<compile_context>
chip_gen: v5e
topology: v5e:2x2
jax: 0.10.0
libtpu: 0.0.40
codegen_flags: <defaults>
</compile_context>

<pallas_src>
import functools

import jax
import jax.numpy as jnp
from jax.experimental import pallas as pl
from jax.experimental.pallas import tpu as pltpu

_NORM_MEAN = (0.332, 0.3219, 0.3267)
_NORM_STD = (0.1922, 0.1739, 0.1801)


# --------------------------------------------------------------------------
# Pallas kernels
# --------------------------------------------------------------------------
def _stem_kernel(xp_ref, w_ref, b_ref, o_ref, *, Ho, Wo, Cin, Cout):
    # 3x3 stride-1 conv with bias (normalization already folded into w/b).
    # xp_ref: (1, Ho+2, Wo+2, Cin) padded bf16 image; w_ref: (9, Cin, Cout) bf16;
    # b_ref: (1, Cout) f32.
    xp = xp_ref[0]
    acc = jnp.zeros((Ho * Wo, Cout), jnp.float32)
    for kh in range(3):
        for kw in range(3):
            xs = xp[kh:kh + Ho, kw:kw + Wo, :].reshape(Ho * Wo, Cin)
            acc = acc + jnp.dot(xs, w_ref[kh * 3 + kw],
                                preferred_element_type=jnp.float32)
    y = acc + b_ref[...]
    o_ref[0] = y.reshape(Ho, Wo, Cout).astype(o_ref.dtype)


def _downblock_kernel(*refs, Ho, Wo, Cin, Cout, head):
    # One fused DownBlock (stride 2) for one image.
    #   parity refs p_ab: (1, Ho+1, Wo+1, Cin) bf16, p_ab[0, i, j] == xpad[2i+a, 2j+b]
    #   w1: (9, Cin, Cout)  wd: (Cin, Cout)  w2: (9, Cout, Cout)   (bf16)
    #   aff: (6, 1, Cout) = [s1, b1, s2, b2, sd, bd] folded BN affines (f32)
    # head=True additionally fuses mean-pool + Linear classifier.
    if head:
        (p00_ref, p01_ref, p10_ref, p11_ref, w1_ref, wd_ref, w2_ref, aff_ref,
         cw_ref, cb_ref, o_ref, hpad_ref) = refs
    else:
        (p00_ref, p01_ref, p10_ref, p11_ref, w1_ref, wd_ref, w2_ref, aff_ref,
         o_ref, hpad_ref) = refs

    M = Ho * Wo
    par = ((p00_ref[0], p01_ref[0]), (p10_ref[0], p11_ref[0]))  # bf16 values

    s1, b1 = aff_ref[0], aff_ref[1]
    s2, b2 = aff_ref[2], aff_ref[3]
    sd, bd = aff_ref[4], aff_ref[5]

    # --- conv1: 3x3 stride-2, tap-wise bf16 MXU matmuls, f32 accumulate ---
    acc1 = jnp.zeros((M, Cout), jnp.float32)
    for kh in range(3):
        for kw in range(3):
            xs = par[kh % 2][kw % 2][kh // 2:kh // 2 + Ho,
                                     kw // 2:kw // 2 + Wo, :]
            acc1 = acc1 + jnp.dot(xs.reshape(M, Cin), w1_ref[kh * 3 + kw],
                                  preferred_element_type=jnp.float32)
    h = jnp.maximum(acc1 * s1 + b1, 0.0)                 # BN1 + ReLU (f32 epilogue)

    # --- fused 1x1 stride-2 downsample (+BN): the center-parity slice ---
    xd = par[1][1][0:Ho, 0:Wo, :].reshape(M, Cin)
    res = jnp.dot(xd, wd_ref[...], preferred_element_type=jnp.float32) * sd + bd

    # --- zero-pad h into a VMEM scratch so conv2 taps are plain static slices.
    # (Full zero-fill each step: scratch persists across grid steps but with
    #  "parallel" batch semantics each core must re-establish its own border.)
    hpad_ref[...] = jnp.zeros((Ho + 2, Wo + 2, Cout), jnp.bfloat16)
    hpad_ref[1:Ho + 1, 1:Wo + 1, :] = h.reshape(Ho, Wo, Cout).astype(jnp.bfloat16)
    hp = hpad_ref[...]

    # --- conv2: 3x3 stride-1 over h ---
    acc2 = jnp.zeros((M, Cout), jnp.float32)
    for kh in range(3):
        for kw in range(3):
            hs = hp[kh:kh + Ho, kw:kw + Wo, :].reshape(M, Cout)
            acc2 = acc2 + jnp.dot(hs, w2_ref[kh * 3 + kw],
                                  preferred_element_type=jnp.float32)
    # block(x) + residual (no ReLU after the add -- matches the PyTorch module)
    y = jnp.maximum(acc2 * s2 + b2, 0.0) + res

    if head:
        # fused global mean-pool + Linear classifier.
        # TODO(synk): torch.nn.Dropout is identity at inference; training-mode
        # random masking is not implemented here.
        pooled = jnp.sum(y, axis=0, keepdims=True) * (1.0 / M)        # (1, Cout)
        logits = jnp.dot(pooled, cw_ref[...],
                         preferred_element_type=jnp.float32) + cb_ref[...]
        o_ref[0] = logits.astype(o_ref.dtype)
    else:
        o_ref[0] = y.reshape(Ho, Wo, Cout).astype(o_ref.dtype)


# --------------------------------------------------------------------------
# Wrappers around pallas_call
# --------------------------------------------------------------------------
def stem_conv_pallas(x, w_taps, bias):
    # x: (B, H, W, Cin) mean-centred input; w_taps: (9, Cin, Cout) (1/std folded in)
    B, H, W, Cin = x.shape
    Cout = w_taps.shape[-1]
    xp = jnp.pad(x, ((0, 0), (1, 1), (1, 1), (0, 0))).astype(jnp.bfloat16)
    kernel = functools.partial(_stem_kernel, Ho=H, Wo=W, Cin=Cin, Cout=Cout)
    return pl.pallas_call(
        kernel,
        out_shape=jax.ShapeDtypeStruct((B, H, W, Cout), jnp.bfloat16),
        grid=(B,),
        in_specs=[
            pl.BlockSpec((1, H + 2, W + 2, Cin), lambda b: (b, 0, 0, 0)),
            pl.BlockSpec((9, Cin, Cout), lambda b: (0, 0, 0)),
            pl.BlockSpec((1, Cout), lambda b: (0, 0)),
        ],
        out_specs=pl.BlockSpec((1, H, W, Cout), lambda b: (b, 0, 0, 0)),
        compiler_params=pltpu.CompilerParams(dimension_semantics=("parallel",)),
    )(xp, w_taps.astype(jnp.bfloat16), bias.reshape(1, Cout).astype(jnp.float32))


def _parity_split(x):
    # zero-pad by 1 and split into the 4 parity phases of the padded image:
    # P[a][b][:, i, j, :] == xpad[:, 2*i + a, 2*j + b, :]
    xp = jnp.pad(x, ((0, 0), (1, 1), (1, 1), (0, 0)))
    return tuple(tuple(xp[:, a::2, b::2, :] for b in range(2)) for a in range(2))


def downblock_pallas(x, w1, wd, w2, aff, cls_w=None, cls_b=None):
    """One fused DownBlock (stride 2).  If cls_w/cls_b are given, also fuses the
    global mean-pool + Linear head and returns (B, 1, n_class) f32 logits."""
    B, H, W, Cin = x.shape
    assert H % 2 == 0 and W % 2 == 0
    Cout = w1.shape[-1]
    Ho, Wo = H // 2, W // 2
    Hh, Wh = Ho + 1, Wo + 1

    p = _parity_split(x.astype(jnp.bfloat16))
    head = cls_w is not None

    par_spec = pl.BlockSpec((1, Hh, Wh, Cin), lambda b: (b, 0, 0, 0))
    in_specs = [par_spec, par_spec, par_spec, par_spec,
                pl.BlockSpec((9, Cin, Cout), lambda b: (0, 0, 0)),
                pl.BlockSpec((Cin, Cout), lambda b: (0, 0)),
                pl.BlockSpec((9, Cout, Cout), lambda b: (0, 0, 0)),
                pl.BlockSpec((6, 1, Cout), lambda b: (0, 0, 0))]
    args = [p[0][0], p[0][1], p[1][0], p[1][1],
            w1.astype(jnp.bfloat16), wd.astype(jnp.bfloat16),
            w2.astype(jnp.bfloat16), aff.astype(jnp.float32)]

    if head:
        n_class = cls_w.shape[-1]
        in_specs += [pl.BlockSpec((Cout, n_class), lambda b: (0, 0)),
                     pl.BlockSpec((1, n_class), lambda b: (0, 0))]
        args += [cls_w.astype(jnp.float32),
                 cls_b.reshape(1, n_class).astype(jnp.float32)]
        out_shape = jax.ShapeDtypeStruct((B, 1, n_class), jnp.float32)
        out_spec = pl.BlockSpec((1, 1, n_class), lambda b: (b, 0, 0))
    else:
        out_shape = jax.ShapeDtypeStruct((B, Ho, Wo, Cout), jnp.bfloat16)
        out_spec = pl.BlockSpec((1, Ho, Wo, Cout), lambda b: (b, 0, 0, 0))

    kernel = functools.partial(_downblock_kernel, Ho=Ho, Wo=Wo,
                               Cin=Cin, Cout=Cout, head=head)
    return pl.pallas_call(
        kernel,
        out_shape=out_shape,
        grid=(B,),
        in_specs=in_specs,
        out_specs=out_spec,
        scratch_shapes=[pltpu.VMEM((Ho + 2, Wo + 2, Cout), jnp.bfloat16)],
        compiler_params=pltpu.CompilerParams(dimension_semantics=("parallel",)),
    )(*args)


# --------------------------------------------------------------------------
# Parameter construction (deterministic, synthetic)
# --------------------------------------------------------------------------
def _conv_w(key, cout, cin, k):
    # PyTorch OIHW weight -> tap-major (k*k, cin, cout) so the kernel indexes
    # one (cin, cout) slice per MXU matmul: w[(kh*k + kw), c, o] = w_torch[o, c, kh, kw]
    w = jax.random.normal(key, (cout, cin, k, k), jnp.float32) / jnp.sqrt(cin * k * k)
    return jnp.transpose(w, (2, 3, 1, 0)).reshape(k * k, cin, cout)


def _bn_params(key, c):
    k1, k2, k3, k4 = jax.random.split(key, 4)
    return dict(
        gamma=jax.random.uniform(k1, (c,), jnp.float32, 0.5, 1.5),
        beta=jax.random.normal(k2, (c,), jnp.float32) * 0.1,
        rmean=jax.random.normal(k3, (c,), jnp.float32) * 0.1,
        rvar=jax.random.uniform(k4, (c,), jnp.float32, 0.5, 1.5),
    )


def _fold_bn(gamma, beta, rmean, rvar, conv_bias=None, eps=1e-5):
    # BatchNorm2d (inference) folded to a per-channel affine: y = z*scale + bias
    scale = gamma / jnp.sqrt(rvar + eps)
    bias = beta - rmean * scale
    if conv_bias is not None:
        bias = bias + conv_bias * scale
    return scale, bias


def init_params(key, layers=(32, 64, 128, 256), n_input_channels=3, n_class=6):
    ki = iter(jax.random.split(key, 64))
    params = {
        "first_w": _conv_w(next(ki), layers[0], n_input_channels, 3),   # (9, 3, 32)
        "first_b": jax.random.normal(next(ki), (layers[0],), jnp.float32) * 0.1,
        "blocks": [],
        "cls_w": jax.random.normal(next(ki), (layers[-1], n_class), jnp.float32)
        / jnp.sqrt(layers[-1]),
        "cls_b": jax.random.normal(next(ki), (n_class,), jnp.float32) * 0.1,
    }
    for cin, cout in zip(layers[:-1], layers[1:]):
        params["blocks"].append(
            dict(
                w1=_conv_w(next(ki), cout, cin, 3),                  # (9, cin, cout)
                bn1=_bn_params(next(ki), cout),
                w2=_conv_w(next(ki), cout, cout, 3),                 # (9, cout, cout)
                bn2=_bn_params(next(ki), cout),
                wd=_conv_w(next(ki), cout, cin, 1).reshape(cin, cout),
                bd=jax.random.normal(next(ki), (cout,), jnp.float32) * 0.1,
                bnd=_bn_params(next(ki), cout),
            )
        )
    return params


# --------------------------------------------------------------------------
# Forward pass (mirrors CNNClassifier.forward, inference mode)
# --------------------------------------------------------------------------
def cnn_classifier_forward(params, x_nchw):
    # x_nchw: (B, 3, H, W) PyTorch layout -> NHWC once.
    x = jnp.transpose(x_nchw, (0, 2, 3, 1)).astype(jnp.float32)
    B = x.shape[0]

    # Normalization folded into the stem conv (exact, incl. the zero-padded
    # border):  conv(W, (x - m)/s) + b == conv(W * (1/s), x - m) + b
    mean = jnp.asarray(_NORM_MEAN, jnp.float32)
    istd = 1.0 / jnp.asarray(_NORM_STD, jnp.float32)
    x = x - mean
    w0 = params["first_w"] * istd[None, :, None]

    # stem: Conv2d(3, layers[0], k=3, pad=1, bias=True); no BN / activation
    y = stem_conv_pallas(x, w0, params["first_b"])

    n_blocks = len(params["blocks"])
    for bi, blk in enumerate(params["blocks"]):
        s1, b1 = _fold_bn(**blk["bn1"])
        s2, b2 = _fold_bn(**blk["bn2"])
        sd, bd = _fold_bn(conv_bias=blk["bd"], **blk["bnd"])
        cout = blk["w1"].shape[-1]
        aff = jnp.stack([s1, b1, s2, b2, sd, bd]).reshape(6, 1, cout)
        if bi == n_blocks - 1:
            # last DownBlock also fuses mean-pool + (dropout=identity) + Linear head
            logits = downblock_pallas(y, blk["w1"], blk["wd"], blk["w2"], aff,
                                      cls_w=params["cls_w"], cls_b=params["cls_b"])
            return logits.reshape(B, -1)
        y = downblock_pallas(y, blk["w1"], blk["wd"], blk["w2"], aff)


if __name__ == "__main__":
    key = jax.random.PRNGKey(0)
    pkey, xkey = jax.random.split(key)
    params = init_params(pkey)
    # small shapes: batch=2, 3 input channels, 16x16 spatial (16 -> 8 -> 4 -> 2)
    x = jax.random.normal(xkey, (2, 3, 16, 16), jnp.float32)

    fwd = jax.jit(cnn_classifier_forward)
    out = fwd(params, x)
    jax.block_until_ready(out)
    assert out.shape == (2, 6) and out.dtype == jnp.float32
    print("KERNEL_OK")
</pallas_src>

<mosaic_0001>
module attributes {stable_mosaic.version = 11 : i64} {
  func.func @_stem_kernel(%arg0: i32, %arg1: memref<1x18x18x3xbf16, #tpu.memory_space<vmem>>, %arg2: memref<9x3x32xbf16, #tpu.memory_space<vmem>>, %arg3: memref<1x32xf32, #tpu.memory_space<vmem>>, %arg4: memref<1x16x16x32xbf16, #tpu.memory_space<vmem>>) attributes {dimension_semantics = [#tpu.dimension_semantics<parallel>], iteration_bounds = array<i64: 2>, scalar_prefetch = 0 : i64, scratch_operands = 0 : i64, tpu.core_type = #tpu.core_type<tc>, window_params = [{transform_indices = @transform_0, window_bounds = array<i64: 1, 18, 18, 3>}, {pipeline_mode = #tpu.pipeline_mode<synchronous>, transform_indices = @transform_1, window_bounds = array<i64: 9, 3, 32>}, {pipeline_mode = #tpu.pipeline_mode<synchronous>, transform_indices = @transform_2, window_bounds = array<i64: 1, 32>}, {transform_indices = @transform_3, window_bounds = array<i64: 1, 16, 16, 32>}]} {
    %c0 = arith.constant 0 : index
    %c0_0 = arith.constant 0 : index
    %c0_1 = arith.constant 0 : index
    %c0_2 = arith.constant 0 : index
    %0 = vector.load %arg1[%c0, %c0_0, %c0_1, %c0_2] : memref<1x18x18x3xbf16, #tpu.memory_space<vmem>>, vector<1x18x18x3xbf16>
    %1 = vector.shape_cast %0 : vector<1x18x18x3xbf16> to vector<18x18x3xbf16>
    %cst = arith.constant 0.000000e+00 : f32
    %2 = vector.broadcast %cst : f32 to vector<256x32xf32>
    %3 = vector.extract_strided_slice %1 {offsets = [0, 0, 0], sizes = [16, 16, 3], strides = [1, 1, 1]} : vector<18x18x3xbf16> to vector<16x16x3xbf16>
    %4 = vector.shape_cast %3 : vector<16x16x3xbf16> to vector<256x3xbf16>
    %c0_3 = arith.constant 0 : index
    %c0_4 = arith.constant 0 : index
    %c0_5 = arith.constant 0 : index
    %5 = vector.load %arg2[%c0_3, %c0_4, %c0_5] : memref<9x3x32xbf16, #tpu.memory_space<vmem>>, vector<1x3x32xbf16>
    %6 = vector.shape_cast %5 : vector<1x3x32xbf16> to vector<3x32xbf16>
    %cst_6 = arith.constant dense<0.000000e+00> : vector<256x32xf32>
    %7 = tpu.matmul %4, %6, %cst_6 {dimension_numbers = #tpu.dot_dimension_numbers<[1], [0], [0], [1], [0, 0, 1, 1], [], []>} : vector<256x3xbf16>, vector<3x32xbf16>, vector<256x32xf32> -> vector<256x32xf32>
    %8 = arith.addf %2, %7 : vector<256x32xf32>
    %9 = vector.extract_strided_slice %1 {offsets = [0, 1, 0], sizes = [16, 16, 3], strides = [1, 1, 1]} : vector<18x18x3xbf16> to vector<16x16x3xbf16>
    %10 = vector.shape_cast %9 : vector<16x16x3xbf16> to vector<256x3xbf16>
    %c1 = arith.constant 1 : index
    %c0_7 = arith.constant 0 : index
    %c0_8 = arith.constant 0 : index
    %11 = vector.load %arg2[%c1, %c0_7, %c0_8] : memref<9x3x32xbf16, #tpu.memory_space<vmem>>, vector<1x3x32xbf16>
    %12 = vector.shape_cast %11 : vector<1x3x32xbf16> to vector<3x32xbf16>
    %cst_9 = arith.constant dense<0.000000e+00> : vector<256x32xf32>
    %13 = tpu.matmul %10, %12, %cst_9 {dimension_numbers = #tpu.dot_dimension_numbers<[1], [0], [0], [1], [0, 0, 1, 1], [], []>} : vector<256x3xbf16>, vector<3x32xbf16>, vector<256x32xf32> -> vector<256x32xf32>
    %14 = arith.addf %8, %13 : vector<256x32xf32>
    %15 = vector.extract_strided_slice %1 {offsets = [0, 2, 0], sizes = [16, 16, 3], strides = [1, 1, 1]} : vector<18x18x3xbf16> to vector<16x16x3xbf16>
    %16 = vector.shape_cast %15 : vector<16x16x3xbf16> to vector<256x3xbf16>
    %c2 = arith.constant 2 : index
    %c0_10 = arith.constant 0 : index
    %c0_11 = arith.constant 0 : index
    %17 = vector.load %arg2[%c2, %c0_10, %c0_11] : memref<9x3x32xbf16, #tpu.memory_space<vmem>>, vector<1x3x32xbf16>
    %18 = vector.shape_cast %17 : vector<1x3x32xbf16> to vector<3x32xbf16>
    %cst_12 = arith.constant dense<0.000000e+00> : vector<256x32xf32>
    %19 = tpu.matmul %16, %18, %cst_12 {dimension_numbers = #tpu.dot_dimension_numbers<[1], [0], [0], [1], [0, 0, 1, 1], [], []>} : vector<256x3xbf16>, vector<3x32xbf16>, vector<256x32xf32> -> vector<256x32xf32>
    %20 = arith.addf %14, %19 : vector<256x32xf32>
    %21 = vector.extract_strided_slice %1 {offsets = [1, 0, 0], sizes = [16, 16, 3], strides = [1, 1, 1]} : vector<18x18x3xbf16> to vector<16x16x3xbf16>
    %22 = vector.shape_cast %21 : vector<16x16x3xbf16> to vector<256x3xbf16>
    %c3 = arith.constant 3 : index
    %c0_13 = arith.constant 0 : index
    %c0_14 = arith.constant 0 : index
    %23 = vector.load %arg2[%c3, %c0_13, %c0_14] : memref<9x3x32xbf16, #tpu.memory_space<vmem>>, vector<1x3x32xbf16>
    %24 = vector.shape_cast %23 : vector<1x3x32xbf16> to vector<3x32xbf16>
    %cst_15 = arith.constant dense<0.000000e+00> : vector<256x32xf32>
    %25 = tpu.matmul %22, %24, %cst_15 {dimension_numbers = #tpu.dot_dimension_numbers<[1], [0], [0], [1], [0, 0, 1, 1], [], []>} : vector<256x3xbf16>, vector<3x32xbf16>, vector<256x32xf32> -> vector<256x32xf32>
    %26 = arith.addf %20, %25 : vector<256x32xf32>
    %27 = vector.extract_strided_slice %1 {offsets = [1, 1, 0], sizes = [16, 16, 3], strides = [1, 1, 1]} : vector<18x18x3xbf16> to vector<16x16x3xbf16>
    %28 = vector.shape_cast %27 : vector<16x16x3xbf16> to vector<256x3xbf16>
    %c4 = arith.constant 4 : index
    %c0_16 = arith.constant 0 : index
    %c0_17 = arith.constant 0 : index
    %29 = vector.load %arg2[%c4, %c0_16, %c0_17] : memref<9x3x32xbf16, #tpu.memory_space<vmem>>, vector<1x3x32xbf16>
    %30 = vector.shape_cast %29 : vector<1x3x32xbf16> to vector<3x32xbf16>
    %cst_18 = arith.constant dense<0.000000e+00> : vector<256x32xf32>
    %31 = tpu.matmul %28, %30, %cst_18 {dimension_numbers = #tpu.dot_dimension_numbers<[1], [0], [0], [1], [0, 0, 1, 1], [], []>} : vector<256x3xbf16>, vector<3x32xbf16>, vector<256x32xf32> -> vector<256x32xf32>
    %32 = arith.addf %26, %31 : vector<256x32xf32>
    %33 = vector.extract_strided_slice %1 {offsets = [1, 2, 0], sizes = [16, 16, 3], strides = [1, 1, 1]} : vector<18x18x3xbf16> to vector<16x16x3xbf16>
    %34 = vector.shape_cast %33 : vector<16x16x3xbf16> to vector<256x3xbf16>
    %c5 = arith.constant 5 : index
    %c0_19 = arith.constant 0 : index
    %c0_20 = arith.constant 0 : index
    %35 = vector.load %arg2[%c5, %c0_19, %c0_20] : memref<9x3x32xbf16, #tpu.memory_space<vmem>>, vector<1x3x32xbf16>
    %36 = vector.shape_cast %35 : vector<1x3x32xbf16> to vector<3x32xbf16>
    %cst_21 = arith.constant dense<0.000000e+00> : vector<256x32xf32>
    %37 = tpu.matmul %34, %36, %cst_21 {dimension_numbers = #tpu.dot_dimension_numbers<[1], [0], [0], [1], [0, 0, 1, 1], [], []>} : vector<256x3xbf16>, vector<3x32xbf16>, vector<256x32xf32> -> vector<256x32xf32>
    %38 = arith.addf %32, %37 : vector<256x32xf32>
    %39 = vector.extract_strided_slice %1 {offsets = [2, 0, 0], sizes = [16, 16, 3], strides = [1, 1, 1]} : vector<18x18x3xbf16> to vector<16x16x3xbf16>
    %40 = vector.shape_cast %39 : vector<16x16x3xbf16> to vector<256x3xbf16>
    %c6 = arith.constant 6 : index
    %c0_22 = arith.constant 0 : index
    %c0_23 = arith.constant 0 : index
    %41 = vector.load %arg2[%c6, %c0_22, %c0_23] : memref<9x3x32xbf16, #tpu.memory_space<vmem>>, vector<1x3x32xbf16>
    %42 = vector.shape_cast %41 : vector<1x3x32xbf16> to vector<3x32xbf16>
    %cst_24 = arith.constant dense<0.000000e+00> : vector<256x32xf32>
    %43 = tpu.matmul %40, %42, %cst_24 {dimension_numbers = #tpu.dot_dimension_numbers<[1], [0], [0], [1], [0, 0, 1, 1], [], []>} : vector<256x3xbf16>, vector<3x32xbf16>, vector<256x32xf32> -> vector<256x32xf32>
    %44 = arith.addf %38, %43 : vector<256x32xf32>
    %45 = vector.extract_strided_slice %1 {offsets = [2, 1, 0], sizes = [16, 16, 3], strides = [1, 1, 1]} : vector<18x18x3xbf16> to vector<16x16x3xbf16>
    %46 = vector.shape_cast %45 : vector<16x16x3xbf16> to vector<256x3xbf16>
    %c7 = arith.constant 7 : index
    %c0_25 = arith.constant 0 : index
    %c0_26 = arith.constant 0 : index
    %47 = vector.load %arg2[%c7, %c0_25, %c0_26] : memref<9x3x32xbf16, #tpu.memory_space<vmem>>, vector<1x3x32xbf16>
    %48 = vector.shape_cast %47 : vector<1x3x32xbf16> to vector<3x32xbf16>
    %cst_27 = arith.constant dense<0.000000e+00> : vector<256x32xf32>
    %49 = tpu.matmul %46, %48, %cst_27 {dimension_numbers = #tpu.dot_dimension_numbers<[1], [0], [0], [1], [0, 0, 1, 1], [], []>} : vector<256x3xbf16>, vector<3x32xbf16>, vector<256x32xf32> -> vector<256x32xf32>
    %50 = arith.addf %44, %49 : vector<256x32xf32>
    %51 = vector.extract_strided_slice %1 {offsets = [2, 2, 0], sizes = [16, 16, 3], strides = [1, 1, 1]} : vector<18x18x3xbf16> to vector<16x16x3xbf16>
    %52 = vector.shape_cast %51 : vector<16x16x3xbf16> to vector<256x3xbf16>
    %c8 = arith.constant 8 : index
    %c0_28 = arith.constant 0 : index
    %c0_29 = arith.constant 0 : index
    %53 = vector.load %arg2[%c8, %c0_28, %c0_29] : memref<9x3x32xbf16, #tpu.memory_space<vmem>>, vector<1x3x32xbf16>
    %54 = vector.shape_cast %53 : vector<1x3x32xbf16> to vector<3x32xbf16>
    %cst_30 = arith.constant dense<0.000000e+00> : vector<256x32xf32>
    %55 = tpu.matmul %52, %54, %cst_30 {dimension_numbers = #tpu.dot_dimension_numbers<[1], [0], [0], [1], [0, 0, 1, 1], [], []>} : vector<256x3xbf16>, vector<3x32xbf16>, vector<256x32xf32> -> vector<256x32xf32>
    %56 = arith.addf %50, %55 : vector<256x32xf32>
    %c0_31 = arith.constant 0 : index
    %c0_32 = arith.constant 0 : index
    %57 = vector.load %arg3[%c0_31, %c0_32] : memref<1x32xf32, #tpu.memory_space<vmem>>, vector<1x32xf32>
    %58 = vector.broadcast %57 : vector<1x32xf32> to vector<256x32xf32>
    %59 = arith.addf %56, %58 : vector<256x32xf32>
    %60 = vector.shape_cast %59 : vector<256x32xf32> to vector<16x16x32xf32>
    %61 = arith.truncf %60 : vector<16x16x32xf32> to vector<16x16x32xbf16>
    %c0_33 = arith.constant 0 : index
    %c0_34 = arith.constant 0 : index
    %c0_35 = arith.constant 0 : index
    %c0_36 = arith.constant 0 : index
    %62 = vector.load %arg4[%c0_33, %c0_34, %c0_35, %c0_36] : memref<1x16x16x32xbf16, #tpu.memory_space<vmem>>, vector<1x16x16x32xbf16>
    %63 = vector.shape_cast %62 : vector<1x16x16x32xbf16> to vector<16x16x32xbf16>
    %64 = vector.shape_cast %61 : vector<16x16x32xbf16> to vector<1x16x16x32xbf16>
    tpu.vector_store %arg4[%c0_33, %c0_34, %c0_35, %c0_36], %64 {strides = array<i32>} : memref<1x16x16x32xbf16, #tpu.memory_space<vmem>>, vector<1x16x16x32xbf16>,
    return
  }
  func.func @transform_0(%arg0: i32) -> (i32, i32, i32, i32) {
    %c0_i32 = arith.constant 0 : i32
    %c0_i32_0 = arith.constant 0 : i32
    %c0_i32_1 = arith.constant 0 : i32
    %c0_i32_2 = arith.constant 0 : i32
    return %arg0, %c0_i32, %c0_i32_0, %c0_i32_1 : i32, i32, i32, i32
  }
  func.func @transform_1(%arg0: i32) -> (i32, i32, i32) {
    %c0_i32 = arith.constant 0 : i32
    %c0_i32_0 = arith.constant 0 : i32
    %c0_i32_1 = arith.constant 0 : i32
    %c0_i32_2 = arith.constant 0 : i32
    return %c0_i32, %c0_i32_0, %c0_i32_1 : i32, i32, i32
  }
  func.func @transform_2(%arg0: i32) -> (i32, i32) {
    %c0_i32 = arith.constant 0 : i32
    %c0_i32_0 = arith.constant 0 : i32
    %c0_i32_1 = arith.constant 0 : i32
    return %c0_i32, %c0_i32_0 : i32, i32
  }
  func.func @transform_3(%arg0: i32) -> (i32, i32, i32, i32) {
    %c0_i32 = arith.constant 0 : i32
    %c0_i32_0 = arith.constant 0 : i32
    %c0_i32_1 = arith.constant 0 : i32
    %c0_i32_2 = arith.constant 0 : i32
    return %arg0, %c0_i32, %c0_i32_0, %c0_i32_1 : i32, i32, i32, i32
  }
}

module attributes {stable_mosaic.version = 11 : i64} {
  func.func @_downblock_kernel(%arg0: i32, %arg1: memref<1x9x9x32xbf16, #tpu.memory_space<vmem>>, %arg2: memref<1x9x9x32xbf16, #tpu.memory_space<vmem>>, %arg3: memref<1x9x9x32xbf16, #tpu.memory_space<vmem>>, %arg4: memref<1x9x9x32xbf16, #tpu.memory_space<vmem>>, %arg5: memref<9x32x64xbf16, #tpu.memory_space<vmem>>, %arg6: memref<32x64xbf16, #tpu.memory_space<vmem>>, %arg7: memref<9x64x64xbf16, #tpu.memory_space<vmem>>, %arg8: memref<6x1x64xf32, #tpu.memory_space<vmem>>, %arg9: memref<1x8x8x64xbf16, #tpu.memory_space<vmem>>, %arg10: memref<10x10x64xbf16, #tpu.memory_space<vmem>>) attributes {dimension_semantics = [#tpu.dimension_semantics<parallel>], iteration_bounds = array<i64: 2>, scalar_prefetch = 0 : i64, scratch_operands = 1 : i64, tpu.core_type = #tpu.core_type<tc>, window_params = [{transform_indices = @transform_0, window_bounds = array<i64: 1, 9, 9, 32>}, {transform_indices = @transform_1, window_bounds = array<i64: 1, 9, 9, 32>}, {transform_indices = @transform_2, window_bounds = array<i64: 1, 9, 9, 32>}, {transform_indices = @transform_3, window_bounds = array<i64: 1, 9, 9, 32>}, {pipeline_mode = #tpu.pipeline_mode<synchronous>, transform_indices = @transform_4, window_bounds = array<i64: 9, 32, 64>}, {pipeline_mode = #tpu.pipeline_mode<synchronous>, transform_indices = @transform_5, window_bounds = array<i64: 32, 64>}, {pipeline_mode = #tpu.pipeline_mode<synchronous>, transform_indices = @transform_6, window_bounds = array<i64: 9, 64, 64>}, {pipeline_mode = #tpu.pipeline_mode<synchronous>, transform_indices = @transform_7, window_bounds = array<i64: 6, 1, 64>}, {transform_indices = @transform_8, window_bounds = array<i64: 1, 8, 8, 64>}]} {
    %c0 = arith.constant 0 : index
    %c0_0 = arith.constant 0 : index
    %c0_1 = arith.constant 0 : index
    %c0_2 = arith.constant 0 : index
    %0 = vector.load %arg1[%c0, %c0_0, %c0_1, %c0_2] : memref<1x9x9x32xbf16, #tpu.memory_space<vmem>>, vector<1x9x9x32xbf16>
    %1 = vector.shape_cast %0 : vector<1x9x9x32xbf16> to vector<9x9x32xbf16>
    %c0_3 = arith.constant 0 : index
    %c0_4 = arith.constant 0 : index
    %c0_5 = arith.constant 0 : index
    %c0_6 = arith.constant 0 : index
    %2 = vector.load %arg2[%c0_3, %c0_4, %c0_5, %c0_6] : memref<1x9x9x32xbf16, #tpu.memory_space<vmem>>, vector<1x9x9x32xbf16>
    %3 = vector.shape_cast %2 : vector<1x9x9x32xbf16> to vector<9x9x32xbf16>
    %c0_7 = arith.constant 0 : index
    %c0_8 = arith.constant 0 : index
    %c0_9 = arith.constant 0 : index
    %c0_10 = arith.constant 0 : index
    %4 = vector.load %arg3[%c0_7, %c0_8, %c0_9, %c0_10] : memref<1x9x9x32xbf16, #tpu.memory_space<vmem>>, vector<1x9x9x32xbf16>
    %5 = vector.shape_cast %4 : vector<1x9x9x32xbf16> to vector<9x9x32xbf16>
    %c0_11 = arith.constant 0 : index
    %c0_12 = arith.constant 0 : index
    %c0_13 = arith.constant 0 : index
    %c0_14 = arith.constant 0 : index
    %6 = vector.load %arg4[%c0_11, %c0_12, %c0_13, %c0_14] : memref<1x9x9x32xbf16, #tpu.memory_space<vmem>>, vector<1x9x9x32xbf16>
    %7 = vector.shape_cast %6 : vector<1x9x9x32xbf16> to vector<9x9x32xbf16>
    %c0_15 = arith.constant 0 : index
    %c0_16 = arith.constant 0 : index
    %c0_17 = arith.constant 0 : index
    %8 = vector.load %arg8[%c0_15, %c0_16, %c0_17] : memref<6x1x64xf32, #tpu.memory_space<vmem>>, vector<1x1x64xf32>
    %9 = vector.shape_cast %8 : vector<1x1x64xf32> to vector<1x64xf32>
    %c1 = arith.constant 1 : index
    %c0_18 = arith.constant 0 : index
    %c0_19 = arith.constant 0 : index
    %10 = vector.load %arg8[%c1, %c0_18, %c0_19] : memref<6x1x64xf32, #tpu.memory_space<vmem>>, vector<1x1x64xf32>
    %11 = vector.shape_cast %10 : vector<1x1x64xf32> to vector<1x64xf32>
    %c2 = arith.constant 2 : index
    %c0_20 = arith.constant 0 : index
    %c0_21 = arith.constant 0 : index
    %12 = vector.load %arg8[%c2, %c0_20, %c0_21] : memref<6x1x64xf32, #tpu.memory_space<vmem>>, vector<1x1x64xf32>
    %13 = vector.shape_cast %12 : vector<1x1x64xf32> to vector<1x64xf32>
    %c3 = arith.constant 3 : index
    %c0_22 = arith.constant 0 : index
    %c0_23 = arith.constant 0 : index
    %14 = vector.load %arg8[%c3, %c0_22, %c0_23] : memref<6x1x64xf32, #tpu.memory_space<vmem>>, vector<1x1x64xf32>
    %15 = vector.shape_cast %14 : vector<1x1x64xf32> to vector<1x64xf32>
    %c4 = arith.constant 4 : index
    %c0_24 = arith.constant 0 : index
    %c0_25 = arith.constant 0 : index
    %16 = vector.load %arg8[%c4, %c0_24, %c0_25] : memref<6x1x64xf32, #tpu.memory_space<vmem>>, vector<1x1x64xf32>
    %17 = vector.shape_cast %16 : vector<1x1x64xf32> to vector<1x64xf32>
    %c5 = arith.constant 5 : index
    %c0_26 = arith.constant 0 : index
    %c0_27 = arith.constant 0 : index
    %18 = vector.load %arg8[%c5, %c0_26, %c0_27] : memref<6x1x64xf32, #tpu.memory_space<vmem>>, vector<1x1x64xf32>
    %19 = vector.shape_cast %18 : vector<1x1x64xf32> to vector<1x64xf32>
    %cst = arith.constant 0.000000e+00 : f32
    %20 = vector.broadcast %cst : f32 to vector<64x64xf32>
    %21 = vector.extract_strided_slice %1 {offsets = [0, 0, 0], sizes = [8, 8, 32], strides = [1, 1, 1]} : vector<9x9x32xbf16> to vector<8x8x32xbf16>
    %22 = vector.shape_cast %21 : vector<8x8x32xbf16> to vector<64x32xbf16>
    %c0_28 = arith.constant 0 : index
    %c0_29 = arith.constant 0 : index
    %c0_30 = arith.constant 0 : index
    %23 = vector.load %arg5[%c0_28, %c0_29, %c0_30] : memref<9x32x64xbf16, #tpu.memory_space<vmem>>, vector<1x32x64xbf16>
    %24 = vector.shape_cast %23 : vector<1x32x64xbf16> to vector<32x64xbf16>
    %cst_31 = arith.constant dense<0.000000e+00> : vector<64x64xf32>
    %25 = tpu.matmul %22, %24, %cst_31 {dimension_numbers = #tpu.dot_dimension_numbers<[1], [0], [0], [1], [0, 0, 1, 1], [], []>} : vector<64x32xbf16>, vector<32x64xbf16>, vector<64x64xf32> -> vector<64x64xf32>
    %26 = arith.addf %20, %25 : vector<64x64xf32>
    %27 = vector.extract_strided_slice %3 {offsets = [0, 0, 0], sizes = [8, 8, 32], strides = [1, 1, 1]} : vector<9x9x32xbf16> to vector<8x8x32xbf16>
    %28 = vector.shape_cast %27 : vector<8x8x32xbf16> to vector<64x32xbf16>
    %c1_32 = arith.constant 1 : index
    %c0_33 = arith.constant 0 : index
    %c0_34 = arith.constant 0 : index
    %29 = vector.load %arg5[%c1_32, %c0_33, %c0_34] : memref<9x32x64xbf16, #tpu.memory_space<vmem>>, vector<1x32x64xbf16>
    %30 = vector.shape_cast %29 : vector<1x32x64xbf16> to vector<32x64xbf16>
    %cst_35 = arith.constant dense<0.000000e+00> : vector<64x64xf32>
    %31 = tpu.matmul %28, %30, %cst_35 {dimension_numbers = #tpu.dot_dimension_numbers<[1], [0], [0], [1], [0, 0, 1, 1], [], []>} : vector<64x32xbf16>, vector<32x64xbf16>, vector<64x64xf32> -> vector<64x64xf32>
    %32 = arith.addf %26, %31 : vector<64x64xf32>
    %33 = vector.extract_strided_slice %1 {offsets = [0, 1, 0], sizes = [8, 8, 32], strides = [1, 1, 1]} : vector<9x9x32xbf16> to vector<8x8x32xbf16>
    %34 = vector.shape_cast %33 : vector<8x8x32xbf16> to vector<64x32xbf16>
    %c2_36 = arith.constant 2 : index
    %c0_37 = arith.constant 0 : index
    %c0_38 = arith.constant 0 : index
    %35 = vector.load %arg5[%c2_36, %c0_37, %c0_38] : memref<9x32x64xbf16, #tpu.memory_space<vmem>>, vector<1x32x64xbf16>
    %36 = vector.shape_cast %35 : vector<1x32x64xbf16> to vector<32x64xbf16>
    %cst_39 = arith.constant dense<0.000000e+00> : vector<64x64xf32>
    %37 = tpu.matmul %34, %36, %cst_39 {dimension_numbers = #tpu.dot_dimension_numbers<[1], [0], [0], [1], [0, 0, 1, 1], [], []>} : vector<64x32xbf16>, vector<32x64xbf16>, vector<64x64xf32> -> vector<64x64xf32>
    %38 = arith.addf %32, %37 : vector<64x64xf32>
    %39 = vector.extract_strided_slice %5 {offsets = [0, 0, 0], sizes = [8, 8, 32], strides = [1, 1, 1]} : vector<9x9x32xbf16> to vector<8x8x32xbf16>
    %40 = vector.shape_cast %39 : vector<8x8x32xbf16> to vector<64x32xbf16>
    %c3_40 = arith.constant 3 : index
    %c0_41 = arith.constant 0 : index
    %c0_42 = arith.constant 0 : index
    %41 = vector.load %arg5[%c3_40, %c0_41, %c0_42] : memref<9x32x64xbf16, #tpu.memory_space<vmem>>, vector<1x32x64xbf16>
    %42 = vector.shape_cast %41 : vector<1x32x64xbf16> to vector<32x64xbf16>
    %cst_43 = arith.constant dense<0.000000e+00> : vector<64x64xf32>
    %43 = tpu.matmul %40, %42, %cst_43 {dimension_numbers = #tpu.dot_dimension_numbers<[1], [0], [0], [1], [0, 0, 1, 1], [], []>} : vector<64x32xbf16>, vector<32x64xbf16>, vector<64x64xf32> -> vector<64x64xf32>
    %44 = arith.addf %38, %43 : vector<64x64xf32>
    %45 = vector.extract_strided_slice %7 {offsets = [0, 0, 0], sizes = [8, 8, 32], strides = [1, 1, 1]} : vector<9x9x32xbf16> to vector<8x8x32xbf16>
    %46 = vector.shape_cast %45 : vector<8x8x32xbf16> to vector<64x32xbf16>
    %c4_44 = arith.constant 4 : index
    %c0_45 = arith.constant 0 : index
    %c0_46 = arith.constant 0 : index
    %47 = vector.load %arg5[%c4_44, %c0_45, %c0_46] : memref<9x32x64xbf16, #tpu.memory_space<vmem>>, vector<1x32x64xbf16>
    %48 = vector.shape_cast %47 : vector<1x32x64xbf16> to vector<32x64xbf16>
    %cst_47 = arith.constant dense<0.000000e+00> : vector<64x64xf32>
    %49 = tpu.matmul %46, %48, %cst_47 {dimension_numbers = #tpu.dot_dimension_numbers<[1], [0], [0], [1], [0, 0, 1, 1], [], []>} : vector<64x32xbf16>, vector<32x64xbf16>, vector<64x64xf32> -> vector<64x64xf32>
    %50 = arith.addf %44, %49 : vector<64x64xf32>
    %51 = vector.extract_strided_slice %5 {offsets = [0, 1, 0], sizes = [8, 8, 32], strides = [1, 1, 1]} : vector<9x9x32xbf16> to vector<8x8x32xbf16>
    %52 = vector.shape_cast %51 : vector<8x8x32xbf16> to vector<64x32xbf16>
    %c5_48 = arith.constant 5 : index
    %c0_49 = arith.constant 0 : index
    %c0_50 = arith.constant 0 : index
    %53 = vector.load %arg5[%c5_48, %c0_49, %c0_50] : memref<9x32x64xbf16, #tpu.memory_space<vmem>>, vector<1x32x64xbf16>
    %54 = vector.shape_cast %53 : vector<1x32x64xbf16> to vector<32x64xbf16>
    %cst_51 = arith.constant dense<0.000000e+00> : vector<64x64xf32>
    %55 = tpu.matmul %52, %54, %cst_51 {dimension_numbers = #tpu.dot_dimension_numbers<[1], [0], [0], [1], [0, 0, 1, 1], [], []>} : vector<64x32xbf16>, vector<32x64xbf16>, vector<64x64xf32> -> vector<64x64xf32>
    %56 = arith.addf %50, %55 : vector<64x64xf32>
    %57 = vector.extract_strided_slice %1 {offsets = [1, 0, 0], sizes = [8, 8, 32], strides = [1, 1, 1]} : vector<9x9x32xbf16> to vector<8x8x32xbf16>
    %58 = vector.shape_cast %57 : vector<8x8x32xbf16> to vector<64x32xbf16>
    %c6 = arith.constant 6 : index
    %c0_52 = arith.constant 0 : index
    %c0_53 = arith.constant 0 : index
    %59 = vector.load %arg5[%c6, %c0_52, %c0_53] : memref<9x32x64xbf16, #tpu.memory_space<vmem>>, vector<1x32x64xbf16>
    %60 = vector.shape_cast %59 : vector<1x32x64xbf16> to vector<32x64xbf16>
    %cst_54 = arith.constant dense<0.000000e+00> : vector<64x64xf32>
    %61 = tpu.matmul %58, %60, %cst_54 {dimension_numbers = #tpu.dot_dimension_numbers<[1], [0], [0], [1], [0, 0, 1, 1], [], []>} : vector<64x32xbf16>, vector<32x64xbf16>, vector<64x64xf32> -> vector<64x64xf32>
    %62 = arith.addf %56, %61 : vector<64x64xf32>
    %63 = vector.extract_strided_slice %3 {offsets = [1, 0, 0], sizes = [8, 8, 32], strides = [1, 1, 1]} : vector<9x9x32xbf16> to vector<8x8x32xbf16>
    %64 = vector.shape_cast %63 : vector<8x8x32xbf16> to vector<64x32xbf16>
    %c7 = arith.constant 7 : index
    %c0_55 = arith.constant 0 : index
    %c0_56 = arith.constant 0 : index
    %65 = vector.load %arg5[%c7, %c0_55, %c0_56] : memref<9x32x64xbf16, #tpu.memory_space<vmem>>, vector<1x32x64xbf16>
    %66 = vector.shape_cast %65 : vector<1x32x64xbf16> to vector<32x64xbf16>
    %cst_57 = arith.constant dense<0.000000e+00> : vector<64x64xf32>
    %67 = tpu.matmul %64, %66, %cst_57 {dimension_numbers = #tpu.dot_dimension_numbers<[1], [0], [0], [1], [0, 0, 1, 1], [], []>} : vector<64x32xbf16>, vector<32x64xbf16>, vector<64x64xf32> -> vector<64x64xf32>
    %68 = arith.addf %62, %67 : vector<64x64xf32>
    %69 = vector.extract_strided_slice %1 {offsets = [1, 1, 0], sizes = [8, 8, 32], strides = [1, 1, 1]} : vector<9x9x32xbf16> to vector<8x8x32xbf16>
    %70 = vector.shape_cast %69 : vector<8x8x32xbf16> to vector<64x32xbf16>
    %c8 = arith.constant 8 : index
    %c0_58 = arith.constant 0 : index
    %c0_59 = arith.constant 0 : index
    %71 = vector.load %arg5[%c8, %c0_58, %c0_59] : memref<9x32x64xbf16, #tpu.memory_space<vmem>>, vector<1x32x64xbf16>
    %72 = vector.shape_cast %71 : vector<1x32x64xbf16> to vector<32x64xbf16>
    %cst_60 = arith.constant dense<0.000000e+00> : vector<64x64xf32>
    %73 = tpu.matmul %70, %72, %cst_60 {dimension_numbers = #tpu.dot_dimension_numbers<[1], [0], [0], [1], [0, 0, 1, 1], [], []>} : vector<64x32xbf16>, vector<32x64xbf16>, vector<64x64xf32> -> vector<64x64xf32>
    %74 = arith.addf %68, %73 : vector<64x64xf32>
    %75 = vector.broadcast %9 : vector<1x64xf32> to vector<64x64xf32>
    %76 = arith.mulf %74, %75 : vector<64x64xf32>
    %77 = vector.broadcast %11 : vector<1x64xf32> to vector<64x64xf32>
    %78 = arith.addf %76, %77 : vector<64x64xf32>
    %cst_61 = arith.constant 0.000000e+00 : f32
    %79 = vector.broadcast %cst_61 : f32 to vector<64x64xf32>
    %80 = arith.maximumf %78, %79 : vector<64x64xf32>
    %81 = vector.extract_strided_slice %7 {offsets = [0, 0, 0], sizes = [8, 8, 32], strides = [1, 1, 1]} : vector<9x9x32xbf16> to vector<8x8x32xbf16>
    %82 = vector.shape_cast %81 : vector<8x8x32xbf16> to vector<64x32xbf16>
    %c0_62 = arith.constant 0 : index
    %c0_63 = arith.constant 0 : index
    %83 = vector.load %arg6[%c0_62, %c0_63] : memref<32x64xbf16, #tpu.memory_space<vmem>>, vector<32x64xbf16>
    %cst_64 = arith.constant dense<0.000000e+00> : vector<64x64xf32>
    %84 = tpu.matmul %82, %83, %cst_64 {dimension_numbers = #tpu.dot_dimension_numbers<[1], [0], [0], [1], [0, 0, 1, 1], [], []>} : vector<64x32xbf16>, vector<32x64xbf16>, vector<64x64xf32> -> vector<64x64xf32>
    %85 = vector.broadcast %17 : vector<1x64xf32> to vector<64x64xf32>
    %86 = arith.mulf %84, %85 : vector<64x64xf32>
    %87 = vector.broadcast %19 : vector<1x64xf32> to vector<64x64xf32>
    %88 = arith.addf %86, %87 : vector<64x64xf32>
    %cst_65 = arith.constant 0.000000e+00 : bf16
    %89 = vector.broadcast %cst_65 : bf16 to vector<10x10x64xbf16>
    %c0_66 = arith.constant 0 : index
    %c0_67 = arith.constant 0 : index
    %c0_68 = arith.constant 0 : index
    %90 = vector.load %arg10[%c0_66, %c0_67, %c0_68] : memref<10x10x64xbf16, #tpu.memory_space<vmem>>, vector<10x10x64xbf16>
    tpu.vector_store %arg10[%c0_66, %c0_67, %c0_68], %89 {strides = array<i32>} : memref<10x10x64xbf16, #tpu.memory_space<vmem>>, vector<10x10x64xbf16>,
    %91 = vector.shape_cast %80 : vector<64x64xf32> to vector<8x8x64xf32>
    %92 = arith.truncf %91 : vector<8x8x64xf32> to vector<8x8x64xbf16>
    %c1_69 = arith.constant 1 : index
    %c1_70 = arith.constant 1 : index
    %c0_71 = arith.constant 0 : index
    %93 = vector.load %arg10[%c1_69, %c1_70, %c0_71] : memref<10x10x64xbf16, #tpu.memory_space<vmem>>, vector<8x8x64xbf16>
    tpu.vector_store %arg10[%c1_69, %c1_70, %c0_71], %92 {strides = array<i32>} : memref<10x10x64xbf16, #tpu.memory_space<vmem>>, vector<8x8x64xbf16>,
    %c0_72 = arith.constant 0 : index
    %c0_73 = arith.constant 0 : index
    %c0_74 = arith.constant 0 : index
    %94 = vector.load %arg10[%c0_72, %c0_73, %c0_74] : memref<10x10x64xbf16, #tpu.memory_space<vmem>>, vector<10x10x64xbf16>
    %cst_75 = arith.constant 0.000000e+00 : f32
    %95 = vector.broadcast %cst_75 : f32 to vector<64x64xf32>
    %96 = vector.extract_strided_slice %94 {offsets = [0, 0, 0], sizes = [8, 8, 64], strides = [1, 1, 1]} : vector<10x10x64xbf16> to vector<8x8x64xbf16>
    %97 = vector.shape_cast %96 : vector<8x8x64xbf16> to vector<64x64xbf16>
    %c0_76 = arith.constant 0 : index
    %c0_77 = arith.constant 0 : index
    %c0_78 = arith.constant 0 : index
    %98 = vector.load %arg7[%c0_76, %c0_77, %c0_78] : memref<9x64x64xbf16, #tpu.memory_space<vmem>>, vector<1x64x64xbf16>
    %99 = vector.shape_cast %98 : vector<1x64x64xbf16> to vector<64x64xbf16>
    %cst_79 = arith.constant dense<0.000000e+00> : vector<64x64xf32>
    %100 = tpu.matmul %97, %99, %cst_79 {dimension_numbers = #tpu.dot_dimension_numbers<[1], [0], [0], [1], [0, 0, 1, 1], [], []>} : vector<64x64xbf16>, vector<64x64xbf16>, vector<64x64xf32> -> vector<64x64xf32>
    %101 = arith.addf %95, %100 : vector<64x64xf32>
    %102 = vector.extract_strided_slice %94 {offsets = [0, 1, 0], sizes = [8, 8, 64], strides = [1, 1, 1]} : vector<10x10x64xbf16> to vector<8x8x64xbf16>
    %103 = vector.shape_cast %102 : vector<8x8x64xbf16> to vector<64x64xbf16>
    %c1_80 = arith.constant 1 : index
    %c0_81 = arith.constant 0 : index
    %c0_82 = arith.constant 0 : index
    %104 = vector.load %arg7[%c1_80, %c0_81, %c0_82] : memref<9x64x64xbf16, #tpu.memory_space<vmem>>, vector<1x64x64xbf16>
    %105 = vector.shape_cast %104 : vector<1x64x64xbf16> to vector<64x64xbf16>
    %cst_83 = arith.constant dense<0.000000e+00> : vector<64x64xf32>
    %106 = tpu.matmul %103, %105, %cst_83 {dimension_numbers = #tpu.dot_dimension_numbers<[1], [0], [0], [1], [0, 0, 1, 1], [], []>} : vector<64x64xbf16>, vector<64x64xbf16>, vector<64x64xf32> -> vector<64x64xf32>
    %107 = arith.addf %101, %106 : vector<64x64xf32>
    %108 = vector.extract_strided_slice %94 {offsets = [0, 2, 0], sizes = [8, 8, 64], strides = [1, 1, 1]} : vector<10x10x64xbf16> to vector<8x8x64xbf16>
    %109 = vector.shape_cast %108 : vector<8x8x64xbf16> to vector<64x64xbf16>
    %c2_84 = arith.constant 2 : index
    %c0_85 = arith.constant 0 : index
    %c0_86 = arith.constant 0 : index
    %110 = vector.load %arg7[%c2_84, %c0_85, %c0_86] : memref<9x64x64xbf16, #tpu.memory_space<vmem>>, vector<1x64x64xbf16>
    %111 = vector.shape_cast %110 : vector<1x64x64xbf16> to vector<64x64xbf16>
    %cst_87 = arith.constant dense<0.000000e+00> : vector<64x64xf32>
    %112 = tpu.matmul %109, %111, %cst_87 {dimension_numbers = #tpu.dot_dimension_numbers<[1], [0], [0], [1], [0, 0, 1, 1], [], []>} : vector<64x64xbf16>, vector<64x64xbf16>, vector<64x64xf32> -> vector<64x64xf32>
    %113 = arith.addf %107, %112 : vector<64x64xf32>
    %114 = vector.extract_strided_slice %94 {offsets = [1, 0, 0], sizes = [8, 8, 64], strides = [1, 1, 1]} : vector<10x10x64xbf16> to vector<8x8x64xbf16>
    %115 = vector.shape_cast %114 : vector<8x8x64xbf16> to vector<64x64xbf16>
    %c3_88 = arith.constant 3 : index
    %c0_89 = arith.constant 0 : index
    %c0_90 = arith.constant 0 : index
    %116 = vector.load %arg7[%c3_88, %c0_89, %c0_90] : memref<9x64x64xbf16, #tpu.memory_space<vmem>>, vector<1x64x64xbf16>
    %117 = vector.shape_cast %116 : vector<1x64x64xbf16> to vector<64x64xbf16>
    %cst_91 = arith.constant dense<0.000000e+00> : vector<64x64xf32>
    %118 = tpu.matmul %115, %117, %cst_91 {dimension_numbers = #tpu.dot_dimension_numbers<[1], [0], [0], [1], [0, 0, 1, 1], [], []>} : vector<64x64xbf16>, vector<64x64xbf16>, vector<64x64xf32> -> vector<64x64xf32>
    %119 = arith.addf %113, %118 : vector<64x64xf32>
    %120 = vector.extract_strided_slice %94 {offsets = [1, 1, 0], sizes = [8, 8, 64], strides = [1, 1, 1]} : vector<10x10x64xbf16> to vector<8x8x64xbf16>
    %121 = vector.shape_cast %120 : vector<8x8x64xbf16> to vector<64x64xbf16>
    %c4_92 = arith.constant 4 : index
    %c0_93 = arith.constant 0 : index
    %c0_94 = arith.constant 0 : index
    %122 = vector.load %arg7[%c4_92, %c0_93, %c0_94] : memref<9x64x64xbf16, #tpu.memory_space<vmem>>, vector<1x64x64xbf16>
    %123 = vector.shape_cast %122 : vector<1x64x64xbf16> to vector<64x64xbf16>
    %cst_95 = arith.constant dense<0.000000e+00> : vector<64x64xf32>
    %124 = tpu.matmul %121, %123, %cst_95 {dimension_numbers = #tpu.dot_dimension_numbers<[1], [0], [0], [1], [0, 0, 1, 1], [], []>} : vector<64x64xbf16>, vector<64x64xbf16>, vector<64x64xf32> -> vector<64x64xf32>
    %125 = arith.addf %119, %124 : vector<64x64xf32>
    %126 = vector.extract_strided_slice %94 {offsets = [1, 2, 0], sizes = [8, 8, 64], strides = [1, 1, 1]} : vector<10x10x64xbf16> to vector<8x8x64xbf16>
    %127 = vector.shape_cast %126 : vector<8x8x64xbf16> to vector<64x64xbf16>
    %c5_96 = arith.constant 5 : index
    %c0_97 = arith.constant 0 : index
    %c0_98 = arith.constant 0 : index
    %128 = vector.load %arg7[%c5_96, %c0_97, %c0_98] : memref<9x64x64xbf16, #tpu.memory_space<vmem>>, vector<1x64x64xbf16>
    %129 = vector.shape_cast %128 : vector<1x64x64xbf16> to vector<64x64xbf16>
    %cst_99 = arith.constant dense<0.000000e+00> : vector<64x64xf32>
    %130 = tpu.matmul %127, %129, %cst_99 {dimension_numbers = #tpu.dot_dimension_numbers<[1], [0], [0], [1], [0, 0, 1, 1], [], []>} : vector<64x64xbf16>, vector<64x64xbf16>, vector<64x64xf32> -> vector<64x64xf32>
    %131 = arith.addf %125, %130 : vector<64x64xf32>
    %132 = vector.extract_strided_slice %94 {offsets = [2, 0, 0], sizes = [8, 8, 64], strides = [1, 1, 1]} : vector<10x10x64xbf16> to vector<8x8x64xbf16>
    %133 = vector.shape_cast %132 : vector<8x8x64xbf16> to vector<64x64xbf16>
    %c6_100 = arith.constant 6 : index
    %c0_101 = arith.constant 0 : index
    %c0_102 = arith.constant 0 : index
    %134 = vector.load %arg7[%c6_100, %c0_101, %c0_102] : memref<9x64x64xbf16, #tpu.memory_space<vmem>>, vector<1x64x64xbf16>
    %135 = vector.shape_cast %134 : vector<1x64x64xbf16> to vector<64x64xbf16>
    %cst_103 = arith.constant dense<0.000000e+00> : vector<64x64xf32>
    %136 = tpu.matmul %133, %135, %cst_103 {dimension_numbers = #tpu.dot_dimension_numbers<[1], [0], [0], [1], [0, 0, 1, 1], [], []>} : vector<64x64xbf16>, vector<64x64xbf16>, vector<64x64xf32> -> vector<64x64xf32>
    %137 = arith.addf %131, %136 : vector<64x64xf32>
    %138 = vector.extract_strided_slice %94 {offsets = [2, 1, 0], sizes = [8, 8, 64], strides = [1, 1, 1]} : vector<10x10x64xbf16> to vector<8x8x64xbf16>
    %139 = vector.shape_cast %138 : vector<8x8x64xbf16> to vector<64x64xbf16>
    %c7_104 = arith.constant 7 : index
    %c0_105 = arith.constant 0 : index
    %c0_106 = arith.constant 0 : index
    %140 = vector.load %arg7[%c7_104, %c0_105, %c0_106] : memref<9x64x64xbf16, #tpu.memory_space<vmem>>, vector<1x64x64xbf16>
    %141 = vector.shape_cast %140 : vector<1x64x64xbf16> to vector<64x64xbf16>
    %cst_107 = arith.constant dense<0.000000e+00> : vector<64x64xf32>
    %142 = tpu.matmul %139, %141, %cst_107 {dimension_numbers = #tpu.dot_dimension_numbers<[1], [0], [0], [1], [0, 0, 1, 1], [], []>} : vector<64x64xbf16>, vector<64x64xbf16>, vector<64x64xf32> -> vector<64x64xf32>
    %143 = arith.addf %137, %142 : vector<64x64xf32>
    %144 = vector.extract_strided_slice %94 {offsets = [2, 2, 0], sizes = [8, 8, 64], strides = [1, 1, 1]} : vector<10x10x64xbf16> to vector<8x8x64xbf16>
    %145 = vector.shape_cast %144 : vector<8x8x64xbf16> to vector<64x64xbf16>
    %c8_108 = arith.constant 8 : index
    %c0_109 = arith.constant 0 : index
    %c0_110 = arith.constant 0 : index
    %146 = vector.load %arg7[%c8_108, %c0_109, %c0_110] : memref<9x64x64xbf16, #tpu.memory_space<vmem>>, vector<1x64x64xbf16>
    %147 = vector.shape_cast %146 : vector<1x64x64xbf16> to vector<64x64xbf16>
    %cst_111 = arith.constant dense<0.000000e+00> : vector<64x64xf32>
    %148 = tpu.matmul %145, %147, %cst_111 {dimension_numbers = #tpu.dot_dimension_numbers<[1], [0], [0], [1], [0, 0, 1, 1], [], []>} : vector<64x64xbf16>, vector<64x64xbf16>, vector<64x64xf32> -> vector<64x64xf32>
    %149 = arith.addf %143, %148 : vector<64x64xf32>
    %150 = vector.broadcast %13 : vector<1x64xf32> to vector<64x64xf32>
    %151 = arith.mulf %149, %150 : vector<64x64xf32>
    %152 = vector.broadcast %15 : vector<1x64xf32> to vector<64x64xf32>
    %153 = arith.addf %151, %152 : vector<64x64xf32>
    %cst_112 = arith.constant 0.000000e+00 : f32
    %154 = vector.broadcast %cst_112 : f32 to vector<64x64xf32>
    %155 = arith.maximumf %153, %154 : vector<64x64xf32>
    %156 = arith.addf %155, %88 : vector<64x64xf32>
    %157 = vector.shape_cast %156 : vector<64x64xf32> to vector<8x8x64xf32>
    %158 = arith.truncf %157 : vector<8x8x64xf32> to vector<8x8x64xbf16>
    %c0_113 = arith.constant 0 : index
    %c0_114 = arith.constant 0 : index
    %c0_115 = arith.constant 0 : index
    %c0_116 = arith.constant 0 : index
    %159 = vector.load %arg9[%c0_113, %c0_114, %c0_115, %c0_116] : memref<1x8x8x64xbf16, #tpu.memory_space<vmem>>, vector<1x8x8x64xbf16>
    %160 = vector.shape_cast %159 : vector<1x8x8x64xbf16> to vector<8x8x64xbf16>
    %161 = vector.shape_cast %158 : vector<8x8x64xbf16> to vector<1x8x8x64xbf16>
    tpu.vector_store %arg9[%c0_113, %c0_114, %c0_115, %c0_116], %161 {strides = array<i32>} : memref<1x8x8x64xbf16, #tpu.memory_space<vmem>>, vector<1x8x8x64xbf16>,
    return
  }
  func.func @transform_0(%arg0: i32) -> (i32, i32, i32, i32) {
    %c0_i32 = arith.constant 0 : i32
    %c0_i32_0 = arith.constant 0 : i32
    %c0_i32_1 = arith.constant 0 : i32
    %c0_i32_2 = arith.constant 0 : i32
    return %arg0, %c0_i32, %c0_i32_0, %c0_i32_1 : i32, i32, i32, i32
  }
  func.func @transform_1(%arg0: i32) -> (i32, i32, i32, i32) {
    %c0_i32 = arith.constant 0 : i32
    %c0_i32_0 = arith.constant 0 : i32
    %c0_i32_1 = arith.constant 0 : i32
    %c0_i32_2 = arith.constant 0 : i32
    return %arg0, %c0_i32, %c0_i32_0, %c0_i32_1 : i32, i32, i32, i32
  }
  func.func @transform_2(%arg0: i32) -> (i32, i32, i32, i32) {
    %c0_i32 = arith.constant 0 : i32
    %c0_i32_0 = arith.constant 0 : i32
    %c0_i32_1 = arith.constant 0 : i32
    %c0_i32_2 = arith.constant 0 : i32
    return %arg0, %c0_i32, %c0_i32_0, %c0_i32_1 : i32, i32, i32, i32
  }
  func.func @transform_3(%arg0: i32) -> (i32, i32, i32, i32) {
    %c0_i32 = arith.constant 0 : i32
    %c0_i32_0 = arith.constant 0 : i32
    %c0_i32_1 = arith.constant 0 : i32
    %c0_i32_2 = arith.constant 0 : i32
    return %arg0, %c0_i32, %c0_i32_0, %c0_i32_1 : i32, i32, i32, i32
  }
  func.func @transform_4(%arg0: i32) -> (i32, i32, i32) {
    %c0_i32 = arith.constant 0 : i32
    %c0_i32_0 = arith.constant 0 : i32
    %c0_i32_1 = arith.constant 0 : i32
    %c0_i32_2 = arith.constant 0 : i32
    return %c0_i32, %c0_i32_0, %c0_i32_1 : i32, i32, i32
  }
  func.func @transform_5(%arg0: i32) -> (i32, i32) {
    %c0_i32 = arith.constant 0 : i32
    %c0_i32_0 = arith.constant 0 : i32
    %c0_i32_1 = arith.constant 0 : i32
    return %c0_i32, %c0_i32_0 : i32, i32
  }
  func.func @transform_6(%arg0: i32) -> (i32, i32, i32) {
    %c0_i32 = arith.constant 0 : i32
    %c0_i32_0 = arith.constant 0 : i32
    %c0_i32_1 = arith.constant 0 : i32
    %c0_i32_2 = arith.constant 0 : i32
    return %c0_i32, %c0_i32_0, %c0_i32_1 : i32, i32, i32
  }
  func.func @transform_7(%arg0: i32) -> (i32, i32, i32) {
    %c0_i32 = arith.constant 0 : i32
    %c0_i32_0 = arith.constant 0 : i32
    %c0_i32_1 = arith.constant 0 : i32
    %c0_i32_2 = arith.constant 0 : i32
    return %c0_i32, %c0_i32_0, %c0_i32_1 : i32, i32, i32
  }
  func.func @transform_8(%arg0: i32) -> (i32, i32, i32, i32) {
    %c0_i32 = arith.constant 0 : i32
    %c0_i32_0 = arith.constant 0 : i32
    %c0_i32_1 = arith.constant 0 : i32
    %c0_i32_2 = arith.constant 0 : i32
    return %arg0, %c0_i32, %c0_i32_0, %c0_i32_1 : i32, i32, i32, i32
  }
}

module attributes {stable_mosaic.version = 11 : i64} {
  func.func @_downblock_kernel(%arg0: i32, %arg1: memref<1x5x5x64xbf16, #tpu.memory_space<vmem>>, %arg2: memref<1x5x5x64xbf16, #tpu.memory_space<vmem>>, %arg3: memref<1x5x5x64xbf16, #tpu.memory_space<vmem>>, %arg4: memref<1x5x5x64xbf16, #tpu.memory_space<vmem>>, %arg5: memref<9x64x128xbf16, #tpu.memory_space<vmem>>, %arg6: memref<64x128xbf16, #tpu.memory_space<vmem>>, %arg7: memref<9x128x128xbf16, #tpu.memory_space<vmem>>, %arg8: memref<6x1x128xf32, #tpu.memory_space<vmem>>, %arg9: memref<1x4x4x128xbf16, #tpu.memory_space<vmem>>, %arg10: memref<6x6x128xbf16, #tpu.memory_space<vmem>>) attributes {dimension_semantics = [#tpu.dimension_semantics<parallel>], iteration_bounds = array<i64: 2>, scalar_prefetch = 0 : i64, scratch_operands = 1 : i64, tpu.core_type = #tpu.core_type<tc>, window_params = [{transform_indices = @transform_0, window_bounds = array<i64: 1, 5, 5, 64>}, {transform_indices = @transform_1, window_bounds = array<i64: 1, 5, 5, 64>}, {transform_indices = @transform_2, window_bounds = array<i64: 1, 5, 5, 64>}, {transform_indices = @transform_3, window_bounds = array<i64: 1, 5, 5, 64>}, {pipeline_mode = #tpu.pipeline_mode<synchronous>, transform_indices = @transform_4, window_bounds = array<i64: 9, 64, 128>}, {pipeline_mode = #tpu.pipeline_mode<synchronous>, transform_indices = @transform_5, window_bounds = array<i64: 64, 128>}, {pipeline_mode = #tpu.pipeline_mode<synchronous>, transform_indices = @transform_6, window_bounds = array<i64: 9, 128, 128>}, {pipeline_mode = #tpu.pipeline_mode<synchronous>, transform_indices = @transform_7, window_bounds = array<i64: 6, 1, 128>}, {transform_indices = @transform_8, window_bounds = array<i64: 1, 4, 4, 128>}]} {
    %c0 = arith.constant 0 : index
    %c0_0 = arith.constant 0 : index
    %c0_1 = arith.constant 0 : index
    %c0_2 = arith.constant 0 : index
    %0 = vector.load %arg1[%c0, %c0_0, %c0_1, %c0_2] : memref<1x5x5x64xbf16, #tpu.memory_space<vmem>>, vector<1x5x5x64xbf16>
    %1 = vector.shape_cast %0 : vector<1x5x5x64xbf16> to vector<5x5x64xbf16>
    %c0_3 = arith.constant 0 : index
    %c0_4 = arith.constant 0 : index
    %c0_5 = arith.constant 0 : index
    %c0_6 = arith.constant 0 : index
    %2 = vector.load %arg2[%c0_3, %c0_4, %c0_5, %c0_6] : memref<1x5x5x64xbf16, #tpu.memory_space<vmem>>, vector<1x5x5x64xbf16>
    %3 = vector.shape_cast %2 : vector<1x5x5x64xbf16> to vector<5x5x64xbf16>
    %c0_7 = arith.constant 0 : index
    %c0_8 = arith.constant 0 : index
    %c0_9 = arith.constant 0 : index
    %c0_10 = arith.constant 0 : index
    %4 = vector.load %arg3[%c0_7, %c0_8, %c0_9, %c0_10] : memref<1x5x5x64xbf16, #tpu.memory_space<vmem>>, vector<1x5x5x64xbf16>
    %5 = vector.shape_cast %4 : vector<1x5x5x64xbf16> to vector<5x5x64xbf16>
    %c0_11 = arith.constant 0 : index
    %c0_12 = arith.constant 0 : index
    %c0_13 = arith.constant 0 : index
    %c0_14 = arith.constant 0 : index
    %6 = vector.load %arg4[%c0_11, %c0_12, %c0_13, %c0_14] : memref<1x5x5x64xbf16, #tpu.memory_space<vmem>>, vector<1x5x5x64xbf16>
    %7 = vector.shape_cast %6 : vector<1x5x5x64xbf16> to vector<5x5x64xbf16>
    %c0_15 = arith.constant 0 : index
    %c0_16 = arith.constant 0 : index
    %c0_17 = arith.constant 0 : index
    %8 = vector.load %arg8[%c0_15, %c0_16, %c0_17] : memref<6x1x128xf32, #tpu.memory_space<vmem>>, vector<1x1x128xf32>
    %9 = vector.shape_cast %8 : vector<1x1x128xf32> to vector<1x128xf32>
    %c1 = arith.constant 1 : index
    %c0_18 = arith.constant 0 : index
    %c0_19 = arith.constant 0 : index
    %10 = vector.load %arg8[%c1, %c0_18, %c0_19] : memref<6x1x128xf32, #tpu.memory_space<vmem>>, vector<1x1x128xf32>
    %11 = vector.shape_cast %10 : vector<1x1x128xf32> to vector<1x128xf32>
    %c2 = arith.constant 2 : index
    %c0_20 = arith.constant 0 : index
    %c0_21 = arith.constant 0 : index
    %12 = vector.load %arg8[%c2, %c0_20, %c0_21] : memref<6x1x128xf32, #tpu.memory_space<vmem>>, vector<1x1x128xf32>
    %13 = vector.shape_cast %12 : vector<1x1x128xf32> to vector<1x128xf32>
    %c3 = arith.constant 3 : index
    %c0_22 = arith.constant 0 : index
    %c0_23 = arith.constant 0 : index
    %14 = vector.load %arg8[%c3, %c0_22, %c0_23] : memref<6x1x128xf32, #tpu.memory_space<vmem>>, vector<1x1x128xf32>
    %15 = vector.shape_cast %14 : vector<1x1x128xf32> to vector<1x128xf32>
    %c4 = arith.constant 4 : index
    %c0_24 = arith.constant 0 : index
    %c0_25 = arith.constant 0 : index
    %16 = vector.load %arg8[%c4, %c0_24, %c0_25] : memref<6x1x128xf32, #tpu.memory_space<vmem>>, vector<1x1x128xf32>
    %17 = vector.shape_cast %16 : vector<1x1x128xf32> to vector<1x128xf32>
    %c5 = arith.constant 5 : index
    %c0_26 = arith.constant 0 : index
    %c0_27 = arith.constant 0 : index
    %18 = vector.load %arg8[%c5, %c0_26, %c0_27] : memref<6x1x128xf32, #tpu.memory_space<vmem>>, vector<1x1x128xf32>
    %19 = vector.shape_cast %18 : vector<1x1x128xf32> to vector<1x128xf32>
    %cst = arith.constant 0.000000e+00 : f32
    %20 = vector.broadcast %cst : f32 to vector<16x128xf32>
    %21 = vector.extract_strided_slice %1 {offsets = [0, 0, 0], sizes = [4, 4, 64], strides = [1, 1, 1]} : vector<5x5x64xbf16> to vector<4x4x64xbf16>
    %22 = vector.shape_cast %21 : vector<4x4x64xbf16> to vector<16x64xbf16>
    %c0_28 = arith.constant 0 : index
    %c0_29 = arith.constant 0 : index
    %c0_30 = arith.constant 0 : index
    %23 = vector.load %arg5[%c0_28, %c0_29, %c0_30] : memref<9x64x128xbf16, #tpu.memory_space<vmem>>, vector<1x64x128xbf16>
    %24 = vector.shape_cast %23 : vector<1x64x128xbf16> to vector<64x128xbf16>
    %cst_31 = arith.constant dense<0.000000e+00> : vector<16x128xf32>
    %25 = tpu.matmul %22, %24, %cst_31 {dimension_numbers = #tpu.dot_dimension_numbers<[1], [0], [0], [1], [0, 0, 1, 1], [], []>} : vector<16x64xbf16>, vector<64x128xbf16>, vector<16x128xf32> -> vector<16x128xf32>
    %26 = arith.addf %20, %25 : vector<16x128xf32>
    %27 = vector.extract_strided_slice %3 {offsets = [0, 0, 0], sizes = [4, 4, 64], strides = [1, 1, 1]} : vector<5x5x64xbf16> to vector<4x4x64xbf16>
    %28 = vector.shape_cast %27 : vector<4x4x64xbf16> to vector<16x64xbf16>
    %c1_32 = arith.constant 1 : index
    %c0_33 = arith.constant 0 : index
    %c0_34 = arith.constant 0 : index
    %29 = vector.load %arg5[%c1_32, %c0_33, %c0_34] : memref<9x64x128xbf16, #tpu.memory_space<vmem>>, vector<1x64x128xbf16>
    %30 = vector.shape_cast %29 : vector<1x64x128xbf16> to vector<64x128xbf16>
    %cst_35 = arith.constant dense<0.000000e+00> : vector<16x128xf32>
    %31 = tpu.matmul %28, %30, %cst_35 {dimension_numbers = #tpu.dot_dimension_numbers<[1], [0], [0], [1], [0, 0, 1, 1], [], []>} : vector<16x64xbf16>, vector<64x128xbf16>, vector<16x128xf32> -> vector<16x128xf32>
    %32 = arith.addf %26, %31 : vector<16x128xf32>
    %33 = vector.extract_strided_slice %1 {offsets = [0, 1, 0], sizes = [4, 4, 64], strides = [1, 1, 1]} : vector<5x5x64xbf16> to vector<4x4x64xbf16>
    %34 = vector.shape_cast %33 : vector<4x4x64xbf16> to vector<16x64xbf16>
    %c2_36 = arith.constant 2 : index
    %c0_37 = arith.constant 0 : index
    %c0_38 = arith.constant 0 : index
    %35 = vector.load %arg5[%c2_36, %c0_37, %c0_38] : memref<9x64x128xbf16, #tpu.memory_space<vmem>>, vector<1x64x128xbf16>
    %36 = vector.shape_cast %35 : vector<1x64x128xbf16> to vector<64x128xbf16>
    %cst_39 = arith.constant dense<0.000000e+00> : vector<16x128xf32>
    %37 = tpu.matmul %34, %36, %cst_39 {dimension_numbers = #tpu.dot_dimension_numbers<[1], [0], [0], [1], [0, 0, 1, 1], [], []>} : vector<16x64xbf16>, vector<64x128xbf16>, vector<16x128xf32> -> vector<16x128xf32>
    %38 = arith.addf %32, %37 : vector<16x128xf32>
    %39 = vector.extract_strided_slice %5 {offsets = [0, 0, 0], sizes = [4, 4, 64], strides = [1, 1, 1]} : vector<5x5x64xbf16> to vector<4x4x64xbf16>
    %40 = vector.shape_cast %39 : vector<4x4x64xbf16> to vector<16x64xbf16>
    %c3_40 = arith.constant 3 : index
    %c0_41 = arith.constant 0 : index
    %c0_42 = arith.constant 0 : index
    %41 = vector.load %arg5[%c3_40, %c0_41, %c0_42] : memref<9x64x128xbf16, #tpu.memory_space<vmem>>, vector<1x64x128xbf16>
    %42 = vector.shape_cast %41 : vector<1x64x128xbf16> to vector<64x128xbf16>
    %cst_43 = arith.constant dense<0.000000e+00> : vector<16x128xf32>
    %43 = tpu.matmul %40, %42, %cst_43 {dimension_numbers = #tpu.dot_dimension_numbers<[1], [0], [0], [1], [0, 0, 1, 1], [], []>} : vector<16x64xbf16>, vector<64x128xbf16>, vector<16x128xf32> -> vector<16x128xf32>
    %44 = arith.addf %38, %43 : vector<16x128xf32>
    %45 = vector.extract_strided_slice %7 {offsets = [0, 0, 0], sizes = [4, 4, 64], strides = [1, 1, 1]} : vector<5x5x64xbf16> to vector<4x4x64xbf16>
    %46 = vector.shape_cast %45 : vector<4x4x64xbf16> to vector<16x64xbf16>
    %c4_44 = arith.constant 4 : index
    %c0_45 = arith.constant 0 : index
    %c0_46 = arith.constant 0 : index
    %47 = vector.load %arg5[%c4_44, %c0_45, %c0_46] : memref<9x64x128xbf16, #tpu.memory_space<vmem>>, vector<1x64x128xbf16>
    %48 = vector.shape_cast %47 : vector<1x64x128xbf16> to vector<64x128xbf16>
    %cst_47 = arith.constant dense<0.000000e+00> : vector<16x128xf32>
    %49 = tpu.matmul %46, %48, %cst_47 {dimension_numbers = #tpu.dot_dimension_numbers<[1], [0], [0], [1], [0, 0, 1, 1], [], []>} : vector<16x64xbf16>, vector<64x128xbf16>, vector<16x128xf32> -> vector<16x128xf32>
    %50 = arith.addf %44, %49 : vector<16x128xf32>
    %51 = vector.extract_strided_slice %5 {offsets = [0, 1, 0], sizes = [4, 4, 64], strides = [1, 1, 1]} : vector<5x5x64xbf16> to vector<4x4x64xbf16>
    %52 = vector.shape_cast %51 : vector<4x4x64xbf16> to vector<16x64xbf16>
    %c5_48 = arith.constant 5 : index
    %c0_49 = arith.constant 0 : index
    %c0_50 = arith.constant 0 : index
    %53 = vector.load %arg5[%c5_48, %c0_49, %c0_50] : memref<9x64x128xbf16, #tpu.memory_space<vmem>>, vector<1x64x128xbf16>
    %54 = vector.shape_cast %53 : vector<1x64x128xbf16> to vector<64x128xbf16>
    %cst_51 = arith.constant dense<0.000000e+00> : vector<16x128xf32>
    %55 = tpu.matmul %52, %54, %cst_51 {dimension_numbers = #tpu.dot_dimension_numbers<[1], [0], [0], [1], [0, 0, 1, 1], [], []>} : vector<16x64xbf16>, vector<64x128xbf16>, vector<16x128xf32> -> vector<16x128xf32>
    %56 = arith.addf %50, %55 : vector<16x128xf32>
    %57 = vector.extract_strided_slice %1 {offsets = [1, 0, 0], sizes = [4, 4, 64], strides = [1, 1, 1]} : vector<5x5x64xbf16> to vector<4x4x64xbf16>
    %58 = vector.shape_cast %57 : vector<4x4x64xbf16> to vector<16x64xbf16>
    %c6 = arith.constant 6 : index
    %c0_52 = arith.constant 0 : index
    %c0_53 = arith.constant 0 : index
    %59 = vector.load %arg5[%c6, %c0_52, %c0_53] : memref<9x64x128xbf16, #tpu.memory_space<vmem>>, vector<1x64x128xbf16>
    %60 = vector.shape_cast %59 : vector<1x64x128xbf16> to vector<64x128xbf16>
    %cst_54 = arith.constant dense<0.000000e+00> : vector<16x128xf32>
    %61 = tpu.matmul %58, %60, %cst_54 {dimension_numbers = #tpu.dot_dimension_numbers<[1], [0], [0], [1], [0, 0, 1, 1], [], []>} : vector<16x64xbf16>, vector<64x128xbf16>, vector<16x128xf32> -> vector<16x128xf32>
    %62 = arith.addf %56, %61 : vector<16x128xf32>
    %63 = vector.extract_strided_slice %3 {offsets = [1, 0, 0], sizes = [4, 4, 64], strides = [1, 1, 1]} : vector<5x5x64xbf16> to vector<4x4x64xbf16>
    %64 = vector.shape_cast %63 : vector<4x4x64xbf16> to vector<16x64xbf16>
    %c7 = arith.constant 7 : index
    %c0_55 = arith.constant 0 : index
    %c0_56 = arith.constant 0 : index
    %65 = vector.load %arg5[%c7, %c0_55, %c0_56] : memref<9x64x128xbf16, #tpu.memory_space<vmem>>, vector<1x64x128xbf16>
    %66 = vector.shape_cast %65 : vector<1x64x128xbf16> to vector<64x128xbf16>
    %cst_57 = arith.constant dense<0.000000e+00> : vector<16x128xf32>
    %67 = tpu.matmul %64, %66, %cst_57 {dimension_numbers = #tpu.dot_dimension_numbers<[1], [0], [0], [1], [0, 0, 1, 1], [], []>} : vector<16x64xbf16>, vector<64x128xbf16>, vector<16x128xf32> -> vector<16x128xf32>
    %68 = arith.addf %62, %67 : vector<16x128xf32>
    %69 = vector.extract_strided_slice %1 {offsets = [1, 1, 0], sizes = [4, 4, 64], strides = [1, 1, 1]} : vector<5x5x64xbf16> to vector<4x4x64xbf16>
    %70 = vector.shape_cast %69 : vector<4x4x64xbf16> to vector<16x64xbf16>
    %c8 = arith.constant 8 : index
    %c0_58 = arith.constant 0 : index
    %c0_59 = arith.constant 0 : index
    %71 = vector.load %arg5[%c8, %c0_58, %c0_59] : memref<9x64x128xbf16, #tpu.memory_space<vmem>>, vector<1x64x128xbf16>
    %72 = vector.shape_cast %71 : vector<1x64x128xbf16> to vector<64x128xbf16>
    %cst_60 = arith.constant dense<0.000000e+00> : vector<16x128xf32>
    %73 = tpu.matmul %70, %72, %cst_60 {dimension_numbers = #tpu.dot_dimension_numbers<[1], [0], [0], [1], [0, 0, 1, 1], [], []>} : vector<16x64xbf16>, vector<64x128xbf16>, vector<16x128xf32> -> vector<16x128xf32>
    %74 = arith.addf %68, %73 : vector<16x128xf32>
    %75 = vector.broadcast %9 : vector<1x128xf32> to vector<16x128xf32>
    %76 = arith.mulf %74, %75 : vector<16x128xf32>
    %77 = vector.broadcast %11 : vector<1x128xf32> to vector<16x128xf32>
    %78 = arith.addf %76, %77 : vector<16x128xf32>
    %cst_61 = arith.constant 0.000000e+00 : f32
    %79 = vector.broadcast %cst_61 : f32 to vector<16x128xf32>
    %80 = arith.maximumf %78, %79 : vector<16x128xf32>
    %81 = vector.extract_strided_slice %7 {offsets = [0, 0, 0], sizes = [4, 4, 64], strides = [1, 1, 1]} : vector<5x5x64xbf16> to vector<4x4x64xbf16>
    %82 = vector.shape_cast %81 : vector<4x4x64xbf16> to vector<16x64xbf16>
    %c0_62 = arith.constant 0 : index
    %c0_63 = arith.constant 0 : index
    %83 = vector.load %arg6[%c0_62, %c0_63] : memref<64x128xbf16, #tpu.memory_space<vmem>>, vector<64x128xbf16>
    %cst_64 = arith.constant dense<0.000000e+00> : vector<16x128xf32>
    %84 = tpu.matmul %82, %83, %cst_64 {dimension_numbers = #tpu.dot_dimension_numbers<[1], [0], [0], [1], [0, 0, 1, 1], [], []>} : vector<16x64xbf16>, vector<64x128xbf16>, vector<16x128xf32> -> vector<16x128xf32>
    %85 = vector.broadcast %17 : vector<1x128xf32> to vector<16x128xf32>
    %86 = arith.mulf %84, %85 : vector<16x128xf32>
    %87 = vector.broadcast %19 : vector<1x128xf32> to vector<16x128xf32>
    %88 = arith.addf %86, %87 : vector<16x128xf32>
    %cst_65 = arith.constant 0.000000e+00 : bf16
    %89 = vector.broadcast %cst_65 : bf16 to vector<6x6x128xbf16>
    %c0_66 = arith.constant 0 : index
    %c0_67 = arith.constant 0 : index
    %c0_68 = arith.constant 0 : index
    %90 = vector.load %arg10[%c0_66, %c0_67, %c0_68] : memref<6x6x128xbf16, #tpu.memory_space<vmem>>, vector<6x6x128xbf16>
    tpu.vector_store %arg10[%c0_66, %c0_67, %c0_68], %89 {strides = array<i32>} : memref<6x6x128xbf16, #tpu.memory_space<vmem>>, vector<6x6x128xbf16>,
    %91 = vector.shape_cast %80 : vector<16x128xf32> to vector<4x4x128xf32>
    %92 = arith.truncf %91 : vector<4x4x128xf32> to vector<4x4x128xbf16>
    %c1_69 = arith.constant 1 : index
    %c1_70 = arith.constant 1 : index
    %c0_71 = arith.constant 0 : index
    %93 = vector.load %arg10[%c1_69, %c1_70, %c0_71] : memref<6x6x128xbf16, #tpu.memory_space<vmem>>, vector<4x4x128xbf16>
    tpu.vector_store %arg10[%c1_69, %c1_70, %c0_71], %92 {strides = array<i32>} : memref<6x6x128xbf16, #tpu.memory_space<vmem>>, vector<4x4x128xbf16>,
    %c0_72 = arith.constant 0 : index
    %c0_73 = arith.constant 0 : index
    %c0_74 = arith.constant 0 : index
    %94 = vector.load %arg10[%c0_72, %c0_73, %c0_74] : memref<6x6x128xbf16, #tpu.memory_space<vmem>>, vector<6x6x128xbf16>
    %cst_75 = arith.constant 0.000000e+00 : f32
    %95 = vector.broadcast %cst_75 : f32 to vector<16x128xf32>
    %96 = vector.extract_strided_slice %94 {offsets = [0, 0, 0], sizes = [4, 4, 128], strides = [1, 1, 1]} : vector<6x6x128xbf16> to vector<4x4x128xbf16>
    %97 = vector.shape_cast %96 : vector<4x4x128xbf16> to vector<16x128xbf16>
    %c0_76 = arith.constant 0 : index
    %c0_77 = arith.constant 0 : index
    %c0_78 = arith.constant 0 : index
    %98 = vector.load %arg7[%c0_76, %c0_77, %c0_78] : memref<9x128x128xbf16, #tpu.memory_space<vmem>>, vector<1x128x128xbf16>
    %99 = vector.shape_cast %98 : vector<1x128x128xbf16> to vector<128x128xbf16>
    %cst_79 = arith.constant dense<0.000000e+00> : vector<16x128xf32>
    %100 = tpu.matmul %97, %99, %cst_79 {dimension_numbers = #tpu.dot_dimension_numbers<[1], [0], [0], [1], [0, 0, 1, 1], [], []>} : vector<16x128xbf16>, vector<128x128xbf16>, vector<16x128xf32> -> vector<16x128xf32>
    %101 = arith.addf %95, %100 : vector<16x128xf32>
    %102 = vector.extract_strided_slice %94 {offsets = [0, 1, 0], sizes = [4, 4, 128], strides = [1, 1, 1]} : vector<6x6x128xbf16> to vector<4x4x128xbf16>
    %103 = vector.shape_cast %102 : vector<4x4x128xbf16> to vector<16x128xbf16>
    %c1_80 = arith.constant 1 : index
    %c0_81 = arith.constant 0 : index
    %c0_82 = arith.constant 0 : index
    %104 = vector.load %arg7[%c1_80, %c0_81, %c0_82] : memref<9x128x128xbf16, #tpu.memory_space<vmem>>, vector<1x128x128xbf16>
    %105 = vector.shape_cast %104 : vector<1x128x128xbf16> to vector<128x128xbf16>
    %cst_83 = arith.constant dense<0.000000e+00> : vector<16x128xf32>
    %106 = tpu.matmul %103, %105, %cst_83 {dimension_numbers = #tpu.dot_dimension_numbers<[1], [0], [0], [1], [0, 0, 1, 1], [], []>} : vector<16x128xbf16>, vector<128x128xbf16>, vector<16x128xf32> -> vector<16x128xf32>
    %107 = arith.addf %101, %106 : vector<16x128xf32>
    %108 = vector.extract_strided_slice %94 {offsets = [0, 2, 0], sizes = [4, 4, 128], strides = [1, 1, 1]} : vector<6x6x128xbf16> to vector<4x4x128xbf16>
    %109 = vector.shape_cast %108 : vector<4x4x128xbf16> to vector<16x128xbf16>
    %c2_84 = arith.constant 2 : index
    %c0_85 = arith.constant 0 : index
    %c0_86 = arith.constant 0 : index
    %110 = vector.load %arg7[%c2_84, %c0_85, %c0_86] : memref<9x128x128xbf16, #tpu.memory_space<vmem>>, vector<1x128x128xbf16>
    %111 = vector.shape_cast %110 : vector<1x128x128xbf16> to vector<128x128xbf16>
    %cst_87 = arith.constant dense<0.000000e+00> : vector<16x128xf32>
    %112 = tpu.matmul %109, %111, %cst_87 {dimension_numbers = #tpu.dot_dimension_numbers<[1], [0], [0], [1], [0, 0, 1, 1], [], []>} : vector<16x128xbf16>, vector<128x128xbf16>, vector<16x128xf32> -> vector<16x128xf32>
    %113 = arith.addf %107, %112 : vector<16x128xf32>
    %114 = vector.extract_strided_slice %94 {offsets = [1, 0, 0], sizes = [4, 4, 128], strides = [1, 1, 1]} : vector<6x6x128xbf16> to vector<4x4x128xbf16>
    %115 = vector.shape_cast %114 : vector<4x4x128xbf16> to vector<16x128xbf16>
    %c3_88 = arith.constant 3 : index
    %c0_89 = arith.constant 0 : index
    %c0_90 = arith.constant 0 : index
    %116 = vector.load %arg7[%c3_88, %c0_89, %c0_90] : memref<9x128x128xbf16, #tpu.memory_space<vmem>>, vector<1x128x128xbf16>
    %117 = vector.shape_cast %116 : vector<1x128x128xbf16> to vector<128x128xbf16>
    %cst_91 = arith.constant dense<0.000000e+00> : vector<16x128xf32>
    %118 = tpu.matmul %115, %117, %cst_91 {dimension_numbers = #tpu.dot_dimension_numbers<[1], [0], [0], [1], [0, 0, 1, 1], [], []>} : vector<16x128xbf16>, vector<128x128xbf16>, vector<16x128xf32> -> vector<16x128xf32>
    %119 = arith.addf %113, %118 : vector<16x128xf32>
    %120 = vector.extract_strided_slice %94 {offsets = [1, 1, 0], sizes = [4, 4, 128], strides = [1, 1, 1]} : vector<6x6x128xbf16> to vector<4x4x128xbf16>
    %121 = vector.shape_cast %120 : vector<4x4x128xbf16> to vector<16x128xbf16>
    %c4_92 = arith.constant 4 : index
    %c0_93 = arith.constant 0 : index
    %c0_94 = arith.constant 0 : index
    %122 = vector.load %arg7[%c4_92, %c0_93, %c0_94] : memref<9x128x128xbf16, #tpu.memory_space<vmem>>, vector<1x128x128xbf16>
    %123 = vector.shape_cast %122 : vector<1x128x128xbf16> to vector<128x128xbf16>
    %cst_95 = arith.constant dense<0.000000e+00> : vector<16x128xf32>
    %124 = tpu.matmul %121, %123, %cst_95 {dimension_numbers = #tpu.dot_dimension_numbers<[1], [0], [0], [1], [0, 0, 1, 1], [], []>} : vector<16x128xbf16>, vector<128x128xbf16>, vector<16x128xf32> -> vector<16x128xf32>
    %125 = arith.addf %119, %124 : vector<16x128xf32>
    %126 = vector.extract_strided_slice %94 {offsets = [1, 2, 0], sizes = [4, 4, 128], strides = [1, 1, 1]} : vector<6x6x128xbf16> to vector<4x4x128xbf16>
    %127 = vector.shape_cast %126 : vector<4x4x128xbf16> to vector<16x128xbf16>
    %c5_96 = arith.constant 5 : index
    %c0_97 = arith.constant 0 : index
    %c0_98 = arith.constant 0 : index
    %128 = vector.load %arg7[%c5_96, %c0_97, %c0_98] : memref<9x128x128xbf16, #tpu.memory_space<vmem>>, vector<1x128x128xbf16>
    %129 = vector.shape_cast %128 : vector<1x128x128xbf16> to vector<128x128xbf16>
    %cst_99 = arith.constant dense<0.000000e+00> : vector<16x128xf32>
    %130 = tpu.matmul %127, %129, %cst_99 {dimension_numbers = #tpu.dot_dimension_numbers<[1], [0], [0], [1], [0, 0, 1, 1], [], []>} : vector<16x128xbf16>, vector<128x128xbf16>, vector<16x128xf32> -> vector<16x128xf32>
    %131 = arith.addf %125, %130 : vector<16x128xf32>
    %132 = vector.extract_strided_slice %94 {offsets = [2, 0, 0], sizes = [4, 4, 128], strides = [1, 1, 1]} : vector<6x6x128xbf16> to vector<4x4x128xbf16>
    %133 = vector.shape_cast %132 : vector<4x4x128xbf16> to vector<16x128xbf16>
    %c6_100 = arith.constant 6 : index
    %c0_101 = arith.constant 0 : index
    %c0_102 = arith.constant 0 : index
    %134 = vector.load %arg7[%c6_100, %c0_101, %c0_102] : memref<9x128x128xbf16, #tpu.memory_space<vmem>>, vector<1x128x128xbf16>
    %135 = vector.shape_cast %134 : vector<1x128x128xbf16> to vector<128x128xbf16>
    %cst_103 = arith.constant dense<0.000000e+00> : vector<16x128xf32>
    %136 = tpu.matmul %133, %135, %cst_103 {dimension_numbers = #tpu.dot_dimension_numbers<[1], [0], [0], [1], [0, 0, 1, 1], [], []>} : vector<16x128xbf16>, vector<128x128xbf16>, vector<16x128xf32> -> vector<16x128xf32>
    %137 = arith.addf %131, %136 : vector<16x128xf32>
    %138 = vector.extract_strided_slice %94 {offsets = [2, 1, 0], sizes = [4, 4, 128], strides = [1, 1, 1]} : vector<6x6x128xbf16> to vector<4x4x128xbf16>
    %139 = vector.shape_cast %138 : vector<4x4x128xbf16> to vector<16x128xbf16>
    %c7_104 = arith.constant 7 : index
    %c0_105 = arith.constant 0 : index
    %c0_106 = arith.constant 0 : index
    %140 = vector.load %arg7[%c7_104, %c0_105, %c0_106] : memref<9x128x128xbf16, #tpu.memory_space<vmem>>, vector<1x128x128xbf16>
    %141 = vector.shape_cast %140 : vector<1x128x128xbf16> to vector<128x128xbf16>
    %cst_107 = arith.constant dense<0.000000e+00> : vector<16x128xf32>
    %142 = tpu.matmul %139, %141, %cst_107 {dimension_numbers = #tpu.dot_dimension_numbers<[1], [0], [0], [1], [0, 0, 1, 1], [], []>} : vector<16x128xbf16>, vector<128x128xbf16>, vector<16x128xf32> -> vector<16x128xf32>
    %143 = arith.addf %137, %142 : vector<16x128xf32>
    %144 = vector.extract_strided_slice %94 {offsets = [2, 2, 0], sizes = [4, 4, 128], strides = [1, 1, 1]} : vector<6x6x128xbf16> to vector<4x4x128xbf16>
    %145 = vector.shape_cast %144 : vector<4x4x128xbf16> to vector<16x128xbf16>
    %c8_108 = arith.constant 8 : index
    %c0_109 = arith.constant 0 : index
    %c0_110 = arith.constant 0 : index
    %146 = vector.load %arg7[%c8_108, %c0_109, %c0_110] : memref<9x128x128xbf16, #tpu.memory_space<vmem>>, vector<1x128x128xbf16>
    %147 = vector.shape_cast %146 : vector<1x128x128xbf16> to vector<128x128xbf16>
    %cst_111 = arith.constant dense<0.000000e+00> : vector<16x128xf32>
    %148 = tpu.matmul %145, %147, %cst_111 {dimension_numbers = #tpu.dot_dimension_numbers<[1], [0], [0], [1], [0, 0, 1, 1], [], []>} : vector<16x128xbf16>, vector<128x128xbf16>, vector<16x128xf32> -> vector<16x128xf32>
    %149 = arith.addf %143, %148 : vector<16x128xf32>
    %150 = vector.broadcast %13 : vector<1x128xf32> to vector<16x128xf32>
    %151 = arith.mulf %149, %150 : vector<16x128xf32>
    %152 = vector.broadcast %15 : vector<1x128xf32> to vector<16x128xf32>
    %153 = arith.addf %151, %152 : vector<16x128xf32>
    %cst_112 = arith.constant 0.000000e+00 : f32
    %154 = vector.broadcast %cst_112 : f32 to vector<16x128xf32>
    %155 = arith.maximumf %153, %154 : vector<16x128xf32>
    %156 = arith.addf %155, %88 : vector<16x128xf32>
    %157 = vector.shape_cast %156 : vector<16x128xf32> to vector<4x4x128xf32>
    %158 = arith.truncf %157 : vector<4x4x128xf32> to vector<4x4x128xbf16>
    %c0_113 = arith.constant 0 : index
    %c0_114 = arith.constant 0 : index
    %c0_115 = arith.constant 0 : index
    %c0_116 = arith.constant 0 : index
    %159 = vector.load %arg9[%c0_113, %c0_114, %c0_115, %c0_116] : memref<1x4x4x128xbf16, #tpu.memory_space<vmem>>, vector<1x4x4x128xbf16>
    %160 = vector.shape_cast %159 : vector<1x4x4x128xbf16> to vector<4x4x128xbf16>
    %161 = vector.shape_cast %158 : vector<4x4x128xbf16> to vector<1x4x4x128xbf16>
    tpu.vector_store %arg9[%c0_113, %c0_114, %c0_115, %c0_116], %161 {strides = array<i32>} : memref<1x4x4x128xbf16, #tpu.memory_space<vmem>>, vector<1x4x4x128xbf16>,
    return
  }
  func.func @transform_0(%arg0: i32) -> (i32, i32, i32, i32) {
    %c0_i32 = arith.constant 0 : i32
    %c0_i32_0 = arith.constant 0 : i32
    %c0_i32_1 = arith.constant 0 : i32
    %c0_i32_2 = arith.constant 0 : i32
    return %arg0, %c0_i32, %c0_i32_0, %c0_i32_1 : i32, i32, i32, i32
  }
  func.func @transform_1(%arg0: i32) -> (i32, i32, i32, i32) {
    %c0_i32 = arith.constant 0 : i32
    %c0_i32_0 = arith.constant 0 : i32
    %c0_i32_1 = arith.constant 0 : i32
    %c0_i32_2 = arith.constant 0 : i32
    return %arg0, %c0_i32, %c0_i32_0, %c0_i32_1 : i32, i32, i32, i32
  }
  func.func @transform_2(%arg0: i32) -> (i32, i32, i32, i32) {
    %c0_i32 = arith.constant 0 : i32
    %c0_i32_0 = arith.constant 0 : i32
    %c0_i32_1 = arith.constant 0 : i32
    %c0_i32_2 = arith.constant 0 : i32
    return %arg0, %c0_i32, %c0_i32_0, %c0_i32_1 : i32, i32, i32, i32
  }
  func.func @transform_3(%arg0: i32) -> (i32, i32, i32, i32) {
    %c0_i32 = arith.constant 0 : i32
    %c0_i32_0 = arith.constant 0 : i32
    %c0_i32_1 = arith.constant 0 : i32
    %c0_i32_2 = arith.constant 0 : i32
    return %arg0, %c0_i32, %c0_i32_0, %c0_i32_1 : i32, i32, i32, i32
  }
  func.func @transform_4(%arg0: i32) -> (i32, i32, i32) {
    %c0_i32 = arith.constant 0 : i32
    %c0_i32_0 = arith.constant 0 : i32
    %c0_i32_1 = arith.constant 0 : i32
    %c0_i32_2 = arith.constant 0 : i32
    return %c0_i32, %c0_i32_0, %c0_i32_1 : i32, i32, i32
  }
  func.func @transform_5(%arg0: i32) -> (i32, i32) {
    %c0_i32 = arith.constant 0 : i32
    %c0_i32_0 = arith.constant 0 : i32
    %c0_i32_1 = arith.constant 0 : i32
    return %c0_i32, %c0_i32_0 : i32, i32
  }
  func.func @transform_6(%arg0: i32) -> (i32, i32, i32) {
    %c0_i32 = arith.constant 0 : i32
    %c0_i32_0 = arith.constant 0 : i32
    %c0_i32_1 = arith.constant 0 : i32
    %c0_i32_2 = arith.constant 0 : i32
    return %c0_i32, %c0_i32_0, %c0_i32_1 : i32, i32, i32
  }
  func.func @transform_7(%arg0: i32) -> (i32, i32, i32) {
    %c0_i32 = arith.constant 0 : i32
    %c0_i32_0 = arith.constant 0 : i32
    %c0_i32_1 = arith.constant 0 : i32
    %c0_i32_2 = arith.constant 0 : i32
    return %c0_i32, %c0_i32_0, %c0_i32_1 : i32, i32, i32
  }
  func.func @transform_8(%arg0: i32) -> (i32, i32, i32, i32) {
    %c0_i32 = arith.constant 0 : i32
    %c0_i32_0 = arith.constant 0 : i32
    %c0_i32_1 = arith.constant 0 : i32
    %c0_i32_2 = arith.constant 0 : i32
    return %arg0, %c0_i32, %c0_i32_0, %c0_i32_1 : i32, i32, i32, i32
  }
}

module attributes {stable_mosaic.version = 11 : i64} {
  func.func @_downblock_kernel(%arg0: i32, %arg1: memref<1x3x3x128xbf16, #tpu.memory_space<vmem>>, %arg2: memref<1x3x3x128xbf16, #tpu.memory_space<vmem>>, %arg3: memref<1x3x3x128xbf16, #tpu.memory_space<vmem>>, %arg4: memref<1x3x3x128xbf16, #tpu.memory_space<vmem>>, %arg5: memref<9x128x256xbf16, #tpu.memory_space<vmem>>, %arg6: memref<128x256xbf16, #tpu.memory_space<vmem>>, %arg7: memref<9x256x256xbf16, #tpu.memory_space<vmem>>, %arg8: memref<6x1x256xf32, #tpu.memory_space<vmem>>, %arg9: memref<256x6xf32, #tpu.memory_space<vmem>>, %arg10: memref<1x6xf32, #tpu.memory_space<vmem>>, %arg11: memref<1x1x6xf32, #tpu.memory_space<vmem>>, %arg12: memref<4x4x256xbf16, #tpu.memory_space<vmem>>) attributes {dimension_semantics = [#tpu.dimension_semantics<parallel>], iteration_bounds = array<i64: 2>, scalar_prefetch = 0 : i64, scratch_operands = 1 : i64, tpu.core_type = #tpu.core_type<tc>, window_params = [{transform_indices = @transform_0, window_bounds = array<i64: 1, 3, 3, 128>}, {transform_indices = @transform_1, window_bounds = array<i64: 1, 3, 3, 128>}, {transform_indices = @transform_2, window_bounds = array<i64: 1, 3, 3, 128>}, {transform_indices = @transform_3, window_bounds = array<i64: 1, 3, 3, 128>}, {pipeline_mode = #tpu.pipeline_mode<synchronous>, transform_indices = @transform_4, window_bounds = array<i64: 9, 128, 256>}, {pipeline_mode = #tpu.pipeline_mode<synchronous>, transform_indices = @transform_5, window_bounds = array<i64: 128, 256>}, {pipeline_mode = #tpu.pipeline_mode<synchronous>, transform_indices = @transform_6, window_bounds = array<i64: 9, 256, 256>}, {pipeline_mode = #tpu.pipeline_mode<synchronous>, transform_indices = @transform_7, window_bounds = array<i64: 6, 1, 256>}, {pipeline_mode = #tpu.pipeline_mode<synchronous>, transform_indices = @transform_8, window_bounds = array<i64: 256, 6>}, {pipeline_mode = #tpu.pipeline_mode<synchronous>, transform_indices = @transform_9, window_bounds = array<i64: 1, 6>}, {transform_indices = @transform_10, window_bounds = array<i64: 1, 1, 6>}]} {
    %c0 = arith.constant 0 : index
    %c0_0 = arith.constant 0 : index
    %c0_1 = arith.constant 0 : index
    %c0_2 = arith.constant 0 : index
    %0 = vector.load %arg1[%c0, %c0_0, %c0_1, %c0_2] : memref<1x3x3x128xbf16, #tpu.memory_space<vmem>>, vector<1x3x3x128xbf16>
    %1 = vector.shape_cast %0 : vector<1x3x3x128xbf16> to vector<3x3x128xbf16>
    %c0_3 = arith.constant 0 : index
    %c0_4 = arith.constant 0 : index
    %c0_5 = arith.constant 0 : index
    %c0_6 = arith.constant 0 : index
    %2 = vector.load %arg2[%c0_3, %c0_4, %c0_5, %c0_6] : memref<1x3x3x128xbf16, #tpu.memory_space<vmem>>, vector<1x3x3x128xbf16>
    %3 = vector.shape_cast %2 : vector<1x3x3x128xbf16> to vector<3x3x128xbf16>
    %c0_7 = arith.constant 0 : index
    %c0_8 = arith.constant 0 : index
    %c0_9 = arith.constant 0 : index
    %c0_10 = arith.constant 0 : index
    %4 = vector.load %arg3[%c0_7, %c0_8, %c0_9, %c0_10] : memref<1x3x3x128xbf16, #tpu.memory_space<vmem>>, vector<1x3x3x128xbf16>
    %5 = vector.shape_cast %4 : vector<1x3x3x128xbf16> to vector<3x3x128xbf16>
    %c0_11 = arith.constant 0 : index
    %c0_12 = arith.constant 0 : index
    %c0_13 = arith.constant 0 : index
    %c0_14 = arith.constant 0 : index
    %6 = vector.load %arg4[%c0_11, %c0_12, %c0_13, %c0_14] : memref<1x3x3x128xbf16, #tpu.memory_space<vmem>>, vector<1x3x3x128xbf16>
    %7 = vector.shape_cast %6 : vector<1x3x3x128xbf16> to vector<3x3x128xbf16>
    %c0_15 = arith.constant 0 : index
    %c0_16 = arith.constant 0 : index
    %c0_17 = arith.constant 0 : index
    %8 = vector.load %arg8[%c0_15, %c0_16, %c0_17] : memref<6x1x256xf32, #tpu.memory_space<vmem>>, vector<1x1x256xf32>
    %9 = vector.shape_cast %8 : vector<1x1x256xf32> to vector<1x256xf32>
    %c1 = arith.constant 1 : index
    %c0_18 = arith.constant 0 : index
    %c0_19 = arith.constant 0 : index
    %10 = vector.load %arg8[%c1, %c0_18, %c0_19] : memref<6x1x256xf32, #tpu.memory_space<vmem>>, vector<1x1x256xf32>
    %11 = vector.shape_cast %10 : vector<1x1x256xf32> to vector<1x256xf32>
    %c2 = arith.constant 2 : index
    %c0_20 = arith.constant 0 : index
    %c0_21 = arith.constant 0 : index
    %12 = vector.load %arg8[%c2, %c0_20, %c0_21] : memref<6x1x256xf32, #tpu.memory_space<vmem>>, vector<1x1x256xf32>
    %13 = vector.shape_cast %12 : vector<1x1x256xf32> to vector<1x256xf32>
    %c3 = arith.constant 3 : index
    %c0_22 = arith.constant 0 : index
    %c0_23 = arith.constant 0 : index
    %14 = vector.load %arg8[%c3, %c0_22, %c0_23] : memref<6x1x256xf32, #tpu.memory_space<vmem>>, vector<1x1x256xf32>
    %15 = vector.shape_cast %14 : vector<1x1x256xf32> to vector<1x256xf32>
    %c4 = arith.constant 4 : index
    %c0_24 = arith.constant 0 : index
    %c0_25 = arith.constant 0 : index
    %16 = vector.load %arg8[%c4, %c0_24, %c0_25] : memref<6x1x256xf32, #tpu.memory_space<vmem>>, vector<1x1x256xf32>
    %17 = vector.shape_cast %16 : vector<1x1x256xf32> to vector<1x256xf32>
    %c5 = arith.constant 5 : index
    %c0_26 = arith.constant 0 : index
    %c0_27 = arith.constant 0 : index
    %18 = vector.load %arg8[%c5, %c0_26, %c0_27] : memref<6x1x256xf32, #tpu.memory_space<vmem>>, vector<1x1x256xf32>
    %19 = vector.shape_cast %18 : vector<1x1x256xf32> to vector<1x256xf32>
    %cst = arith.constant 0.000000e+00 : f32
    %20 = vector.broadcast %cst : f32 to vector<4x256xf32>
    %21 = vector.extract_strided_slice %1 {offsets = [0, 0, 0], sizes = [2, 2, 128], strides = [1, 1, 1]} : vector<3x3x128xbf16> to vector<2x2x128xbf16>
    %22 = vector.shape_cast %21 : vector<2x2x128xbf16> to vector<4x128xbf16>
    %c0_28 = arith.constant 0 : index
    %c0_29 = arith.constant 0 : index
    %c0_30 = arith.constant 0 : index
    %23 = vector.load %arg5[%c0_28, %c0_29, %c0_30] : memref<9x128x256xbf16, #tpu.memory_space<vmem>>, vector<1x128x256xbf16>
    %24 = vector.shape_cast %23 : vector<1x128x256xbf16> to vector<128x256xbf16>
    %cst_31 = arith.constant dense<0.000000e+00> : vector<4x256xf32>
    %25 = tpu.matmul %22, %24, %cst_31 {dimension_numbers = #tpu.dot_dimension_numbers<[1], [0], [0], [1], [0, 0, 1, 1], [], []>} : vector<4x128xbf16>, vector<128x256xbf16>, vector<4x256xf32> -> vector<4x256xf32>
    %26 = arith.addf %20, %25 : vector<4x256xf32>
    %27 = vector.extract_strided_slice %3 {offsets = [0, 0, 0], sizes = [2, 2, 128], strides = [1, 1, 1]} : vector<3x3x128xbf16> to vector<2x2x128xbf16>
    %28 = vector.shape_cast %27 : vector<2x2x128xbf16> to vector<4x128xbf16>
    %c1_32 = arith.constant 1 : index
    %c0_33 = arith.constant 0 : index
    %c0_34 = arith.constant 0 : index
    %29 = vector.load %arg5[%c1_32, %c0_33, %c0_34] : memref<9x128x256xbf16, #tpu.memory_space<vmem>>, vector<1x128x256xbf16>
    %30 = vector.shape_cast %29 : vector<1x128x256xbf16> to vector<128x256xbf16>
    %cst_35 = arith.constant dense<0.000000e+00> : vector<4x256xf32>
    %31 = tpu.matmul %28, %30, %cst_35 {dimension_numbers = #tpu.dot_dimension_numbers<[1], [0], [0], [1], [0, 0, 1, 1], [], []>} : vector<4x128xbf16>, vector<128x256xbf16>, vector<4x256xf32> -> vector<4x256xf32>
    %32 = arith.addf %26, %31 : vector<4x256xf32>
    %33 = vector.extract_strided_slice %1 {offsets = [0, 1, 0], sizes = [2, 2, 128], strides = [1, 1, 1]} : vector<3x3x128xbf16> to vector<2x2x128xbf16>
    %34 = vector.shape_cast %33 : vector<2x2x128xbf16> to vector<4x128xbf16>
    %c2_36 = arith.constant 2 : index
    %c0_37 = arith.constant 0 : index
    %c0_38 = arith.constant 0 : index
    %35 = vector.load %arg5[%c2_36, %c0_37, %c0_38] : memref<9x128x256xbf16, #tpu.memory_space<vmem>>, vector<1x128x256xbf16>
    %36 = vector.shape_cast %35 : vector<1x128x256xbf16> to vector<128x256xbf16>
    %cst_39 = arith.constant dense<0.000000e+00> : vector<4x256xf32>
    %37 = tpu.matmul %34, %36, %cst_39 {dimension_numbers = #tpu.dot_dimension_numbers<[1], [0], [0], [1], [0, 0, 1, 1], [], []>} : vector<4x128xbf16>, vector<128x256xbf16>, vector<4x256xf32> -> vector<4x256xf32>
    %38 = arith.addf %32, %37 : vector<4x256xf32>
    %39 = vector.extract_strided_slice %5 {offsets = [0, 0, 0], sizes = [2, 2, 128], strides = [1, 1, 1]} : vector<3x3x128xbf16> to vector<2x2x128xbf16>
    %40 = vector.shape_cast %39 : vector<2x2x128xbf16> to vector<4x128xbf16>
    %c3_40 = arith.constant 3 : index
    %c0_41 = arith.constant 0 : index
    %c0_42 = arith.constant 0 : index
    %41 = vector.load %arg5[%c3_40, %c0_41, %c0_42] : memref<9x128x256xbf16, #tpu.memory_space<vmem>>, vector<1x128x256xbf16>
    %42 = vector.shape_cast %41 : vector<1x128x256xbf16> to vector<128x256xbf16>
    %cst_43 = arith.constant dense<0.000000e+00> : vector<4x256xf32>
    %43 = tpu.matmul %40, %42, %cst_43 {dimension_numbers = #tpu.dot_dimension_numbers<[1], [0], [0], [1], [0, 0, 1, 1], [], []>} : vector<4x128xbf16>, vector<128x256xbf16>, vector<4x256xf32> -> vector<4x256xf32>
    %44 = arith.addf %38, %43 : vector<4x256xf32>
    %45 = vector.extract_strided_slice %7 {offsets = [0, 0, 0], sizes = [2, 2, 128], strides = [1, 1, 1]} : vector<3x3x128xbf16> to vector<2x2x128xbf16>
    %46 = vector.shape_cast %45 : vector<2x2x128xbf16> to vector<4x128xbf16>
    %c4_44 = arith.constant 4 : index
    %c0_45 = arith.constant 0 : index
    %c0_46 = arith.constant 0 : index
    %47 = vector.load %arg5[%c4_44, %c0_45, %c0_46] : memref<9x128x256xbf16, #tpu.memory_space<vmem>>, vector<1x128x256xbf16>
    %48 = vector.shape_cast %47 : vector<1x128x256xbf16> to vector<128x256xbf16>
    %cst_47 = arith.constant dense<0.000000e+00> : vector<4x256xf32>
    %49 = tpu.matmul %46, %48, %cst_47 {dimension_numbers = #tpu.dot_dimension_numbers<[1], [0], [0], [1], [0, 0, 1, 1], [], []>} : vector<4x128xbf16>, vector<128x256xbf16>, vector<4x256xf32> -> vector<4x256xf32>
    %50 = arith.addf %44, %49 : vector<4x256xf32>
    %51 = vector.extract_strided_slice %5 {offsets = [0, 1, 0], sizes = [2, 2, 128], strides = [1, 1, 1]} : vector<3x3x128xbf16> to vector<2x2x128xbf16>
    %52 = vector.shape_cast %51 : vector<2x2x128xbf16> to vector<4x128xbf16>
    %c5_48 = arith.constant 5 : index
    %c0_49 = arith.constant 0 : index
    %c0_50 = arith.constant 0 : index
    %53 = vector.load %arg5[%c5_48, %c0_49, %c0_50] : memref<9x128x256xbf16, #tpu.memory_space<vmem>>, vector<1x128x256xbf16>
    %54 = vector.shape_cast %53 : vector<1x128x256xbf16> to vector<128x256xbf16>
    %cst_51 = arith.constant dense<0.000000e+00> : vector<4x256xf32>
    %55 = tpu.matmul %52, %54, %cst_51 {dimension_numbers = #tpu.dot_dimension_numbers<[1], [0], [0], [1], [0, 0, 1, 1], [], []>} : vector<4x128xbf16>, vector<128x256xbf16>, vector<4x256xf32> -> vector<4x256xf32>
    %56 = arith.addf %50, %55 : vector<4x256xf32>
    %57 = vector.extract_strided_slice %1 {offsets = [1, 0, 0], sizes = [2, 2, 128], strides = [1, 1, 1]} : vector<3x3x128xbf16> to vector<2x2x128xbf16>
    %58 = vector.shape_cast %57 : vector<2x2x128xbf16> to vector<4x128xbf16>
    %c6 = arith.constant 6 : index
    %c0_52 = arith.constant 0 : index
    %c0_53 = arith.constant 0 : index
    %59 = vector.load %arg5[%c6, %c0_52, %c0_53] : memref<9x128x256xbf16, #tpu.memory_space<vmem>>, vector<1x128x256xbf16>
    %60 = vector.shape_cast %59 : vector<1x128x256xbf16> to vector<128x256xbf16>
    %cst_54 = arith.constant dense<0.000000e+00> : vector<4x256xf32>
    %61 = tpu.matmul %58, %60, %cst_54 {dimension_numbers = #tpu.dot_dimension_numbers<[1], [0], [0], [1], [0, 0, 1, 1], [], []>} : vector<4x128xbf16>, vector<128x256xbf16>, vector<4x256xf32> -> vector<4x256xf32>
    %62 = arith.addf %56, %61 : vector<4x256xf32>
    %63 = vector.extract_strided_slice %3 {offsets = [1, 0, 0], sizes = [2, 2, 128], strides = [1, 1, 1]} : vector<3x3x128xbf16> to vector<2x2x128xbf16>
    %64 = vector.shape_cast %63 : vector<2x2x128xbf16> to vector<4x128xbf16>
    %c7 = arith.constant 7 : index
    %c0_55 = arith.constant 0 : index
    %c0_56 = arith.constant 0 : index
    %65 = vector.load %arg5[%c7, %c0_55, %c0_56] : memref<9x128x256xbf16, #tpu.memory_space<vmem>>, vector<1x128x256xbf16>
    %66 = vector.shape_cast %65 : vector<1x128x256xbf16> to vector<128x256xbf16>
    %cst_57 = arith.constant dense<0.000000e+00> : vector<4x256xf32>
    %67 = tpu.matmul %64, %66, %cst_57 {dimension_numbers = #tpu.dot_dimension_numbers<[1], [0], [0], [1], [0, 0, 1, 1], [], []>} : vector<4x128xbf16>, vector<128x256xbf16>, vector<4x256xf32> -> vector<4x256xf32>
    %68 = arith.addf %62, %67 : vector<4x256xf32>
    %69 = vector.extract_strided_slice %1 {offsets = [1, 1, 0], sizes = [2, 2, 128], strides = [1, 1, 1]} : vector<3x3x128xbf16> to vector<2x2x128xbf16>
    %70 = vector.shape_cast %69 : vector<2x2x128xbf16> to vector<4x128xbf16>
    %c8 = arith.constant 8 : index
    %c0_58 = arith.constant 0 : index
    %c0_59 = arith.constant 0 : index
    %71 = vector.load %arg5[%c8, %c0_58, %c0_59] : memref<9x128x256xbf16, #tpu.memory_space<vmem>>, vector<1x128x256xbf16>
    %72 = vector.shape_cast %71 : vector<1x128x256xbf16> to vector<128x256xbf16>
    %cst_60 = arith.constant dense<0.000000e+00> : vector<4x256xf32>
    %73 = tpu.matmul %70, %72, %cst_60 {dimension_numbers = #tpu.dot_dimension_numbers<[1], [0], [0], [1], [0, 0, 1, 1], [], []>} : vector<4x128xbf16>, vector<128x256xbf16>, vector<4x256xf32> -> vector<4x256xf32>
    %74 = arith.addf %68, %73 : vector<4x256xf32>
    %75 = vector.broadcast %9 : vector<1x256xf32> to vector<4x256xf32>
    %76 = arith.mulf %74, %75 : vector<4x256xf32>
    %77 = vector.broadcast %11 : vector<1x256xf32> to vector<4x256xf32>
    %78 = arith.addf %76, %77 : vector<4x256xf32>
    %cst_61 = arith.constant 0.000000e+00 : f32
    %79 = vector.broadcast %cst_61 : f32 to vector<4x256xf32>
    %80 = arith.maximumf %78, %79 : vector<4x256xf32>
    %81 = vector.extract_strided_slice %7 {offsets = [0, 0, 0], sizes = [2, 2, 128], strides = [1, 1, 1]} : vector<3x3x128xbf16> to vector<2x2x128xbf16>
    %82 = vector.shape_cast %81 : vector<2x2x128xbf16> to vector<4x128xbf16>
    %c0_62 = arith.constant 0 : index
    %c0_63 = arith.constant 0 : index
    %83 = vector.load %arg6[%c0_62, %c0_63] : memref<128x256xbf16, #tpu.memory_space<vmem>>, vector<128x256xbf16>
    %cst_64 = arith.constant dense<0.000000e+00> : vector<4x256xf32>
    %84 = tpu.matmul %82, %83, %cst_64 {dimension_numbers = #tpu.dot_dimension_numbers<[1], [0], [0], [1], [0, 0, 1, 1], [], []>} : vector<4x128xbf16>, vector<128x256xbf16>, vector<4x256xf32> -> vector<4x256xf32>
    %85 = vector.broadcast %17 : vector<1x256xf32> to vector<4x256xf32>
    %86 = arith.mulf %84, %85 : vector<4x256xf32>
    %87 = vector.broadcast %19 : vector<1x256xf32> to vector<4x256xf32>
    %88 = arith.addf %86, %87 : vector<4x256xf32>
    %cst_65 = arith.constant 0.000000e+00 : bf16
    %89 = vector.broadcast %cst_65 : bf16 to vector<4x4x256xbf16>
    %c0_66 = arith.constant 0 : index
    %c0_67 = arith.constant 0 : index
    %c0_68 = arith.constant 0 : index
    %90 = vector.load %arg12[%c0_66, %c0_67, %c0_68] : memref<4x4x256xbf16, #tpu.memory_space<vmem>>, vector<4x4x256xbf16>
    tpu.vector_store %arg12[%c0_66, %c0_67, %c0_68], %89 {strides = array<i32>} : memref<4x4x256xbf16, #tpu.memory_space<vmem>>, vector<4x4x256xbf16>,
    %91 = vector.shape_cast %80 : vector<4x256xf32> to vector<2x2x256xf32>
    %92 = arith.truncf %91 : vector<2x2x256xf32> to vector<2x2x256xbf16>
    %c1_69 = arith.constant 1 : index
    %c1_70 = arith.constant 1 : index
    %c0_71 = arith.constant 0 : index
    %93 = vector.load %arg12[%c1_69, %c1_70, %c0_71] : memref<4x4x256xbf16, #tpu.memory_space<vmem>>, vector<2x2x256xbf16>
    tpu.vector_store %arg12[%c1_69, %c1_70, %c0_71], %92 {strides = array<i32>} : memref<4x4x256xbf16, #tpu.memory_space<vmem>>, vector<2x2x256xbf16>,
    %c0_72 = arith.constant 0 : index
    %c0_73 = arith.constant 0 : index
    %c0_74 = arith.constant 0 : index
    %94 = vector.load %arg12[%c0_72, %c0_73, %c0_74] : memref<4x4x256xbf16, #tpu.memory_space<vmem>>, vector<4x4x256xbf16>
    %cst_75 = arith.constant 0.000000e+00 : f32
    %95 = vector.broadcast %cst_75 : f32 to vector<4x256xf32>
    %96 = vector.extract_strided_slice %94 {offsets = [0, 0, 0], sizes = [2, 2, 256], strides = [1, 1, 1]} : vector<4x4x256xbf16> to vector<2x2x256xbf16>
    %97 = vector.shape_cast %96 : vector<2x2x256xbf16> to vector<4x256xbf16>
    %c0_76 = arith.constant 0 : index
    %c0_77 = arith.constant 0 : index
    %c0_78 = arith.constant 0 : index
    %98 = vector.load %arg7[%c0_76, %c0_77, %c0_78] : memref<9x256x256xbf16, #tpu.memory_space<vmem>>, vector<1x256x256xbf16>
    %99 = vector.shape_cast %98 : vector<1x256x256xbf16> to vector<256x256xbf16>
    %cst_79 = arith.constant dense<0.000000e+00> : vector<4x256xf32>
    %100 = tpu.matmul %97, %99, %cst_79 {dimension_numbers = #tpu.dot_dimension_numbers<[1], [0], [0], [1], [0, 0, 1, 1], [], []>} : vector<4x256xbf16>, vector<256x256xbf16>, vector<4x256xf32> -> vector<4x256xf32>
    %101 = arith.addf %95, %100 : vector<4x256xf32>
    %102 = vector.extract_strided_slice %94 {offsets = [0, 1, 0], sizes = [2, 2, 256], strides = [1, 1, 1]} : vector<4x4x256xbf16> to vector<2x2x256xbf16>
    %103 = vector.shape_cast %102 : vector<2x2x256xbf16> to vector<4x256xbf16>
    %c1_80 = arith.constant 1 : index
    %c0_81 = arith.constant 0 : index
    %c0_82 = arith.constant 0 : index
    %104 = vector.load %arg7[%c1_80, %c0_81, %c0_82] : memref<9x256x256xbf16, #tpu.memory_space<vmem>>, vector<1x256x256xbf16>
    %105 = vector.shape_cast %104 : vector<1x256x256xbf16> to vector<256x256xbf16>
    %cst_83 = arith.constant dense<0.000000e+00> : vector<4x256xf32>
    %106 = tpu.matmul %103, %105, %cst_83 {dimension_numbers = #tpu.dot_dimension_numbers<[1], [0], [0], [1], [0, 0, 1, 1], [], []>} : vector<4x256xbf16>, vector<256x256xbf16>, vector<4x256xf32> -> vector<4x256xf32>
    %107 = arith.addf %101, %106 : vector<4x256xf32>
    %108 = vector.extract_strided_slice %94 {offsets = [0, 2, 0], sizes = [2, 2, 256], strides = [1, 1, 1]} : vector<4x4x256xbf16> to vector<2x2x256xbf16>
    %109 = vector.shape_cast %108 : vector<2x2x256xbf16> to vector<4x256xbf16>
    %c2_84 = arith.constant 2 : index
    %c0_85 = arith.constant 0 : index
    %c0_86 = arith.constant 0 : index
    %110 = vector.load %arg7[%c2_84, %c0_85, %c0_86] : memref<9x256x256xbf16, #tpu.memory_space<vmem>>, vector<1x256x256xbf16>
    %111 = vector.shape_cast %110 : vector<1x256x256xbf16> to vector<256x256xbf16>
    %cst_87 = arith.constant dense<0.000000e+00> : vector<4x256xf32>
    %112 = tpu.matmul %109, %111, %cst_87 {dimension_numbers = #tpu.dot_dimension_numbers<[1], [0], [0], [1], [0, 0, 1, 1], [], []>} : vector<4x256xbf16>, vector<256x256xbf16>, vector<4x256xf32> -> vector<4x256xf32>
    %113 = arith.addf %107, %112 : vector<4x256xf32>
    %114 = vector.extract_strided_slice %94 {offsets = [1, 0, 0], sizes = [2, 2, 256], strides = [1, 1, 1]} : vector<4x4x256xbf16> to vector<2x2x256xbf16>
    %115 = vector.shape_cast %114 : vector<2x2x256xbf16> to vector<4x256xbf16>
    %c3_88 = arith.constant 3 : index
    %c0_89 = arith.constant 0 : index
    %c0_90 = arith.constant 0 : index
    %116 = vector.load %arg7[%c3_88, %c0_89, %c0_90] : memref<9x256x256xbf16, #tpu.memory_space<vmem>>, vector<1x256x256xbf16>
    %117 = vector.shape_cast %116 : vector<1x256x256xbf16> to vector<256x256xbf16>
    %cst_91 = arith.constant dense<0.000000e+00> : vector<4x256xf32>
    %118 = tpu.matmul %115, %117, %cst_91 {dimension_numbers = #tpu.dot_dimension_numbers<[1], [0], [0], [1], [0, 0, 1, 1], [], []>} : vector<4x256xbf16>, vector<256x256xbf16>, vector<4x256xf32> -> vector<4x256xf32>
    %119 = arith.addf %113, %118 : vector<4x256xf32>
    %120 = vector.extract_strided_slice %94 {offsets = [1, 1, 0], sizes = [2, 2, 256], strides = [1, 1, 1]} : vector<4x4x256xbf16> to vector<2x2x256xbf16>
    %121 = vector.shape_cast %120 : vector<2x2x256xbf16> to vector<4x256xbf16>
    %c4_92 = arith.constant 4 : index
    %c0_93 = arith.constant 0 : index
    %c0_94 = arith.constant 0 : index
    %122 = vector.load %arg7[%c4_92, %c0_93, %c0_94] : memref<9x256x256xbf16, #tpu.memory_space<vmem>>, vector<1x256x256xbf16>
    %123 = vector.shape_cast %122 : vector<1x256x256xbf16> to vector<256x256xbf16>
    %cst_95 = arith.constant dense<0.000000e+00> : vector<4x256xf32>
    %124 = tpu.matmul %121, %123, %cst_95 {dimension_numbers = #tpu.dot_dimension_numbers<[1], [0], [0], [1], [0, 0, 1, 1], [], []>} : vector<4x256xbf16>, vector<256x256xbf16>, vector<4x256xf32> -> vector<4x256xf32>
    %125 = arith.addf %119, %124 : vector<4x256xf32>
    %126 = vector.extract_strided_slice %94 {offsets = [1, 2, 0], sizes = [2, 2, 256], strides = [1, 1, 1]} : vector<4x4x256xbf16> to vector<2x2x256xbf16>
    %127 = vector.shape_cast %126 : vector<2x2x256xbf16> to vector<4x256xbf16>
    %c5_96 = arith.constant 5 : index
    %c0_97 = arith.constant 0 : index
    %c0_98 = arith.constant 0 : index
    %128 = vector.load %arg7[%c5_96, %c0_97, %c0_98] : memref<9x256x256xbf16, #tpu.memory_space<vmem>>, vector<1x256x256xbf16>
    %129 = vector.shape_cast %128 : vector<1x256x256xbf16> to vector<256x256xbf16>
    %cst_99 = arith.constant dense<0.000000e+00> : vector<4x256xf32>
    %130 = tpu.matmul %127, %129, %cst_99 {dimension_numbers = #tpu.dot_dimension_numbers<[1], [0], [0], [1], [0, 0, 1, 1], [], []>} : vector<4x256xbf16>, vector<256x256xbf16>, vector<4x256xf32> -> vector<4x256xf32>
    %131 = arith.addf %125, %130 : vector<4x256xf32>
    %132 = vector.extract_strided_slice %94 {offsets = [2, 0, 0], sizes = [2, 2, 256], strides = [1, 1, 1]} : vector<4x4x256xbf16> to vector<2x2x256xbf16>
    %133 = vector.shape_cast %132 : vector<2x2x256xbf16> to vector<4x256xbf16>
    %c6_100 = arith.constant 6 : index
    %c0_101 = arith.constant 0 : index
    %c0_102 = arith.constant 0 : index
    %134 = vector.load %arg7[%c6_100, %c0_101, %c0_102] : memref<9x256x256xbf16, #tpu.memory_space<vmem>>, vector<1x256x256xbf16>
    %135 = vector.shape_cast %134 : vector<1x256x256xbf16> to vector<256x256xbf16>
    %cst_103 = arith.constant dense<0.000000e+00> : vector<4x256xf32>
    %136 = tpu.matmul %133, %135, %cst_103 {dimension_numbers = #tpu.dot_dimension_numbers<[1], [0], [0], [1], [0, 0, 1, 1], [], []>} : vector<4x256xbf16>, vector<256x256xbf16>, vector<4x256xf32> -> vector<4x256xf32>
    %137 = arith.addf %131, %136 : vector<4x256xf32>
    %138 = vector.extract_strided_slice %94 {offsets = [2, 1, 0], sizes = [2, 2, 256], strides = [1, 1, 1]} : vector<4x4x256xbf16> to vector<2x2x256xbf16>
    %139 = vector.shape_cast %138 : vector<2x2x256xbf16> to vector<4x256xbf16>
    %c7_104 = arith.constant 7 : index
    %c0_105 = arith.constant 0 : index
    %c0_106 = arith.constant 0 : index
    %140 = vector.load %arg7[%c7_104, %c0_105, %c0_106] : memref<9x256x256xbf16, #tpu.memory_space<vmem>>, vector<1x256x256xbf16>
    %141 = vector.shape_cast %140 : vector<1x256x256xbf16> to vector<256x256xbf16>
    %cst_107 = arith.constant dense<0.000000e+00> : vector<4x256xf32>
    %142 = tpu.matmul %139, %141, %cst_107 {dimension_numbers = #tpu.dot_dimension_numbers<[1], [0], [0], [1], [0, 0, 1, 1], [], []>} : vector<4x256xbf16>, vector<256x256xbf16>, vector<4x256xf32> -> vector<4x256xf32>
    %143 = arith.addf %137, %142 : vector<4x256xf32>
    %144 = vector.extract_strided_slice %94 {offsets = [2, 2, 0], sizes = [2, 2, 256], strides = [1, 1, 1]} : vector<4x4x256xbf16> to vector<2x2x256xbf16>
    %145 = vector.shape_cast %144 : vector<2x2x256xbf16> to vector<4x256xbf16>
    %c8_108 = arith.constant 8 : index
    %c0_109 = arith.constant 0 : index
    %c0_110 = arith.constant 0 : index
    %146 = vector.load %arg7[%c8_108, %c0_109, %c0_110] : memref<9x256x256xbf16, #tpu.memory_space<vmem>>, vector<1x256x256xbf16>
    %147 = vector.shape_cast %146 : vector<1x256x256xbf16> to vector<256x256xbf16>
    %cst_111 = arith.constant dense<0.000000e+00> : vector<4x256xf32>
    %148 = tpu.matmul %145, %147, %cst_111 {dimension_numbers = #tpu.dot_dimension_numbers<[1], [0], [0], [1], [0, 0, 1, 1], [], []>} : vector<4x256xbf16>, vector<256x256xbf16>, vector<4x256xf32> -> vector<4x256xf32>
    %149 = arith.addf %143, %148 : vector<4x256xf32>
    %150 = vector.broadcast %13 : vector<1x256xf32> to vector<4x256xf32>
    %151 = arith.mulf %149, %150 : vector<4x256xf32>
    %152 = vector.broadcast %15 : vector<1x256xf32> to vector<4x256xf32>
    %153 = arith.addf %151, %152 : vector<4x256xf32>
    %cst_112 = arith.constant 0.000000e+00 : f32
    %154 = vector.broadcast %cst_112 : f32 to vector<4x256xf32>
    %155 = arith.maximumf %153, %154 : vector<4x256xf32>
    %156 = arith.addf %155, %88 : vector<4x256xf32>
    %cst_113 = arith.constant dense<0.000000e+00> : vector<256xf32>
    %157 = vector.multi_reduction <add>, %156, %cst_113 [0] : vector<4x256xf32> to vector<256xf32>
    %158 = vector.shape_cast %157 : vector<256xf32> to vector<1x256xf32>
    %cst_114 = arith.constant 2.500000e-01 : f32
    %159 = vector.broadcast %cst_114 : f32 to vector<1x256xf32>
    %160 = arith.mulf %158, %159 : vector<1x256xf32>
    %c0_115 = arith.constant 0 : index
    %c0_116 = arith.constant 0 : index
    %161 = vector.load %arg9[%c0_115, %c0_116] : memref<256x6xf32, #tpu.memory_space<vmem>>, vector<256x6xf32>
    %cst_117 = arith.constant dense<0.000000e+00> : vector<1x6xf32>
    %162 = tpu.matmul %160, %161, %cst_117 {dimension_numbers = #tpu.dot_dimension_numbers<[1], [0], [0], [1], [0, 0, 1, 1], [], []>} : vector<1x256xf32>, vector<256x6xf32>, vector<1x6xf32> -> vector<1x6xf32>
    %c0_118 = arith.constant 0 : index
    %c0_119 = arith.constant 0 : index
    %163 = vector.load %arg10[%c0_118, %c0_119] : memref<1x6xf32, #tpu.memory_space<vmem>>, vector<1x6xf32>
    %164 = arith.addf %162, %163 : vector<1x6xf32>
    %c0_120 = arith.constant 0 : index
    %c0_121 = arith.constant 0 : index
    %c0_122 = arith.constant 0 : index
    %165 = vector.load %arg11[%c0_120, %c0_121, %c0_122] : memref<1x1x6xf32, #tpu.memory_space<vmem>>, vector<1x1x6xf32>
    %166 = vector.shape_cast %165 : vector<1x1x6xf32> to vector<1x6xf32>
    %167 = vector.shape_cast %164 : vector<1x6xf32> to vector<1x1x6xf32>
    tpu.vector_store %arg11[%c0_120, %c0_121, %c0_122], %167 {strides = array<i32>} : memref<1x1x6xf32, #tpu.memory_space<vmem>>, vector<1x1x6xf32>,
    return
  }
  func.func @transform_0(%arg0: i32) -> (i32, i32, i32, i32) {
    %c0_i32 = arith.constant 0 : i32
    %c0_i32_0 = arith.constant 0 : i32
    %c0_i32_1 = arith.constant 0 : i32
    %c0_i32_2 = arith.constant 0 : i32
    return %arg0, %c0_i32, %c0_i32_0, %c0_i32_1 : i32, i32, i32, i32
  }
  func.func @transform_1(%arg0: i32) -> (i32, i32, i32, i32) {
    %c0_i32 = arith.constant 0 : i32
    %c0_i32_0 = arith.constant 0 : i32
    %c0_i32_1 = arith.constant 0 : i32
    %c0_i32_2 = arith.constant 0 : i32
    return %arg0, %c0_i32, %c0_i32_0, %c0_i32_1 : i32, i32, i32, i32
  }
  func.func @transform_2(%arg0: i32) -> (i32, i32, i32, i32) {
    %c0_i32 = arith.constant 0 : i32
    %c0_i32_0 = arith.constant 0 : i32
    %c0_i32_1 = arith.constant 0 : i32
    %c0_i32_2 = arith.constant 0 : i32
    return %arg0, %c0_i32, %c0_i32_0, %c0_i32_1 : i32, i32, i32, i32
  }
  func.func @transform_3(%arg0: i32) -> (i32, i32, i32, i32) {
    %c0_i32 = arith.constant 0 : i32
    %c0_i32_0 = arith.constant 0 : i32
    %c0_i32_1 = arith.constant 0 : i32
    %c0_i32_2 = arith.constant 0 : i32
    return %arg0, %c0_i32, %c0_i32_0, %c0_i32_1 : i32, i32, i32, i32
  }
  func.func @transform_4(%arg0: i32) -> (i32, i32, i32) {
    %c0_i32 = arith.constant 0 : i32
    %c0_i32_0 = arith.constant 0 : i32
    %c0_i32_1 = arith.constant 0 : i32
    %c0_i32_2 = arith.constant 0 : i32
    return %c0_i32, %c0_i32_0, %c0_i32_1 : i32, i32, i32
  }
  func.func @transform_5(%arg0: i32) -> (i32, i32) {
    %c0_i32 = arith.constant 0 : i32
    %c0_i32_0 = arith.constant 0 : i32
    %c0_i32_1 = arith.constant 0 : i32
    return %c0_i32, %c0_i32_0 : i32, i32
  }
  func.func @transform_6(%arg0: i32) -> (i32, i32, i32) {
    %c0_i32 = arith.constant 0 : i32
    %c0_i32_0 = arith.constant 0 : i32
    %c0_i32_1 = arith.constant 0 : i32
    %c0_i32_2 = arith.constant 0 : i32
    return %c0_i32, %c0_i32_0, %c0_i32_1 : i32, i32, i32
  }
  func.func @transform_7(%arg0: i32) -> (i32, i32, i32) {
    %c0_i32 = arith.constant 0 : i32
    %c0_i32_0 = arith.constant 0 : i32
    %c0_i32_1 = arith.constant 0 : i32
    %c0_i32_2 = arith.constant 0 : i32
    return %c0_i32, %c0_i32_0, %c0_i32_1 : i32, i32, i32
  }
  func.func @transform_8(%arg0: i32) -> (i32, i32) {
    %c0_i32 = arith.constant 0 : i32
    %c0_i32_0 = arith.constant 0 : i32
    %c0_i32_1 = arith.constant 0 : i32
    return %c0_i32, %c0_i32_0 : i32, i32
  }
  func.func @transform_9(%arg0: i32) -> (i32, i32) {
    %c0_i32 = arith.constant 0 : i32
    %c0_i32_0 = arith.constant 0 : i32
    %c0_i32_1 = arith.constant 0 : i32
    return %c0_i32, %c0_i32_0 : i32, i32
  }
  func.func @transform_10(%arg0: i32) -> (i32, i32, i32) {
    %c0_i32 = arith.constant 0 : i32
    %c0_i32_0 = arith.constant 0 : i32
    %c0_i32_1 = arith.constant 0 : i32
    return %arg0, %c0_i32, %c0_i32_0 : i32, i32, i32
  }
}

</mosaic_0001>

<bundles_post_ra>
// kernel: cnn_classifier_forward.4
= control target key start
LH: loop header
LB: loop body
LE: loop exit
PB: predicated region body
PF: predicated region fallthrough
CT: control target
= control target key end

     0   :  { %s2720_s12 = smov 0   ;;  %s3891_s0 = inlined_call_operand.vmem [shape: bf16[2,18,18,3], index: 0, kind: input, shape index: {}]   ;;  %s3892_s1 = inlined_call_operand.vmem [shape: bf16[9,3,32], index: 1, kind: input, shape index: {}]   ;;  %s3893_s2 = inlined_call_operand.vmem [shape: f32[1,32], index: 2, kind: input, shape index: {}]   ;;  %s3894_s3 = inlined_call_operand.vmem [shape: bf16[2,16,16,32], index: 3, kind: output, shape index: {}]  }
   0x1 LB: > { %s2398_s13 = sadd.s32 4294967295, %s2697_s12   ;;  %p2402_p0 = scmp.ge.s32.totalorder %s2697_s12, 1  ;;  %s2697_s12 = sphi %s2720_s12, %s13_s12  }
   0x2   : > { %p137_p1 = scmp.lt.s32.totalorder %s2697_s12, 3 }
   0x4   : > { %p138_p2 = pnand %p2402_p0, %p137_p1 }
   0x6   : > { %141 = sbr.rel (%p138_p2) target bundleno = 758 (0x2f6), region = 32 }
   0xb   : > { %v2406_v0 = vld [vmem:[%s3892_s1 + $0x2] sm:$0x3]  ;;  %vm713_vm0 = vcmask 1040384   ;;  %vm714_vm1 = vcmask 1041408   ;;  %p161_p3 = scmp.lt.s32.totalorder %s2398_s13, 1  ;;  %v2699_v1 = vmov 65535  }
   0xc   : > { %v715_v2 = vsel %vm713_vm0, 4294967295, %v2699_v1  ;;  %v2519_v4 = vld [vmem:[%s3892_s1 + $0x4] sm:$0x3]  ;;  %v2536_v7 = vld [vmem:[%s3892_s1 + $0x6] sm:$0x3]  ;;  %vm664_vm5 = vcmask 23552  }
   0xd   : > { %v2731_v3 = vsel %vm714_vm1, %v715_v2, 0  ;;  %s4036_s13 = smov (!%p161_p3, %s2398_s13), 1  ;;  %v226_v8 = vld [vmem:[%s3892_s1] sm:$0x3]  ;;  %v2557_v9 = vld [vmem:[%s3892_s1 + $0x8] sm:$0x3] }
   0xe   : > { %v718_v5 = vand.u32 %v2406_v0, %v2731_v3  ;;  %v1259_v6 = vand.u32 %v2519_v4, %v2731_v3  ;;  %s2672_s24 = smul.u32 216, %s4036_s13  ;;  %v1393_v10 = vand.u32 %v2536_v7, %v2731_v3  ;;  %v938_v11 = vand.u32 %v2731_v3, %v226_v8  ;;  %s2650_s11 = sshll.u32 %s4036_s13, 7 }
   0xf   : > { %v1549_v12 = vand.u32 %v2557_v9, %v2731_v3  ;;  %vm227_vm2 = vsmask.f32 3328  ;;  %vm228_vm3 = vsmask.f32 7440  ;;  %vm1045_vm6 = vcmask 1042432   ;;  %s3683_s16 = scalar_lea.vmem %s3894_s3, %s2650_s11 }
  0x10   : > { %2669 = vmatpush.bf16.msra.mxu1 %v718_v5  ;;  %2670 = vmatpush.bf16.msra.mxu2 %v718_v5  ;;  %s2756_s27 = scalar_lea.vmem %s3891_s0, %s2672_s24  ;;  %vm2783_vm4 = vmor %vm227_vm2, %vm228_vm3  ;;  %vm1046_vm7 = vcmask 1046532   ;;  %vm2310_vm9 = vcmask 257024  }
  0x11   : > { %2671 = vmatpush.bf16.msra.mxu3 %v718_v5  ;;  %727 = vmatpush.bf16.msra.mxu0 %v718_v5  ;;  %v2759_v13 = vld [vmem:[%s2756_s27 + $0x30] sm:$0xf]  ;;  %v2762_v14 = vld [vmem:[%s2756_s27 + $0x34] sm:$0xf]  ;;  %v2765_v15 = vld [vmem:[%s2756_s27 + $0x38] sm:$0x1] }
  0x12   : > { %v327_v16 = vshrl.u32 %v2759_v13, 16  ;;  %v330_v17 = vshll.u32 %v2759_v13, 16  ;;  %v336_v18 = vshll.u32 %v2762_v14, 16  ;;  %v340_v19 = vshrl.u32 %v2762_v14, 16  ;;  %v196_v20 = vld [vmem:[%s2756_s27 + $0x60] sm:$0xf]  ;;  %vm3086_vm8 = vmor %vm1045_vm6, %vm1046_vm7 }
  0x13   : > { %v346_v21 = vshll.u32 %v2765_v15, 16  ;;  %v2774_v22 = vld [vmem:[%s2756_s27 + $0x64] sm:$0xf]  ;;  %v198_v23 = vld [vmem:[%s2756_s27 + $0x68] sm:$0x1]  ;;  %v423_v24 = vshrl.u32 %v196_v20, 16 }
  0x14   : > { %1268 = vmatpush.bf16.msrb.mxu2 %v1259_v6  ;;  %947 = vmatpush.bf16.msrb.mxu1 %v938_v11  ;;  %v329_v25 = vrot.slane %v327_v16, 4  ;;  %v332_v26 = vrot.slane %v330_v17, 5  ;;  %v338_v27 = vrot.slane %v336_v18, 5  ;;  %v342_v28 = vrot.slane %v340_v19, 4  ;;  %v208_v29 = vld [vmem:[%s2756_s27 + $0x90] sm:$0xf] }
  0x15   : > { %1402 = vmatpush.bf16.msrb.mxu3 %v1393_v10  ;;  %1558 = vmatpush.bf16.msrb.mxu0 %v1549_v12  ;;  %v348_v30 = vrot.slane %v346_v21, 5  ;;  %v425_v31 = vrot.slane %v423_v24, 4  ;;  %v426_v32 = vshll.u32 %v196_v20, 16  ;;  %v432_v33 = vshll.u32 %v2774_v22, 16  ;;  %v209_v38 = vld [vmem:[%s2756_s27 + $0x94] sm:$0xf] }
  0x16   : > { %v333_v34 = vor.u32 %v332_v26, %v329_v25  ;;  %v343_v35 = vor.u32 %v342_v28, %v338_v27  ;;  %v436_v36 = vshrl.u32 %v2774_v22, 16  ;;  %v442_v37 = vshll.u32 %v198_v23, 16  ;;  %v210_v48 = vld [vmem:[%s2756_s27 + $0x98] sm:$0x1]  ;;  %v2793_v0 = vld [vmem:[%s2756_s27] sm:$0xf] }
  0x17   : > { %v428_v40 = vrot.slane %v426_v32, 5  ;;  %v434_v41 = vrot.slane %v432_v33, 5  ;;  %v519_v42 = vshrl.u32 %v208_v29, 16  ;;  %v522_v50 = vshll.u32 %v208_v29, 16  ;;  %v2800_v5 = vld [vmem:[%s2756_s27 + $0x4] sm:$0xf] }
  0x18   : > { %v334_v43 = vrot.slane %v333_v34, 4  ;;  %v344_v44 = vrot.slane %v343_v35, 4  ;;  %v438_v45 = vrot.slane %v436_v36, 4  ;;  %v444_v46 = vrot.slane %v442_v37, 5  ;;  %v2803_v6 = vld [vmem:[%s2756_s27 + $0x8] sm:$0x1] }
  0x19   : > { %v429_v47 = vor.u32 %v428_v40, %v425_v31  ;;  %v521_v49 = vrot.slane %v519_v42, 4  ;;  %v528_v51 = vshll.u32 %v209_v38, 16  ;;  %v532_v55 = vshrl.u32 %v209_v38, 16  ;;  %v2822_v28 = vld [vmem:[%s2756_s27 + $0x40] sm:$0xf] }
  0x1a   : > { %v339_v52 = vsel %vm2783_vm4, %v334_v43, %v338_v27  ;;  %v349_v53 = vsel %vm2783_vm4, %v344_v44, %v348_v30  ;;  %v439_v54 = vor.u32 %v438_v45, %v434_v41  ;;  %v524_v59 = vrot.slane %v522_v50, 5  ;;  %v2819_v27 = vld [vmem:[%s2756_s27 + $0x3c] sm:$0xf]  ;;  %v2827_v33 = vld [vmem:[%s2756_s27 + $0x44] sm:$0x1] }
  0x1b   : > { %v624_v56 = vunpack.c.l.b16 %v339_v52  ;;  %v625_v57 = vunpack.c.l.b16 %v349_v53  ;;  %v430_v58 = vrot.slane %v429_v47, 4  ;;  %v530_v61 = vrot.slane %v528_v51, 5  ;;  %v2835_v42 = vld [vmem:[%s2756_s27 + $0x6c] sm:$0xf]  ;;  %v2842_v51 = vld [vmem:[%s2756_s27 + $0x70] sm:$0xf] }
  0x1c   : > { %v440_v60 = vrot.slane %v439_v54, 4  ;;  %v534_v62 = vrot.slane %v532_v55, 4  ;;  %v538_v63 = vshll.u32 %v210_v48, 16  ;;  %v525_v4 = vor.u32 %v524_v59, %v521_v49  ;;  %v2849_v55 = vld [vmem:[%s2756_s27 + $0x74] sm:$0x1] }
  0x1d   : > { %v2795_v1 = vpack.c.b16 %v625_v57, %v624_v56  ;;  %v435_v2 = vsel %vm2783_vm4, %v430_v58, %v434_v41  ;;  %v231_v16 = vshrl.u32 %v2793_v0, 16  ;;  %v234_v17 = vshll.u32 %v2793_v0, 16 }
  0x1e   : > { %v445_v7 = vsel %vm2783_vm4, %v440_v60, %v444_v46  ;;  %v632_v8 = vunpack.c.l.b16 %v435_v2  ;;  %v535_v9 = vor.u32 %v534_v62, %v530_v61  ;;  %v540_v10 = vrot.slane %v538_v63, 5 }
  0x1f   : > { %2411 = vmatmul.msk.bf16.vlgmr.msra.gmra.mxu1 %vm664_vm5, %v2795_v1  ;;  %v633_v11 = vunpack.c.l.b16 %v445_v7  ;;  %v526_v12 = vrot.slane %v525_v4, 4  ;;  %v240_v19 = vshll.u32 %v2800_v5, 16  ;;  %v244_v20 = vshrl.u32 %v2800_v5, 16 }
  0x20   : > { %v536_v18 = vrot.slane %v535_v9, 4  ;;  %v250_v21 = vshll.u32 %v2803_v6, 16  ;;  %v233_v25 = vrot.slane %v231_v16, 4  ;;  %v236_v26 = vrot.slane %v234_v17, 5  ;;  %v212_v17 = vld [vmem:[%s2756_s27 + $0xa0] sm:$0xf] }
  0x21   : > { %v2814_v23 = vpack.c.b16 %v633_v11, %v632_v8  ;;  %v531_v24 = vsel %vm2783_vm4, %v526_v12, %v530_v61  ;;  %v242_v31 = vrot.slane %v240_v19, 5  ;;  %v246_v32 = vrot.slane %v244_v20, 4 }
  0x22   : > { %v541_v29 = vsel %vm2783_vm4, %v536_v18, %v540_v10  ;;  %v640_v30 = vunpack.c.l.b16 %v531_v24  ;;  %v237_v35 = vor.u32 %v236_v26, %v233_v25  ;;  %v252_v36 = vrot.slane %v250_v21, 5  ;;  %v211_v10 = vld [vmem:[%s2756_s27 + $0x9c] sm:$0xf]  ;;  %v213_v24 = vld [vmem:[%s2756_s27 + $0xa4] sm:$0x1] }
  0x23   : > { %3937 = vst [vmem:[#allocation2_spill] sm:$0xff] %v2814_v23  ;;  %2415 = vmatmul.msk.bf16.vlgmr.msra.gmra.mxu2 %vm664_vm5, %v2814_v23  ;;  %v641_v34 = vunpack.c.l.b16 %v541_v29  ;;  %v247_v37 = vor.u32 %v246_v32, %v242_v31  ;;  %v351_v38 = vshrl.u32 %v2819_v27, 16  ;;  %v354_v40 = vshll.u32 %v2819_v27, 16 }
  0x24   : > { %v360_v41 = vshll.u32 %v2822_v28, 16  ;;  %v238_v44 = vrot.slane %v237_v35, 4  ;;  %v364_v45 = vshrl.u32 %v2822_v28, 16  ;;  %v370_v46 = vshll.u32 %v2827_v33, 16 }
  0x25   : > { %v2837_v43 = vpack.c.b16 %v641_v34, %v640_v30  ;;  %v248_v47 = vrot.slane %v247_v37, 4  ;;  %v353_v48 = vrot.slane %v351_v38, 4  ;;  %v356_v49 = vrot.slane %v354_v40, 5 }
  0x26   : > { %v362_v50 = vrot.slane %v360_v41, 5  ;;  %v243_v52 = vsel %vm2783_vm4, %v238_v44, %v242_v31  ;;  %v366_v53 = vrot.slane %v364_v45, 4  ;;  %v372_v54 = vrot.slane %v370_v46, 5  ;;  %v2867_v41 = vld [vmem:[%s2756_s27 + $0xc] sm:$0xf] }
  0x27   : > { %3938 = vst [vmem:[#allocation3_spill] sm:$0xff] %v2837_v43  ;;  %2419 = vmatmul.msk.bf16.vlgmr.msra.gmra.mxu3 %vm664_vm5, %v2837_v43  ;;  %v447_v56 = vshrl.u32 %v2835_v42, 16  ;;  %v253_v57 = vsel %vm2783_vm4, %v248_v47, %v252_v36  ;;  %v616_v58 = vunpack.c.l.b16 %v243_v52  ;;  %v357_v59 = vor.u32 %v356_v49, %v353_v48  ;;  %v2874_v48 = vld [vmem:[%s2756_s27 + $0x10] sm:$0xf]  ;;  %v3043_v43 = vld [vmem:[%s2756_s27 + $0x24] sm:$0xf] }
  0x28   : > { %v450_v60 = vshll.u32 %v2835_v42, 16  ;;  %v617_v61 = vunpack.c.l.b16 %v253_v57  ;;  %v367_v62 = vor.u32 %v366_v53, %v362_v50  ;;  %v456_v2 = vshll.u32 %v2842_v51, 16  ;;  %v2877_v53 = vld [vmem:[%s2756_s27 + $0x14] sm:$0x1] }
  0x29   : > { %v449_v63 = vrot.slane %v447_v56, 4  ;;  %v358_v4 = vrot.slane %v357_v59, 4  ;;  %v460_v8 = vshrl.u32 %v2842_v51, 16  ;;  %v466_v9 = vshll.u32 %v2849_v55, 16 }
  0x2a   : > { %v452_v7 = vrot.slane %v450_v60, 5  ;;  %v648_v11 = vpack.c.b16 %v617_v61, %v616_v58  ;;  %v368_v12 = vrot.slane %v367_v62, 4  ;;  %v458_v16 = vrot.slane %v456_v2, 5 }
  0x2b   : > { %v363_v18 = vsel %vm2783_vm4, %v358_v4, %v362_v50  ;;  %v462_v20 = vrot.slane %v460_v8, 4  ;;  %v468_v21 = vrot.slane %v466_v9, 5  ;;  %v543_v29 = vshrl.u32 %v211_v10, 16  ;;  %v2892_v9 = vld [vmem:[%s2756_s27 + $0x4c] sm:$0xf] }
  0x2c   : > { %v453_v19 = vor.u32 %v452_v7, %v449_v63  ;;  %2407 = vmatmul.msk.bf16.vlgmr.msra.gmra.mxu0 %vm664_vm5, %v648_v11  ;;  %v373_v25 = vsel %vm2783_vm4, %v368_v12, %v372_v54  ;;  %v626_v26 = vunpack.c.l.b16 %v363_v18  ;;  %v546_v30 = vshll.u32 %v211_v10, 16  ;;  %v2887_v63 = vld [vmem:[%s2756_s27 + $0x48] sm:$0xf] }
  0x2d   : > { %v627_v31 = vunpack.c.l.b16 %v373_v25  ;;  %v463_v34 = vor.u32 %v462_v20, %v458_v16  ;;  %v552_v35 = vshll.u32 %v212_v17, 16  ;;  %v545_v36 = vrot.slane %v543_v29, 4 }
  0x2e   : > { %v454_v32 = vrot.slane %v453_v19, 4  ;;  %v548_v37 = vrot.slane %v546_v30, 5  ;;  %v556_v38 = vshrl.u32 %v212_v17, 16  ;;  %v562_v40 = vshll.u32 %v213_v24, 16 }
  0x2f   : > { %v2869_v44 = vpack.c.b16 %v627_v31, %v626_v26  ;;  %v464_v46 = vrot.slane %v463_v34, 4  ;;  %v554_v47 = vrot.slane %v552_v35, 5  ;;  %v255_v57 = vshrl.u32 %v2867_v41, 16  ;;  %v2910_v35 = vld [vmem:[%s2756_s27 + $0x78] sm:$0xf] }
  0x30   : > { %v459_v45 = vsel %vm2783_vm4, %v454_v32, %v458_v16  ;;  %v549_v50 = vor.u32 %v548_v37, %v545_v36  ;;  %v558_v52 = vrot.slane %v556_v38, 4  ;;  %v564_v56 = vrot.slane %v562_v40, 5 }
  0x31   : > { %v634_v49 = vunpack.c.l.b16 %v459_v45  ;;  %2412 = vmatmul.msk.bf16.gmra.mxu1 %vm664_vm5, %v2869_v44  ;;  %v469_v54 = vsel %vm2783_vm4, %v464_v46, %v468_v21  ;;  %v258_v58 = vshll.u32 %v2867_v41, 16  ;;  %v264_v62 = vshll.u32 %v2874_v48, 16  ;;  %v2899_v21 = vld [vmem:[%s2756_s27 + $0x50] sm:$0x1]  ;;  %v2914_v45 = vld [vmem:[%s2756_s27 + $0x7c] sm:$0xf] }
  0x32   : > { %v635_v59 = vunpack.c.l.b16 %v469_v54  ;;  %v550_v60 = vrot.slane %v549_v50, 4  ;;  %v559_v61 = vor.u32 %v558_v52, %v554_v47  ;;  %v257_v2 = vrot.slane %v255_v57, 4  ;;  %v2921_v57 = vld [vmem:[%s2756_s27 + $0x80] sm:$0x1] }
  0x33   : > { %v260_v4 = vrot.slane %v258_v58, 5  ;;  %v268_v7 = vshrl.u32 %v2874_v48, 16  ;;  %v274_v8 = vshll.u32 %v2877_v53, 16  ;;  %v266_v16 = vrot.slane %v264_v62, 5 }
  0x34   : > { %v2894_v10 = vpack.c.b16 %v635_v59, %v634_v49  ;;  %v555_v11 = vsel %vm2783_vm4, %v550_v60, %v554_v47  ;;  %v560_v12 = vrot.slane %v559_v61, 4  ;;  %v375_v25 = vshrl.u32 %v2887_v63, 16 }
  0x35   : > { %v642_v17 = vunpack.c.l.b16 %v555_v11  ;;  %v261_v18 = vor.u32 %v260_v4, %v257_v2  ;;  %v270_v19 = vrot.slane %v268_v7, 4  ;;  %v276_v20 = vrot.slane %v274_v8, 5 }
  0x36   : > { %2416 = vmatmul.msk.bf16.gmra.mxu2 %vm664_vm5, %v2894_v10  ;;  %v565_v24 = vsel %vm2783_vm4, %v560_v12, %v564_v56  ;;  %v378_v26 = vshll.u32 %v2887_v63, 16  ;;  %v384_v29 = vshll.u32 %v2892_v9, 16  ;;  %v388_v34 = vshrl.u32 %v2892_v9, 16 }
  0x37   : > { %v643_v30 = vunpack.c.l.b16 %v565_v24  ;;  %v262_v31 = vrot.slane %v261_v18, 4  ;;  %v271_v32 = vor.u32 %v270_v19, %v266_v16  ;;  %v377_v36 = vrot.slane %v375_v25, 4  ;;  %v2933_v18 = vld [vmem:[%s2756_s27 + $0xa8] sm:$0xf]  ;;  %v2940_v25 = vld [vmem:[%s2756_s27 + $0xac] sm:$0xf] }
  0x38   : > { %v380_v37 = vrot.slane %v378_v26, 5  ;;  %v386_v38 = vrot.slane %v384_v29, 5  ;;  %v394_v40 = vshll.u32 %v2899_v21, 16  ;;  %v390_v50 = vrot.slane %v388_v34, 4  ;;  %3940 = vst [vmem:[#allocation5_spill] sm:$0xff] %v2933_v18 }
  0x39   : > { %v2916_v46 = vpack.c.b16 %v643_v30, %v642_v17  ;;  %v267_v47 = vsel %vm2783_vm4, %v262_v31, %v266_v16  ;;  %v272_v49 = vrot.slane %v271_v32, 4  ;;  %v471_v58 = vshrl.u32 %v2910_v35, 16  ;;  %3941 = vst [vmem:[#allocation6_spill] sm:$0xff] %v2940_v25  ;;  %v2943_v26 = vld [vmem:[%s2756_s27 + $0xb0] sm:$0x1] }
  0x3a   : > { %v618_v52 = vunpack.c.l.b16 %v267_v47  ;;  %v381_v54 = vor.u32 %v380_v37, %v377_v36  ;;  %v396_v56 = vrot.slane %v394_v40, 5  ;;  %v391_v60 = vor.u32 %v390_v50, %v386_v38  ;;  %3942 = vst [vmem:[#allocation7_spill] sm:$0xff] %v2943_v26 }
  0x3b   : > { %3939 = vst [vmem:[#allocation4_spill] sm:$0xff] %v2916_v46  ;;  %2420 = vmatmul.msk.bf16.gmra.mxu3 %vm664_vm5, %v2916_v46  ;;  %v277_v59 = vsel %vm2783_vm4, %v272_v49, %v276_v20  ;;  %v474_v61 = vshll.u32 %v2910_v35, 16  ;;  %v480_v62 = vshll.u32 %v2914_v45, 16  ;;  %v473_v7 = vrot.slane %v471_v58, 4 }
  0x3c   : > { %v619_v2 = vunpack.c.l.b16 %v277_v59  ;;  %v382_v4 = vrot.slane %v381_v54, 4  ;;  %v484_v8 = vshrl.u32 %v2914_v45, 16  ;;  %v392_v11 = vrot.slane %v391_v60, 4  ;;  %v2957_v59 = vld [vmem:[%s2756_s27 + $0x18] sm:$0xf] }
  0x3d   : > { %v476_v12 = vrot.slane %v474_v61, 5  ;;  %v482_v16 = vrot.slane %v480_v62, 5  ;;  %v490_v17 = vshll.u32 %v2921_v57, 16  ;;  %v567_v37 = vshrl.u32 %v2933_v18, 16 }
  0x3e   : > { %v2935_v19 = vpack.c.b16 %v619_v2, %v618_v52  ;;  %v387_v20 = vsel %vm2783_vm4, %v382_v4, %v386_v38  ;;  %v486_v24 = vrot.slane %v484_v8, 4  ;;  %v397_v29 = vsel %vm2783_vm4, %v392_v11, %v396_v56  ;;  %v2962_v2 = vld [vmem:[%s2756_s27 + $0x1c] sm:$0xf]  ;;  %v2965_v4 = vld [vmem:[%s2756_s27 + $0x20] sm:$0x1] }
  0x3f   : > { %v628_v30 = vunpack.c.l.b16 %v387_v20  ;;  %v477_v31 = vor.u32 %v476_v12, %v473_v7  ;;  %v492_v32 = vrot.slane %v490_v17, 5  ;;  %v629_v34 = vunpack.c.l.b16 %v397_v29 }
  0x40   : > { %2408 = vmatmul.msk.bf16.gmra.mxu0 %vm664_vm5, %v2935_v19  ;;  %v487_v36 = vor.u32 %v486_v24, %v482_v16  ;;  %v570_v38 = vshll.u32 %v2933_v18, 16  ;;  %v576_v47 = vshll.u32 %v2940_v25, 16  ;;  %v580_v49 = vshrl.u32 %v2940_v25, 16  ;;  %v3009_v18 = vld [vmem:[%s2756_s27 + $0x8c] sm:$0x1] }
  0x41   : > { %v478_v40 = vrot.slane %v477_v31, 4  ;;  %v586_v50 = vshll.u32 %v2943_v26, 16  ;;  %v2954_v52 = vpack.c.b16 %v629_v34, %v628_v30  ;;  %v569_v56 = vrot.slane %v567_v37, 4  ;;  %3946 = vst [vmem:[#allocation11_spill] sm:$0xff] %v3009_v18  ;;  %v3021_v25 = vld [vmem:[%s2756_s27 + $0xb4] sm:$0xf] }
  0x42   : > { %v488_v54 = vrot.slane %v487_v36, 4  ;;  %v572_v58 = vrot.slane %v570_v38, 5  ;;  %v578_v61 = vrot.slane %v576_v47, 5  ;;  %v582_v62 = vrot.slane %v580_v49, 4  ;;  %v2977_v36 = vld [vmem:[%s2756_s27 + $0x54] sm:$0xf] }
  0x43   : > { %3943 = vst [vmem:[#allocation8_spill] sm:$0xff] %v2954_v52  ;;  %v483_v60 = vsel %vm2783_vm4, %v478_v40, %v482_v16  ;;  %2413 = vmatmul.msk.bf16.gmra.mxu1 %vm664_vm5, %v2954_v52  ;;  %v588_v12 = vrot.slane %v586_v50, 5  ;;  %v279_v16 = vshrl.u32 %v2957_v59, 16  ;;  %v282_v24 = vshll.u32 %v2957_v59, 16  ;;  %v2982_v47 = vld [vmem:[%s2756_s27 + $0x58] sm:$0xf] }
  0x44   : > { %v493_v7 = vsel %vm2783_vm4, %v488_v54, %v492_v32  ;;  %v636_v8 = vunpack.c.l.b16 %v483_v60  ;;  %v573_v11 = vor.u32 %v572_v58, %v569_v56  ;;  %v583_v20 = vor.u32 %v582_v62, %v578_v61  ;;  %v2987_v58 = vld [vmem:[%s2756_s27 + $0x5c] sm:$0x1]  ;;  %3947 = vst [vmem:[#allocation12_spill] sm:$0xff] %v3021_v25 }
  0x45   : > { %v637_v17 = vunpack.c.l.b16 %v493_v7  ;;  %v288_v30 = vshll.u32 %v2962_v2, 16  ;;  %v292_v31 = vshrl.u32 %v2962_v2, 16  ;;  %v298_v34 = vshll.u32 %v2965_v4, 16 }
  0x46   : > { %v574_v29 = vrot.slane %v573_v11, 4  ;;  %v584_v37 = vrot.slane %v583_v20, 4  ;;  %v281_v38 = vrot.slane %v279_v16, 4  ;;  %v284_v40 = vrot.slane %v282_v24, 5  ;;  %v2997_v16 = vld [vmem:[%s2756_s27 + $0x84] sm:$0xf] }
  0x47   : > { %v2979_v32 = vpack.c.b16 %v637_v17, %v636_v8  ;;  %v290_v50 = vrot.slane %v288_v30, 5  ;;  %v294_v54 = vrot.slane %v292_v31, 4  ;;  %v300_v56 = vrot.slane %v298_v34, 5  ;;  %3944 = vst [vmem:[#allocation9_spill] sm:$0xff] %v2997_v16 }
  0x48   : > { %v579_v49 = vsel %vm2783_vm4, %v574_v29, %v578_v61  ;;  %v589_v60 = vsel %vm2783_vm4, %v584_v37, %v588_v12  ;;  %v285_v7 = vor.u32 %v284_v40, %v281_v38  ;;  %v399_v8 = vshrl.u32 %v2977_v36, 16  ;;  %v3004_v40 = vld [vmem:[%s2756_s27 + $0x88] sm:$0xf] }
  0x49   : > { %2417 = vmatmul.msk.bf16.gmra.mxu2 %vm664_vm5, %v2979_v32  ;;  %v644_v62 = vunpack.c.l.b16 %v579_v49  ;;  %v645_v11 = vunpack.c.l.b16 %v589_v60  ;;  %v295_v17 = vor.u32 %v294_v54, %v290_v50  ;;  %v402_v61 = vshll.u32 %v2977_v36, 16 }
  0x4a   : > { %v408_v20 = vshll.u32 %v2982_v47, 16  ;;  %v286_v24 = vrot.slane %v285_v7, 4  ;;  %v401_v29 = vrot.slane %v399_v8, 4  ;;  %v412_v30 = vshrl.u32 %v2982_v47, 16 }
  0x4b   : > { %v418_v12 = vshll.u32 %v2987_v58, 16  ;;  %v3001_v31 = vpack.c.b16 %v645_v11, %v644_v62  ;;  %v296_v34 = vrot.slane %v295_v17, 4  ;;  %v404_v37 = vrot.slane %v402_v61, 5 }
  0x4c   : > { %v410_v38 = vrot.slane %v408_v20, 5  ;;  %v291_v49 = vsel %vm2783_vm4, %v286_v24, %v290_v50  ;;  %v414_v54 = vrot.slane %v412_v30, 4  ;;  %v495_v7 = vshrl.u32 %v2997_v16, 16 }
  0x4d   : > { %3945 = vst [vmem:[#allocation10_spill] sm:$0xff] %v3001_v31  ;;  %v420_v60 = vrot.slane %v418_v12, 5  ;;  %2421 = vmatmul.msk.bf16.gmra.mxu3 %vm664_vm5, %v3001_v31  ;;  %v301_v62 = vsel %vm2783_vm4, %v296_v34, %v300_v56  ;;  %v620_v8 = vunpack.c.l.b16 %v291_v49  ;;  %v405_v11 = vor.u32 %v404_v37, %v401_v29  ;;  %v3026_v37 = vld [vmem:[%s2756_s27 + $0xb8] sm:$0xf] }
  0x4e   : > { %v498_v17 = vshll.u32 %v2997_v16, 16  ;;  %v621_v61 = vunpack.c.l.b16 %v301_v62  ;;  %v415_v50 = vor.u32 %v414_v54, %v410_v38  ;;  %v497_v20 = vrot.slane %v495_v7, 4  ;;  %3948 = vst [vmem:[#allocation13_spill] sm:$0xff] %v3026_v37  ;;  %v3054_v16 = vld [vmem:[%s2756_s27 + $0x2c] sm:$0x1] }
  0x4f   : > { %v504_v24 = vshll.u32 %v3004_v40, 16  ;;  %v406_v30 = vrot.slane %v405_v11, 4  ;;  %v508_v26 = vshrl.u32 %v3004_v40, 16  ;;  %v514_v31 = vshll.u32 %v3009_v18, 16  ;;  %v3031_v11 = vld [vmem:[%s2756_s27 + $0xbc] sm:$0x1] }
  0x50   : > { %v500_v12 = vrot.slane %v498_v17, 5  ;;  %v3023_v56 = vpack.c.b16 %v621_v61, %v620_v8  ;;  %v416_v34 = vrot.slane %v415_v50, 4  ;;  %3949 = vst [vmem:[#allocation14_spill] sm:$0xff] %v3031_v11  ;;  %v591_v61 = vshrl.u32 %v3021_v25, 16 }
  0x51   : > { %v506_v29 = vrot.slane %v504_v24, 5  ;;  %v411_v49 = vsel %vm2783_vm4, %v406_v30, %v410_v38  ;;  %v510_v7 = vrot.slane %v508_v26, 4  ;;  %v516_v62 = vrot.slane %v514_v31, 5 }
  0x52   : > { %v501_v54 = vor.u32 %v500_v12, %v497_v20  ;;  %2409 = vmatmul.msk.bf16.gmra.mxu0 %vm664_vm5, %v3023_v56  ;;  %v421_v8 = vsel %vm2783_vm4, %v416_v34, %v420_v60  ;;  %v630_v17 = vunpack.c.l.b16 %v411_v49  ;;  %v594_v50 = vshll.u32 %v3021_v25, 16 }
  0x53   : > { %v631_v24 = vunpack.c.l.b16 %v421_v8  ;;  %v511_v20 = vor.u32 %v510_v7, %v506_v29  ;;  %v600_v26 = vshll.u32 %v3026_v37, 16  ;;  %v593_v31 = vrot.slane %v591_v61, 4 }
  0x54   : > { %v502_v38 = vrot.slane %v501_v54, 4  ;;  %v596_v30 = vrot.slane %v594_v50, 5  ;;  %v604_v12 = vshrl.u32 %v3026_v37, 16  ;;  %v610_v46 = vshll.u32 %v3031_v11, 16  ;;  %v3050_v54 = vld [vmem:[%s2756_s27 + $0x28] sm:$0xf] }
  0x55   : > { %v3045_v60 = vpack.c.b16 %v631_v24, %v630_v17  ;;  %v512_v49 = vrot.slane %v511_v20, 4  ;;  %v602_v8 = vrot.slane %v600_v26, 5  ;;  %v1053_v7 = vrot.slane %v2803_v6, 5 }
  0x56   : > { %v507_v34 = vsel %vm2783_vm4, %v502_v38, %v506_v29  ;;  %v597_v61 = vor.u32 %v596_v30, %v593_v31  ;;  %v606_v50 = vrot.slane %v604_v12, 4  ;;  %v612_v24 = vrot.slane %v610_v46, 5 }
  0x57   : > { %3950 = vst [vmem:[#allocation15_spill] sm:$0xff] %v3045_v60  ;;  %v638_v25 = vunpack.c.l.b16 %v507_v34  ;;  %2414 = vmatmul.msk.bf16.gmra.mxu1 %vm664_vm5, %v3045_v60  ;;  %v517_v17 = vsel %vm2783_vm4, %v512_v49, %v516_v62  ;;  %v303_v29 = vshrl.u32 %v3043_v43, 16  ;;  %v306_v38 = vshll.u32 %v3043_v43, 16 }
  0x58   : > { %v639_v20 = vunpack.c.l.b16 %v517_v17  ;;  %v598_v26 = vrot.slane %v597_v61, 4  ;;  %v607_v11 = vor.u32 %v606_v50, %v602_v8  ;;  %v312_v6 = vshll.u32 %v3050_v54, 16  ;;  %v2592_v61 = vld [vmem:[%s3892_s1 + $0xc] sm:$0x3]  ;;  %v2613_v50 = vld [vmem:[%s3892_s1 + $0xe] sm:$0x3] }
  0x59   : > { %v305_v31 = vrot.slane %v303_v29, 4  ;;  %v308_v30 = vrot.slane %v306_v38, 5  ;;  %v316_v12 = vshrl.u32 %v3050_v54, 16  ;;  %v322_v34 = vshll.u32 %v3054_v16, 16 }
  0x5a   : > { %v3065_v37 = vpack.c.b16 %v639_v20, %v638_v25  ;;  %v603_v46 = vsel %vm2783_vm4, %v598_v26, %v602_v8  ;;  %v608_v62 = vrot.slane %v607_v11, 4  ;;  %v314_v49 = vrot.slane %v312_v6, 5  ;;  %v2575_v25 = vld [vmem:[%s3892_s1 + $0xa] sm:$0x3]  ;;  %v2631_v11 = vld [vmem:[%s3892_s1 + $0x10] sm:$0x3] }
  0x5b   : > { %v646_v17 = vunpack.c.l.b16 %v603_v46  ;;  %v309_v29 = vor.u32 %v308_v30, %v305_v31  ;;  %v318_v38 = vrot.slane %v316_v12, 4  ;;  %v324_v18 = vrot.slane %v322_v34, 5 }
  0x5c   : > { %3951 = vst [vmem:[#allocation16_spill] sm:$0xff] %v3065_v37  ;;  %2418 = vmatmul.msk.bf16.gmra.mxu2 %vm664_vm5, %v3065_v37  ;;  %v613_v8 = vsel %vm2783_vm4, %v608_v62, %v612_v24  ;;  %v2503_v20 = vrot.slane %v2793_v0, 9  ;;  %v1050_v12 = vrot.slane %v2800_v5, 5  ;;  %v1823_v34 = vand.u32 %v2592_v61, %v2731_v3 }
  0x5d   : > { %v647_v26 = vunpack.c.l.b16 %v613_v8  ;;  %v310_v6 = vrot.slane %v309_v29, 4  ;;  %v319_v31 = vor.u32 %v318_v38, %v314_v49  ;;  %v1979_v46 = vand.u32 %v2613_v50, %v2731_v3 }
  0x5e   : > { %v1689_v37 = vand.u32 %v2575_v25, %v2731_v3  ;;  %v2119_v24 = vand.u32 %v2631_v11, %v2731_v3  ;;  %v1051_v38 = vsel %vm3086_vm8, %v2503_v20, %v1050_v12  ;;  %v1052_v5 = vrot.slane %v1050_v12, 4  ;;  %1832 = vmatpush.bf16.msra.mxu2 %v1823_v34  ;;  %v2651_v20 = vld [vmem:[%s2756_s27] sm:$0xff]  ;;  %v2652_v12 = vld [vmem:[%s2756_s27 + $0xc] sm:$0xff] }
  0x5f   : > { %v3095_v62 = vpack.c.b16 %v647_v26, %v646_v17  ;;  %v315_v0 = vsel %vm2783_vm4, %v310_v6, %v314_v49  ;;  %v320_v29 = vrot.slane %v319_v31, 4  ;;  %1988 = vmatpush.bf16.msra.mxu3 %v1979_v46  ;;  %v2504_v61 = vrot.slane %v2867_v41, 9  ;;  %v3132_v46 = vld [vmem:[%s2756_s27 + $0x18] sm:$0xff] }
  0x60   : > { %v622_v8 = vunpack.c.l.b16 %v315_v0  ;;  %v1162_v50 = vunpack.c.l.b16 %v1051_v38  ;;  %1698 = vmatpush.bf16.msra.mxu1 %v1689_v37  ;;  %v1057_v49 = vrot.slane %v2874_v48, 5  ;;  %v1060_v17 = vrot.slane %v2877_v53, 5  ;;  %2128 = vmatpush.bf16.msra.mxu0 %v2119_v24 }
  0x61   : > { %2422 = vmatmul.msk.bf16.gmra.mxu3 %vm664_vm5, %v3095_v62  ;;  %v325_v3 = vsel %vm2783_vm4, %v320_v29, %v324_v18  ;;  %v1054_v11 = vsel %vm3086_vm8, %v1052_v5, %v1053_v7  ;;  %v1064_v34 = vrot.slane %v2962_v2, 5  ;;  %v2505_v24 = vrot.slane %v2957_v59, 9  ;;  %v3152_v5 = vld [vmem:[%s2756_s27 + $0x24] sm:$0xff] }
  0x62   : > { %v623_v25 = vunpack.c.l.b16 %v325_v3  ;;  %v1163_v41 = vunpack.c.l.b16 %v1054_v11  ;;  %v1058_v26 = vsel %vm3086_vm8, %v2504_v61, %v1057_v49  ;;  %v1059_v6 = vrot.slane %v1057_v49, 4 }
  0x63   : > { %v1164_v37 = vunpack.c.l.b16 %v1058_v26  ;;  %v1066_v0 = vrot.slane %v1064_v34, 4  ;;  %v1067_v29 = vrot.slane %v2965_v4, 5  ;;  %v1071_v4 = vrot.slane %v3050_v54, 5 }
  0x64   : > { %v3113_v18 = vpack.c.b16 %v623_v25, %v622_v8  ;;  %v1194_v31 = vpack.c.b16 %v1163_v41, %v1162_v50  ;;  %v1061_v48 = vsel %vm3086_vm8, %v1059_v6, %v1060_v17  ;;  %v2506_v61 = vrot.slane %v3043_v43, 9 }
  0x65   : > { %v1165_v53 = vunpack.c.l.b16 %v1061_v48  ;;  %v1068_v2 = vsel %vm3086_vm8, %v1066_v0, %v1067_v29  ;;  %v1073_v3 = vrot.slane %v1071_v4, 4  ;;  %v1074_v50 = vrot.slane %v3054_v16, 5  ;;  %v3202_v0 = vld [vmem:[%s2756_s27 + $0x3c] sm:$0xff] }
  0x66   : > { %2410 = vmatmul.msk.bf16.gmra.mxu0 %vm664_vm5, %v3113_v18  ;;  %v1167_v8 = vunpack.c.l.b16 %v1068_v2  ;;  %v1072_v49 = vsel %vm3086_vm8, %v2506_v61, %v1071_v4  ;;  %v1078_v16 = vrot.slane %v2762_v14, 5  ;;  %v2507_v41 = vrot.slane %v2759_v13, 9 }
  0x67   : > { %2487 = vmatmul.msk.bf16.vlgmr.msrb.gmra.mxu1 %vm664_vm5, %v2651_v20  ;;  %v3120_v7 = vpack.c.b16 %v1165_v53, %v1164_v37  ;;  %v1075_v54 = vsel %vm3086_vm8, %v1073_v3, %v1074_v50  ;;  %v1168_v17 = vunpack.c.l.b16 %v1072_v49  ;;  %v3174_v20 = vld [vmem:[%s2756_s27 + $0x30] sm:$0xff]  ;;  %v1081_v6 = vrot.slane %v2765_v15, 5 }
  0x68   : > { %v1169_v25 = vunpack.c.l.b16 %v1075_v54  ;;  %v1080_v26 = vrot.slane %v1078_v16, 4  ;;  %v1079_v37 = vsel %vm3086_vm8, %v2507_v41, %v1078_v16  ;;  %v3236_v16 = vld [vmem:[%s2756_s27 + $0x48] sm:$0xff] }
  0x69   : > { %v1170_v48 = vunpack.c.l.b16 %v1079_v37  ;;  %v1095_v37 = vrot.slane %v2899_v21, 5 }
  0x6a   : > { %v3166_v43 = vpack.c.b16 %v1169_v25, %v1168_v17  ;;  %v1082_v14 = vsel %vm3086_vm8, %v1080_v26, %v1081_v6  ;;  %v1092_v17 = vrot.slane %v2892_v9, 5  ;;  %v2509_v26 = vrot.slane %v2887_v63, 9 }
  0x6b   : > { %v1171_v53 = vunpack.c.l.b16 %v1082_v14 }
  0x6c   : > { %2520 = vmatmul.msk.bf16.vlgmr.msrb.gmra.mxu2 %vm664_vm5, %v1194_v31  ;;  %v1094_v6 = vrot.slane %v1092_v17, 4 }
  0x6d   : > { %v3194_v15 = vpack.c.b16 %v1171_v53, %v1170_v48  ;;  %v1093_v48 = vsel %vm3086_vm8, %v2509_v26, %v1092_v17  ;;  %v1102_v26 = vrot.slane %v2987_v58, 5 }
  0x6e   : > { %v1096_v53 = vsel %vm3086_vm8, %v1094_v6, %v1095_v37 }
  0x71   : > { %2541 = vmatmul.msk.bf16.vlgmr.msrb.gmra.mxu3 %vm664_vm5, %v2652_v12 }
  0x76   : > { %2558 = vmatmul.msk.bf16.vlgmr.msrb.gmra.mxu0 %vm664_vm5, %v2935_v19  ;;  %v1065_v19 = vsel %vm3086_vm8, %v2505_v24, %v1064_v34  ;;  %v1085_v24 = vrot.slane %v2822_v28, 5 }
  0x77   : > { %2488 = vmatmul.msk.bf16.gmra.mxu1 %vm664_vm5, %v2652_v12  ;;  %v1166_v38 = vunpack.c.l.b16 %v1065_v19  ;;  %v2508_v19 = vrot.slane %v2819_v27, 9 }
  0x78   : > { %v1087_v2 = vrot.slane %v1085_v24, 4 }
  0x79   : > { %v3146_v59 = vpack.c.b16 %v1167_v8, %v1166_v38  ;;  %v1088_v38 = vrot.slane %v2827_v33, 5  ;;  %v1086_v28 = vsel %vm3086_vm8, %v2508_v19, %v1085_v24  ;;  %v1174_v24 = vunpack.c.l.b16 %v1093_v48 }
  0x7a   : > { %v1172_v27 = vunpack.c.l.b16 %v1086_v28  ;;  %v1175_v19 = vunpack.c.l.b16 %v1096_v53 }
  0x7b   : > { %v1089_v4 = vsel %vm3086_vm8, %v1087_v2, %v1088_v38  ;;  %v1099_v38 = vrot.slane %v2982_v47, 5 }
  0x7c   : > { %2521 = vmatmul.msk.bf16.gmra.mxu2 %vm664_vm5, %v3120_v7  ;;  %v1173_v50 = vunpack.c.l.b16 %v1089_v4  ;;  %v3260_v2 = vpack.c.b16 %v1175_v19, %v1174_v24 }
  0x7d   : > { %v1101_v17 = vrot.slane %v1099_v38, 4 }
  0x7e   : > { %v3226_v49 = vpack.c.b16 %v1173_v50, %v1172_v27  ;;  %3958 = vst [vmem:[#allocation21_spill] sm:$0xff] %v3260_v2  ;;  %v3270_v27 = vld [vmem:[%s2756_s27 + $0x54] sm:$0xff]  ;;  %v2510_v50 = vrot.slane %v2977_v36, 9 }
  0x7f   : > { %3959 = vst [vmem:[#allocation22_spill] sm:$0xff] %v3270_v27  ;;  %v1103_v48 = vsel %vm3086_vm8, %v1101_v17, %v1102_v26 }
  0x80   : > { %v1100_v47 = vsel %vm3086_vm8, %v2510_v50, %v1099_v38  ;;  %v1177_v58 = vunpack.c.l.b16 %v1103_v48  ;;  %v1106_v50 = vrot.slane %v2774_v22, 5 }
  0x81   : > { %2542 = vmatmul.msk.bf16.gmra.mxu3 %vm664_vm5, %v3132_v46  ;;  %v1176_v53 = vunpack.c.l.b16 %v1100_v47  ;;  %v2683_v47 = vld [vmem:[%s2756_s27 + $0x68] sm:$0x1] }
  0x82   : > { %v1109_v48 = vrot.slane %v2683_v47, 5 }
  0x83   : > { %v3292_v19 = vpack.c.b16 %v1177_v58, %v1176_v53 }
  0x85   : > { %3961 = vst [vmem:[#allocation24_spill] sm:$0xff] %v3292_v19 }
  0x86   : > { %2559 = vmatmul.msk.bf16.gmra.mxu0 %vm664_vm5, %v3023_v56 }
  0x87   : > { %2489 = vmatmul.msk.bf16.gmra.mxu1 %vm664_vm5, %v3132_v46 }
  0x8c   : > { %2522 = vmatmul.msk.bf16.gmra.mxu2 %vm664_vm5, %v3146_v59 }
  0x91   : > { %2543 = vmatmul.msk.bf16.gmra.mxu3 %vm664_vm5, %v3152_v5 }
  0x96   : > { %2560 = vmatmul.msk.bf16.gmra.mxu0 %vm664_vm5, %v3113_v18 }
  0x97   : > { %2490 = vmatmul.msk.bf16.gmra.mxu1 %vm664_vm5, %v3152_v5 }
  0x9c   : > { %v3169_v11 = vpop.f32.mrf.mxu1  ;;  %2523 = vmatmul.msk.bf16.gmra.mxu2 %vm664_vm5, %v3166_v43 }
  0xa1   : > { %2544 = vmatmul.msk.bf16.gmra.mxu3 %vm664_vm5, %v3174_v20 }
  0xa4   : > { %v3184_v31 = vpop.f32.mrf.mxu1 }
  0xa6   : > { %v3186_v12 = vpop.f32.mrf.mxu2  ;;  %2561 = vmatmul.msk.bf16.gmra.mxu0 %vm664_vm5, %v2795_v1 }
  0xa7   : > { %2491 = vmatmul.msk.bf16.gmra.mxu1 %vm664_vm5, %v3174_v20 }
  0xa9   : > { %v3192_v13 = vpop.f32.mrf.mxu0 }
  0xaa   : > { %v3196_v34 = vpop.f32.mrf.mxu3 }
  0xab   : > { %3954 = vst [vmem:[#allocation17_spill] sm:$0xff] %v3196_v34 }
  0xac   : > { %2524 = vmatmul.msk.bf16.gmra.mxu2 %vm664_vm5, %v3194_v15 }
  0xae   : > { %v3204_v29 = vpop.f32.mrf.mxu1  ;;  %v3208_v8 = vpop.f32.mrf.mxu2 }
  0xb1   : > { %2545 = vmatmul.msk.bf16.gmra.mxu3 %vm664_vm5, %v3202_v0  ;;  %v3216_v61 = vpop.f32.mrf.mxu0 }
  0xb2   : > { %v3218_v3 = vpop.f32.mrf.mxu3 }
  0xb3   : > { %3955 = vst [vmem:[#allocation18_spill] sm:$0xff] %v3218_v3 }
  0xb6   : > { %2562 = vmatmul.msk.bf16.gmra.mxu0 %vm664_vm5, %v2869_v44  ;;  %v3222_v33 = vpop.f32.mrf.mxu1 }
  0xb7   : > { %2492 = vmatmul.msk.bf16.gmra.mxu1 %vm664_vm5, %v3202_v0 }
  0xb9   : > { %v3228_v54 = vpop.f32.mrf.mxu2 }
  0xbc   : > { %2525 = vmatmul.msk.bf16.gmra.mxu2 %vm664_vm5, %v3226_v49 }
  0xbd   : > { %v3231_v25 = vpop.f32.mrf.mxu0 }
  0xbe   : > { %v3238_v41 = vpop.f32.mrf.mxu3 }
  0xbf   : > { %3956 = vst [vmem:[#allocation19_spill] sm:$0xff] %v3238_v41  ;;  %v1108_v41 = vrot.slane %v1106_v50, 4 }
  0xc0   : > { %v3242_v14 = vpop.f32.mrf.mxu1 }
  0xc1   : > { %2546 = vmatmul.msk.bf16.gmra.mxu3 %vm664_vm5, %v3236_v16  ;;  %v3246_v9 = vpop.f32.mrf.mxu2  ;;  %v1110_v58 = vsel %vm3086_vm8, %v1108_v41, %v1109_v48  ;;  %v1113_v41 = vrot.slane %v2842_v51, 5 }
  0xc5   : > { %v3252_v63 = vpop.f32.mrf.mxu0 }
  0xc6   : > { %2563 = vmatmul.msk.bf16.gmra.mxu0 %vm664_vm5, %v2954_v52  ;;  %v3256_v21 = vpop.f32.mrf.mxu3 }
  0xc7   : > { %3957 = vst [vmem:[#allocation20_spill] sm:$0xff] %v3256_v21  ;;  %2493 = vmatmul.msk.bf16.gmra.mxu1 %vm664_vm5, %v3236_v16  ;;  %v2684_v21 = vld [vmem:[%s2756_s27 + $0x60] sm:$0xf] }
  0xc8   : > { %v3263_v28 = vpop.f32.mrf.mxu1 }
  0xcc   : > { %v3265_v4 = vpop.f32.mrf.mxu2  ;;  %2526 = vmatmul.msk.bf16.gmra.mxu2 %vm664_vm5, %v3260_v2 }
  0xcf   : > { %v3274_v6 = vpop.f32.mrf.mxu0 }
  0xd0   : > { %v3276_v37 = vpop.f32.mrf.mxu3 }
  0xd1   : > { %3960 = vst [vmem:[#allocation23_spill] sm:$0xff] %v3276_v37  ;;  %2547 = vmatmul.msk.bf16.gmra.mxu3 %vm664_vm5, %v3270_v27  ;;  %v3305_v37 = vld [vmem:[%s2756_s27 + $0x60] sm:$0xff] }
  0xd2   : > { %3963 = vst [vmem:[#allocation26_spill] sm:$0xff] %v3305_v37 }
  0xd4   : > { %v3284_v36 = vpop.f32.mrf.mxu1  ;;  %v3286_v24 = vpop.f32.mrf.mxu2 }
  0xd6   : > { %2564 = vmatmul.msk.bf16.gmra.mxu0 %vm664_vm5, %v3045_v60  ;;  %v2511_v60 = vrot.slane %v2684_v21, 9  ;;  %v1179_v21 = vunpack.c.l.b16 %v1110_v58 }
  0xd7   : > { %2494 = vmatmul.msk.bf16.gmra.mxu1 %vm664_vm5, %v3270_v27  ;;  %v3294_v38 = vpop.f32.mrf.mxu0 }
  0xd8   : > { %v3297_v17 = vpop.f32.mrf.mxu3  ;;  %v1107_v22 = vsel %vm3086_vm8, %v2511_v60, %v1106_v50 }
  0xd9   : > { %3962 = vst [vmem:[#allocation25_spill] sm:$0xff] %v3297_v17  ;;  %v1178_v27 = vunpack.c.l.b16 %v1107_v22  ;;  %v3338_v22 = vld [vmem:[%s2756_s27 + $0x6c] sm:$0xff] }
  0xdb   : > { %v3327_v60 = vpack.c.b16 %v1179_v21, %v1178_v27  ;;  %v1115_v27 = vrot.slane %v1113_v41, 4 }
  0xdc   : > { %2527 = vmatmul.msk.bf16.gmra.mxu2 %vm664_vm5, %v3292_v19  ;;  %v3301_v26 = vpop.f32.mrf.mxu1 }
  0xdd   : > { %3965 = vst [vmem:[#allocation28_spill] sm:$0xff] %v3327_v60 }
  0xdf   : > { %v3308_v53 = vpop.f32.mrf.mxu2 }
  0xe1   : > { %2548 = vmatmul.msk.bf16.gmra.mxu3 %vm664_vm5, %v3305_v37 }
  0xe3   : > { %v3316_v17 = vpop.f32.mrf.mxu0 }
  0xe4   : > { %v3318_v47 = vpop.f32.mrf.mxu3  ;;  %v949_v19 = vpop.f32.mrf.mxu1 }
  0xe5   : > { %3964 = vst [vmem:[#allocation27_spill] sm:$0xff] %v3318_v47  ;;  %v950_v3 = vadd.f32 %v949_v19, %v3192_v13  ;;  %v1116_v19 = vrot.slane %v2849_v55, 5  ;;  %v2512_v47 = vrot.slane %v2835_v42, 9 }
  0xe6   : > { %2565 = vmatmul.msk.bf16.gmra.mxu0 %vm664_vm5, %v2814_v23 }
  0xe7   : > { %v3323_v2 = vpop.f32.mrf.mxu2  ;;  %2495 = vmatmul.msk.bf16.gmra.mxu1 %vm664_vm5, %v3305_v37  ;;  %v1114_v51 = vsel %vm3086_vm8, %v2512_v47, %v1113_v41 }
  0xe8   : > { %v1180_v52 = vunpack.c.l.b16 %v1114_v51 }
  0xeb   : > { %v3330_v50 = vpop.f32.mrf.mxu0 }
  0xec   : > { %v3332_v48 = vpop.f32.mrf.mxu3  ;;  %2528 = vmatmul.msk.bf16.gmra.mxu2 %vm664_vm5, %v3327_v60  ;;  %v951_v13 = vpop.f32.mrf.mxu1 }
  0xed   : > { %3966 = vst [vmem:[#allocation29_spill] sm:$0xff] %v3332_v48  ;;  %v952_v58 = vadd.f32 %v951_v13, %v3216_v61  ;;  %v1117_v48 = vsel %vm3086_vm8, %v1115_v27, %v1116_v19  ;;  %v1120_v19 = vrot.slane %v2914_v45, 5 }
  0xee   : > { %v1181_v34 = vunpack.c.l.b16 %v1117_v48  ;;  %v1123_v48 = vrot.slane %v2921_v57, 5 }
  0xef   : > { %v1270_v21 = vpop.f32.mrf.mxu2 }
  0xf0   : > { %v1350_v23 = vadd.f32 %v1270_v21, %v950_v3  ;;  %v3355_v13 = vpack.c.b16 %v1181_v34, %v1180_v52  ;;  %v3362_v21 = vld [vmem:[%s2756_s27 + $0x78] sm:$0xff] }
  0xf1   : > { %2549 = vmatmul.msk.bf16.gmra.mxu3 %vm664_vm5, %v3338_v22 }
  0xf3   : > { %v1560_v60 = vpop.f32.mrf.mxu0 }
  0xf4   : > { %v1404_v55 = vpop.f32.mrf.mxu3  ;;  %v954_v37 = vpop.f32.mrf.mxu1 }
  0xf5   : > { %v1484_v61 = vadd.f32 %v1404_v55, %v1350_v23  ;;  %v955_v42 = vadd.f32 %v954_v37, %v3231_v25 }
  0xf6   : > { %2566 = vmatmul.msk.bf16.gmra.mxu0 %vm664_vm5, %v2894_v10 }
  0xf7   : > { %v1272_v3 = vpop.f32.mrf.mxu2  ;;  %2496 = vmatmul.msk.bf16.gmra.mxu1 %vm664_vm5, %v3338_v22  ;;  %v3353_v47 = vadd.f32 %v1560_v60, %v1484_v61  ;;  %v2513_v60 = vrot.slane %v2910_v35, 9 }
  0xf8   : > { %v1351_v41 = vadd.f32 %v1272_v3, %v952_v58  ;;  %v1122_v58 = vrot.slane %v1120_v19, 4 }
  0xf9   : > { %v1121_v57 = vsel %vm3086_vm8, %v2513_v60, %v1120_v19 }
  0xfa   : > { %v1124_v55 = vsel %vm3086_vm8, %v1122_v58, %v1123_v48  ;;  %v3968_v58 = vld [vmem:[#allocation11_spill] sm:$0xff] }
  0xfb   : > { %v1562_v27 = vpop.f32.mrf.mxu0 }
  0xfc   : > { %v1406_v23 = vpop.f32.mrf.mxu3  ;;  %2529 = vmatmul.msk.bf16.gmra.mxu2 %vm664_vm5, %v3355_v13  ;;  %v956_v25 = vpop.f32.mrf.mxu1 }
  0xfd   : > { %v1485_v37 = vadd.f32 %v1406_v23, %v1351_v41  ;;  %v957_v51 = vadd.f32 %v956_v25, %v3252_v63  ;;  %v1182_v63 = vunpack.c.l.b16 %v1121_v57  ;;  %v1183_v23 = vunpack.c.l.b16 %v1124_v55  ;;  %v3388_v55 = vld [vmem:[%s2756_s27 + $0x84] sm:$0xff] }
  0xff   : > { %v1275_v52 = vpop.f32.mrf.mxu2  ;;  %v3366_v34 = vadd.f32 %v1562_v27, %v1485_v37  ;;  %v3381_v48 = vpack.c.b16 %v1183_v23, %v1182_v63  ;;  %v1127_v37 = vrot.slane %v3004_v40, 5 }
 0x100   : > { %v1352_v45 = vadd.f32 %v1275_v52, %v955_v42  ;;  %v1130_v52 = vrot.slane %v3968_v58, 5 }
 0x101   : > { %2550 = vmatmul.msk.bf16.gmra.mxu3 %vm664_vm5, %v3362_v21 }
 0x103   : > { %v1565_v61 = vpop.f32.mrf.mxu0 }
 0x104   : > { %v1409_v3 = vpop.f32.mrf.mxu3  ;;  %v959_v41 = vpop.f32.mrf.mxu1 }
 0x105   : > { %v1486_v35 = vadd.f32 %v1409_v3, %v1352_v45  ;;  %v960_v27 = vadd.f32 %v959_v41, %v3274_v6 }
 0x106   : > { %2567 = vmatmul.msk.bf16.gmra.mxu0 %vm664_vm5, %v2979_v32 }
 0x107   : > { %v1277_v42 = vpop.f32.mrf.mxu2  ;;  %2497 = vmatmul.msk.bf16.gmra.mxu1 %vm664_vm5, %v3362_v21  ;;  %v3379_v19 = vadd.f32 %v1565_v61, %v1486_v35  ;;  %v3969_v61 = vld [vmem:[#allocation9_spill] sm:$0xff] }
 0x108   : > { %v1353_v25 = vadd.f32 %v1277_v42, %v957_v51  ;;  %v2514_v41 = vrot.slane %v3969_v61, 9  ;;  %v1129_v51 = vrot.slane %v1127_v37, 4 }
 0x109   : > { %3967 = vst [vmem:[#allocation30_spill] sm:$0xff] %v3379_v19 }
 0x10a   : > { %v1128_v35 = vsel %vm3086_vm8, %v2514_v41, %v1127_v37  ;;  %v1131_v42 = vsel %vm3086_vm8, %v1129_v51, %v1130_v52  ;;  %v2685_v51 = vld [vmem:[%s2756_s27 + $0x94] sm:$0xf] }
 0x10b   : > { %v1567_v60 = vpop.f32.mrf.mxu0 }
 0x10c   : > { %v1411_v45 = vpop.f32.mrf.mxu3  ;;  %2530 = vmatmul.msk.bf16.gmra.mxu2 %vm664_vm5, %v3381_v48  ;;  %v961_v6 = vpop.f32.mrf.mxu1 }
 0x10d   : > { %v1487_v57 = vadd.f32 %v1411_v45, %v1353_v25  ;;  %v962_v3 = vadd.f32 %v961_v6, %v3294_v38  ;;  %v1184_v45 = vunpack.c.l.b16 %v1128_v35  ;;  %v1185_v6 = vunpack.c.l.b16 %v1131_v42 }
 0x10f   : > { %v1280_v63 = vpop.f32.mrf.mxu2  ;;  %v3392_v23 = vadd.f32 %v1567_v60, %v1487_v57  ;;  %v3407_v41 = vpack.c.b16 %v1185_v6, %v1184_v45 }
 0x110   : > { %v1354_v40 = vadd.f32 %v1280_v63, %v960_v27  ;;  %v3971_v27 = vld [vmem:[#allocation16_spill] sm:$0xff]  ;;  %v1134_v63 = vrot.slane %v2685_v51, 5 }
 0x111   : > { %3970 = vst [vmem:[#allocation11_spill] sm:$0xff] %v3392_v23  ;;  %2551 = vmatmul.msk.bf16.gmra.mxu3 %vm664_vm5, %v3388_v55  ;;  %v3414_v23 = vld [vmem:[%s2756_s27 + $0x90] sm:$0xff] }
 0x112   : > { %3973 = vst [vmem:[#allocation31_spill] sm:$0xff] %v3407_v41 }
 0x113   : > { %v1570_v25 = vpop.f32.mrf.mxu0  ;;  %3974 = vst [vmem:[#allocation32_spill] sm:$0xff] %v3414_v23 }
 0x114   : > { %v1414_v38 = vpop.f32.mrf.mxu3  ;;  %v964_v58 = vpop.f32.mrf.mxu1 }
 0x115   : > { %v1488_v61 = vadd.f32 %v1414_v38, %v1354_v40  ;;  %v965_v60 = vadd.f32 %v964_v58, %v3316_v17  ;;  %v2686_v40 = vld [vmem:[%s2756_s27 + $0x98] sm:$0x1] }
 0x116   : > { %2568 = vmatmul.msk.bf16.gmra.mxu0 %vm664_vm5, %v3971_v27  ;;  %v1137_v42 = vrot.slane %v2686_v40, 5 }
 0x117   : > { %v1282_v57 = vpop.f32.mrf.mxu2  ;;  %2498 = vmatmul.msk.bf16.gmra.mxu1 %vm664_vm5, %v3388_v55  ;;  %v3405_v37 = vadd.f32 %v1570_v25, %v1488_v61  ;;  %v2687_v25 = vld [vmem:[%s2756_s27 + $0x90] sm:$0xf] }
 0x118   : > { %v1355_v52 = vadd.f32 %v1282_v57, %v962_v3  ;;  %v2515_v61 = vrot.slane %v2687_v25, 9  ;;  %v1136_v3 = vrot.slane %v1134_v63, 4 }
 0x119   : > { %3972 = vst [vmem:[#allocation9_spill] sm:$0xff] %v3405_v37 }
 0x11a   : > { %v1135_v51 = vsel %vm3086_vm8, %v2515_v61, %v1134_v63  ;;  %v2688_v61 = vld [vmem:[%s2756_s27 + $0xa0] sm:$0xf] }
 0x11b   : > { %v1572_v35 = vpop.f32.mrf.mxu0 }
 0x11c   : > { %v1416_v17 = vpop.f32.mrf.mxu3  ;;  %2531 = vmatmul.msk.bf16.gmra.mxu2 %vm664_vm5, %v3407_v41  ;;  %v966_v38 = vpop.f32.mrf.mxu1  ;;  %v2690_v41 = vld [vmem:[%s2756_s27 + $0x9c] sm:$0xf] }
 0x11d   : > { %v1489_v58 = vadd.f32 %v1416_v17, %v1355_v52  ;;  %v967_v27 = vadd.f32 %v966_v38, %v3330_v50  ;;  %v1138_v52 = vsel %vm3086_vm8, %v1136_v3, %v1137_v42  ;;  %v1186_v38 = vunpack.c.l.b16 %v1135_v51 }
 0x11e   : > { %v1187_v25 = vunpack.c.l.b16 %v1138_v52  ;;  %v1141_v3 = vrot.slane %v2688_v61, 5  ;;  %v2689_v52 = vld [vmem:[%s2756_s27 + $0xa4] sm:$0x1] }
 0x11f   : > { %v1285_v45 = vpop.f32.mrf.mxu2  ;;  %v3418_v6 = vadd.f32 %v1572_v35, %v1489_v58  ;;  %v3976_v35 = vld [vmem:[#allocation3_spill] sm:$0xff] }
 0x120   : > { %v1356_v57 = vadd.f32 %v1285_v45, %v965_v60  ;;  %v3432_v42 = vpack.c.b16 %v1187_v25, %v1186_v38 }
 0x121   : > { %3975 = vst [vmem:[#allocation33_spill] sm:$0xff] %v3418_v6  ;;  %2552 = vmatmul.msk.bf16.gmra.mxu3 %vm664_vm5, %v3414_v23 }
 0x122   : > { %3978 = vst [vmem:[#allocation35_spill] sm:$0xff] %v3432_v42 }
 0x123   : > { %v1575_v40 = vpop.f32.mrf.mxu0 }
 0x124   : > { %v1419_v17 = vpop.f32.mrf.mxu3  ;;  %v969_v50 = vpop.f32.mrf.mxu1 }
 0x125   : > { %v1490_v37 = vadd.f32 %v1419_v17, %v1356_v57  ;;  %v1144_v17 = vrot.slane %v2689_v52, 5 }
 0x126   : > { %2569 = vmatmul.msk.bf16.gmra.mxu0 %vm664_vm5, %v3976_v35  ;;  %v3439_v35 = vld [vmem:[%s2756_s27 + $0x9c] sm:$0xff] }
 0x127   : > { %v1287_v60 = vpop.f32.mrf.mxu2  ;;  %2499 = vmatmul.msk.bf16.gmra.mxu1 %vm664_vm5, %v3414_v23  ;;  %v3430_v63 = vadd.f32 %v1575_v40, %v1490_v37  ;;  %3979 = vst [vmem:[#allocation36_spill] sm:$0xff] %v3439_v35  ;;  %v2516_v23 = vrot.slane %v2690_v41, 9  ;;  %v1143_v37 = vrot.slane %v1141_v3, 4 }
 0x128   : > { %v1357_v58 = vadd.f32 %v1287_v60, %v967_v27  ;;  %v970_v27 = vadd.f32 %v969_v50, %v3169_v11  ;;  %v3981_v50 = vld [vmem:[#allocation4_spill] sm:$0xff] }
 0x129   : > { %3977 = vst [vmem:[#allocation34_spill] sm:$0xff] %v3430_v63  ;;  %v1142_v60 = vsel %vm3086_vm8, %v2516_v23, %v1141_v3 }
 0x12a   : > { %v1188_v41 = vunpack.c.l.b16 %v1142_v60 }
 0x12b   : > { %v1577_v45 = vpop.f32.mrf.mxu0 }
 0x12c   : > { %v1421_v51 = vpop.f32.mrf.mxu3  ;;  %2532 = vmatmul.msk.bf16.gmra.mxu2 %vm664_vm5, %v3432_v42  ;;  %v971_v57 = vpop.f32.mrf.mxu1 }
 0x12d   : > { %v1491_v6 = vadd.f32 %v1421_v51, %v1357_v58  ;;  %v1145_v58 = vsel %vm3086_vm8, %v1143_v37, %v1144_v17  ;;  %v3984_v37 = vld [vmem:[#allocation6_spill] sm:$0xff] }
 0x12e   : > { %v1189_v63 = vunpack.c.l.b16 %v1145_v58  ;;  %v3985_v58 = vld [vmem:[#allocation7_spill] sm:$0xff] }
 0x12f   : > { %v1290_v40 = vpop.f32.mrf.mxu2  ;;  %v3443_v38 = vadd.f32 %v1577_v45, %v1491_v6  ;;  %v972_v6 = vadd.f32 %v971_v57, %v3184_v31  ;;  %v3465_v57 = vld [vmem:[%s2756_s27 + $0xa8] sm:$0xff] }
 0x130   : > { %v1358_v25 = vadd.f32 %v1290_v40, %v970_v27  ;;  %v3458_v17 = vpack.c.b16 %v1189_v63, %v1188_v41  ;;  %v1148_v27 = vrot.slane %v3984_v37, 5  ;;  %3986 = vst [vmem:[#allocation6_spill] sm:$0xff] %v3465_v57 }
 0x131   : > { %3980 = vst [vmem:[#allocation37_spill] sm:$0xff] %v3443_v38  ;;  %2553 = vmatmul.msk.bf16.gmra.mxu3 %vm664_vm5, %v3439_v35  ;;  %v3987_v38 = vld [vmem:[#allocation5_spill] sm:$0xff] }
 0x132   : > { %3983 = vst [vmem:[#allocation39_spill] sm:$0xff] %v3458_v17 }
 0x133   : > { %v1580_v61 = vpop.f32.mrf.mxu0 }
 0x134   : > { %v1424_v51 = vpop.f32.mrf.mxu3  ;;  %v974_v52 = vpop.f32.mrf.mxu1 }
 0x135   : > { %v1492_v11 = vadd.f32 %v1424_v51, %v1358_v25  ;;  %v1151_v51 = vrot.slane %v3985_v58, 5 }
 0x136   : > { %2570 = vmatmul.msk.bf16.gmra.mxu0 %vm664_vm5, %v3981_v50  ;;  %v2517_v50 = vrot.slane %v3987_v38, 9 }
 0x137   : > { %v1292_v45 = vpop.f32.mrf.mxu2  ;;  %2500 = vmatmul.msk.bf16.gmra.mxu1 %vm664_vm5, %v3439_v35  ;;  %v3456_v23 = vadd.f32 %v1580_v61, %v1492_v11  ;;  %v1150_v61 = vrot.slane %v1148_v27, 4  ;;  %v975_v11 = vadd.f32 %v974_v52, %v3204_v29 }
 0x138   : > { %v1359_v3 = vadd.f32 %v1292_v45, %v972_v6  ;;  %v1149_v45 = vsel %vm3086_vm8, %v2517_v50, %v1148_v27  ;;  %v3483_v50 = vld [vmem:[%s2756_s27 + $0xc0] sm:$0xf] }
 0x139   : > { %3982 = vst [vmem:[#allocation38_spill] sm:$0xff] %v3456_v23  ;;  %v1190_v58 = vunpack.c.l.b16 %v1149_v45  ;;  %v3989_v23 = vld [vmem:[#allocation10_spill] sm:$0xff]  ;;  %v1517_v45 = vshrl.u32 %v3483_v50, 16 }
 0x13a   : > { %3990 = vst [vmem:[#allocation5_spill] sm:$0xff] %v3483_v50 }
 0x13b   : > { %v1582_v40 = vpop.f32.mrf.mxu0 }
 0x13c   : > { %v1426_v60 = vpop.f32.mrf.mxu3  ;;  %2533 = vmatmul.msk.bf16.gmra.mxu2 %vm664_vm5, %v3458_v17  ;;  %v976_v25 = vpop.f32.mrf.mxu1 }
 0x13d   : > { %v1493_v31 = vadd.f32 %v1426_v60, %v1359_v3  ;;  %v1152_v3 = vsel %vm3086_vm8, %v1150_v61, %v1151_v51 }
 0x13e   : > { %v1191_v29 = vunpack.c.l.b16 %v1152_v3 }
 0x13f   : > { %v1295_v63 = vpop.f32.mrf.mxu2  ;;  %v3469_v41 = vadd.f32 %v1582_v40, %v1493_v31  ;;  %v977_v40 = vadd.f32 %v976_v25, %v3222_v33  ;;  %v1520_v33 = vshll.u32 %v3483_v50, 16 }
 0x140   : > { %v1360_v6 = vadd.f32 %v1295_v63, %v975_v11  ;;  %v3487_v61 = vpack.c.b16 %v1191_v29, %v1190_v58  ;;  %v3490_v11 = vld [vmem:[%s2756_s27 + $0xc4] sm:$0xf]  ;;  %v3994_v63 = vld [vmem:[#allocation13_spill] sm:$0xff] }
 0x141   : > { %3988 = vst [vmem:[#allocation7_spill] sm:$0xff] %v3469_v41  ;;  %2554 = vmatmul.msk.bf16.gmra.mxu3 %vm664_vm5, %v3465_v57  ;;  %v1526_v25 = vshll.u32 %v3490_v11, 16  ;;  %v3995_v58 = vld [vmem:[#allocation14_spill] sm:$0xff]  ;;  %v1522_v17 = vrot.slane %v1520_v33, 5 }
 0x142   : > { %3992 = vst [vmem:[#allocation41_spill] sm:$0xff] %v3487_v61  ;;  %v1158_v29 = vrot.slane %v3995_v58, 5 }
 0x143   : > { %v1585_v37 = vpop.f32.mrf.mxu0  ;;  %3993 = vst [vmem:[#allocation42_spill] sm:$0xff] %v3490_v11 }
 0x144   : > { %v1429_v38 = vpop.f32.mrf.mxu3  ;;  %v979_v60 = vpop.f32.mrf.mxu1 }
 0x145   : > { %v1494_v52 = vadd.f32 %v1429_v38, %v1360_v6  ;;  %v1155_v6 = vrot.slane %v3994_v63, 5  ;;  %v1530_v38 = vshrl.u32 %v3490_v11, 16  ;;  %v980_v50 = vadd.f32 %v979_v60, %v3242_v14 }
 0x146   : > { %2571 = vmatmul.msk.bf16.gmra.mxu0 %vm664_vm5, %v3989_v23  ;;  %v1519_v23 = vrot.slane %v1517_v45, 4  ;;  %v1528_v11 = vrot.slane %v1526_v25, 5 }
 0x147   : > { %v1297_v31 = vpop.f32.mrf.mxu2  ;;  %2501 = vmatmul.msk.bf16.gmra.mxu1 %vm664_vm5, %v3465_v57  ;;  %v3485_v27 = vadd.f32 %v1585_v37, %v1494_v52  ;;  %v1532_v35 = vrot.slane %v1530_v38, 4 }
 0x148   : > { %v1361_v51 = vadd.f32 %v1297_v31, %v977_v40  ;;  %v3501_v40 = vld [vmem:[%s2756_s27 + $0xb4] sm:$0xff]  ;;  %v1523_v60 = vor.u32 %v1522_v17, %v1519_v23 }
 0x149   : > { %3991 = vst [vmem:[#allocation40_spill] sm:$0xff] %v3485_v27  ;;  %v3996_v31 = vld [vmem:[#allocation12_spill] sm:$0xff]  ;;  %v1157_v27 = vrot.slane %v1155_v6, 4  ;;  %v1533_v45 = vor.u32 %v1532_v35, %v1528_v11 }
 0x14a   : > { %v2518_v63 = vrot.slane %v3996_v31, 9 }
 0x14b   : > { %v1587_v3 = vpop.f32.mrf.mxu0  ;;  %v1534_v23 = vrot.slane %v1533_v45, 4 }
 0x14c   : > { %v1431_v41 = vpop.f32.mrf.mxu3  ;;  %2534 = vmatmul.msk.bf16.gmra.mxu2 %vm664_vm5, %v3487_v61  ;;  %v981_v37 = vpop.f32.mrf.mxu1  ;;  %v3508_v61 = vld [vmem:[%s2756_s27 + $0xc8] sm:$0x1] }
 0x14d   : > { %v1495_v52 = vadd.f32 %v1431_v41, %v1361_v51  ;;  %v1156_v41 = vsel %vm3086_vm8, %v2518_v63, %v1155_v6  ;;  %v1159_v51 = vsel %vm3086_vm8, %v1157_v27, %v1158_v29  ;;  %v1536_v33 = vshll.u32 %v3508_v61, 16 }
 0x14e   : > { %v1192_v38 = vunpack.c.l.b16 %v1156_v41  ;;  %v982_v58 = vadd.f32 %v981_v37, %v3263_v28  ;;  %v1524_v27 = vrot.slane %v1523_v60, 4 }
 0x14f   : > { %v1300_v57 = vpop.f32.mrf.mxu2  ;;  %v3505_v42 = vadd.f32 %v1587_v3, %v1495_v52  ;;  %v1538_v35 = vrot.slane %v1536_v33, 5 }
 0x150   : > { %v1362_v19 = vadd.f32 %v1300_v57, %v980_v50  ;;  %v1193_v57 = vunpack.c.l.b16 %v1159_v51  ;;  %v3533_v51 = vld [vmem:[%s2756_s27 + $0xc0] sm:$0xff] }
 0x151   : > { %2555 = vmatmul.msk.bf16.gmra.mxu3 %vm664_vm5, %v3501_v40  ;;  %v1539_v28 = vsel %vm2783_vm4, %v1534_v23, %v1538_v35 }
 0x152   : > { %v3524_v52 = vpack.c.b16 %v1193_v57, %v1192_v38  ;;  %v1543_v45 = vunpack.c.l.b16 %v1539_v28 }
 0x153   : > { %v1590_v14 = vpop.f32.mrf.mxu0 }
 0x154   : > { %v1434_v25 = vpop.f32.mrf.mxu3  ;;  %v984_v3 = vpop.f32.mrf.mxu1 }
 0x155   : > { %v1496_v50 = vadd.f32 %v1434_v25, %v1362_v19  ;;  %v1529_v19 = vsel %vm2783_vm4, %v1524_v27, %v1528_v11 }
 0x156   : > { %2572 = vmatmul.msk.bf16.gmra.mxu0 %vm664_vm5, %v3095_v62  ;;  %v1542_v60 = vunpack.c.l.b16 %v1529_v19 }
 0x157   : > { %v1302_v6 = vpop.f32.mrf.mxu2  ;;  %2502 = vmatmul.msk.bf16.gmra.mxu1 %vm664_vm5, %v3501_v40  ;;  %v3522_v17 = vadd.f32 %v1590_v14, %v1496_v50  ;;  %v985_v14 = vadd.f32 %v984_v3, %v3284_v36 }
 0x158   : > { %v1363_v29 = vadd.f32 %v1302_v6, %v982_v58  ;;  %v3540_v11 = vpack.c.b16 %v1543_v45, %v1542_v60 }
 0x15b   : > { %v1592_v31 = vpop.f32.mrf.mxu0 }
 0x15c   : > { %v1436_v37 = vpop.f32.mrf.mxu3  ;;  %2535 = vmatmul.msk.bf16.gmra.mxu2 %vm664_vm5, %v3524_v52  ;;  %v986_v63 = vpop.f32.mrf.mxu1 }
 0x15d   : > { %v1497_v41 = vadd.f32 %v1436_v37, %v1363_v29  ;;  %v987_v36 = vadd.f32 %v986_v63, %v3301_v26 }
 0x15f   : > { %v1305_v33 = vpop.f32.mrf.mxu2  ;;  %v3536_v25 = vadd.f32 %v1592_v31, %v1497_v41 }
 0x160   : > { %v1364_v38 = vadd.f32 %v1305_v33, %v985_v14 }
 0x161   : > { %2556 = vmatmul.msk.bf16.gmra.mxu3 %vm664_vm5, %v3533_v51 }
 0x163   : > { %v1595_v57 = vpop.f32.mrf.mxu0 }
 0x164   : > { %v1439_v50 = vpop.f32.mrf.mxu3  ;;  %v989_v58 = vpop.f32.mrf.mxu1 }
 0x165   : > { %v1498_v6 = vadd.f32 %v1439_v50, %v1364_v38  ;;  %v990_v28 = vadd.f32 %v989_v58, %v3186_v12 }
 0x166   : > { %2573 = vmatmul.msk.bf16.gmra.mxu0 %vm664_vm5, %v3540_v11 }
 0x167   : > { %v1307_v3 = vpop.f32.mrf.mxu2  ;;  %2576 = vmatmul.msk.bf16.vlgmr.msra.gmra.mxu1 %vm664_vm5, %v3120_v7  ;;  %v3547_v27 = vadd.f32 %v1595_v57, %v1498_v6 }
 0x168   : > { %v1365_v23 = vadd.f32 %v1307_v3, %v987_v36 }
 0x16b   : > { %v1597_v35 = vpop.f32.mrf.mxu0 }
 0x16c   : > { %v1441_v29 = vpop.f32.mrf.mxu3  ;;  %2597 = vmatmul.msk.bf16.vlgmr.msra.gmra.mxu2 %vm664_vm5, %v3132_v46  ;;  %v991_v31 = vpop.f32.mrf.mxu1 }
 0x16d   : > { %v1499_v19 = vadd.f32 %v1441_v29, %v1365_v23  ;;  %v992_v46 = vadd.f32 %v991_v31, %v3208_v8 }
 0x16f   : > { %v1310_v37 = vpop.f32.mrf.mxu2  ;;  %v3552_v41 = vadd.f32 %v1597_v35, %v1499_v19 }
 0x170   : > { %v1366_v26 = vadd.f32 %v1310_v37, %v990_v28 }
 0x171   : > { %2614 = vmatmul.msk.bf16.vlgmr.msra.gmra.mxu3 %vm664_vm5, %v3023_v56 }
 0x173   : > { %v1600_v7 = vpop.f32.mrf.mxu0 }
 0x174   : > { %v1444_v63 = vpop.f32.mrf.mxu3  ;;  %v994_v14 = vpop.f32.mrf.mxu1 }
 0x175   : > { %v1500_v60 = vadd.f32 %v1444_v63, %v1366_v26  ;;  %v995_v58 = vadd.f32 %v994_v14, %v3228_v54 }
 0x176   : > { %2632 = vmatmul.msk.bf16.vlgmr.msra.gmra.mxu0 %vm664_vm5, %v3146_v59 }
 0x177   : > { %v1312_v45 = vpop.f32.mrf.mxu2  ;;  %2577 = vmatmul.msk.bf16.gmra.mxu1 %vm664_vm5, %v3146_v59  ;;  %v3561_v12 = vadd.f32 %v1600_v7, %v1500_v60 }
 0x178   : > { %v1367_v33 = vadd.f32 %v1312_v45, %v992_v46 }
 0x17b   : > { %v1602_v38 = vpop.f32.mrf.mxu0 }
 0x17c   : > { %v1446_v57 = vpop.f32.mrf.mxu3  ;;  %2598 = vmatmul.msk.bf16.gmra.mxu2 %vm664_vm5, %v3152_v5  ;;  %v996_v56 = vpop.f32.mrf.mxu1 }
 0x17d   : > { %v1501_v50 = vadd.f32 %v1446_v57, %v1367_v33  ;;  %v997_v5 = vadd.f32 %v996_v56, %v3246_v9 }
 0x17f   : > { %v1315_v6 = vpop.f32.mrf.mxu2  ;;  %v3566_v36 = vadd.f32 %v1602_v38, %v1501_v50 }
 0x180   : > { %v1368_v8 = vadd.f32 %v1315_v6, %v995_v58 }
 0x181   : > { %2615 = vmatmul.msk.bf16.gmra.mxu3 %vm664_vm5, %v3113_v18 }
 0x183   : > { %v1605_v59 = vpop.f32.mrf.mxu0 }
 0x184   : > { %v1449_v3 = vpop.f32.mrf.mxu3  ;;  %v999_v23 = vpop.f32.mrf.mxu1 }
 0x185   : > { %v1502_v35 = vadd.f32 %v1449_v3, %v1368_v8  ;;  %v1000_v26 = vadd.f32 %v999_v23, %v3265_v4 }
 0x186   : > { %2633 = vmatmul.msk.bf16.gmra.mxu0 %vm664_vm5, %v3166_v43 }
 0x187   : > { %v1317_v29 = vpop.f32.mrf.mxu2  ;;  %2578 = vmatmul.msk.bf16.gmra.mxu1 %vm664_vm5, %v3166_v43  ;;  %v3575_v54 = vadd.f32 %v1605_v59, %v1502_v35 }
 0x188   : > { %v1369_v31 = vadd.f32 %v1317_v29, %v997_v5 }
 0x18b   : > { %v1607_v19 = vpop.f32.mrf.mxu0 }
 0x18c   : > { %v1451_v28 = vpop.f32.mrf.mxu3  ;;  %2599 = vmatmul.msk.bf16.gmra.mxu2 %vm664_vm5, %v3174_v20  ;;  %v1001_v18 = vpop.f32.mrf.mxu1 }
 0x18d   : > { %v1503_v37 = vadd.f32 %v1451_v28, %v1369_v31  ;;  %v1002_v20 = vadd.f32 %v1001_v18, %v3286_v24 }
 0x18f   : > { %v1320_v7 = vpop.f32.mrf.mxu2  ;;  %v3580_v63 = vadd.f32 %v1607_v19, %v1503_v37  ;;  %v3997_v19 = vld [vmem:[#allocation17_spill] sm:$0xff] }
 0x190   : > { %v1370_v9 = vadd.f32 %v1320_v7, %v1000_v26  ;;  %v3998_v26 = vld [vmem:[#allocation8_spill] sm:$0xff] }
 0x191   : > { %2616 = vmatmul.msk.bf16.gmra.mxu3 %vm664_vm5, %v2795_v1 }
 0x193   : > { %v1610_v43 = vpop.f32.mrf.mxu0 }
 0x194   : > { %v1454_v14 = vpop.f32.mrf.mxu3  ;;  %v1004_v60 = vpop.f32.mrf.mxu1 }
 0x195   : > { %v1504_v46 = vadd.f32 %v1454_v14, %v1370_v9  ;;  %v1005_v50 = vadd.f32 %v1004_v60, %v3308_v53  ;;  %v3999_v14 = vld [vmem:[#allocation21_spill] sm:$0xff]  ;;  %v4000_v60 = vld [vmem:[#allocation18_spill] sm:$0xff] }
 0x196   : > { %2634 = vmatmul.msk.bf16.gmra.mxu0 %vm664_vm5, %v3194_v15 }
 0x197   : > { %v1322_v45 = vpop.f32.mrf.mxu2  ;;  %2579 = vmatmul.msk.bf16.gmra.mxu1 %vm664_vm5, %v3194_v15  ;;  %v3589_v4 = vadd.f32 %v1610_v43, %v1504_v46 }
 0x198   : > { %v1371_v33 = vadd.f32 %v1322_v45, %v1002_v20 }
 0x19b   : > { %v1612_v38 = vpop.f32.mrf.mxu0 }
 0x19c   : > { %v1456_v57 = vpop.f32.mrf.mxu3  ;;  %2600 = vmatmul.msk.bf16.gmra.mxu2 %vm664_vm5, %v3202_v0  ;;  %v1006_v1 = vpop.f32.mrf.mxu1 }
 0x19d   : > { %v1505_v56 = vadd.f32 %v1456_v57, %v1371_v33  ;;  %v1007_v0 = vadd.f32 %v1006_v1, %v3323_v2  ;;  %v4001_v57 = vld [vmem:[#allocation22_spill] sm:$0xff] }
 0x19f   : > { %v1325_v58 = vpop.f32.mrf.mxu2  ;;  %v3594_v6 = vadd.f32 %v1612_v38, %v1505_v56 }
 0x1a0   : > { %v1372_v24 = vadd.f32 %v1325_v58, %v1005_v50  ;;  %v4002_v50 = vld [vmem:[#allocation19_spill] sm:$0xff] }
 0x1a1   : > { %2617 = vmatmul.msk.bf16.gmra.mxu3 %vm664_vm5, %v2869_v44 }
 0x1a3   : > { %v1615_v15 = vpop.f32.mrf.mxu0 }
 0x1a4   : > { %v1459_v8 = vpop.f32.mrf.mxu3  ;;  %v1009_v59 = vpop.f32.mrf.mxu1 }
 0x1a5   : > { %v1506_v3 = vadd.f32 %v1459_v8, %v1372_v24  ;;  %v1010_v28 = vadd.f32 %v1009_v59, %v3997_v19  ;;  %v4003_v59 = vld [vmem:[#allocation15_spill] sm:$0xff] }
 0x1a6   : > { %2635 = vmatmul.msk.bf16.gmra.mxu0 %vm664_vm5, %v3226_v49 }
 0x1a7   : > { %v1327_v23 = vpop.f32.mrf.mxu2  ;;  %2580 = vmatmul.msk.bf16.gmra.mxu1 %vm664_vm5, %v3226_v49  ;;  %v3603_v53 = vadd.f32 %v1615_v15, %v1506_v3 }
 0x1a8   : > { %v1373_v35 = vadd.f32 %v1327_v23, %v1007_v0 }
 0x1ab   : > { %v1617_v5 = vpop.f32.mrf.mxu0 }
 0x1ac   : > { %v1461_v29 = vpop.f32.mrf.mxu3  ;;  %2601 = vmatmul.msk.bf16.gmra.mxu2 %vm664_vm5, %v3236_v16  ;;  %v1011_v44 = vpop.f32.mrf.mxu1 }
 0x1ad   : > { %v1507_v31 = vadd.f32 %v1461_v29, %v1373_v35  ;;  %v1012_v16 = vadd.f32 %v1011_v44, %v4000_v60  ;;  %v4005_v29 = vld [vmem:[#allocation20_spill] sm:$0xff] }
 0x1af   : > { %v1330_v18 = vpop.f32.mrf.mxu2  ;;  %v3608_v37 = vadd.f32 %v1617_v5, %v1507_v31  ;;  %v4004_v5 = vld [vmem:[#allocation24_spill] sm:$0xff] }
 0x1b0   : > { %v1374_v2 = vadd.f32 %v1330_v18, %v1010_v28 }
 0x1b1   : > { %2618 = vmatmul.msk.bf16.gmra.mxu3 %vm664_vm5, %v3998_v26  ;;  %v4006_v26 = vld [vmem:[#allocation26_spill] sm:$0xff] }
 0x1b3   : > { %v1620_v49 = vpop.f32.mrf.mxu0 }
 0x1b4   : > { %v1464_v7 = vpop.f32.mrf.mxu3  ;;  %v1014_v9 = vpop.f32.mrf.mxu1 }
 0x1b5   : > { %v1508_v43 = vadd.f32 %v1464_v7, %v1374_v2  ;;  %v1015_v58 = vadd.f32 %v1014_v9, %v4002_v50  ;;  %v4007_v9 = vld [vmem:[#allocation23_spill] sm:$0xff] }
 0x1b6   : > { %2636 = vmatmul.msk.bf16.gmra.mxu0 %vm664_vm5, %v3999_v14 }
 0x1b7   : > { %v1332_v46 = vpop.f32.mrf.mxu2  ;;  %2581 = vmatmul.msk.bf16.gmra.mxu1 %vm664_vm5, %v3999_v14  ;;  %v3617_v20 = vadd.f32 %v1620_v49, %v1508_v43 }
 0x1b8   : > { %v1375_v45 = vadd.f32 %v1332_v46, %v1012_v16  ;;  %v4008_v46 = vld [vmem:[#allocation2_spill] sm:$0xff] }
 0x1bb   : > { %v1622_v33 = vpop.f32.mrf.mxu0 }
 0x1bc   : > { %v1466_v38 = vpop.f32.mrf.mxu3  ;;  %2602 = vmatmul.msk.bf16.gmra.mxu2 %vm664_vm5, %v4001_v57  ;;  %v1016_v1 = vpop.f32.mrf.mxu1 }
 0x1bd   : > { %v1509_v56 = vadd.f32 %v1466_v38, %v1375_v45  ;;  %v1017_v44 = vadd.f32 %v1016_v1, %v4005_v29  ;;  %v4009_v1 = vld [vmem:[#allocation28_spill] sm:$0xff] }
 0x1bf   : > { %v1335_v24 = vpop.f32.mrf.mxu2  ;;  %v3622_v15 = vadd.f32 %v1622_v33, %v1509_v56  ;;  %v4010_v56 = vld [vmem:[#allocation25_spill] sm:$0xff] }
 0x1c0   : > { %v1376_v8 = vadd.f32 %v1335_v24, %v1015_v58 }
 0x1c1   : > { %2619 = vmatmul.msk.bf16.gmra.mxu3 %vm664_vm5, %v4003_v59 }
 0x1c3   : > { %v1625_v3 = vpop.f32.mrf.mxu0 }
 0x1c4   : > { %v1469_v0 = vpop.f32.mrf.mxu3  ;;  %v1019_v23 = vpop.f32.mrf.mxu1 }
 0x1c5   : > { %v1510_v35 = vadd.f32 %v1469_v0, %v1376_v8  ;;  %v1020_v43 = vadd.f32 %v1019_v23, %v4007_v9 }
 0x1c6   : > { %2637 = vmatmul.msk.bf16.gmra.mxu0 %vm664_vm5, %v4004_v5 }
 0x1c7   : > { %v1337_v31 = vpop.f32.mrf.mxu2  ;;  %2582 = vmatmul.msk.bf16.gmra.mxu1 %vm664_vm5, %v4004_v5  ;;  %v3631_v19 = vadd.f32 %v1625_v3, %v1510_v35  ;;  %v4011_v35 = vld [vmem:[#allocation27_spill] sm:$0xff] }
 0x1c8   : > { %v1377_v28 = vadd.f32 %v1337_v31, %v1017_v44 }
 0x1cb   : > { %v1627_v18 = vpop.f32.mrf.mxu0 }
 0x1cc   : > { %v1471_v2 = vpop.f32.mrf.mxu3  ;;  %2603 = vmatmul.msk.bf16.gmra.mxu2 %vm664_vm5, %v4006_v26  ;;  %v1021_v49 = vpop.f32.mrf.mxu1 }
 0x1cd   : > { %v1511_v7 = vadd.f32 %v1471_v2, %v1377_v28  ;;  %v1022_v50 = vadd.f32 %v1021_v49, %v4010_v56  ;;  %v4012_v49 = vld [vmem:[#allocation29_spill] sm:$0xff] }
 0x1cf   : > { %v1340_v14 = vpop.f32.mrf.mxu2  ;;  %v3636_v60 = vadd.f32 %v1627_v18, %v1511_v7 }
 0x1d0   : > { %v1378_v16 = vadd.f32 %v1340_v14, %v1020_v43 }
 0x1d1   : > { %2620 = vmatmul.msk.bf16.gmra.mxu3 %vm664_vm5, %v4008_v46 }
 0x1d3   : > { %v1630_v45 = vpop.f32.mrf.mxu0 }
 0x1d4   : > { %v1474_v33 = vpop.f32.mrf.mxu3  ;;  %v1024_v38 = vpop.f32.mrf.mxu1 }
 0x1d5   : > { %v1512_v57 = vadd.f32 %v1474_v33, %v1378_v16  ;;  %v1025_v5 = vadd.f32 %v1024_v38, %v4011_v35 }
 0x1d6   : > { %2638 = vmatmul.msk.bf16.gmra.mxu0 %vm664_vm5, %v4009_v1 }
 0x1d7   : > { %v1342_v58 = vpop.f32.mrf.mxu2  ;;  %2583 = vmatmul.msk.bf16.gmra.mxu1 %vm664_vm5, %v4009_v1  ;;  %v3645_v24 = vadd.f32 %v1630_v45, %v1512_v57 }
 0x1d8   : > { %v1379_v8 = vadd.f32 %v1342_v58, %v1022_v50  ;;  %v3671_v58 = vld [vmem:[%s3893_s2] ss:$0 sm:$0xff] }
 0x1db   : > { %v1632_v59 = vpop.f32.mrf.mxu0 }
 0x1dc   : > { %v1476_v3 = vpop.f32.mrf.mxu3  ;;  %2604 = vmatmul.msk.bf16.gmra.mxu2 %vm664_vm5, %v3338_v22  ;;  %v1026_v0 = vpop.f32.mrf.mxu1 }
 0x1dd   : > { %v1513_v23 = vadd.f32 %v1476_v3, %v1379_v8  ;;  %v1027_v22 = vadd.f32 %v1026_v0, %v4012_v49 }
 0x1df   : > { %v1345_v29 = vpop.f32.mrf.mxu2  ;;  %v3650_v44 = vadd.f32 %v1632_v59, %v1513_v23 }
 0x1e0   : > { %v1380_v31 = vadd.f32 %v1345_v29, %v1025_v5  ;;  %v4013_v5 = vld [vmem:[#allocation30_spill] sm:$0xff] }
 0x1e1   : > { %2621 = vmatmul.msk.bf16.gmra.mxu3 %vm664_vm5, %v2894_v10 }
 0x1e3   : > { %v1635_v28 = vpop.f32.mrf.mxu0 }
 0x1e4   : > { %v1479_v18 = vpop.f32.mrf.mxu3  ;;  %v1700_v2 = vpop.f32.mrf.mxu1 }
 0x1e5   : > { %v1514_v26 = vadd.f32 %v1479_v18, %v1380_v31  ;;  %v1780_v45 = vadd.f32 %v1700_v2, %v3353_v47  ;;  %v4014_v18 = vld [vmem:[#allocation16_spill] sm:$0xff] }
 0x1e6   : > { %2639 = vmatmul.msk.bf16.gmra.mxu0 %vm664_vm5, %v3355_v13 }
 0x1e7   : > { %v1347_v7 = vpop.f32.mrf.mxu2  ;;  %2584 = vmatmul.msk.bf16.gmra.mxu1 %vm664_vm5, %v3355_v13  ;;  %v3659_v9 = vadd.f32 %v1635_v28, %v1514_v26 }
 0x1e8   : > { %v1381_v43 = vadd.f32 %v1347_v7, %v1027_v22 }
 0x1eb   : > { %v1637_v14 = vpop.f32.mrf.mxu0 }
 0x1ec   : > { %v1481_v16 = vpop.f32.mrf.mxu3  ;;  %2605 = vmatmul.msk.bf16.gmra.mxu2 %vm664_vm5, %v3362_v21  ;;  %v1702_v10 = vpop.f32.mrf.mxu1 }
 0x1ed   : > { %v1515_v46 = vadd.f32 %v1481_v16, %v1381_v43  ;;  %v1781_v21 = vadd.f32 %v1702_v10, %v3366_v34  ;;  %v4015_v43 = vld [vmem:[#allocation31_spill] sm:$0xff] }
 0x1ee   : > { %v4016_v16 = vld [vmem:[#allocation11_spill] sm:$0xff] }
 0x1ef   : > { %v1834_v33 = vpop.f32.mrf.mxu2  ;;  %v3664_v38 = vadd.f32 %v1637_v14, %v1515_v46 }
 0x1f0   : > { %v1914_v13 = vadd.f32 %v1834_v33, %v1780_v45 }
 0x1f1   : > { %2622 = vmatmul.msk.bf16.gmra.mxu3 %vm664_vm5, %v2979_v32 }
 0x1f3   : > { %v2130_v57 = vpop.f32.mrf.mxu0 }
 0x1f4   : > { %v1990_v1 = vpop.f32.mrf.mxu3  ;;  %v1705_v56 = vpop.f32.mrf.mxu1 }
 0x1f5   : > { %v2070_v50 = vadd.f32 %v1990_v1, %v1914_v13  ;;  %v1782_v29 = vadd.f32 %v1705_v56, %v4013_v5  ;;  %v4017_v56 = vld [vmem:[#allocation32_spill] sm:$0xff] }
 0x1f6   : > { %2640 = vmatmul.msk.bf16.gmra.mxu0 %vm664_vm5, %v3381_v48 }
 0x1f7   : > { %v2210_v47 = vadd.f32 %v2130_v57, %v2070_v50  ;;  %v1836_v8 = vpop.f32.mrf.mxu2  ;;  %2585 = vmatmul.msk.bf16.gmra.mxu1 %vm664_vm5, %v3381_v48 }
 0x1f8   : > { %v1915_v59 = vadd.f32 %v1836_v8, %v1781_v21  ;;  %v4018_v8 = vld [vmem:[#allocation9_spill] sm:$0xff] }
 0x1f9   : > { %v2246_v32 = vadd.f32 %v3671_v58, %v2210_v47 }
 0x1fb   : > { %v2278_v3 = vpack.c.bf16 %v2246_v32, %v2246_v32  ;;  %v2132_v0 = vpop.f32.mrf.mxu0 }
 0x1fc   : > { %v1992_v23 = vpop.f32.mrf.mxu3  ;;  %2606 = vmatmul.msk.bf16.gmra.mxu2 %vm664_vm5, %v3388_v55  ;;  %v1707_v34 = vpop.f32.mrf.mxu1 }
 0x1fd   : > { %2311 = vst.msk [vmem:[%s3683_s16] sm:$0xf] %vm2310_vm9, %v2278_v3  ;;  %v2071_v48 = vadd.f32 %v1992_v23, %v1915_v59  ;;  %v1783_v10 = vadd.f32 %v1707_v34, %v4016_v16 }
 0x1ff   : > { %v2211_v35 = vadd.f32 %v2132_v0, %v2071_v48  ;;  %v1839_v31 = vpop.f32.mrf.mxu2  ;;  %v4019_v0 = vld [vmem:[#allocation3_spill] sm:$0xff] }
 0x200   : > { %v1916_v2 = vadd.f32 %v1839_v31, %v1782_v29  ;;  %v4020_v31 = vld [vmem:[#allocation35_spill] sm:$0xff] }
 0x201   : > { %v2247_v28 = vadd.f32 %v3671_v58, %v2211_v35  ;;  %2623 = vmatmul.msk.bf16.gmra.mxu3 %vm664_vm5, %v4014_v18  ;;  %v4021_v18 = vld [vmem:[#allocation33_spill] sm:$0xff] }
 0x203   : > { %v2279_v26 = vpack.c.bf16 %v2247_v28, %v2247_v28  ;;  %v2135_v49 = vpop.f32.mrf.mxu0 }
 0x204   : > { %v1995_v22 = vpop.f32.mrf.mxu3  ;;  %v1710_v7 = vpop.f32.mrf.mxu1 }
 0x205   : > { %2312 = vst.msk [vmem:[%s3683_s16 + $0x4] sm:$0xf] %vm2310_vm9, %v2279_v26  ;;  %v2072_v55 = vadd.f32 %v1995_v22, %v1916_v2  ;;  %v1784_v32 = vadd.f32 %v1710_v7, %v4018_v8 }
 0x206   : > { %2641 = vmatmul.msk.bf16.gmra.mxu0 %vm664_vm5, %v4015_v43 }
 0x207   : > { %v2212_v14 = vadd.f32 %v2135_v49, %v2072_v55  ;;  %v1841_v46 = vpop.f32.mrf.mxu2  ;;  %2586 = vmatmul.msk.bf16.gmra.mxu1 %vm664_vm5, %v4015_v43 }
 0x208   : > { %v1917_v33 = vadd.f32 %v1841_v46, %v1783_v10 }
 0x209   : > { %v2248_v45 = vadd.f32 %v3671_v58, %v2212_v14  ;;  %v4022_v14 = vld [vmem:[#allocation36_spill] sm:$0xff] }
 0x20b   : > { %v2280_v13 = vpack.c.bf16 %v2248_v45, %v2248_v45  ;;  %v2137_v57 = vpop.f32.mrf.mxu0  ;;  %v4023_v45 = vld [vmem:[#allocation34_spill] sm:$0xff] }
 0x20c   : > { %v1997_v1 = vpop.f32.mrf.mxu3  ;;  %2607 = vmatmul.msk.bf16.gmra.mxu2 %vm664_vm5, %v4017_v56  ;;  %v1712_v50 = vpop.f32.mrf.mxu1 }
 0x20d   : > { %2313 = vst.msk [vmem:[%s3683_s16 + $0x8] sm:$0xf] %vm2310_vm9, %v2280_v13  ;;  %v2073_v47 = vadd.f32 %v1997_v1, %v1917_v33  ;;  %v1785_v2 = vadd.f32 %v1712_v50, %v4021_v18  ;;  %v4024_v1 = vld [vmem:[#allocation4_spill] sm:$0xff] }
 0x20f   : > { %v2213_v21 = vadd.f32 %v2137_v57, %v2073_v47  ;;  %v1844_v59 = vpop.f32.mrf.mxu2 }
 0x210   : > { %v1918_v23 = vadd.f32 %v1844_v59, %v1784_v32  ;;  %v4025_v59 = vld [vmem:[#allocation39_spill] sm:$0xff] }
 0x211   : > { %v2249_v3 = vadd.f32 %v3671_v58, %v2213_v21  ;;  %2624 = vmatmul.msk.bf16.gmra.mxu3 %vm664_vm5, %v4019_v0  ;;  %v4026_v0 = vld [vmem:[#allocation37_spill] sm:$0xff] }
 0x213   : > { %v2281_v34 = vpack.c.bf16 %v2249_v3, %v2249_v3  ;;  %v2140_v48 = vpop.f32.mrf.mxu0 }
 0x214   : > { %v2000_v35 = vpop.f32.mrf.mxu3  ;;  %v1715_v5 = vpop.f32.mrf.mxu1 }
 0x215   : > { %2314 = vst.msk [vmem:[%s3683_s16 + $0xc] sm:$0xf] %vm2310_vm9, %v2281_v34  ;;  %v2074_v29 = vadd.f32 %v2000_v35, %v1918_v23  ;;  %v1786_v33 = vadd.f32 %v1715_v5, %v4023_v45 }
 0x216   : > { %2642 = vmatmul.msk.bf16.gmra.mxu0 %vm664_vm5, %v4020_v31 }
 0x217   : > { %v2214_v28 = vadd.f32 %v2140_v48, %v2074_v29  ;;  %v1846_v26 = vpop.f32.mrf.mxu2  ;;  %2587 = vmatmul.msk.bf16.gmra.mxu1 %vm664_vm5, %v4020_v31 }
 0x218   : > { %v1919_v22 = vadd.f32 %v1846_v26, %v1785_v2 }
 0x219   : > { %v2250_v49 = vadd.f32 %v3671_v58, %v2214_v28  ;;  %v4027_v28 = vld [vmem:[#allocation6_spill] sm:$0xff] }
 0x21b   : > { %v2282_v7 = vpack.c.bf16 %v2250_v49, %v2250_v49  ;;  %v2142_v55 = vpop.f32.mrf.mxu0  ;;  %v4028_v49 = vld [vmem:[#allocation38_spill] sm:$0xff] }
 0x21c   : > { %v2002_v43 = vpop.f32.mrf.mxu3  ;;  %2608 = vmatmul.msk.bf16.gmra.mxu2 %vm664_vm5, %v4022_v14  ;;  %v1717_v16 = vpop.f32.mrf.mxu1 }
 0x21d   : > { %2315 = vst.msk [vmem:[%s3683_s16 + $0x10] sm:$0xf] %vm2310_vm9, %v2282_v7  ;;  %v2075_v10 = vadd.f32 %v2002_v43, %v1919_v22  ;;  %v1787_v23 = vadd.f32 %v1717_v16, %v4026_v0  ;;  %v4029_v43 = vld [vmem:[#allocation10_spill] sm:$0xff] }
 0x21f   : > { %v2215_v46 = vadd.f32 %v2142_v55, %v2075_v10  ;;  %v1849_v13 = vpop.f32.mrf.mxu2 }
 0x220   : > { %v1920_v56 = vadd.f32 %v1849_v13, %v1786_v33  ;;  %v4030_v13 = vld [vmem:[#allocation41_spill] sm:$0xff] }
 0x221   : > { %v2251_v57 = vadd.f32 %v3671_v58, %v2215_v46  ;;  %2625 = vmatmul.msk.bf16.gmra.mxu3 %vm664_vm5, %v4024_v1  ;;  %v4031_v1 = vld [vmem:[#allocation7_spill] sm:$0xff] }
 0x223   : > { %v2283_v50 = vpack.c.bf16 %v2251_v57, %v2251_v57  ;;  %v2145_v47 = vpop.f32.mrf.mxu0 }
 0x224   : > { %v2005_v21 = vpop.f32.mrf.mxu3  ;;  %v1720_v8 = vpop.f32.mrf.mxu1 }
 0x225   : > { %2316 = vst.msk [vmem:[%s3683_s16 + $0x14] sm:$0xf] %vm2310_vm9, %v2283_v50  ;;  %v2076_v32 = vadd.f32 %v2005_v21, %v1920_v56  ;;  %v1788_v22 = vadd.f32 %v1720_v8, %v4028_v49 }
 0x226   : > { %2643 = vmatmul.msk.bf16.gmra.mxu0 %vm664_vm5, %v4025_v59 }
 0x227   : > { %v2216_v3 = vadd.f32 %v2145_v47, %v2076_v32  ;;  %v1851_v34 = vpop.f32.mrf.mxu2  ;;  %2588 = vmatmul.msk.bf16.gmra.mxu1 %vm664_vm5, %v4025_v59 }
 0x228   : > { %v1921_v35 = vadd.f32 %v1851_v34, %v1787_v23  ;;  %v4032_v34 = vld [vmem:[#allocation40_spill] sm:$0xff] }
 0x229   : > { %v2252_v48 = vadd.f32 %v3671_v58, %v2216_v3 }
 0x22b   : > { %v2284_v5 = vpack.c.bf16 %v2252_v48, %v2252_v48  ;;  %v2147_v29 = vpop.f32.mrf.mxu0 }
 0x22c   : > { %v2007_v31 = vpop.f32.mrf.mxu3  ;;  %2609 = vmatmul.msk.bf16.gmra.mxu2 %vm664_vm5, %v4027_v28  ;;  %v1722_v18 = vpop.f32.mrf.mxu1 }
 0x22d   : > { %2317 = vst.msk [vmem:[%s3683_s16 + $0x18] sm:$0xf] %vm2310_vm9, %v2284_v5  ;;  %v2077_v2 = vadd.f32 %v2007_v31, %v1921_v35  ;;  %v1789_v56 = vadd.f32 %v1722_v18, %v4031_v1  ;;  %v4033_v18 = vld [vmem:[#allocation42_spill] sm:$0xff] }
 0x22f   : > { %v2217_v26 = vadd.f32 %v2147_v29, %v2077_v2  ;;  %v1854_v7 = vpop.f32.mrf.mxu2  ;;  %v1675_v2 = vrot.slane %v4033_v18, 5 }
 0x230   : > { %v1922_v14 = vadd.f32 %v1854_v7, %v1788_v22 }
 0x231   : > { %v2253_v55 = vadd.f32 %v3671_v58, %v2217_v26  ;;  %2626 = vmatmul.msk.bf16.gmra.mxu3 %vm664_vm5, %v4029_v43  ;;  %v3762_v26 = vld [vmem:[%s2756_s27 + $0xd0] sm:$0xf] }
 0x233   : > { %v2285_v16 = vpack.c.bf16 %v2253_v55, %v2253_v55  ;;  %v2150_v10 = vpop.f32.mrf.mxu0  ;;  %v4034_v55 = vld [vmem:[#allocation5_spill] sm:$0xff] }
 0x234   : > { %v2010_v46 = vpop.f32.mrf.mxu3  ;;  %v1725_v45 = vpop.f32.mrf.mxu1  ;;  %v2574_v43 = vrot.slane %v4034_v55, 9 }
 0x235   : > { %2318 = vst.msk [vmem:[%s3683_s16 + $0x1c] sm:$0xf] %vm2310_vm9, %v2285_v16  ;;  %v2078_v33 = vadd.f32 %v2010_v46, %v1922_v14  ;;  %v1790_v48 = vadd.f32 %v1725_v45, %v4032_v34  ;;  %v1956_v16 = vshll.u32 %v3762_v26, 16 }
 0x236   : > { %2644 = vmatmul.msk.bf16.gmra.mxu0 %vm664_vm5, %v4030_v13 }
 0x237   : > { %v2218_v57 = vadd.f32 %v2150_v10, %v2078_v33  ;;  %v1856_v50 = vpop.f32.mrf.mxu2  ;;  %2589 = vmatmul.msk.bf16.gmra.mxu1 %vm664_vm5, %v4030_v13  ;;  %v1960_v10 = vshrl.u32 %v3762_v26, 16  ;;  %v1677_v13 = vrot.slane %v1675_v2, 4 }
 0x238   : > { %v1923_v21 = vadd.f32 %v1856_v50, %v1789_v56  ;;  %v1676_v50 = vsel %vm3086_vm8, %v2574_v43, %v1675_v2 }
 0x239   : > { %v2254_v47 = vadd.f32 %v3671_v58, %v2218_v57  ;;  %v1678_v57 = vrot.slane %v3508_v61, 5  ;;  %v1682_v34 = vunpack.c.l.b16 %v1676_v50 }
 0x23b   : > { %v2286_v8 = vpack.c.bf16 %v2254_v47, %v2254_v47  ;;  %v2152_v32 = vpop.f32.mrf.mxu0 }
 0x23c   : > { %v2012_v59 = vpop.f32.mrf.mxu3  ;;  %2610 = vmatmul.msk.bf16.gmra.mxu2 %vm664_vm5, %v3501_v40  ;;  %v1727_v3 = vpop.f32.mrf.mxu1  ;;  %v3759_v40 = vld [vmem:[%s2756_s27 + $0xcc] sm:$0xf] }
 0x23d   : > { %2319 = vst.msk [vmem:[%s3683_s16 + $0x20] sm:$0xf] %vm2310_vm9, %v2286_v8  ;;  %v2079_v0 = vadd.f32 %v2012_v59, %v1923_v21  ;;  %v1950_v14 = vshll.u32 %v3759_v40, 16  ;;  %v1791_v45 = vadd.f32 %v1727_v3, %v3505_v42  ;;  %v1958_v8 = vrot.slane %v1956_v16, 5 }
 0x23e   : > { %v1679_v3 = vsel %vm3086_vm8, %v1677_v13, %v1678_v57  ;;  %v2105_v16 = vrot.slane %v3762_v26, 5 }
 0x23f   : > { %v2219_v23 = vadd.f32 %v2152_v32, %v2079_v0  ;;  %v1859_v35 = vpop.f32.mrf.mxu2  ;;  %v1952_v21 = vrot.slane %v1950_v14, 5  ;;  %v1962_v32 = vrot.slane %v1960_v10, 4 }
 0x240   : > { %v1924_v29 = vadd.f32 %v1859_v35, %v1790_v48  ;;  %v1683_v48 = vunpack.c.l.b16 %v1679_v3  ;;  %v2107_v26 = vrot.slane %v2105_v16, 4 }
 0x241   : > { %v2255_v5 = vadd.f32 %v3671_v58, %v2219_v23  ;;  %2627 = vmatmul.msk.bf16.gmra.mxu3 %vm664_vm5, %v3095_v62  ;;  %v1947_v62 = vshrl.u32 %v3759_v40, 16 }
 0x243   : > { %v2287_v31 = vpack.c.bf16 %v2255_v5, %v2255_v5  ;;  %v2155_v28 = vpop.f32.mrf.mxu0  ;;  %v1949_v47 = vrot.slane %v1947_v62, 4  ;;  %v1963_v5 = vor.u32 %v1962_v32, %v1958_v8 }
 0x244   : > { %v2015_v49 = vpop.f32.mrf.mxu3  ;;  %v1730_v22 = vpop.f32.mrf.mxu1 }
 0x245   : > { %2320 = vst.msk [vmem:[%s3683_s16 + $0x24] sm:$0xf] %vm2310_vm9, %v2287_v31  ;;  %v2080_v7 = vadd.f32 %v2015_v49, %v1924_v29  ;;  %v1953_v35 = vor.u32 %v1952_v21, %v1949_v47  ;;  %v1684_v49 = vpack.c.b16 %v1683_v48, %v1682_v34  ;;  %v1964_v55 = vrot.slane %v1963_v5, 4 }
 0x246   : > { %2645 = vmatmul.msk.bf16.gmra.mxu0 %vm664_vm5, %v3524_v52 }
 0x247   : > { %v2220_v46 = vadd.f32 %v2155_v28, %v2080_v7  ;;  %v1861_v33 = vpop.f32.mrf.mxu2  ;;  %2590 = vmatmul.msk.bf16.gmra.mxu1 %vm664_vm5, %v3524_v52  ;;  %v225_v52 = vld [vmem:[%s2756_s27 + $0xd4] sm:$0x1]  ;;  %v1792_v28 = vadd.f32 %v1730_v22, %v3522_v17  ;;  %v1954_v7 = vrot.slane %v1953_v35, 4 }
 0x248   : > { %v1925_v56 = vadd.f32 %v1861_v33, %v1791_v45  ;;  %v1966_v29 = vshll.u32 %v225_v52, 16  ;;  %v2630_v45 = vrot.slane %v3759_v40, 9 }
 0x249   : > { %v2256_v1 = vadd.f32 %v3671_v58, %v2220_v46 }
 0x24a   : > { %v1968_v43 = vrot.slane %v1966_v29, 5  ;;  %v2106_v40 = vsel %vm3086_vm8, %v2630_v45, %v2105_v16 }
 0x24b   : > { %v2288_v59 = vpack.c.bf16 %v2256_v1, %v2256_v1  ;;  %v2157_v42 = vpop.f32.mrf.mxu0  ;;  %v2108_v1 = vrot.slane %v225_v52, 5 }
 0x24c   : > { %v2017_v0 = vpop.f32.mrf.mxu3  ;;  %2611 = vmatmul.msk.bf16.gmra.mxu2 %vm664_vm5, %v3533_v51  ;;  %v1732_v61 = vpop.f32.mrf.mxu1  ;;  %v1969_v22 = vsel %vm2783_vm4, %v1964_v55, %v1968_v43 }
 0x24d   : > { %2321 = vst.msk [vmem:[%s3683_s16 + $0x28] sm:$0xf] %vm2310_vm9, %v2288_v59  ;;  %v2081_v23 = vadd.f32 %v2017_v0, %v1925_v56  ;;  %v1793_v13 = vadd.f32 %v1732_v61, %v3536_v25  ;;  %v2668_v56 = vld [vmem:[%s2756_s27 + $0xcc] sm:$0xff]  ;;  %v2109_v25 = vsel %vm3086_vm8, %v2107_v26, %v2108_v1  ;;  %v2112_v0 = vunpack.c.l.b16 %v2106_v40 }
 0x24e   : > { %v2113_v61 = vunpack.c.l.b16 %v2109_v25 }
 0x24f   : > { %v2221_v31 = vadd.f32 %v2157_v42, %v2081_v23  ;;  %v1864_v18 = vpop.f32.mrf.mxu2 }
 0x250   : > { %v1926_v51 = vadd.f32 %v1864_v18, %v1792_v28  ;;  %v2114_v5 = vpack.c.b16 %v2113_v61, %v2112_v0 }
 0x251   : > { %v2257_v2 = vadd.f32 %v3671_v58, %v2221_v31  ;;  %2628 = vmatmul.msk.bf16.gmra.mxu3 %vm664_vm5, %v3540_v11  ;;  %v1959_v11 = vsel %vm2783_vm4, %v1954_v7, %v1958_v8  ;;  %v1973_v8 = vunpack.c.l.b16 %v1969_v22 }
 0x252   : > { %v1972_v21 = vunpack.c.l.b16 %v1959_v11 }
 0x253   : > { %v2289_v62 = vpack.c.bf16 %v2257_v2, %v2257_v2  ;;  %v2160_v14 = vpop.f32.mrf.mxu0 }
 0x254   : > { %v2020_v10 = vpop.f32.mrf.mxu3  ;;  %v1735_v46 = vpop.f32.mrf.mxu1  ;;  %v1974_v52 = vpack.c.b16 %v1973_v8, %v1972_v21 }
 0x255   : > { %2322 = vst.msk [vmem:[%s3683_s16 + $0x2c] sm:$0xf] %vm2310_vm9, %v2289_v62  ;;  %v2082_v17 = vadd.f32 %v2020_v10, %v1926_v51  ;;  %v1794_v34 = vadd.f32 %v1735_v46, %v3547_v27 }
 0x256   : > { %2646 = vmatmul.msk.bf16.gmra.mxu0 %vm664_vm5, %v1684_v49 }
 0x257   : > { %v2222_v33 = vadd.f32 %v2160_v14, %v2082_v17  ;;  %v1866_v57 = vpop.f32.mrf.mxu2  ;;  %2591 = vmatmul.msk.bf16.gmra.mxu1 %vm664_vm5, %v1684_v49 }
 0x258   : > { %v1927_v47 = vadd.f32 %v1866_v57, %v1793_v13 }
 0x259   : > { %v2258_v50 = vadd.f32 %v3671_v58, %v2222_v33 }
 0x25b   : > { %v2290_v32 = vpack.c.bf16 %v2258_v50, %v2258_v50  ;;  %v2162_v39 = vpop.f32.mrf.mxu0 }
 0x25c   : > { %v2022_v59 = vpop.f32.mrf.mxu3  ;;  %2612 = vmatmul.msk.bf16.gmra.mxu2 %vm664_vm5, %v2668_v56  ;;  %v1737_v42 = vpop.f32.mrf.mxu1 }
 0x25d   : > { %2323 = vst.msk [vmem:[%s3683_s16 + $0x30] sm:$0xf] %vm2310_vm9, %v2290_v32  ;;  %v2083_v3 = vadd.f32 %v2022_v59, %v1927_v47  ;;  %v1795_v27 = vadd.f32 %v1737_v42, %v3552_v41 }
 0x25f   : > { %v2223_v23 = vadd.f32 %v2162_v39, %v2083_v3  ;;  %v1869_v48 = vpop.f32.mrf.mxu2 }
 0x260   : > { %v1928_v30 = vadd.f32 %v1869_v48, %v1794_v34 }
 0x261   : > { %v2259_v35 = vadd.f32 %v3671_v58, %v2223_v23  ;;  %2629 = vmatmul.msk.bf16.gmra.mxu3 %vm664_vm5, %v1974_v52 }
 0x263   : > { %v2291_v29 = vpack.c.bf16 %v2259_v35, %v2259_v35  ;;  %v2165_v31 = vpop.f32.mrf.mxu0 }
 0x264   : > { %v2025_v28 = vpop.f32.mrf.mxu3  ;;  %v1740_v18 = vpop.f32.mrf.mxu1 }
 0x265   : > { %2324 = vst.msk [vmem:[%s3683_s16 + $0x34] sm:$0xf] %vm2310_vm9, %v2291_v29  ;;  %v2084_v2 = vadd.f32 %v2025_v28, %v1928_v30  ;;  %v1796_v17 = vadd.f32 %v1740_v18, %v3561_v12 }
 0x266   : > { %2647 = vmatmul.msk.bf16.gmra.mxu0 %vm664_vm5, %v2114_v5 }
 0x267   : > { %v2224_v51 = vadd.f32 %v2165_v31, %v2084_v2  ;;  %v1871_v49 = vpop.f32.mrf.mxu2 }
 0x268   : > { %v1929_v55 = vadd.f32 %v1871_v49, %v1795_v27 }
 0x269   : > { %v2260_v7 = vadd.f32 %v3671_v58, %v2224_v51 }
 0x26b   : > { %v2292_v43 = vpack.c.bf16 %v2260_v7, %v2260_v7  ;;  %v2167_v62 = vpop.f32.mrf.mxu0 }
 0x26c   : > { %v2027_v14 = vpop.f32.mrf.mxu3  ;;  %v1742_v16 = vpop.f32.mrf.mxu1 }
 0x26d   : > { %2325 = vst.msk [vmem:[%s3683_s16 + $0x38] sm:$0xf] %vm2310_vm9, %v2292_v43  ;;  %v2085_v10 = vadd.f32 %v2027_v14, %v1929_v55  ;;  %v1797_v56 = vadd.f32 %v1742_v16, %v3566_v36 }
 0x26f   : > { %v2225_v46 = vadd.f32 %v2167_v62, %v2085_v10  ;;  %v1874_v11 = vpop.f32.mrf.mxu2 }
 0x270   : > { %v1930_v45 = vadd.f32 %v1874_v11, %v1796_v17 }
 0x271   : > { %v2261_v22 = vadd.f32 %v3671_v58, %v2225_v46 }
 0x273   : > { %v2293_v41 = vpack.c.bf16 %v2261_v22, %v2261_v22  ;;  %v2170_v33 = vpop.f32.mrf.mxu0 }
 0x274   : > { %v2030_v13 = vpop.f32.mrf.mxu3  ;;  %v1745_v57 = vpop.f32.mrf.mxu1 }
 0x275   : > { %2326 = vst.msk [vmem:[%s3683_s16 + $0x3c] sm:$0xf] %vm2310_vm9, %v2293_v41  ;;  %v2086_v26 = vadd.f32 %v2030_v13, %v1930_v45  ;;  %v1798_v59 = vadd.f32 %v1745_v57, %v3575_v54 }
 0x277   : > { %v2226_v1 = vadd.f32 %v2170_v33, %v2086_v26  ;;  %v1876_v50 = vpop.f32.mrf.mxu2 }
 0x278   : > { %v1931_v21 = vadd.f32 %v1876_v50, %v1797_v56 }
 0x279   : > { %v2262_v47 = vadd.f32 %v3671_v58, %v2226_v1 }
 0x27b   : > { %v2294_v12 = vpack.c.bf16 %v2262_v47, %v2262_v47  ;;  %v2172_v8 = vpop.f32.mrf.mxu0 }
 0x27c   : > { %v2032_v32 = vpop.f32.mrf.mxu3  ;;  %v1747_v39 = vpop.f32.mrf.mxu1 }
 0x27d   : > { %2327 = vst.msk [vmem:[%s3683_s16 + $0x40] sm:$0xf] %vm2310_vm9, %v2294_v12  ;;  %v2087_v40 = vadd.f32 %v2032_v32, %v1931_v21  ;;  %v1799_v35 = vadd.f32 %v1747_v39, %v3580_v63 }
 0x27f   : > { %v2227_v25 = vadd.f32 %v2172_v8, %v2087_v40  ;;  %v1879_v42 = vpop.f32.mrf.mxu2 }
 0x280   : > { %v1932_v52 = vadd.f32 %v1879_v42, %v1798_v59 }
 0x281   : > { %v2263_v3 = vadd.f32 %v3671_v58, %v2227_v25 }
 0x283   : > { %v2295_v36 = vpack.c.bf16 %v2263_v3, %v2263_v3  ;;  %v2175_v0 = vpop.f32.mrf.mxu0 }
 0x284   : > { %v2035_v61 = vpop.f32.mrf.mxu3  ;;  %v1750_v23 = vpop.f32.mrf.mxu1 }
 0x285   : > { %2328 = vst.msk [vmem:[%s3683_s16 + $0x44] sm:$0xf] %vm2310_vm9, %v2295_v36  ;;  %v2088_v34 = vadd.f32 %v2035_v61, %v1932_v52  ;;  %v1800_v27 = vadd.f32 %v1750_v23, %v3589_v4 }
 0x287   : > { %v2228_v48 = vadd.f32 %v2175_v0, %v2088_v34  ;;  %v1881_v30 = vpop.f32.mrf.mxu2 }
 0x288   : > { %v1933_v29 = vadd.f32 %v1881_v30, %v1799_v35 }
 0x289   : > { %v2264_v5 = vadd.f32 %v3671_v58, %v2228_v48 }
 0x28b   : > { %v2296_v54 = vpack.c.bf16 %v2264_v5, %v2264_v5  ;;  %v2177_v31 = vpop.f32.mrf.mxu0 }
 0x28c   : > { %v2037_v28 = vpop.f32.mrf.mxu3  ;;  %v1752_v18 = vpop.f32.mrf.mxu1 }
 0x28d   : > { %2329 = vst.msk [vmem:[%s3683_s16 + $0x48] sm:$0xf] %vm2310_vm9, %v2296_v54  ;;  %v2089_v2 = vadd.f32 %v2037_v28, %v1933_v29  ;;  %v1801_v46 = vadd.f32 %v1752_v18, %v3594_v6 }
 0x28f   : > { %v2229_v51 = vadd.f32 %v2177_v31, %v2089_v2  ;;  %v1884_v49 = vpop.f32.mrf.mxu2 }
 0x290   : > { %v1934_v55 = vadd.f32 %v1884_v49, %v1800_v27 }
 0x291   : > { %v2265_v7 = vadd.f32 %v3671_v58, %v2229_v51 }
 0x293   : > { %v2297_v63 = vpack.c.bf16 %v2265_v7, %v2265_v7  ;;  %v2180_v43 = vpop.f32.mrf.mxu0 }
 0x294   : > { %v2040_v62 = vpop.f32.mrf.mxu3  ;;  %v1755_v14 = vpop.f32.mrf.mxu1 }
 0x295   : > { %2330 = vst.msk [vmem:[%s3683_s16 + $0x4c] sm:$0xf] %vm2310_vm9, %v2297_v63  ;;  %v2090_v16 = vadd.f32 %v2040_v62, %v1934_v55  ;;  %v1802_v26 = vadd.f32 %v1755_v14, %v3603_v53 }
 0x297   : > { %v2230_v10 = vadd.f32 %v2180_v43, %v2090_v16  ;;  %v1886_v17 = vpop.f32.mrf.mxu2 }
 0x298   : > { %v1935_v22 = vadd.f32 %v1886_v17, %v1801_v46 }
 0x299   : > { %v2266_v11 = vadd.f32 %v3671_v58, %v2230_v10 }
 0x29b   : > { %v2298_v4 = vpack.c.bf16 %v2266_v11, %v2266_v11  ;;  %v2182_v45 = vpop.f32.mrf.mxu0 }
 0x29c   : > { %v2042_v41 = vpop.f32.mrf.mxu3  ;;  %v1757_v33 = vpop.f32.mrf.mxu1 }
 0x29d   : > { %2331 = vst.msk [vmem:[%s3683_s16 + $0x50] sm:$0xf] %vm2310_vm9, %v2298_v4  ;;  %v2091_v13 = vadd.f32 %v2042_v41, %v1935_v22  ;;  %v1803_v39 = vadd.f32 %v1757_v33, %v3608_v37 }
 0x29f   : > { %v2231_v57 = vadd.f32 %v2182_v45, %v2091_v13  ;;  %v1889_v1 = vpop.f32.mrf.mxu2 }
 0x2a0   : > { %v1936_v50 = vadd.f32 %v1889_v1, %v1802_v26 }
 0x2a1   : > { %v2267_v56 = vadd.f32 %v3671_v58, %v2231_v57 }
 0x2a3   : > { %v2299_v6 = vpack.c.bf16 %v2267_v56, %v2267_v56  ;;  %v2185_v47 = vpop.f32.mrf.mxu0 }
 0x2a4   : > { %v2045_v21 = vpop.f32.mrf.mxu3  ;;  %v1760_v12 = vpop.f32.mrf.mxu1 }
 0x2a5   : > { %2332 = vst.msk [vmem:[%s3683_s16 + $0x54] sm:$0xf] %vm2310_vm9, %v2299_v6  ;;  %v2092_v8 = vadd.f32 %v2045_v21, %v1936_v50  ;;  %v1804_v61 = vadd.f32 %v1760_v12, %v3617_v20 }
 0x2a7   : > { %v2232_v32 = vadd.f32 %v2185_v47, %v2092_v8  ;;  %v1891_v40 = vpop.f32.mrf.mxu2 }
 0x2a8   : > { %v1937_v59 = vadd.f32 %v1891_v40, %v1803_v39 }
 0x2a9   : > { %v2268_v25 = vadd.f32 %v3671_v58, %v2232_v32 }
 0x2ab   : > { %v2300_v53 = vpack.c.bf16 %v2268_v25, %v2268_v25  ;;  %v2187_v42 = vpop.f32.mrf.mxu0 }
 0x2ac   : > { %v2047_v3 = vpop.f32.mrf.mxu3  ;;  %v1762_v52 = vpop.f32.mrf.mxu1 }
 0x2ad   : > { %2333 = vst.msk [vmem:[%s3683_s16 + $0x58] sm:$0xf] %vm2310_vm9, %v2300_v53  ;;  %v2093_v36 = vadd.f32 %v2047_v3, %v1937_v59  ;;  %v1805_v31 = vadd.f32 %v1762_v52, %v3622_v15 }
 0x2af   : > { %v2233_v0 = vadd.f32 %v2187_v42, %v2093_v36  ;;  %v1894_v23 = vpop.f32.mrf.mxu2 }
 0x2b0   : > { %v1938_v48 = vadd.f32 %v1894_v23, %v1804_v61 }
 0x2b1   : > { %v2269_v34 = vadd.f32 %v3671_v58, %v2233_v0 }
 0x2b3   : > { %v2301_v37 = vpack.c.bf16 %v2269_v34, %v2269_v34  ;;  %v2190_v35 = vpop.f32.mrf.mxu0 }
 0x2b4   : > { %v2050_v30 = vpop.f32.mrf.mxu3  ;;  %v1765_v5 = vpop.f32.mrf.mxu1 }
 0x2b5   : > { %2334 = vst.msk [vmem:[%s3683_s16 + $0x5c] sm:$0xf] %vm2310_vm9, %v2301_v37  ;;  %v2094_v29 = vadd.f32 %v2050_v30, %v1938_v48  ;;  %v1806_v63 = vadd.f32 %v1765_v5, %v3631_v19 }
 0x2b7   : > { %v2234_v54 = vadd.f32 %v2190_v35, %v2094_v29  ;;  %v1896_v28 = vpop.f32.mrf.mxu2 }
 0x2b8   : > { %v1939_v20 = vadd.f32 %v1896_v28, %v1805_v31 }
 0x2b9   : > { %v2270_v18 = vadd.f32 %v3671_v58, %v2234_v54 }
 0x2bb   : > { %v2302_v2 = vpack.c.bf16 %v2270_v18, %v2270_v18  ;;  %v2192_v51 = vpop.f32.mrf.mxu0 }
 0x2bc   : > { %v2052_v27 = vpop.f32.mrf.mxu3  ;;  %v1767_v49 = vpop.f32.mrf.mxu1 }
 0x2bd   : > { %2335 = vst.msk [vmem:[%s3683_s16 + $0x60] sm:$0xf] %vm2310_vm9, %v2302_v2  ;;  %v2095_v7 = vadd.f32 %v2052_v27, %v1939_v20  ;;  %v1807_v22 = vadd.f32 %v1767_v49, %v3636_v60 }
 0x2bf   : > { %v2235_v55 = vadd.f32 %v2192_v51, %v2095_v7  ;;  %v1899_v43 = vpop.f32.mrf.mxu2 }
 0x2c0   : > { %v1940_v15 = vadd.f32 %v1899_v43, %v1806_v63 }
 0x2c1   : > { %v2271_v62 = vadd.f32 %v3671_v58, %v2235_v55 }
 0x2c3   : > { %v2303_v14 = vpack.c.bf16 %v2271_v62, %v2271_v62  ;;  %v2195_v16 = vpop.f32.mrf.mxu0 }
 0x2c4   : > { %v2055_v10 = vpop.f32.mrf.mxu3  ;;  %v1770_v17 = vpop.f32.mrf.mxu1 }
 0x2c5   : > { %2336 = vst.msk [vmem:[%s3683_s16 + $0x64] sm:$0xf] %vm2310_vm9, %v2303_v14  ;;  %v2096_v46 = vadd.f32 %v2055_v10, %v1940_v15  ;;  %v1808_v1 = vadd.f32 %v1770_v17, %v3645_v24 }
 0x2c7   : > { %v2236_v11 = vadd.f32 %v2195_v16, %v2096_v46  ;;  %v1901_v4 = vpop.f32.mrf.mxu2 }
 0x2c8   : > { %v1941_v19 = vadd.f32 %v1901_v4, %v1807_v22 }
 0x2c9   : > { %v2272_v45 = vadd.f32 %v3671_v58, %v2236_v11 }
 0x2cb   : > { %v2304_v41 = vpack.c.bf16 %v2272_v45, %v2272_v45  ;;  %v2197_v33 = vpop.f32.mrf.mxu0 }
 0x2cc   : > { %v2057_v13 = vpop.f32.mrf.mxu3  ;;  %v1772_v50 = vpop.f32.mrf.mxu1 }
 0x2cd   : > { %2337 = vst.msk [vmem:[%s3683_s16 + $0x68] sm:$0xf] %vm2310_vm9, %v2304_v41  ;;  %v2097_v57 = vadd.f32 %v2057_v13, %v1941_v19  ;;  %v1809_v39 = vadd.f32 %v1772_v50, %v3650_v44 }
 0x2cf   : > { %v2237_v26 = vadd.f32 %v2197_v33, %v2097_v57  ;;  %v1904_v56 = vpop.f32.mrf.mxu2 }
 0x2d0   : > { %v1942_v60 = vadd.f32 %v1904_v56, %v1808_v1 }
 0x2d1   : > { %v2273_v6 = vadd.f32 %v3671_v58, %v2237_v26 }
 0x2d3   : > { %v2305_v47 = vpack.c.bf16 %v2273_v6, %v2273_v6  ;;  %v2200_v21 = vpop.f32.mrf.mxu0 }
 0x2d4   : > { %v2060_v12 = vpop.f32.mrf.mxu3  ;;  %v1775_v24 = vpop.f32.mrf.mxu1 }
 0x2d5   : > { %2338 = vst.msk [vmem:[%s3683_s16 + $0x6c] sm:$0xf] %vm2310_vm9, %v2305_v47  ;;  %v2098_v8 = vadd.f32 %v2060_v12, %v1942_v60  ;;  %v1810_v0 = vadd.f32 %v1775_v24, %v3659_v9 }
 0x2d7   : > { %v2238_v32 = vadd.f32 %v2200_v21, %v2098_v8  ;;  %v1906_v40 = vpop.f32.mrf.mxu2 }
 0x2d8   : > { %v1943_v59 = vadd.f32 %v1906_v40, %v1809_v39 }
 0x2d9   : > { %v2274_v25 = vadd.f32 %v3671_v58, %v2238_v32 }
 0x2db   : > { %v2306_v53 = vpack.c.bf16 %v2274_v25, %v2274_v25  ;;  %v2202_v42 = vpop.f32.mrf.mxu0 }
 0x2dc   : > { %v2062_v3 = vpop.f32.mrf.mxu3  ;;  %v1777_v48 = vpop.f32.mrf.mxu1 }
 0x2dd   : > { %2339 = vst.msk [vmem:[%s3683_s16 + $0x70] sm:$0xf] %vm2310_vm9, %v2306_v53  ;;  %v2099_v52 = vadd.f32 %v2062_v3, %v1943_v59  ;;  %v1811_v29 = vadd.f32 %v1777_v48, %v3664_v38 }
 0x2df   : > { %v2239_v36 = vadd.f32 %v2202_v42, %v2099_v52  ;;  %v1909_v61 = vpop.f32.mrf.mxu2 }
 0x2e0   : > { %v1944_v44 = vadd.f32 %v1909_v61, %v1810_v0 }
 0x2e1   : > { %v2275_v23 = vadd.f32 %v3671_v58, %v2239_v36 }
 0x2e3   : > { %v2307_v34 = vpack.c.bf16 %v2275_v23, %v2275_v23  ;;  %v2205_v37 = vpop.f32.mrf.mxu0 }
 0x2e4   : > { %v2065_v35 = vpop.f32.mrf.mxu3 }
 0x2e5   : > { %2340 = vst.msk [vmem:[%s3683_s16 + $0x74] sm:$0xf] %vm2310_vm9, %v2307_v34  ;;  %v2100_v30 = vadd.f32 %v2065_v35, %v1944_v44 }
 0x2e7   : > { %v2240_v5 = vadd.f32 %v2205_v37, %v2100_v30  ;;  %v1911_v54 = vpop.f32.mrf.mxu2 }
 0x2e8   : > { %v1945_v9 = vadd.f32 %v1911_v54, %v1811_v29 }
 0x2e9   : > { %v2276_v31 = vadd.f32 %v3671_v58, %v2240_v5 }
 0x2eb   : > { %v2308_v28 = vpack.c.bf16 %v2276_v31, %v2276_v31  ;;  %v2207_v2 = vpop.f32.mrf.mxu0 }
 0x2ec   : > { %v2067_v18 = vpop.f32.mrf.mxu3 }
 0x2ed   : > { %2341 = vst.msk [vmem:[%s3683_s16 + $0x78] sm:$0xf] %vm2310_vm9, %v2308_v28  ;;  %v2101_v20 = vadd.f32 %v2067_v18, %v1945_v9 }
 0x2ef   : > { %v2241_v51 = vadd.f32 %v2207_v2, %v2101_v20 }
 0x2f1   : > { %v2277_v27 = vadd.f32 %v3671_v58, %v2241_v51 }
 0x2f3   : > { %v2309_v49 = vpack.c.bf16 %v2277_v27, %v2277_v27 }
 0x2f5   : > { %2342 = vst.msk [vmem:[%s3683_s16 + $0x7c] sm:$0xf] %vm2310_vm9, %v2309_v49 }
 0x2f6 PF: > { %s13_s12 = sadd.s32 1, %s2697_s12  }
 0x2f7   : > { %p10_p4 = scmp.ge.s32.totalorder %s13_s12, 4  }
 0x2f9   :  { %12 = sbr.rel (!%p10_p4) target bundleno = 1 (0x1), region = 70 }

// kernel: cnn_classifier_forward.5
= control target key start
LH: loop header
LB: loop body
LE: loop exit
PB: predicated region body
PF: predicated region fallthrough
CT: control target
= control target key end

     0   :  { %s3348_s27 = smov 0   ;;  %s4465_s0 = inlined_call_operand.vmem [shape: bf16[2,9,9,32], index: 0, kind: input, shape index: {}]   ;;  %s4466_s1 = inlined_call_operand.vmem [shape: bf16[2,9,9,32], index: 1, kind: input, shape index: {}]   ;;  %s4467_s2 = inlined_call_operand.vmem [shape: bf16[2,9,9,32], index: 2, kind: input, shape index: {}]   ;;  %s4468_s3 = inlined_call_operand.vmem [shape: bf16[2,9,9,32], index: 3, kind: input, shape index: {}]   ;;  %s4469_s4 = inlined_call_operand.vmem [shape: bf16[9,32,64], index: 4, kind: input, shape index: {}]   ;;  %s4470_s5 = inlined_call_operand.vmem [shape: bf16[32,64], index: 5, kind: input, shape index: {}]   ;;  %s4471_s6 = inlined_call_operand.vmem [shape: bf16[9,64,64], index: 6, kind: input, shape index: {}]   ;;  %s4472_s7 = inlined_call_operand.vmem [shape: f32[6,1,64], index: 7, kind: input, shape index: {}]   ;;  %s4473_s8 = inlined_call_operand.vmem [shape: bf16[2,8,8,64], index: 8, kind: output, shape index: {}]  }
   0x1 LB: > { %s2751_s28 = sadd.s32 4294967295, %s3300_s27   ;;  %p2755_p0 = scmp.ge.s32.totalorder %s3300_s27, 1  ;;  %s3300_s27 = sphi %s3348_s27, %s18_s27  }
   0x2   : > { %p292_p1 = scmp.lt.s32.totalorder %s3300_s27, 3 }
   0x4   : > { %p293_p2 = pnand %p2755_p0, %p292_p1 }
   0x6   : > { %296 = sbr.rel (%p293_p2) target bundleno = 639 (0x27f), region = 52 }
   0xb   : > { %v3219_v0 = vld [vmem:[%s4469_s4 + $0x18] sm:$0xff]  ;;  %v3217_v1 = vld [vmem:[%s4469_s4 + $0x8] sm:$0xff]  ;;  %p341_p3 = scmp.lt.s32.totalorder %s2751_s28, 1  ;;  %v3218_v3 = vld [vmem:[%s4469_s4 + $0x10] sm:$0xff]  ;;  %vm470_vm0 = vcmask 261120   ;;  %vm1466_vm4 = vcmask 519168  }
   0xc   : > { %v3365_v2 = vld [vmem:[%s4469_s4 + $0x28] sm:$0xff]  ;;  %489 = vmatpush.bf16.msra.mxu0 %v3219_v0  ;;  %3272 = vmatpush.bf16.msra.mxu3 %v3219_v0  ;;  %v3223_v4 = vld [vmem:[%s4469_s4 + $0x38] sm:$0xff]  ;;  %v3216_v5 = vld [vmem:[%s4469_s4] sm:$0xff]  ;;  %vm585_vm1 = vsmask.f32 3328  ;;  %vm1468_vm5 = vcmask 516096  }
   0xd   : > { %s4485_s28 = smov (!%p341_p3, %s2751_s28), 1  ;;  %3274 = vmatpush.bf16.msra.mxu1 %v3217_v1  ;;  %3276 = vmatpush.bf16.msra.mxu2 %v3365_v2  ;;  %v3385_v6 = vld [vmem:[%s4469_s4 + $0x20] sm:$0xff]  ;;  %vm586_vm2 = vsmask.f32 7440  ;;  %v3222_v7 = vld [vmem:[%s4469_s4 + $0x30] sm:$0xff]  ;;  %vm1951_vm10 = vcmask 1042432  }
   0xe   : > { %s3380_s19 = smul.u32 72, %s4485_s28  ;;  %vm3449_vm3 = vmor %vm585_vm1, %vm586_vm2  ;;  %vm1578_vm6 = vsmask.f32 7938  ;;  %vm1584_vm7 = vsmask.f32 256  ;;  %vm1952_vm11 = vcmask 1046532  }
   0xf   : > { %vm3940_vm8 = vmand %vm1466_vm4, %vm1578_vm6  ;;  %vm1816_vm13 = vcmask 523264   ;;  %s3207_s26 = sshll.u32 %s4485_s28, 5 }
  0x10   : > { %490 = vmatpush.bf16.msra.mxu0 %v3218_v3  ;;  %3273 = vmatpush.bf16.msra.mxu3 %v3218_v3  ;;  %s3391_s24 = scalar_lea.vmem %s4465_s0, %s3380_s19  ;;  %s3397_s29 = scalar_lea.vmem %s4466_s1, %s3380_s19  ;;  %vm3953_vm9 = vmand %vm1468_vm5, %vm1584_vm7 }
  0x11   : > { %v385_v8 = vld [vmem:[%s3397_s29] sm:$0xf]  ;;  %v386_v9 = vld [vmem:[%s3397_s29 + $0x8] sm:$0xf]  ;;  %v387_v10 = vld [vmem:[%s3397_s29 + $0x10] sm:$0xf]  ;;  %3275 = vmatpush.bf16.msra.mxu1 %v3216_v5  ;;  %3277 = vmatpush.bf16.msra.mxu2 %v3385_v6  ;;  %s3514_s14 = scalar_lea.vmem %s4467_s2, %s3380_s19  ;;  %s3599_s15 = scalar_lea.vmem %s4468_s3, %s3380_s19 }
  0x12   : > { %v446_v11 = vunpack.c.l.b16 %v385_v8  ;;  %v447_v12 = vunpack.c.l.b16 %v386_v9  ;;  %v3406_v13 = vld [vmem:[%s3397_s29 + $0x18] sm:$0xf]  ;;  %v448_v14 = vunpack.c.l.b16 %v387_v10  ;;  %v3409_v15 = vld [vmem:[%s3391_s24 + $0x10] sm:$0xf]  ;;  %v370_v21 = vld [vmem:[%s3391_s24 + $0xc] sm:$0x1]  ;;  %s4393_s10 = scalar_lea.vmem %s4473_s8, %s3207_s26 }
  0x13   : > { %v3412_v16 = vld [vmem:[%s3391_s24 + $0x18] sm:$0xf]  ;;  %v449_v17 = vunpack.c.l.b16 %v3406_v13  ;;  %v522_v18 = vunpack.c.l.b16 %v3409_v15  ;;  %v617_v20 = vshrl.u32 %v3409_v15, 16  ;;  %v620_v24 = vshll.u32 %v3409_v15, 16  ;;  %v372_v26 = vld [vmem:[%s3391_s24 + $0x14] sm:$0x1]  ;;  %vm3973_vm12 = vmor %vm1951_vm10, %vm1952_vm11 }
  0x14   : > { %833 = vmatpush.bf16.msrb.mxu3 %v3223_v4  ;;  %562 = vmatpush.bf16.msrb.mxu0 %v3217_v1  ;;  %v523_v19 = vunpack.c.l.b16 %v3412_v16  ;;  %v454_v22 = vpack.c.b16 %v447_v12, %v446_v11  ;;  %v3420_v23 = vpack.c.b16 %v448_v14, %v447_v12  ;;  %v631_v25 = vshrl.u32 %v3412_v16, 16  ;;  %v374_v27 = vld [vmem:[%s3391_s24 + $0x1c] sm:$0x1]  ;;  %v3434_v32 = vld [vmem:[%s3391_s24 + $0x8] sm:$0xf] }
  0x15   : > { %v455_v28 = vpack.c.b16 %v449_v17, %v448_v14  ;;  %v619_v30 = vrot.slane %v617_v20, 4  ;;  %v634_v31 = vshll.u32 %v3412_v16, 16  ;;  %v622_v33 = vrot.slane %v620_v24, 5  ;;  %v3442_v41 = vld [vmem:[%s3397_s29 + $0x20] sm:$0xf] }
  0x16   : > { %v529_v29 = vpack.c.b16 %v523_v19, %v522_v18  ;;  %2779 = vmatmul.msk.bf16.vlgmr.msra.gmra.mxu0 %vm470_vm0, %v454_v22  ;;  %v633_v34 = vrot.slane %v631_v25, 4  ;;  %v603_v35 = vshrl.u32 %v3434_v32, 16  ;;  %v606_v36 = vshll.u32 %v3434_v32, 16  ;;  %v3445_v45 = vld [vmem:[%s3397_s29 + $0x28] sm:$0xf] }
  0x17   : > { %2780 = vmatmul.msk.bf16.vlgmr.msra.gmra.mxu3 %vm470_vm0, %v455_v28  ;;  %v636_v37 = vrot.slane %v634_v31, 5  ;;  %v612_v38 = vshll.u32 %v370_v21, 16  ;;  %v626_v39 = vshll.u32 %v372_v26, 16  ;;  %v640_v40 = vshll.u32 %v374_v27, 16  ;;  %v367_v50 = vld [vmem:[%s3391_s24] sm:$0xf] }
  0x18   : > { %834 = vmatpush.bf16.msrb.mxu3 %v3222_v7  ;;  %2792 = vmatmul.msk.bf16.vlgmr.msra.gmra.mxu1 %vm470_vm0, %v529_v29  ;;  %v605_v42 = vrot.slane %v603_v35, 4  ;;  %v608_v43 = vrot.slane %v606_v36, 5  ;;  %v623_v44 = vor.u32 %v622_v33, %v619_v30  ;;  %v450_v54 = vunpack.c.l.b16 %v3442_v41  ;;  %v3461_v63 = vld [vmem:[%s3391_s24 + $0x20] sm:$0xf]  ;;  %v3464_v0 = vld [vmem:[%s3391_s24 + $0x28] sm:$0xf] }
  0x19   : > { %563 = vmatpush.bf16.msrb.mxu0 %v3216_v5  ;;  %v628_v47 = vrot.slane %v626_v39, 5  ;;  %v637_v48 = vor.u32 %v636_v37, %v633_v34  ;;  %v642_v49 = vrot.slane %v640_v40, 5  ;;  %v614_v52 = vrot.slane %v612_v38, 5  ;;  %v376_v10 = vld [vmem:[%s3391_s24 + $0x24] sm:$0x1] }
  0x1a   : > { %v609_v51 = vor.u32 %v608_v43, %v605_v42  ;;  %v624_v53 = vrot.slane %v623_v44, 4  ;;  %v451_v56 = vunpack.c.l.b16 %v3445_v45  ;;  %v589_v57 = vshrl.u32 %v367_v50, 16  ;;  %v378_v21 = vld [vmem:[%s3391_s24 + $0x2c] sm:$0x1]  ;;  %v368_v25 = vld [vmem:[%s3391_s24 + $0x4] sm:$0x1] }
  0x1b   : > { %v638_v55 = vrot.slane %v637_v48, 4  ;;  %v592_v58 = vshll.u32 %v367_v50, 16  ;;  %v520_v61 = vunpack.c.l.b16 %v367_v50  ;;  %v521_v62 = vunpack.c.l.b16 %v3434_v32  ;;  %v3502_v39 = vld [vmem:[%s3391_s24 + $0x30] sm:$0xf]  ;;  %v3505_v40 = vld [vmem:[%s3391_s24 + $0x38] sm:$0xf] }
  0x1c   : > { %v610_v59 = vrot.slane %v609_v51, 4  ;;  %v629_v60 = vsel %vm3449_vm3, %v624_v53, %v628_v47  ;;  %v591_v3 = vrot.slane %v589_v57, 4  ;;  %v524_v4 = vunpack.c.l.b16 %v3461_v63  ;;  %v3225_v47 = vld [vmem:[%s4469_s4 + $0x48] sm:$0xff]  ;;  %v393_v45 = vld [vmem:[%s3397_s29 + $0x40] sm:$0xf] }
  0x1d   : > { %747 = vmatpush.bf16.msra.mxu0 %v3365_v2  ;;  %v643_v1 = vsel %vm3449_vm3, %v638_v55, %v642_v49  ;;  %v3468_v2 = vunpack.c.l.b16 %v629_v60  ;;  %v594_v8 = vrot.slane %v592_v58, 5  ;;  %v525_v9 = vunpack.c.l.b16 %v3464_v0  ;;  %v3229_v60 = vld [vmem:[%s4469_s4 + $0x68] sm:$0xff] }
  0x1e   : > { %v615_v5 = vsel %vm3449_vm3, %v610_v59, %v614_v52  ;;  %v3474_v7 = vunpack.c.l.b16 %v643_v1  ;;  %v645_v12 = vshrl.u32 %v3461_v63, 16  ;;  %v648_v14 = vshll.u32 %v3461_v63, 16  ;;  %v3231_v59 = vld [vmem:[%s4469_s4 + $0x78] sm:$0xff]  ;;  %v380_v1 = vld [vmem:[%s3391_s24 + $0x34] sm:$0x1]  ;;  %1181 = vmatpush.bf16.msrb.mxu2 %v3229_v60 }
  0x1f   : > { %v3478_v11 = vunpack.c.l.b16 %v615_v5  ;;  %v659_v20 = vshrl.u32 %v3464_v0, 16  ;;  %v595_v22 = vor.u32 %v594_v8, %v591_v3  ;;  %v662_v24 = vshll.u32 %v3464_v0, 16  ;;  %v3224_v3 = vld [vmem:[%s4469_s4 + $0x40] sm:$0xff]  ;;  %v3227_v5 = vld [vmem:[%s4469_s4 + $0x58] sm:$0xff]  ;;  %1253 = vmatpush.bf16.msra.mxu3 %v3231_v59  ;;  %v397_v59 = vld [vmem:[%s3514_s14 + $0xc] sm:$0x1] }
  0x20   : > { %v647_v27 = vrot.slane %v645_v12, 4  ;;  %v650_v28 = vrot.slane %v648_v14, 5  ;;  %v528_v30 = vpack.c.b16 %v521_v62, %v520_v61  ;;  %v654_v33 = vshll.u32 %v376_v10, 16  ;;  %v382_v14 = vld [vmem:[%s3391_s24 + $0x3c] sm:$0x1]  ;;  %1109 = vmatpush.bf16.msrb.mxu1 %v3227_v5 }
  0x21   : > { %748 = vmatpush.bf16.msra.mxu0 %v3385_v6  ;;  %v714_v6 = vpack.c.b16 %v3474_v7, %v3468_v2  ;;  %v1304_v26 = vpack.c.b16 %v3468_v2, %v3478_v11  ;;  %v661_v29 = vrot.slane %v659_v20, 4  ;;  %v664_v31 = vrot.slane %v662_v24, 5  ;;  %v3228_v20 = vld [vmem:[%s4469_s4 + $0x60] sm:$0xff] }
  0x22   : > { %v668_v34 = vshll.u32 %v378_v21, 16  ;;  %v456_v35 = vpack.c.b16 %v451_v56, %v450_v54  ;;  %v530_v36 = vpack.c.b16 %v525_v9, %v524_v4  ;;  %v651_v37 = vor.u32 %v650_v28, %v647_v27  ;;  %v394_v21 = vld [vmem:[%s3514_s14] sm:$0xf]  ;;  %v3226_v27 = vld [vmem:[%s4469_s4 + $0x50] sm:$0xff]  ;;  %v396_v28 = vld [vmem:[%s3514_s14 + $0x8] sm:$0xf]  ;;  %1182 = vmatpush.bf16.msrb.mxu2 %v3228_v20 }
  0x23   : > { %2808 = vmatmul.msk.bf16.vlgmr.msra.gmra.mxu2 %vm470_vm0, %v714_v6  ;;  %v598_v38 = vshll.u32 %v368_v25, 16  ;;  %v656_v42 = vrot.slane %v654_v33, 5  ;;  %v665_v43 = vor.u32 %v664_v31, %v661_v29  ;;  %v596_v48 = vrot.slane %v595_v22, 4  ;;  %v3556_v29 = vld [vmem:[%s3397_s29 + $0x30] sm:$0xf] }
  0x24   : > { %v670_v44 = vrot.slane %v668_v34, 5  ;;  %v652_v49 = vrot.slane %v651_v37, 4  ;;  %v673_v52 = vshrl.u32 %v3502_v39, 16  ;;  %v676_v53 = vshll.u32 %v3502_v39, 16  ;;  %1110 = vmatpush.bf16.msrb.mxu1 %v3226_v27  ;;  %v398_v27 = vld [vmem:[%s3514_s14 + $0x10] sm:$0xf] }
  0x25   : > { %v600_v50 = vrot.slane %v598_v38, 5  ;;  %v666_v51 = vrot.slane %v665_v43, 4  ;;  %v687_v55 = vshrl.u32 %v3505_v40, 16  ;;  %v690_v58 = vshll.u32 %v3505_v40, 16  ;;  %v383_v0 = vld [vmem:[%s3391_s24 + $0x40] sm:$0xf] }
  0x26   : > { %2791 = vmatmul.msk.bf16.vlgmr.msrb.gmra.mxu0 %vm470_vm0, %v528_v30  ;;  %v657_v57 = vsel %vm3449_vm3, %v652_v49, %v656_v42  ;;  %v675_v6 = vrot.slane %v673_v52, 4  ;;  %v678_v22 = vrot.slane %v676_v53, 5  ;;  %v3559_v30 = vld [vmem:[%s3397_s29 + $0x38] sm:$0xf]  ;;  %v951_v33 = vshrl.u32 %v394_v21, 16 }
  0x27   : > { %2781 = vmatmul.msk.bf16.gmra.mxu3 %vm470_vm0, %v456_v35  ;;  %v671_v61 = vsel %vm3449_vm3, %v666_v51, %v670_v44  ;;  %919 = vmatpush.bf16.msrb.mxu0 %v3225_v47  ;;  %v3540_v8 = vunpack.c.l.b16 %v657_v57  ;;  %v601_v12 = vsel %vm3449_vm3, %v596_v48, %v600_v50  ;;  %v689_v24 = vrot.slane %v687_v55, 4 }
  0x28   : > { %2793 = vmatmul.msk.bf16.gmra.mxu1 %vm470_vm0, %v530_v36  ;;  %v3542_v10 = vunpack.c.l.b16 %v671_v61  ;;  %v692_v25 = vrot.slane %v690_v58, 5  ;;  %v705_v31 = vunpack.c.l.b16 %v601_v12  ;;  %v682_v35 = vshll.u32 %v380_v1, 16  ;;  %v395_v58 = vld [vmem:[%s3514_s14 + $0x4] sm:$0x1] }
  0x29   : > { %v696_v36 = vshll.u32 %v382_v14, 16  ;;  %v954_v37 = vshll.u32 %v394_v21, 16  ;;  %v679_v38 = vor.u32 %v678_v22, %v675_v6  ;;  %v965_v43 = vshrl.u32 %v396_v28, 16  ;;  %v3233_v14 = vld [vmem:[%s4469_s4 + $0x88] sm:$0xff] }
  0x2a   : > { %v715_v34 = vpack.c.b16 %v3542_v10, %v3540_v8  ;;  %v693_v42 = vor.u32 %v692_v25, %v689_v24  ;;  %v968_v44 = vshll.u32 %v396_v28, 16  ;;  %v452_v47 = vunpack.c.l.b16 %v3556_v29  ;;  %v400_v28 = vld [vmem:[%s3514_s14 + $0x18] sm:$0xf] }
  0x2b   : > { %920 = vmatpush.bf16.msrb.mxu0 %v3224_v3  ;;  %v453_v48 = vunpack.c.l.b16 %v3559_v30  ;;  %v526_v49 = vunpack.c.l.b16 %v3502_v39  ;;  %v527_v50 = vunpack.c.l.b16 %v3505_v40  ;;  %v953_v51 = vrot.slane %v951_v33, 4 }
  0x2c   : > { %v956_v52 = vrot.slane %v954_v37, 5  ;;  %v967_v53 = vrot.slane %v965_v43, 4  ;;  %v970_v55 = vrot.slane %v968_v44, 5  ;;  %v713_v57 = vpack.c.b16 %v3478_v11, %v705_v31 }
  0x2d   : > { %v680_v60 = vrot.slane %v679_v38, 4  ;;  %v684_v61 = vrot.slane %v682_v35, 5  ;;  %v694_v1 = vrot.slane %v693_v42, 4  ;;  %v698_v3 = vrot.slane %v696_v36, 5 }
  0x2e   : > { %v457_v5 = vpack.c.b16 %v453_v48, %v452_v47  ;;  %v531_v12 = vpack.c.b16 %v527_v50, %v526_v49  ;;  %v957_v20 = vor.u32 %v956_v52, %v953_v51  ;;  %v960_v21 = vshll.u32 %v395_v58, 16 }
  0x2f   : > { %v971_v6 = vor.u32 %v970_v55, %v967_v53  ;;  %v974_v22 = vshll.u32 %v397_v59, 16  ;;  %v685_v24 = vsel %vm3449_vm3, %v680_v60, %v684_v61  ;;  %v699_v25 = vsel %vm3449_vm3, %v694_v1, %v698_v3  ;;  %v2849_v55 = vld [vmem:[%s3599_s15] sm:$0xf] }
  0x30   : > { %v958_v31 = vrot.slane %v957_v20, 4  ;;  %v962_v33 = vrot.slane %v960_v21, 5  ;;  %v3591_v36 = vunpack.c.l.b16 %v685_v24  ;;  %v3593_v37 = vunpack.c.l.b16 %v699_v25  ;;  %v3208_v20 = vld [vmem:[%s3514_s14 + $0x4] sm:$0xf0] }
  0x31   : > { %v976_v35 = vrot.slane %v974_v22, 5  ;;  %v979_v38 = vshrl.u32 %v398_v27, 16  ;;  %v982_v42 = vshll.u32 %v398_v27, 16  ;;  %v993_v43 = vshrl.u32 %v400_v28, 16 }
  0x32   : > { %v996_v44 = vshll.u32 %v400_v28, 16  ;;  %v963_v51 = vsel %vm3449_vm3, %v958_v31, %v962_v33  ;;  %v716_v53 = vpack.c.b16 %v3593_v37, %v3591_v36  ;;  %v1220_v40 = vpack.c.b16 %v450_v54, %v449_v17 }
  0x33   : > { %2809 = vmatmul.msk.bf16.gmra.mxu2 %vm470_vm0, %v715_v34  ;;  %v972_v34 = vrot.slane %v971_v6, 4  ;;  %v981_v58 = vrot.slane %v979_v38, 4  ;;  %v984_v59 = vrot.slane %v982_v42, 5  ;;  %v995_v60 = vrot.slane %v993_v43, 4  ;;  %v3230_v38 = vld [vmem:[%s4469_s4 + $0x70] sm:$0xff]  ;;  %v3232_v42 = vld [vmem:[%s4469_s4 + $0x80] sm:$0xff] }
  0x34   : > { %v998_v61 = vrot.slane %v996_v44, 5  ;;  %v1067_v1 = vunpack.c.l.b16 %v963_v51  ;;  %v402_v43 = vld [vmem:[%s3514_s14 + $0x20] sm:$0xf]  ;;  %v404_v44 = vld [vmem:[%s3514_s14 + $0x28] sm:$0xf]  ;;  %1254 = vmatpush.bf16.msra.mxu3 %v3230_v38  ;;  %v1285_v2 = vshrl.u32 %v383_v0, 16  ;;  %v1306_v13 = vpack.c.b16 %v3591_v36, %v3542_v10 }
  0x35   : > { %v977_v52 = vsel %vm3449_vm3, %v972_v34, %v976_v35  ;;  %v985_v6 = vor.u32 %v984_v59, %v981_v58  ;;  %v1024_v58 = vshll.u32 %v404_v44, 16  ;;  %v1147_v59 = vpack.c.b16 %v522_v18, %v521_v62 }
  0x36   : > { %2807 = vmatmul.msk.bf16.vlgmr.msra.gmra.mxu0 %vm470_vm0, %v713_v57  ;;  %v3212_v57 = vld [vmem:[%s3599_s15 + $0x4] sm:$0xf0]  ;;  %v1068_v3 = vunpack.c.l.b16 %v977_v52  ;;  %v999_v24 = vor.u32 %v998_v61, %v995_v60  ;;  %v2821_v60 = vld [vmem:[%s3514_s14 + $0x10] sm:$0xf]  ;;  %v3209_v61 = vld [vmem:[%s3514_s14 + $0x14] sm:$0xf0]  ;;  %v1221_v41 = vpack.c.b16 %v452_v47, %v451_v56  ;;  %v1218_v29 = vunpack.c.l.b16 %v393_v45 }
  0x37   : > { %2782 = vmatmul.msk.bf16.gmra.mxu3 %vm470_vm0, %v457_v5  ;;  %1338 = vmatpush.bf16.msra.mxu0 %v3233_v14  ;;  %v399_v5 = vld [vmem:[%s3514_s14 + $0x14] sm:$0x1]  ;;  %v2817_v14 = vld [vmem:[%s3514_s14] sm:$0xf]  ;;  %v3613_v21 = vor.u32 %v3212_v57, %v2849_v55  ;;  %v986_v31 = vrot.slane %v985_v6, 4  ;;  %v1010_v55 = vshll.u32 %v402_v43, 16  ;;  %v2822_v32 = vor.u32 %v3209_v61, %v2821_v60 }
  0x38   : > { %2794 = vmatmul.msk.bf16.gmra.mxu1 %vm470_vm0, %v531_v12  ;;  %v401_v12 = vld [vmem:[%s3514_s14 + $0x1c] sm:$0x1]  ;;  %v988_v22 = vshll.u32 %v399_v5, 16  ;;  %v2818_v27 = vor.u32 %v3208_v20, %v2817_v14  ;;  %v1075_v28 = vpack.c.b16 %v1068_v3, %v1067_v1  ;;  %v1000_v34 = vrot.slane %v999_v24, 4  ;;  %v2853_v1 = vld [vmem:[%s3599_s15 + $0x10] sm:$0xf] }
  0x39   : > { %v1002_v25 = vshll.u32 %v401_v12, 16  ;;  %v1021_v57 = vshrl.u32 %v404_v44, 16  ;;  %v3213_v12 = vld [vmem:[%s3599_s15 + $0x14] sm:$0xf0]  ;;  %v1012_v20 = vrot.slane %v1010_v55, 5  ;;  %v1288_v11 = vshll.u32 %v383_v0, 16 }
  0x3a   : > { %v990_v33 = vrot.slane %v988_v22, 5  ;;  %v1026_v22 = vrot.slane %v1024_v58, 5  ;;  %v403_v24 = vld [vmem:[%s3514_s14 + $0x24] sm:$0x1]  ;;  %v1148_v58 = vpack.c.b16 %v524_v4, %v523_v19  ;;  %v2857_v60 = vld [vmem:[%s3599_s15 + $0x20] sm:$0xf] }
  0x3b   : > { %v1004_v35 = vrot.slane %v1002_v25, 5  ;;  %1339 = vmatpush.bf16.msra.mxu0 %v3232_v42  ;;  %v1023_v6 = vrot.slane %v1021_v57, 4  ;;  %v405_v25 = vld [vmem:[%s3514_s14 + $0x2c] sm:$0x1]  ;;  %v1016_v62 = vshll.u32 %v403_v24, 16 }
  0x3c   : > { %v991_v51 = vsel %vm3449_vm3, %v986_v31, %v990_v33  ;;  %v1030_v31 = vshll.u32 %v405_v25, 16  ;;  %v406_v42 = vld [vmem:[%s3514_s14 + $0x30] sm:$0xf]  ;;  %v3214_v61 = vld [vmem:[%s3599_s15 + $0x24] sm:$0xf0] }
  0x3d   : > { %v1005_v52 = vsel %vm3449_vm3, %v1000_v34, %v1004_v35  ;;  %v1069_v3 = vunpack.c.l.b16 %v991_v51  ;;  %v1018_v34 = vrot.slane %v1016_v62, 5  ;;  %v409_v24 = vld [vmem:[%s3514_s14 + $0x3c] sm:$0x1]  ;;  %v3666_v25 = vor.u32 %v3214_v61, %v2857_v60 }
  0x3e   : > { %v1070_v5 = vunpack.c.l.b16 %v1005_v52  ;;  %v1032_v38 = vrot.slane %v1030_v31, 5  ;;  %v1035_v52 = vshrl.u32 %v406_v42, 16 }
  0x40   : > { %v1076_v15 = vpack.c.b16 %v1070_v5, %v1069_v3  ;;  %v3210_v5 = vld [vmem:[%s3514_s14 + $0x24] sm:$0xf0] }
  0x43   : > { %2810 = vmatmul.msk.bf16.gmra.mxu2 %vm470_vm0, %v716_v53  ;;  %v1007_v53 = vshrl.u32 %v402_v43, 16  ;;  %v408_v43 = vld [vmem:[%s3514_s14 + $0x38] sm:$0xf] }
  0x44   : > { %v1049_v55 = vshrl.u32 %v408_v43, 16  ;;  %v1052_v57 = vshll.u32 %v408_v43, 16 }
  0x45   : > { %v1009_v14 = vrot.slane %v1007_v53, 4  ;;  %v1038_v53 = vshll.u32 %v406_v42, 16  ;;  %v3215_v42 = vld [vmem:[%s3599_s15 + $0x34] sm:$0xf0] }
  0x46   : > { %2871 = vmatmul.msk.bf16.vlgmr.msrb.gmra.mxu0 %vm470_vm0, %v3613_v21 }
  0x47   : > { %2839 = vmatmul.msk.bf16.vlgmr.msrb.gmra.mxu3 %vm470_vm0, %v2818_v27  ;;  %v3643_v27 = vor.u32 %v3213_v12, %v2853_v1  ;;  %v1013_v18 = vor.u32 %v1012_v20, %v1009_v14  ;;  %v1037_v12 = vrot.slane %v1035_v52, 4  ;;  %v1040_v14 = vrot.slane %v1038_v53, 5  ;;  %v3211_v52 = vld [vmem:[%s3514_s14 + $0x34] sm:$0xf0] }
  0x48   : > { %2887 = vmatmul.msk.bf16.vlgmr.msrb.gmra.mxu1 %vm470_vm0, %v1075_v28  ;;  %v1027_v28 = vor.u32 %v1026_v22, %v1023_v6  ;;  %v1051_v20 = vrot.slane %v1049_v55, 4  ;;  %v1054_v6 = vrot.slane %v1052_v57, 5  ;;  %v407_v22 = vld [vmem:[%s3514_s14 + $0x34] sm:$0x1] }
  0x49   : > { %v1014_v33 = vrot.slane %v1013_v18, 4  ;;  %v1041_v19 = vor.u32 %v1040_v14, %v1037_v12  ;;  %v1044_v4 = vshll.u32 %v407_v22, 16  ;;  %v1222_v22 = vpack.c.b16 %v1218_v29, %v453_v48  ;;  %v3251_v29 = vld [vmem:[%s4471_s6 + $0x78] sm:$0xff] }
  0x4a   : > { %v1028_v35 = vrot.slane %v1027_v28, 4 }
  0x4b   : > { %v1019_v44 = vsel %vm3449_vm3, %v1014_v33, %v1018_v34  ;;  %v1042_v18 = vrot.slane %v1041_v19, 4  ;;  %v1046_v62 = vrot.slane %v1044_v4, 5 }
  0x4c   : > { %v1033_v51 = vsel %vm3449_vm3, %v1028_v35, %v1032_v38  ;;  %v1071_v1 = vunpack.c.l.b16 %v1019_v44  ;;  %v1149_v35 = vpack.c.b16 %v526_v49, %v525_v9  ;;  %v2861_v38 = vld [vmem:[%s3599_s15 + $0x30] sm:$0xf]  ;;  %v1146_v9 = vunpack.c.l.b16 %v383_v0 }
  0x4d   : > { %v1072_v3 = vunpack.c.l.b16 %v1033_v51  ;;  %v1047_v33 = vsel %vm3449_vm3, %v1042_v18, %v1046_v62  ;;  %v2829_v51 = vld [vmem:[%s3514_s14 + $0x30] sm:$0xf]  ;;  %v3685_v53 = vor.u32 %v3215_v42, %v2861_v38  ;;  %v1305_v49 = vpack.c.b16 %v3540_v8, %v3474_v7  ;;  %v384_v7 = vld [vmem:[%s3391_s24 + $0x44] sm:$0x1]  ;;  %v3235_v62 = vld [vmem:[%s4470_s5 + $0x8] sm:$0xff] }
  0x4e   : > { %v1073_v43 = vunpack.c.l.b16 %v1047_v33  ;;  %v2830_v55 = vor.u32 %v3211_v52, %v2829_v51  ;;  %v1150_v39 = vpack.c.b16 %v1146_v9, %v527_v50  ;;  %v1294_v60 = vshll.u32 %v384_v7, 16  ;;  %1421 = vmatpush.bf16.msra.mxu1 %v3235_v62  ;;  %v3234_v33 = vld [vmem:[%s4470_s5] sm:$0xff]  ;;  %v3243_v38 = vld [vmem:[%s4471_s6 + $0x38] sm:$0xff]  ;;  %v3242_v0 = vld [vmem:[%s4471_s6 + $0x30] sm:$0xff] }
  0x4f   : > { %v1077_v63 = vpack.c.b16 %v1072_v3, %v1071_v1  ;;  %1833 = vmatpush.bf16.msra.mxu2 %v3243_v38  ;;  %v3244_v62 = vld [vmem:[%s4471_s6 + $0x40] sm:$0xff] }
  0x50   : > { %v1296_v3 = vrot.slane %v1294_v60, 5 }
  0x52   : > { %1422 = vmatpush.bf16.msra.mxu1 %v3234_v33 }
  0x53   : > { %2903 = vmatmul.msk.bf16.vlgmr.msrb.gmra.mxu2 %vm470_vm0, %v1147_v59  ;;  %v2825_v59 = vld [vmem:[%s3514_s14 + $0x20] sm:$0xf] }
  0x54   : > { %v2826_v16 = vor.u32 %v3210_v5, %v2825_v59  ;;  %v1290_v59 = vrot.slane %v1288_v11, 5  ;;  %1834 = vmatpush.bf16.msra.mxu2 %v3242_v0  ;;  %v3302_v11 = vmov 0  }
  0x55   : > { %1470 = vst.msk [vmem:[#allocation2 + $0x8] sm:$0xf] %vm1466_vm4, %v3302_v11 }
  0x56   : > { %2872 = vmatmul.msk.bf16.gmra.mxu0 %vm470_vm0, %v3643_v27  ;;  %1471 = vst.msk [vmem:[#allocation2 + $0xc] sm:$0x1] %vm1468_vm5, %v3302_v11  ;;  %2135 = vmatpush.bf16.msrb.mxu1 %v3251_v29 }
  0x57   : > { %2840 = vmatmul.msk.bf16.gmra.mxu3 %vm470_vm0, %v2822_v32  ;;  %v1055_v32 = vor.u32 %v1054_v6, %v1051_v20  ;;  %1467 = vst.msk [vmem:[#allocation2] sm:$0xf] %vm1466_vm4, %v3302_v11 }
  0x58   : > { %2888 = vmatmul.msk.bf16.gmra.mxu1 %vm470_vm0, %v1076_v15  ;;  %v1058_v15 = vshll.u32 %v409_v24, 16  ;;  %1469 = vst.msk [vmem:[#allocation2 + $0x4] sm:$0x1] %vm1468_vm5, %v3302_v11 }
  0x59   : > { %v1056_v28 = vrot.slane %v1055_v32, 4  ;;  %1472 = vst.msk [vmem:[#allocation2 + $0x10] sm:$0xf] %vm1466_vm4, %v3302_v11 }
  0x5a   : > { %v1060_v31 = vrot.slane %v1058_v15, 5  ;;  %1473 = vst.msk [vmem:[#allocation2 + $0x14] sm:$0x1] %vm1468_vm5, %v3302_v11 }
  0x5b   : > { %1474 = vst.msk [vmem:[#allocation2 + $0x18] sm:$0xf] %vm1466_vm4, %v3302_v11 }
  0x5c   : > { %v1061_v34 = vsel %vm3449_vm3, %v1056_v28, %v1060_v31  ;;  %1475 = vst.msk [vmem:[#allocation2 + $0x1c] sm:$0x1] %vm1468_vm5, %v3302_v11 }
  0x5d   : > { %v1074_v44 = vunpack.c.l.b16 %v1061_v34  ;;  %1476 = vst.msk [vmem:[#allocation2 + $0x20] sm:$0xf] %vm1466_vm4, %v3302_v11 }
  0x5e   : > { %1477 = vst.msk [vmem:[#allocation2 + $0x24] sm:$0x1] %vm1468_vm5, %v3302_v11 }
  0x5f   : > { %v1078_v57 = vpack.c.b16 %v1074_v44, %v1073_v43  ;;  %1478 = vst.msk [vmem:[#allocation2 + $0x28] sm:$0xf] %vm1466_vm4, %v3302_v11 }
  0x60   : > { %1479 = vst.msk [vmem:[#allocation2 + $0x2c] sm:$0x1] %vm1468_vm5, %v3302_v11 }
  0x61   : > { %1480 = vst.msk [vmem:[#allocation2 + $0x30] sm:$0xf] %vm1466_vm4, %v3302_v11 }
  0x62   : > { %1481 = vst.msk [vmem:[#allocation2 + $0x34] sm:$0x1] %vm1468_vm5, %v3302_v11 }
  0x63   : > { %2904 = vmatmul.msk.bf16.gmra.mxu2 %vm470_vm0, %v1148_v58  ;;  %1482 = vst.msk [vmem:[#allocation2 + $0x38] sm:$0xf] %vm1466_vm4, %v3302_v11 }
  0x64   : > { %1483 = vst.msk [vmem:[#allocation2 + $0x3c] sm:$0x1] %vm1468_vm5, %v3302_v11 }
  0x65   : > { %1484 = vst.msk [vmem:[#allocation2 + $0x40] sm:$0xf] %vm1466_vm4, %v3302_v11 }
  0x66   : > { %2873 = vmatmul.msk.bf16.gmra.mxu0 %vm470_vm0, %v3666_v25  ;;  %1485 = vst.msk [vmem:[#allocation2 + $0x44] sm:$0x1] %vm1468_vm5, %v3302_v11 }
  0x67   : > { %2841 = vmatmul.msk.bf16.gmra.mxu3 %vm470_vm0, %v2826_v16  ;;  %1486 = vst.msk [vmem:[#allocation2 + $0x48] sm:$0xf] %vm1466_vm4, %v3302_v11 }
  0x68   : > { %2889 = vmatmul.msk.bf16.gmra.mxu1 %vm470_vm0, %v1077_v63  ;;  %1487 = vst.msk [vmem:[#allocation2 + $0x4c] sm:$0x1] %vm1468_vm5, %v3302_v11  ;;  %v3249_v11 = vld [vmem:[%s4471_s6 + $0x68] sm:$0xff] }
  0x73   : > { %2905 = vmatmul.msk.bf16.gmra.mxu2 %vm470_vm0, %v1149_v35 }
  0x76   : > { %2874 = vmatmul.msk.bf16.gmra.mxu0 %vm470_vm0, %v3685_v53 }
  0x77   : > { %2842 = vmatmul.msk.bf16.gmra.mxu3 %vm470_vm0, %v2830_v55 }
  0x78   : > { %2890 = vmatmul.msk.bf16.gmra.mxu1 %vm470_vm0, %v1078_v57 }
  0x83   : > { %2906 = vmatmul.msk.bf16.gmra.mxu2 %vm470_vm0, %v1150_v39 }
  0x86   : > { %2935 = vmatmul.msk.bf16.vlgmr.msra.gmra.mxu0 %vm470_vm0, %v1304_v26 }
  0x87   : > { %2919 = vmatmul.msk.bf16.vlgmr.msra.gmra.mxu3 %vm470_vm0, %v3420_v23  ;;  %v1287_v23 = vrot.slane %v1285_v2, 4 }
  0x88   : > { %2947 = vmatmul.msk.bf16.vlgmr.msra.gmra.mxu1 %vm470_vm0, %v3613_v21 }
  0x89   : > { %v1291_v54 = vor.u32 %v1290_v59, %v1287_v23 }
  0x8b   : > { %v1292_v1 = vrot.slane %v1291_v54, 4  ;;  %v3238_v54 = vld [vmem:[%s4471_s6 + $0x10] sm:$0xff] }
  0x8d   : > { %v1297_v10 = vsel %vm3449_vm3, %v1292_v1, %v1296_v3  ;;  %v3246_v1 = vld [vmem:[%s4471_s6 + $0x50] sm:$0xff] }
  0x8e   : > { %v1303_v36 = vunpack.c.l.b16 %v1297_v10 }
  0x90   : > { %v1307_v20 = vpack.c.b16 %v1303_v36, %v3593_v37  ;;  %v3237_v36 = vld [vmem:[%s4471_s6 + $0x8] sm:$0xff] }
  0x93   : > { %v492_v58 = vpop.f32.mrf.mxu0 }
  0x95   : > { %v3731_v56 = vpop.f32.mrf.mxu1 }
  0x96   : > { %2936 = vmatmul.msk.bf16.gmra.mxu0 %vm470_vm0, %v1305_v49 }
  0x97   : > { %2920 = vmatmul.msk.bf16.gmra.mxu3 %vm470_vm0, %v1220_v40 }
  0x98   : > { %2948 = vmatmul.msk.bf16.gmra.mxu1 %vm470_vm0, %v3643_v27 }
  0x9a   : > { %v3709_v50 = vpop.f32.mrf.mxu3 }
  0x9b   : > { %v3711_v26 = vpop.f32.mrf.mxu0  ;;  %v571_v33 = vadd.f32 %v3731_v56, %v3709_v50  ;;  %v3906_v50 = vld [vmem:[%s4472_s7 + $0x1] ss:$0 sm:$0xff] }
  0x9d   : > { %v3744_v16 = vpop.f32.mrf.mxu1 }
  0xa2   : > { %v3714_v8 = vpop.f32.mrf.mxu3 }
  0xa3   : > { %v565_v17 = vpop.f32.mrf.mxu0 }
  0xa4   : > { %v566_v61 = vadd.f32 %v565_v17, %v492_v58 }
  0xa5   : > { %v3756_v30 = vpop.f32.mrf.mxu1 }
  0xa6   : > { %2937 = vmatmul.msk.bf16.gmra.mxu0 %vm470_vm0, %v1306_v13  ;;  %v3733_v47 = vpop.f32.mrf.mxu2  ;;  %v3247_v13 = vld [vmem:[%s4471_s6 + $0x58] sm:$0xff] }
  0xa7   : > { %2921 = vmatmul.msk.bf16.gmra.mxu3 %vm470_vm0, %v1221_v41  ;;  %2047 = vmatpush.bf16.msrb.mxu0 %v3247_v13 }
  0xa8   : > { %2949 = vmatmul.msk.bf16.gmra.mxu1 %vm470_vm0, %v3666_v25  ;;  %v3239_v25 = vld [vmem:[%s4471_s6 + $0x18] sm:$0xff] }
  0xa9   : > { %1918 = vmatpush.bf16.msrb.mxu3 %v3239_v25  ;;  %v772_v25 = vadd.f32 %v3733_v47, %v571_v33  ;;  %v3240_v47 = vld [vmem:[%s4471_s6 + $0x20] sm:$0xff] }
  0xaa   : > { %v3724_v5 = vpop.f32.mrf.mxu3 }
  0xab   : > { %v3726_v12 = vpop.f32.mrf.mxu0  ;;  %2048 = vmatpush.bf16.msrb.mxu0 %v3246_v1 }
  0xac   : > { %v568_v3 = vadd.f32 %v3726_v12, %v3711_v26  ;;  %v3245_v12 = vld [vmem:[%s4471_s6 + $0x48] sm:$0xff] }
  0xad   : > { %v3765_v28 = vpop.f32.mrf.mxu1  ;;  %1919 = vmatpush.bf16.msrb.mxu3 %v3238_v54  ;;  %v3248_v54 = vld [vmem:[%s4471_s6 + $0x60] sm:$0xff] }
  0xae   : > { %v3748_v19 = vpop.f32.mrf.mxu2 }
  0xaf   : > { %2049 = vmatpush.bf16.msrb.mxu0 %v3245_v12 }
  0xb1   : > { %1920 = vmatpush.bf16.msrb.mxu3 %v3237_v36 }
  0xb2   : > { %v3735_v14 = vpop.f32.mrf.mxu3 }
  0xb3   : > { %v750_v6 = vpop.f32.mrf.mxu0  ;;  %2050 = vmatpush.bf16.msrb.mxu0 %v3244_v62  ;;  %v1586_v62 = vld [vmem:[#allocation2 + $0xc] sm:$0x1] }
  0xb4   : > { %v3740_v24 = vadd.f32 %v750_v6, %v566_v61 }
  0xb5   : > { %v3781_v42 = vpop.f32.mrf.mxu1 }
  0xb6   : > { %2938 = vmatmul.msk.bf16.gmra.mxu0 %vm470_vm0, %v1307_v20  ;;  %v3758_v48 = vpop.f32.mrf.mxu2 }
  0xb7   : > { %2922 = vmatmul.msk.bf16.gmra.mxu3 %vm470_vm0, %v1222_v22  ;;  %v3236_v22 = vld [vmem:[%s4471_s6] sm:$0xff] }
  0xb8   : > { %2950 = vmatmul.msk.bf16.gmra.mxu1 %vm470_vm0, %v3685_v53  ;;  %v3241_v53 = vld [vmem:[%s4471_s6 + $0x28] sm:$0xff]  ;;  %1921 = vmatpush.bf16.msrb.mxu3 %v3236_v22 }
  0xb9   : > { %1835 = vmatpush.bf16.msra.mxu2 %v3241_v53 }
  0xba   : > { %v3746_v63 = vpop.f32.mrf.mxu3 }
  0xbb   : > { %v3750_v4 = vpop.f32.mrf.mxu0 }
  0xbc   : > { %v771_v26 = vadd.f32 %v3750_v4, %v568_v3 }
  0xbd   : > { %v3789_v52 = vpop.f32.mrf.mxu1  ;;  %1836 = vmatpush.bf16.msra.mxu2 %v3240_v47 }
  0xbe   : > { %v3767_v31 = vpop.f32.mrf.mxu2 }
  0xc2   : > { %v3752_v32 = vpop.f32.mrf.mxu3 }
  0xc3   : > { %v3754_v37 = vpop.f32.mrf.mxu0 }
  0xc5   : > { %v1112_v39 = vpop.f32.mrf.mxu1 }
  0xc6   : > { %v3783_v43 = vpop.f32.mrf.mxu2 }
  0xca   : > { %v836_v15 = vpop.f32.mrf.mxu3 }
  0xcb   : > { %v3760_v18 = vpop.f32.mrf.mxu0  ;;  %v856_v17 = vadd.f32 %v836_v15, %v3740_v24  ;;  %v3250_v24 = vld [vmem:[%s4471_s6 + $0x70] sm:$0xff] }
  0xcc   : > { %2136 = vmatpush.bf16.msrb.mxu1 %v3250_v24 }
  0xcd   : > { %v3813_v27 = vpop.f32.mrf.mxu1  ;;  %v942_v10 = vadd.f32 %v3754_v37, %v856_v17 }
  0xce   : > { %v3793_v57 = vpop.f32.mrf.mxu2 }
  0xcf   : > { %v1132_v20 = vadd.f32 %v1112_v39, %v942_v10  ;;  %v3897_v39 = vld [vmem:[%s4472_s7] ss:$0 sm:$0xff]  ;;  %v578_v10 = vadd.f32 %v3765_v28, %v3735_v14 }
  0xd0   : > { %2137 = vmatpush.bf16.msrb.mxu1 %v3249_v11 }
  0xd2   : > { %v3772_v34 = vpop.f32.mrf.mxu3 }
  0xd3   : > { %v3774_v35 = vpop.f32.mrf.mxu0  ;;  %v857_v6 = vadd.f32 %v3772_v34, %v771_v26 }
  0xd4   : > { %2138 = vmatpush.bf16.msrb.mxu1 %v3248_v54 }
  0xd5   : > { %v3838_v41 = vpop.f32.mrf.mxu1  ;;  %v943_v34 = vadd.f32 %v3760_v18, %v857_v6 }
  0xd6   : > { %v1184_v58 = vpop.f32.mrf.mxu2 }
  0xd7   : > { %v1204_v4 = vadd.f32 %v1184_v58, %v1132_v20  ;;  %v1133_v56 = vadd.f32 %v3813_v27, %v943_v34  ;;  %v573_v27 = vadd.f32 %v3744_v16, %v3714_v8  ;;  %v775_v8 = vadd.f32 %v3767_v31, %v578_v10 }
  0xd8   : > { %v583_v31 = vadd.f32 %v3789_v52, %v3752_v32  ;;  %v1580_v52 = vld [vmem:[#allocation2 + $0x8] sm:$0xf] }
  0xd9   : > { %v773_v20 = vadd.f32 %v3748_v19, %v573_v27 }
  0xda   : > { %v3785_v44 = vpop.f32.mrf.mxu3  ;;  %v777_v27 = vadd.f32 %v3793_v57, %v583_v31 }
  0xdb   : > { %v3787_v51 = vpop.f32.mrf.mxu0  ;;  %v858_v18 = vadd.f32 %v3785_v44, %v772_v25  ;;  %v576_v44 = vadd.f32 %v3756_v30, %v3724_v5 }
  0xdd   : > { %v3884_v37 = vpop.f32.mrf.mxu1  ;;  %v944_v36 = vadd.f32 %v3774_v35, %v858_v18  ;;  %v774_v6 = vadd.f32 %v3758_v48, %v576_v44  ;;  %v581_v48 = vadd.f32 %v3781_v42, %v3746_v63 }
  0xde   : > { %v3817_v23 = vpop.f32.mrf.mxu2 }
  0xdf   : > { %v1205_v1 = vadd.f32 %v3817_v23, %v1133_v56  ;;  %v1134_v35 = vadd.f32 %v3838_v41, %v944_v36  ;;  %v3945_v41 = vld [vmem:[#allocation2] sm:$0xf] }
  0xe0   : > { %v1866_v31 = vunpack.c.l.b16 %v3945_v41 }
  0xe2   : > { %v3791_v55 = vpop.f32.mrf.mxu3 }
  0xe3   : > { %v3795_v21 = vpop.f32.mrf.mxu0  ;;  %v859_v30 = vadd.f32 %v3791_v55, %v773_v20 }
  0xe5   : > { %v1122_v29 = vpop.f32.mrf.mxu1  ;;  %v945_v63 = vadd.f32 %v3787_v51, %v859_v30  ;;  %v1592_v30 = vld [vmem:[#allocation2 + $0x14] sm:$0x1] }
  0xe6   : > { %v3845_v60 = vpop.f32.mrf.mxu2 }
  0xe7   : > { %v1206_v24 = vadd.f32 %v3845_v60, %v1134_v35  ;;  %v1135_v54 = vadd.f32 %v3884_v37, %v945_v63 }
  0xea   : > { %v3802_v9 = vpop.f32.mrf.mxu3 }
  0xeb   : > { %v3804_v49 = vpop.f32.mrf.mxu0  ;;  %v860_v14 = vadd.f32 %v3802_v9, %v774_v6 }
  0xed   : > { %v946_v42 = vadd.f32 %v3795_v21, %v860_v14  ;;  %v1660_v21 = vshrl.u32 %v3945_v41, 16  ;;  %v1124_v25 = vpop.f32.mrf.mxu1 }
  0xee   : > { %v3892_v38 = vpop.f32.mrf.mxu2 }
  0xef   : > { %v1136_v44 = vadd.f32 %v1122_v29, %v946_v42 }
  0xf2   : > { %v3806_v40 = vpop.f32.mrf.mxu3 }
  0xf3   : > { %v3808_v2 = vpop.f32.mrf.mxu0  ;;  %v861_v28 = vadd.f32 %v3806_v40, %v775_v8 }
  0xf5   : > { %v947_v32 = vadd.f32 %v3804_v49, %v861_v28  ;;  %v1663_v49 = vshll.u32 %v3945_v41, 16 }
  0xf6   : > { %v1194_v16 = vpop.f32.mrf.mxu2 }
  0xf7   : > { %v1137_v37 = vadd.f32 %v1124_v25, %v947_v32  ;;  %v1208_v20 = vadd.f32 %v1194_v16, %v1136_v44 }
  0xfa   : > { %v3822_v59 = vpop.f32.mrf.mxu3 }
  0xfb   : > { %v3825_v7 = vpop.f32.mrf.mxu0 }
  0xfe   : > { %v1196_v10 = vpop.f32.mrf.mxu2 }
  0xff   : > { %v3979_v8 = vadd.f32 %v1196_v10, %v1137_v37 }
 0x102   : > { %v3848_v61 = vpop.f32.mrf.mxu3 }
 0x103   : > { %v1341_v45 = vpop.f32.mrf.mxu0 }
 0x10a   : > { %v1256_v15 = vpop.f32.mrf.mxu3 }
 0x10b   : > { %v1276_v0 = vadd.f32 %v1256_v15, %v1204_v4  ;;  %v1343_v58 = vpop.f32.mrf.mxu0  ;;  %v776_v15 = vadd.f32 %v3783_v43, %v581_v48  ;;  %v3957_v43 = vld [vmem:[#allocation2 + $0x4] sm:$0x1]  ;;  %v863_v48 = vadd.f32 %v3848_v61, %v777_v27 }
 0x10d   : > { %v1361_v13 = vadd.f32 %v1341_v45, %v1276_v0  ;;  %v862_v47 = vadd.f32 %v3822_v59, %v776_v15  ;;  %v1207_v59 = vadd.f32 %v3892_v38, %v1135_v54  ;;  %v1669_v38 = vshll.u32 %v3957_v43, 16  ;;  %v1595_v54 = vld [vmem:[#allocation2 + $0x18] sm:$0xf] }
 0x10e   : > { %v949_v37 = vadd.f32 %v3825_v7, %v863_v48 }
 0x10f   : > { %v1372_v17 = vmul.f32 %v3897_v39, %v1361_v13 }
 0x111   : > { %v1383_v3 = vadd.f32 %v3906_v50, %v1372_v17 }
 0x112   : > { %v1258_v45 = vpop.f32.mrf.mxu3 }
 0x113   : > { %v1391_v26 = vmax.f32 %v1383_v3, 0.0  ;;  %v1277_v12 = vadd.f32 %v1258_v45, %v1205_v1  ;;  %v1346_v23 = vpop.f32.mrf.mxu0  ;;  %v2999_v1 = vrot.slane %v3945_v41, 9  ;;  %v1956_v3 = vrot.slane %v3957_v43, 5 }
 0x115   : > { %v1488_v53 = vpack.c.bf16 %v1391_v26, %v1391_v26  ;;  %v1362_v5 = vadd.f32 %v1343_v58, %v1277_v12  ;;  %v1662_v12 = vrot.slane %v1660_v21, 4  ;;  %v1957_v28 = vsel %vm3973_vm12, %v2999_v1, %v1956_v3 }
 0x117   : > { %v1497_v22 = vshrl.u32 %v1488_v53, 16  ;;  %v1373_v19 = vmul.f32 %v3897_v39, %v1362_v5  ;;  %v1500_v4 = vshll.u32 %v1488_v53, 16  ;;  %v948_v53 = vadd.f32 %v3808_v2, %v862_v47  ;;  %v1589_v5 = vld [vmem:[#allocation2 + $0x10] sm:$0xf]  ;;  %v1598_v47 = vld [vmem:[#allocation2 + $0x1c] sm:$0x1] }
 0x119   : > { %v1499_v55 = vrot.slane %v1497_v22, 7  ;;  %v1384_v40 = vadd.f32 %v3906_v50, %v1373_v19 }
 0x11a   : > { %v1261_v33 = vpop.f32.mrf.mxu3 }
 0x11b   : > { %v1502_v34 = vor.u32 %v1500_v4, %v1499_v55  ;;  %v1503_v0 = vrot.slane %v1499_v55, 4  ;;  %v1392_v58 = vmax.f32 %v1384_v40, 0.0  ;;  %v1278_v11 = vadd.f32 %v1261_v33, %v1206_v24  ;;  %v1348_v51 = vpop.f32.mrf.mxu0  ;;  %v1127_v33 = vpop.f32.mrf.mxu1 }
 0x11d   : > { %v1581_v13 = vsel %vm3940_vm8, %v1502_v34, %v1580_v52  ;;  %v1587_v56 = vsel %vm3953_vm9, %v1503_v0, %v1586_v62  ;;  %v1489_v18 = vpack.c.bf16 %v1392_v58, %v1392_v58  ;;  %v1363_v17 = vadd.f32 %v1346_v23, %v1278_v11  ;;  %v3255_v11 = vld [vmem:[%s4471_s6 + $0x98] sm:$0xff] }
 0x11e   : > { %1582 = vst [vmem:[#allocation2 + $0x8] sm:$0xf] %v1581_v13  ;;  %v1665_v23 = vrot.slane %v1663_v49, 5  ;;  %v1995_v62 = vunpack.c.l.b16 %v1957_v28  ;;  %v1671_v58 = vrot.slane %v1669_v38, 5  ;;  %2236 = vmatpush.bf16.msrb.mxu2 %v3255_v11  ;;  %v1199_v38 = vpop.f32.mrf.mxu2 }
 0x11f   : > { %1588 = vst [vmem:[#allocation2 + $0xc] sm:$0x1] %v1587_v56  ;;  %v1505_v45 = vshrl.u32 %v1489_v18, 16  ;;  %v1374_v36 = vmul.f32 %v3897_v39, %v1363_v17  ;;  %v1508_v57 = vshll.u32 %v1489_v18, 16  ;;  %v1138_v17 = vadd.f32 %v1127_v33, %v948_v53  ;;  %v1604_v33 = vld [vmem:[#allocation2 + $0x24] sm:$0x1] }
 0x120   : > { %v1666_v24 = vor.u32 %v1665_v23, %v1662_v12 }
 0x121   : > { %v1507_v6 = vrot.slane %v1505_v45, 7  ;;  %v1385_v29 = vadd.f32 %v3906_v50, %v1374_v36 }
 0x122   : > { %v1263_v14 = vpop.f32.mrf.mxu3 }
 0x123   : > { %v1510_v35 = vor.u32 %v1508_v57, %v1507_v6  ;;  %v1511_v22 = vrot.slane %v1507_v6, 4  ;;  %v1393_v19 = vmax.f32 %v1385_v29, 0.0  ;;  %v1279_v16 = vadd.f32 %v1263_v14, %v1207_v59  ;;  %v1351_v63 = vpop.f32.mrf.mxu0 }
 0x125   : > { %v1590_v2 = vsel %vm3940_vm8, %v1510_v35, %v1589_v5  ;;  %v1593_v55 = vsel %vm3953_vm9, %v1511_v22, %v1592_v30  ;;  %v1490_v4 = vpack.c.bf16 %v1393_v19, %v1393_v19  ;;  %v1364_v40 = vadd.f32 %v1348_v51, %v1279_v16  ;;  %v1633_v15 = vld [vmem:[#allocation2 + $0x8] sm:$0xf] }
 0x126   : > { %1591 = vst [vmem:[#allocation2 + $0x10] sm:$0xf] %v1590_v2  ;;  %v1867_v42 = vunpack.c.l.b16 %v1633_v15  ;;  %v1634_v32 = vld [vmem:[#allocation2 + $0xc] sm:$0x1]  ;;  %v3000_v52 = vrot.slane %v1633_v15, 9  ;;  %v1674_v61 = vshrl.u32 %v1633_v15, 16 }
 0x127   : > { %1594 = vst [vmem:[#allocation2 + $0x14] sm:$0x1] %v1593_v55  ;;  %v1513_v41 = vshrl.u32 %v1490_v4, 16  ;;  %v1375_v34 = vmul.f32 %v3897_v39, %v1364_v40  ;;  %v1960_v0 = vrot.slane %v1634_v32, 5  ;;  %v1667_v51 = vrot.slane %v1666_v24, 4  ;;  %v1129_v40 = vpop.f32.mrf.mxu1 }
 0x128   : > { %v1874_v43 = vpack.c.b16 %v1867_v42, %v1866_v31  ;;  %v1676_v21 = vrot.slane %v1674_v61, 4  ;;  %v1677_v49 = vshll.u32 %v1633_v15, 16  ;;  %v1516_v13 = vshll.u32 %v1490_v4, 16  ;;  %v1601_v61 = vld [vmem:[#allocation2 + $0x20] sm:$0xf] }
 0x129   : > { %v1515_v25 = vrot.slane %v1513_v41, 7  ;;  %v1386_v56 = vadd.f32 %v3906_v50, %v1375_v34  ;;  %v3998_v18 = vsel %vm3973_vm12, %v3000_v52, %v1960_v0  ;;  %v1683_v44 = vshll.u32 %v1634_v32, 16 }
 0x12a   : > { %v1266_v1 = vpop.f32.mrf.mxu3  ;;  %2995 = vmatmul.msk.bf16.vlgmr.msrb.gmra.mxu3 %vm1816_vm13, %v1874_v43  ;;  %v1996_v3 = vunpack.c.l.b16 %v3998_v18  ;;  %v1679_v27 = vrot.slane %v1677_v49, 5  ;;  %v1672_v23 = vsel %vm3449_vm3, %v1667_v51, %v1671_v58  ;;  %v1139_v43 = vadd.f32 %v1129_v40, %v949_v37  ;;  %v3254_v37 = vld [vmem:[%s4471_s6 + $0x90] sm:$0xff]  ;;  %v3269_v18 = vld [vmem:[%s4471_s6 + $0x108] sm:$0xff] }
 0x12b   : > { %v1518_v10 = vor.u32 %v1516_v13, %v1515_v25  ;;  %v1519_v45 = vrot.slane %v1515_v25, 4  ;;  %v1394_v36 = vmax.f32 %v1386_v56, 0.0  ;;  %v1280_v59 = vadd.f32 %v1266_v1, %v1208_v20  ;;  %v1353_v31 = vpop.f32.mrf.mxu0  ;;  %2237 = vmatpush.bf16.msrb.mxu2 %v3254_v37 }
 0x12c   : > { %v2003_v12 = vpack.c.b16 %v1996_v3, %v1995_v62  ;;  %v1680_v6 = vor.u32 %v1679_v27, %v1676_v21  ;;  %v1685_v14 = vrot.slane %v1683_v44, 5  ;;  %v1780_v16 = vunpack.c.l.b16 %v1672_v23 }
 0x12d   : > { %v1596_v57 = vsel %vm3940_vm8, %v1518_v10, %v1595_v54  ;;  %v1599_v29 = vsel %vm3953_vm9, %v1519_v45, %v1598_v47  ;;  %v1491_v53 = vpack.c.bf16 %v1394_v36, %v1394_v36  ;;  %v1365_v5 = vadd.f32 %v1351_v63, %v1280_v59  ;;  %v1635_v30 = vld [vmem:[#allocation2 + $0x10] sm:$0xf] }
 0x12e   : > { %1597 = vst [vmem:[#allocation2 + $0x18] sm:$0xf] %v1596_v57  ;;  %3031 = vmatmul.msk.bf16.vlgmr.msrb.gmra.mxu0 %vm1816_vm13, %v2003_v12  ;;  %v1868_v7 = vunpack.c.l.b16 %v1635_v30  ;;  %v1681_v20 = vrot.slane %v1680_v6, 4  ;;  %v3001_v28 = vrot.slane %v1635_v30, 9  ;;  %v4013_v48 = vld [vmem:[#allocation2 + $0x14] sm:$0x1]  ;;  %v1210_v62 = vadd.f32 %v1199_v38, %v1138_v17 }
 0x12f   : > { %1600 = vst [vmem:[#allocation2 + $0x1c] sm:$0x1] %v1599_v29  ;;  %v1521_v35 = vshrl.u32 %v1491_v53, 16  ;;  %v1524_v22 = vshll.u32 %v1491_v53, 16  ;;  %v1376_v19 = vmul.f32 %v3897_v39, %v1365_v5  ;;  %v1964_v55 = vrot.slane %v4013_v48, 5 }
 0x130   : > { %v2091_v24 = vpack.c.b16 %v1868_v7, %v1867_v42  ;;  %v1686_v2 = vsel %vm3449_vm3, %v1681_v20, %v1685_v14  ;;  %v1688_v4 = vshrl.u32 %v1635_v30, 16  ;;  %v1691_v52 = vshll.u32 %v1635_v30, 16  ;;  %v1607_v53 = vld [vmem:[#allocation2 + $0x28] sm:$0xf] }
 0x131   : > { %v1523_v15 = vrot.slane %v1521_v35, 7  ;;  %v1387_v63 = vadd.f32 %v3906_v50, %v1376_v19  ;;  %v4019_v32 = vunpack.c.l.b16 %v1686_v2  ;;  %v4026_v21 = vsel %vm3973_vm12, %v3001_v28, %v1964_v55  ;;  %v3253_v14 = vld [vmem:[%s4471_s6 + $0x88] sm:$0xff] }
 0x132   : > { %v1268_v41 = vpop.f32.mrf.mxu3  ;;  %3059 = vmatmul.msk.bf16.vlgmr.msrb.gmra.mxu1 %vm1816_vm13, %v2091_v24  ;;  %v1690_v42 = vrot.slane %v1688_v4, 4  ;;  %v1693_v49 = vrot.slane %v1691_v52, 5  ;;  %v1697_v44 = vshll.u32 %v4013_v48, 16  ;;  %v1997_v59 = vunpack.c.l.b16 %v4026_v21  ;;  %v3259_v48 = vld [vmem:[%s4471_s6 + $0xb8] sm:$0xff]  ;;  %2238 = vmatpush.bf16.msrb.mxu2 %v3253_v14  ;;  %v3268_v21 = vld [vmem:[%s4471_s6 + $0x100] sm:$0xff] }
 0x133   : > { %v1526_v34 = vor.u32 %v1524_v22, %v1523_v15  ;;  %v1527_v0 = vrot.slane %v1523_v15, 4  ;;  %v1395_v58 = vmax.f32 %v1387_v63, 0.0  ;;  %v1281_v11 = vadd.f32 %v1268_v41, %v3979_v8  ;;  %v1356_v28 = vpop.f32.mrf.mxu0  ;;  %2328 = vmatpush.bf16.msra.mxu3 %v3259_v48 }
 0x134   : > { %v1788_v51 = vpack.c.b16 %v4019_v32, %v1780_v16  ;;  %v1694_v27 = vor.u32 %v1693_v49, %v1690_v42  ;;  %v1699_v15 = vrot.slane %v1697_v44, 5 }
 0x135   : > { %v1602_v25 = vsel %vm3940_vm8, %v1526_v34, %v1601_v61  ;;  %v1605_v13 = vsel %vm3953_vm9, %v1527_v0, %v1604_v33  ;;  %v1492_v56 = vpack.c.bf16 %v1395_v58, %v1395_v58  ;;  %v1366_v17 = vadd.f32 %v1353_v31, %v1281_v11  ;;  %v4032_v54 = vld [vmem:[#allocation2 + $0x18] sm:$0xf]  ;;  %v1201_v31 = vpop.f32.mrf.mxu2 }
 0x136   : > { %1603 = vst [vmem:[#allocation2 + $0x20] sm:$0xf] %v1602_v25  ;;  %2975 = vmatmul.msk.bf16.vlgmr.msra.gmra.mxu2 %vm1816_vm13, %v1788_v51  ;;  %v1869_v8 = vunpack.c.l.b16 %v4032_v54  ;;  %v1638_v47 = vld [vmem:[#allocation2 + $0x1c] sm:$0x1]  ;;  %v3002_v1 = vrot.slane %v4032_v54, 9  ;;  %v1702_v6 = vshrl.u32 %v4032_v54, 16 }
 0x137   : > { %1606 = vst [vmem:[#allocation2 + $0x24] sm:$0x1] %v1605_v13  ;;  %v1529_v10 = vshrl.u32 %v1492_v56, 16  ;;  %v1377_v45 = vmul.f32 %v3897_v39, %v1366_v17  ;;  %v1968_v36 = vrot.slane %v1638_v47, 5  ;;  %v1532_v12 = vshll.u32 %v1492_v56, 16 }
 0x138   : > { %v4043_v23 = vpack.c.b16 %v1869_v8, %v1868_v7  ;;  %v1705_v57 = vshll.u32 %v4032_v54, 16  ;;  %v1711_v20 = vshll.u32 %v1638_v47, 16  ;;  %v1610_v7 = vld [vmem:[#allocation2 + $0x2c] sm:$0x1]  ;;  %v1695_v22 = vrot.slane %v1694_v27, 4  ;;  %v3258_v27 = vld [vmem:[%s4471_s6 + $0xb0] sm:$0xff] }
 0x139   : > { %v1531_v29 = vrot.slane %v1529_v10, 7  ;;  %v1388_v5 = vadd.f32 %v3906_v50, %v1377_v45  ;;  %v4050_v30 = vsel %vm3973_vm12, %v3002_v1, %v1968_v36  ;;  %v1704_v19 = vrot.slane %v1702_v6, 4  ;;  %v1613_v45 = vld [vmem:[#allocation2 + $0x30] sm:$0xf]  ;;  %2329 = vmatpush.bf16.msra.mxu3 %v3258_v27 }
 0x13a   : > { %v1271_v38 = vpop.f32.mrf.mxu3  ;;  %2996 = vmatmul.msk.bf16.gmra.mxu3 %vm1816_vm13, %v4043_v23  ;;  %v1998_v35 = vunpack.c.l.b16 %v4050_v30  ;;  %v1707_v16 = vrot.slane %v1705_v57, 5  ;;  %v1713_v52 = vrot.slane %v1711_v20, 5  ;;  %v1700_v13 = vsel %vm3449_vm3, %v1695_v22, %v1699_v15 }
 0x13b   : > { %v1534_v24 = vor.u32 %v1532_v12, %v1531_v29  ;;  %v1535_v2 = vrot.slane %v1531_v29, 4  ;;  %v1396_v55 = vmax.f32 %v1388_v5, 0.0  ;;  %v1282_v4 = vadd.f32 %v1271_v38, %v1210_v62  ;;  %v1616_v12 = vld [vmem:[#allocation2 + $0x34] sm:$0x1]  ;;  %v1358_v38 = vpop.f32.mrf.mxu0 }
 0x13c   : > { %v4065_v40 = vpack.c.b16 %v1998_v35, %v1997_v59  ;;  %v1708_v63 = vor.u32 %v1707_v16, %v1704_v19  ;;  %v1211_v62 = vadd.f32 %v1201_v31, %v1139_v43  ;;  %v3263_v43 = vld [vmem:[%s4471_s6 + $0xd8] sm:$0xff]  ;;  %v3262_v5 = vld [vmem:[%s4471_s6 + $0xd0] sm:$0xff] }
 0x13d   : > { %v1608_v61 = vsel %vm3940_vm8, %v1534_v24, %v1607_v53  ;;  %v1611_v33 = vsel %vm3953_vm9, %v1535_v2, %v1610_v7  ;;  %v1493_v41 = vpack.c.bf16 %v1396_v55, %v1396_v55  ;;  %v1367_v42 = vadd.f32 %v1356_v28, %v1282_v4  ;;  %v1639_v34 = vld [vmem:[#allocation2 + $0x20] sm:$0xf]  ;;  %2404 = vmatpush.bf16.msra.mxu0 %v3263_v43 }
 0x13e   : > { %1609 = vst [vmem:[#allocation2 + $0x28] sm:$0xf] %v1608_v61  ;;  %3032 = vmatmul.msk.bf16.gmra.mxu0 %vm1816_vm13, %v4065_v40  ;;  %v1870_v0 = vunpack.c.l.b16 %v1639_v34  ;;  %v1709_v58 = vrot.slane %v1708_v63, 4  ;;  %v4073_v11 = vld [vmem:[#allocation2 + $0x24] sm:$0x1]  ;;  %v3003_v51 = vrot.slane %v1639_v34, 9 }
 0x13f   : > { %1612 = vst [vmem:[#allocation2 + $0x2c] sm:$0x1] %v1611_v33  ;;  %v1537_v49 = vshrl.u32 %v1493_v41, 16  ;;  %v1378_v25 = vmul.f32 %v3897_v39, %v1367_v42  ;;  %v1972_v56 = vrot.slane %v4073_v11, 5  ;;  %v1716_v47 = vshrl.u32 %v1639_v34, 16  ;;  %v3252_v42 = vld [vmem:[%s4471_s6 + $0x80] sm:$0xff] }
 0x140   : > { %v2092_v17 = vpack.c.b16 %v1870_v0, %v1869_v8  ;;  %v1714_v54 = vsel %vm3449_vm3, %v1709_v58, %v1713_v52  ;;  %v1719_v1 = vshll.u32 %v1639_v34, 16  ;;  %v1540_v10 = vshll.u32 %v1493_v41, 16  ;;  %2239 = vmatpush.bf16.msrb.mxu2 %v3252_v42 }
 0x141   : > { %v1539_v44 = vrot.slane %v1537_v49, 7  ;;  %v1389_v36 = vadd.f32 %v3906_v50, %v1378_v25  ;;  %v4088_v37 = vunpack.c.l.b16 %v1714_v54  ;;  %v4091_v8 = vunpack.c.l.b16 %v1700_v13  ;;  %2405 = vmatpush.bf16.msra.mxu0 %v3262_v5  ;;  %v3257_v49 = vld [vmem:[%s4471_s6 + $0xa8] sm:$0xff]  ;;  %v1619_v13 = vld [vmem:[#allocation2 + $0x38] sm:$0xf] }
 0x142   : > { %v1273_v6 = vpop.f32.mrf.mxu3  ;;  %3060 = vmatmul.msk.bf16.gmra.mxu1 %vm1816_vm13, %v2092_v17  ;;  %v4095_v57 = vsel %vm3973_vm12, %v3003_v51, %v1972_v56  ;;  %v1718_v29 = vrot.slane %v1716_v47, 4  ;;  %v1721_v53 = vrot.slane %v1719_v1, 5  ;;  %v1725_v41 = vshll.u32 %v4073_v11, 16  ;;  %v3261_v11 = vld [vmem:[%s4471_s6 + $0xc8] sm:$0xff]  ;;  %v1622_v17 = vld [vmem:[#allocation2 + $0x3c] sm:$0x1]  ;;  %2330 = vmatpush.bf16.msra.mxu3 %v3257_v49 }
 0x143   : > { %v1542_v20 = vor.u32 %v1540_v10, %v1539_v44  ;;  %v1543_v14 = vrot.slane %v1539_v44, 4  ;;  %v1397_v7 = vmax.f32 %v1389_v36, 0.0  ;;  %v1283_v28 = vadd.f32 %v1273_v6, %v1211_v62  ;;  %v3266_v44 = vld [vmem:[%s4471_s6 + $0xf0] sm:$0xff]  ;;  %v3260_v6 = vld [vmem:[%s4471_s6 + $0xc0] sm:$0xff] }
 0x144   : > { %v4102_v22 = vpack.c.b16 %v4088_v37, %v4091_v8  ;;  %v1722_v19 = vor.u32 %v1721_v53, %v1718_v29  ;;  %v1999_v63 = vunpack.c.l.b16 %v4095_v57  ;;  %v1727_v36 = vrot.slane %v1725_v41, 5 }
 0x145   : > { %v1614_v16 = vsel %vm3940_vm8, %v1542_v20, %v1613_v45  ;;  %v1617_v48 = vsel %vm3953_vm9, %v1543_v14, %v1616_v12  ;;  %v1494_v31 = vpack.c.bf16 %v1397_v7, %v1397_v7  ;;  %v1368_v24 = vadd.f32 %v1358_v38, %v1283_v28  ;;  %v4108_v2 = vld [vmem:[#allocation2 + $0x28] sm:$0xf]  ;;  %2406 = vmatpush.bf16.msra.mxu0 %v3261_v11  ;;  %v3256_v12 = vld [vmem:[%s4471_s6 + $0xa0] sm:$0xff] }
 0x146   : > { %1615 = vst [vmem:[#allocation2 + $0x30] sm:$0xf] %v1614_v16  ;;  %2976 = vmatmul.msk.bf16.gmra.mxu2 %vm1816_vm13, %v4102_v22  ;;  %v1871_v55 = vunpack.c.l.b16 %v4108_v2  ;;  %v1642_v4 = vld [vmem:[#allocation2 + $0x2c] sm:$0x1]  ;;  %v3004_v15 = vrot.slane %v4108_v2, 9  ;;  %v1723_v62 = vrot.slane %v1722_v19, 4  ;;  %2331 = vmatpush.bf16.msra.mxu3 %v3256_v12  ;;  %v2192_v26 = vpack.c.b16 %v4091_v8, %v4019_v32 }
 0x147   : > { %1618 = vst [vmem:[#allocation2 + $0x34] sm:$0x1] %v1617_v48  ;;  %v1545_v52 = vshrl.u32 %v1494_v31, 16  ;;  %v1379_v61 = vmul.f32 %v3897_v39, %v1368_v24  ;;  %v1976_v33 = vrot.slane %v1642_v4, 5  ;;  %v1730_v58 = vshrl.u32 %v4108_v2, 16  ;;  %v3267_v39 = vld [vmem:[%s4471_s6 + $0xf8] sm:$0xff] }
 0x148   : > { %v4120_v34 = vpack.c.b16 %v1871_v55, %v1870_v0  ;;  %v1733_v51 = vshll.u32 %v4108_v2, 16  ;;  %v1548_v0 = vshll.u32 %v1494_v31, 16  ;;  %v1739_v27 = vshll.u32 %v1642_v4, 16  ;;  %2493 = vmatpush.bf16.msra.mxu1 %v3267_v39  ;;  %v3265_v24 = vld [vmem:[%s4471_s6 + $0xe8] sm:$0xff] }
 0x149   : > { %v1547_v25 = vrot.slane %v1545_v52, 7  ;;  %v1390_v56 = vadd.f32 %v3906_v50, %v1379_v61  ;;  %v4136_v43 = vsel %vm3973_vm12, %v3004_v15, %v1976_v33  ;;  %v1732_v47 = vrot.slane %v1730_v58, 4  ;;  %2407 = vmatpush.bf16.msra.mxu0 %v3260_v6  ;;  %v1625_v58 = vld [vmem:[#allocation2 + $0x40] sm:$0xf] }
 0x14a   : > { %2997 = vmatmul.msk.bf16.gmra.mxu3 %vm1816_vm13, %v4120_v34  ;;  %v2000_v54 = vunpack.c.l.b16 %v4136_v43  ;;  %v1735_v1 = vrot.slane %v1733_v51, 5  ;;  %v1728_v28 = vsel %vm3449_vm3, %v1723_v62, %v1727_v36  ;;  %v1741_v16 = vrot.slane %v1739_v27, 5  ;;  %v1628_v51 = vld [vmem:[#allocation2 + $0x44] sm:$0x1]  ;;  %v4185_v27 = vld [vmem:[#allocation2 + $0x48] sm:$0xf] }
 0x14b   : > { %v1550_v50 = vor.u32 %v1548_v0, %v1547_v25  ;;  %v1551_v10 = vrot.slane %v1547_v25, 4  ;;  %v1398_v45 = vmax.f32 %v1390_v56, 0.0  ;;  %v4169_v15 = vunpack.c.l.b16 %v1728_v28 }
 0x14c   : > { %v4154_v29 = vpack.c.b16 %v2000_v54, %v1999_v63  ;;  %v1736_v53 = vor.u32 %v1735_v1, %v1732_v47  ;;  %2494 = vmatpush.bf16.msra.mxu1 %v3266_v44  ;;  %v2438_v8 = vshrl.u32 %v4185_v27, 16 }
 0x14d   : > { %v1620_v5 = vsel %vm3940_vm8, %v1550_v50, %v1619_v13  ;;  %v1623_v20 = vsel %vm3953_vm9, %v1551_v10, %v1622_v17  ;;  %v1495_v14 = vpack.c.bf16 %v1398_v45, %v1398_v45  ;;  %v1643_v7 = vld [vmem:[#allocation2 + $0x30] sm:$0xf]  ;;  %v3264_v13 = vld [vmem:[%s4471_s6 + $0xe0] sm:$0xff]  ;;  %v2193_v32 = vpack.c.b16 %v4169_v15, %v4088_v37 }
 0x14e   : > { %1621 = vst [vmem:[#allocation2 + $0x38] sm:$0xf] %v1620_v5  ;;  %3033 = vmatmul.msk.bf16.gmra.mxu0 %vm1816_vm13, %v4154_v29  ;;  %v1872_v38 = vunpack.c.l.b16 %v1643_v7  ;;  %v1737_v19 = vrot.slane %v1736_v53, 4  ;;  %v1744_v31 = vshrl.u32 %v1643_v7, 16  ;;  %v1644_v52 = vld [vmem:[#allocation2 + $0x34] sm:$0x1] }
 0x14f   : > { %1624 = vst [vmem:[#allocation2 + $0x3c] sm:$0x1] %v1623_v20  ;;  %v1553_v48 = vshrl.u32 %v1495_v14, 16  ;;  %v1747_v61 = vshll.u32 %v1643_v7, 16  ;;  %v1556_v41 = vshll.u32 %v1495_v14, 16  ;;  %v3005_v49 = vrot.slane %v1643_v7, 9 }
 0x150   : > { %v2093_v2 = vpack.c.b16 %v1872_v38, %v1871_v55  ;;  %v1742_v4 = vsel %vm3449_vm3, %v1737_v19, %v1741_v16  ;;  %v1746_v62 = vrot.slane %v1744_v31, 4  ;;  %v1980_v0 = vrot.slane %v1644_v52, 5  ;;  %2495 = vmatpush.bf16.msra.mxu1 %v3265_v24  ;;  %v3271_v5 = vld [vmem:[%s4471_s6 + $0x118] sm:$0xff]  ;;  %v4196_v20 = vld [vmem:[#allocation2 + $0x4c] sm:$0x1] }
 0x151   : > { %v1555_v33 = vrot.slane %v1553_v48, 7  ;;  %v4171_v42 = vunpack.c.l.b16 %v1742_v4  ;;  %v1749_v39 = vrot.slane %v1747_v61, 5  ;;  %v1753_v45 = vshll.u32 %v1644_v52, 16  ;;  %2573 = vmatpush.bf16.msra.mxu2 %v3271_v5 }
 0x152   : > { %3061 = vmatmul.msk.bf16.gmra.mxu1 %vm1816_vm13, %v2093_v2  ;;  %v1981_v36 = vsel %vm3973_vm12, %v3005_v49, %v1980_v0  ;;  %v3176_v14 = vrot.slane %v4185_v27, 9  ;;  %v2529_v2 = vrot.slane %v4196_v20, 5  ;;  %v2441_v37 = vshll.u32 %v4185_v27, 16 }
 0x153   : > { %v1558_v11 = vor.u32 %v1556_v41, %v1555_v33  ;;  %v1559_v55 = vrot.slane %v1555_v33, 4  ;;  %v4176_v25 = vpack.c.b16 %v4171_v42, %v4169_v15  ;;  %v1750_v56 = vor.u32 %v1749_v39, %v1746_v62 }
 0x154   : > { %2496 = vmatpush.bf16.msra.mxu1 %v3264_v13  ;;  %v1755_v31 = vrot.slane %v1753_v45, 5  ;;  %v2530_v62 = vsel %vm3973_vm12, %v3176_v14, %v2529_v2  ;;  %v2447_v15 = vshll.u32 %v4196_v20, 16  ;;  %v2371_v5 = vunpack.c.l.b16 %v4185_v27 }
 0x155   : > { %v1626_v17 = vsel %vm3940_vm8, %v1558_v11, %v1625_v58  ;;  %v1629_v47 = vsel %vm3953_vm9, %v1559_v55, %v1628_v51  ;;  %v1645_v1 = vld [vmem:[#allocation2 + $0x38] sm:$0xf]  ;;  %v1751_v53 = vrot.slane %v1750_v56, 4  ;;  %v2540_v56 = vunpack.c.l.b16 %v2530_v62 }
 0x156   : > { %1627 = vst [vmem:[#allocation2 + $0x40] sm:$0xf] %v1626_v17  ;;  %2977 = vmatmul.msk.bf16.gmra.mxu2 %vm1816_vm13, %v4176_v25  ;;  %v1873_v44 = vunpack.c.l.b16 %v1645_v1  ;;  %v1646_v50 = vld [vmem:[#allocation2 + $0x3c] sm:$0x1]  ;;  %v3006_v10 = vrot.slane %v1645_v1, 9  ;;  %v1758_v12 = vshrl.u32 %v1645_v1, 16 }
 0x157   : > { %1630 = vst [vmem:[#allocation2 + $0x44] sm:$0x1] %v1629_v47  ;;  %v1984_v9 = vrot.slane %v1646_v50, 5  ;;  %v1761_v6 = vshll.u32 %v1645_v1, 16  ;;  %v1767_v16 = vshll.u32 %v1646_v50, 16  ;;  %v1756_v61 = vsel %vm3449_vm3, %v1751_v53, %v1755_v31 }
 0x158   : > { %v4191_v60 = vpack.c.b16 %v1873_v44, %v1872_v38  ;;  %v1760_v28 = vrot.slane %v1758_v12, 4  ;;  %v2001_v38 = vunpack.c.l.b16 %v1981_v36  ;;  %v1786_v0 = vunpack.c.l.b16 %v1756_v61 }
 0x159   : > { %v4201_v7 = vsel %vm3973_vm12, %v3006_v10, %v1984_v9  ;;  %v1763_v19 = vrot.slane %v1761_v6, 5  ;;  %v1769_v41 = vrot.slane %v1767_v16, 5  ;;  %v2284_v10 = vpack.c.b16 %v1997_v59, %v1996_v3 }
 0x15a   : > { %2998 = vmatmul.msk.bf16.gmra.mxu3 %vm1816_vm13, %v4191_v60  ;;  %v2002_v48 = vunpack.c.l.b16 %v4201_v7  ;;  %v2285_v3 = vpack.c.b16 %v1999_v63, %v1998_v35  ;;  %v2286_v59 = vpack.c.b16 %v2001_v38, %v2000_v54  ;;  %v2440_v63 = vrot.slane %v2438_v8, 4 }
 0x15b   : > { %v1764_v24 = vor.u32 %v1763_v19, %v1760_v28  ;;  %v2194_v36 = vpack.c.b16 %v1786_v0, %v4171_v42  ;;  %v2449_v6 = vrot.slane %v2447_v15, 5 }
 0x15c   : > { %v4209_v4 = vpack.c.b16 %v2002_v48, %v2001_v38 }
 0x15d   : > { %v4211_v52 = vld [vmem:[#allocation2 + $0x40] sm:$0xf]  ;;  %v1765_v33 = vrot.slane %v1764_v24, 4 }
 0x15e   : > { %3034 = vmatmul.msk.bf16.gmra.mxu0 %vm1816_vm13, %v4209_v4  ;;  %v2090_v58 = vunpack.c.l.b16 %v4211_v52  ;;  %v1648_v51 = vld [vmem:[#allocation2 + $0x44] sm:$0x1]  ;;  %v3091_v49 = vrot.slane %v4211_v52, 9  ;;  %v2169_v30 = vshrl.u32 %v4211_v52, 16  ;;  %v2172_v35 = vshll.u32 %v4211_v52, 16 }
 0x15f   : > { %v1770_v39 = vsel %vm3449_vm3, %v1765_v33, %v1769_v41  ;;  %v2272_v11 = vrot.slane %v1648_v51, 5  ;;  %v2178_v45 = vshll.u32 %v1648_v51, 16 }
 0x160   : > { %v2094_v55 = vpack.c.b16 %v2090_v58, %v1873_v44  ;;  %v4223_v13 = vunpack.c.l.b16 %v1770_v39  ;;  %v3270_v44 = vld [vmem:[%s4471_s6 + $0x110] sm:$0xff]  ;;  %v2171_v57 = vrot.slane %v2169_v30, 4  ;;  %v2372_v42 = vpack.c.b16 %v2371_v5, %v2090_v58 }
 0x161   : > { %v2273_v17 = vsel %vm3973_vm12, %v3091_v49, %v2272_v11  ;;  %2574 = vmatpush.bf16.msra.mxu2 %v3270_v44  ;;  %v2180_v53 = vrot.slane %v2178_v45, 5 }
 0x162   : > { %3062 = vmatmul.msk.bf16.gmra.mxu1 %vm1816_vm13, %v2094_v55  ;;  %v1791_v47 = vpack.c.b16 %v4223_v13, %v1786_v0  ;;  %v2283_v1 = vunpack.c.l.b16 %v2273_v17 }
 0x164   : > { %v4229_v50 = vpack.c.b16 %v2540_v56, %v2283_v1 }
 0x165   : > { %2575 = vmatpush.bf16.msra.mxu2 %v3269_v18 }
 0x166   : > { %2978 = vmatmul.msk.bf16.gmra.mxu2 %vm1816_vm13, %v1791_v47 }
 0x169   : > { %2576 = vmatpush.bf16.msra.mxu2 %v3268_v21 }
 0x16a   : > { %3116 = vmatmul.msk.bf16.vlgmr.msra.gmra.mxu3 %vm1816_vm13, %v2284_v10 }
 0x16e   : > { %3144 = vmatmul.msk.bf16.vlgmr.msra.gmra.mxu0 %vm1816_vm13, %v4043_v23  ;;  %v4267_v23 = vpop.f32.mrf.mxu1 }
 0x172   : > { %3172 = vmatmul.msk.bf16.vlgmr.msra.gmra.mxu1 %vm1816_vm13, %v4102_v22  ;;  %v2174_v22 = vrot.slane %v2172_v35, 5 }
 0x174   : > { %v2175_v43 = vor.u32 %v2174_v22, %v2171_v57 }
 0x176   : > { %3087 = vmatmul.msk.bf16.vlgmr.msrb.gmra.mxu2 %vm1816_vm13, %v2192_v26  ;;  %v2176_v9 = vrot.slane %v2175_v43, 4 }
 0x178   : > { %v2181_v20 = vsel %vm3449_vm3, %v2176_v9, %v2180_v53 }
 0x179   : > { %v2191_v28 = vunpack.c.l.b16 %v2181_v20 }
 0x17a   : > { %3117 = vmatmul.msk.bf16.gmra.mxu3 %vm1816_vm13, %v2285_v3 }
 0x17b   : > { %v2195_v27 = vpack.c.b16 %v2191_v28, %v4223_v13 }
 0x17e   : > { %3145 = vmatmul.msk.bf16.gmra.mxu0 %vm1816_vm13, %v4120_v34  ;;  %v2443_v34 = vrot.slane %v2441_v37, 5 }
 0x180   : > { %v2444_v54 = vor.u32 %v2443_v34, %v2440_v63 }
 0x182   : > { %3173 = vmatmul.msk.bf16.gmra.mxu1 %vm1816_vm13, %v4176_v25  ;;  %v4278_v25 = vpop.f32.mrf.mxu1  ;;  %v2445_v12 = vrot.slane %v2444_v54, 4 }
 0x184   : > { %v2450_v14 = vsel %vm3449_vm3, %v2445_v12, %v2449_v6 }
 0x185   : > { %v2460_v19 = vunpack.c.l.b16 %v2450_v14 }
 0x186   : > { %3088 = vmatmul.msk.bf16.gmra.mxu2 %vm1816_vm13, %v2193_v32 }
 0x187   : > { %v2461_v38 = vpack.c.b16 %v2460_v19, %v2191_v28 }
 0x18a   : > { %3118 = vmatmul.msk.bf16.gmra.mxu3 %vm1816_vm13, %v2286_v59  ;;  %v4290_v16 = vpop.f32.mrf.mxu1 }
 0x18e   : > { %3146 = vmatmul.msk.bf16.gmra.mxu0 %vm1816_vm13, %v4191_v60  ;;  %v2287_v60 = vpack.c.b16 %v2283_v1, %v2002_v48 }
 0x192   : > { %3174 = vmatmul.msk.bf16.gmra.mxu1 %vm1816_vm13, %v1791_v47  ;;  %v4296_v7 = vpop.f32.mrf.mxu1 }
 0x196   : > { %3089 = vmatmul.msk.bf16.gmra.mxu2 %vm1816_vm13, %v2194_v36 }
 0x19a   : > { %3119 = vmatmul.msk.bf16.gmra.mxu3 %vm1816_vm13, %v2287_v60  ;;  %v4298_v46 = vpop.f32.mrf.mxu1 }
 0x19e   : > { %3147 = vmatmul.msk.bf16.gmra.mxu0 %vm1816_vm13, %v2372_v42 }
 0x1a2   : > { %3175 = vmatmul.msk.bf16.gmra.mxu1 %vm1816_vm13, %v2461_v38  ;;  %v4302_v31 = vpop.f32.mrf.mxu1 }
 0x1a6   : > { %3090 = vmatmul.msk.bf16.gmra.mxu2 %vm1816_vm13, %v2195_v27 }
 0x1aa   : > { %v4304_v2 = vpop.f32.mrf.mxu1 }
 0x1ab   : > { %v2052_v62 = vpop.f32.mrf.mxu0 }
 0x1ad   : > { %v1923_v33 = vpop.f32.mrf.mxu3 }
 0x1b2   : > { %v4308_v61 = vpop.f32.mrf.mxu1 }
 0x1b3   : > { %4482 = vst [vmem:[#allocation3_spill] sm:$0xff] %v4308_v61  ;;  %v2054_v49 = vpop.f32.mrf.mxu0 }
 0x1b5   : > { %v1925_v51 = vpop.f32.mrf.mxu3 }
 0x1b6   : > { %3201 = vmatmul.msk.bf16.vlgmr.msra.gmra.mxu2 %vm1816_vm13, %v4065_v40 }
 0x1b9   : > { %v1838_v48 = vpop.f32.mrf.mxu2 }
 0x1ba   : > { %v2140_v40 = vpop.f32.mrf.mxu1  ;;  %v1924_v54 = vadd.f32 %v1923_v33, %v1838_v48 }
 0x1bc   : > { %v2072_v45 = vadd.f32 %v2052_v62, %v1924_v54  ;;  %v4361_v62 = vld [vmem:[%s4472_s7 + $0x4] ss:$0 sm:$0xff] }
 0x1bd   : > { %v1928_v55 = vpop.f32.mrf.mxu3 }
 0x1be   : > { %v2160_v6 = vadd.f32 %v2140_v40, %v2072_v45 }
 0x1c1   : > { %v1840_v24 = vpop.f32.mrf.mxu2 }
 0x1c2   : > { %v2142_v11 = vpop.f32.mrf.mxu1  ;;  %v1926_v12 = vadd.f32 %v1925_v51, %v1840_v24  ;;  %v4366_v51 = vld [vmem:[%s4472_s7 + $0x2] ss:$0 sm:$0xff] }
 0x1c4   : > { %v2073_v5 = vadd.f32 %v2054_v49, %v1926_v12 }
 0x1c5   : > { %v1930_v56 = vpop.f32.mrf.mxu3 }
 0x1c6   : > { %3202 = vmatmul.msk.bf16.gmra.mxu2 %vm1816_vm13, %v4154_v29  ;;  %v2057_v29 = vpop.f32.mrf.mxu0  ;;  %v2161_v19 = vadd.f32 %v2142_v11, %v2073_v5 }
 0x1c9   : > { %v1843_v52 = vpop.f32.mrf.mxu2 }
 0x1ca   : > { %v2145_v13 = vpop.f32.mrf.mxu1  ;;  %v1929_v28 = vadd.f32 %v1928_v55, %v1843_v52 }
 0x1cc   : > { %v2074_v33 = vadd.f32 %v2057_v29, %v1929_v28  ;;  %v4372_v29 = vld [vmem:[%s4472_s7 + $0x3] ss:$0 sm:$0xff] }
 0x1cd   : > { %v4326_v1 = vpop.f32.mrf.mxu3 }
 0x1ce   : > { %v2162_v55 = vadd.f32 %v2145_v13, %v2074_v33 }
 0x1d1   : > { %v4310_v41 = vpop.f32.mrf.mxu2 }
 0x1d2   : > { %v4324_v47 = vpop.f32.mrf.mxu1  ;;  %v1931_v11 = vadd.f32 %v1930_v56, %v4310_v41 }
 0x1d5   : > { %v4332_v3 = vpop.f32.mrf.mxu3 }
 0x1d6   : > { %3203 = vmatmul.msk.bf16.gmra.mxu2 %vm1816_vm13, %v4209_v4  ;;  %v2059_v4 = vpop.f32.mrf.mxu0 }
 0x1d7   : > { %v2075_v13 = vadd.f32 %v2059_v4, %v1931_v11  ;;  %v1448_v4 = vmul.f32 %v4361_v62, %v4278_v25 }
 0x1d9   : > { %v4314_v58 = vpop.f32.mrf.mxu2 }
 0x1da   : > { %v4330_v26 = vpop.f32.mrf.mxu1 }
 0x1dd   : > { %v4338_v59 = vpop.f32.mrf.mxu3 }
 0x1de   : > { %v4328_v10 = vpop.f32.mrf.mxu0 }
 0x1e1   : > { %v4316_v39 = vpop.f32.mrf.mxu2 }
 0x1e2   : > { %v4336_v21 = vpop.f32.mrf.mxu1 }
 0x1e5   : > { %v4344_v37 = vpop.f32.mrf.mxu3 }
 0x1e6   : > { %3204 = vmatmul.msk.bf16.gmra.mxu2 %vm1816_vm13, %v4229_v50  ;;  %v4334_v50 = vpop.f32.mrf.mxu0 }
 0x1e9   : > { %v4320_v0 = vpop.f32.mrf.mxu2 }
 0x1ea   : > { %v4342_v8 = vpop.f32.mrf.mxu1 }
 0x1ed   : > { %v2333_v34 = vpop.f32.mrf.mxu3 }
 0x1ee   : > { %v4340_v30 = vpop.f32.mrf.mxu0 }
 0x1f1   : > { %v4322_v17 = vpop.f32.mrf.mxu2 }
 0x1f2   : > { %v4350_v63 = vpop.f32.mrf.mxu1 }
 0x1f5   : > { %v2335_v53 = vpop.f32.mrf.mxu3 }
 0x1f6   : > { %v4348_v22 = vpop.f32.mrf.mxu0 }
 0x1f9   : > { %v2241_v44 = vpop.f32.mrf.mxu2 }
 0x1fa   : > { %v2498_v36 = vpop.f32.mrf.mxu1  ;;  %v2261_v60 = vadd.f32 %v2241_v44, %v2160_v6 }
 0x1fc   : > { %v2353_v14 = vadd.f32 %v2333_v34, %v2261_v60  ;;  %v1934_v60 = vadd.f32 %v4326_v1, %v4314_v58 }
 0x1fd   : > { %v2338_v48 = vpop.f32.mrf.mxu3 }
 0x1fe   : > { %v2409_v15 = vpop.f32.mrf.mxu0  ;;  %v2076_v58 = vadd.f32 %v4328_v10, %v1934_v60 }
 0x1ff   : > { %v2429_v61 = vadd.f32 %v2409_v15, %v2353_v14 }
 0x201   : > { %v2243_v18 = vpop.f32.mrf.mxu2  ;;  %v2518_v40 = vadd.f32 %v2498_v36, %v2429_v61  ;;  %v1447_v61 = vmul.f32 %v4361_v62, %v4267_v23 }
 0x202   : > { %v2500_v38 = vpop.f32.mrf.mxu1  ;;  %v2262_v27 = vadd.f32 %v2243_v18, %v2161_v19  ;;  %v4379_v18 = vld [vmem:[%s4472_s7 + $0x5] ss:$0 sm:$0xff] }
 0x203   : > { %v1458_v36 = vadd.f32 %v4379_v18, %v1447_v61  ;;  %v1459_v25 = vadd.f32 %v4379_v18, %v1448_v4 }
 0x204   : > { %v2354_v24 = vadd.f32 %v2335_v53, %v2262_v27 }
 0x205   : > { %v2340_v45 = vpop.f32.mrf.mxu3 }
 0x206   : > { %v2411_v20 = vpop.f32.mrf.mxu0 }
 0x207   : > { %v2430_v15 = vadd.f32 %v2411_v20, %v2354_v24 }
 0x209   : > { %v2246_v32 = vpop.f32.mrf.mxu2  ;;  %v2519_v23 = vadd.f32 %v2500_v38, %v2430_v15 }
 0x20a   : > { %v2263_v34 = vadd.f32 %v2246_v32, %v2162_v55  ;;  %v2503_v41 = vpop.f32.mrf.mxu1  ;;  %v2163_v32 = vadd.f32 %v4324_v47, %v2075_v13  ;;  %v1449_v55 = vmul.f32 %v4361_v62, %v4290_v16 }
 0x20c   : > { %v2355_v12 = vadd.f32 %v2338_v48, %v2263_v34 }
 0x20e   : > { %v2414_v49 = vpop.f32.mrf.mxu0 }
 0x20f   : > { %v2431_v27 = vadd.f32 %v2414_v49, %v2355_v12  ;;  %v2164_v49 = vadd.f32 %v4330_v26, %v2076_v58  ;;  %v1460_v26 = vadd.f32 %v4379_v18, %v1449_v55 }
 0x211   : > { %v2248_v35 = vpop.f32.mrf.mxu2  ;;  %v2520_v24 = vadd.f32 %v2503_v41, %v2431_v27 }
 0x212   : > { %v2264_v28 = vadd.f32 %v2248_v35, %v2163_v32  ;;  %v2505_v1 = vpop.f32.mrf.mxu1  ;;  %v1936_v35 = vadd.f32 %v4332_v3, %v4316_v39 }
 0x214   : > { %v2356_v48 = vadd.f32 %v2340_v45, %v2264_v28  ;;  %v2077_v41 = vadd.f32 %v4334_v50, %v1936_v35  ;;  %v1450_v50 = vmul.f32 %v4361_v62, %v4296_v7 }
 0x216   : > { %v2416_v20 = vpop.f32.mrf.mxu0 }
 0x219   : > { %v4346_v57 = vpop.f32.mrf.mxu2 }
 0x21a   : > { %v2508_v16 = vpop.f32.mrf.mxu1 }
 0x21e   : > { %v2419_v15 = vpop.f32.mrf.mxu0 }
 0x221   : > { %v4352_v43 = vpop.f32.mrf.mxu2 }
 0x222   : > { %v2510_v58 = vpop.f32.mrf.mxu1 }
 0x229   : > { %v4354_v9 = vpop.f32.mrf.mxu2 }
 0x231   : > { %v4356_v42 = vpop.f32.mrf.mxu2 }
 0x239   : > { %v2578_v52 = vpop.f32.mrf.mxu2 }
 0x23a   : > { %v2598_v44 = vadd.f32 %v2578_v52, %v2518_v40  ;;  %v2343_v40 = vpop.f32.mrf.mxu3 }
 0x23c   : > { %v2609_v54 = vmul.f32 %v4366_v51, %v2598_v44  ;;  %v2265_v44 = vadd.f32 %v4346_v57, %v2164_v49  ;;  %v1939_v57 = vadd.f32 %v4338_v59, %v4320_v0  ;;  %v2421_v59 = vpop.f32.mrf.mxu0 }
 0x23e   : > { %v2620_v56 = vadd.f32 %v4372_v29, %v2609_v54  ;;  %v2432_v54 = vadd.f32 %v2416_v20, %v2356_v48  ;;  %v2357_v3 = vadd.f32 %v2343_v40, %v2265_v44 }
 0x240   : > { %v2628_v6 = vmax.f32 %v2620_v56, 0.0  ;;  %v2521_v56 = vadd.f32 %v2505_v1, %v2432_v54 }
 0x241   : > { %v2580_v53 = vpop.f32.mrf.mxu2 }
 0x242   : > { %v2636_v5 = vadd.f32 %v2628_v6, %v1458_v36  ;;  %v2599_v14 = vadd.f32 %v2580_v53, %v2519_v23  ;;  %v2165_v36 = vadd.f32 %v4336_v21, %v2077_v41  ;;  %v2345_v23 = vpop.f32.mrf.mxu3  ;;  %v1461_v21 = vadd.f32 %v4379_v18, %v1450_v50 }
 0x244   : > { %v2644_v19 = vpack.c.bf16 %v2636_v5, %v2636_v5  ;;  %v2610_v38 = vmul.f32 %v4366_v51, %v2599_v14  ;;  %v2266_v53 = vadd.f32 %v4352_v43, %v2165_v36  ;;  %v2433_v5 = vadd.f32 %v2419_v15, %v2357_v3 }
 0x245   : > { %v2078_v14 = vadd.f32 %v4340_v30, %v1939_v57  ;;  %v1941_v43 = vadd.f32 %v4344_v37, %v4322_v17  ;;  %v1451_v30 = vmul.f32 %v4361_v62, %v4298_v46 }
 0x246   : > { %2652 = vst.msk [vmem:[%s4393_s10] sm:$0xf] %vm1466_vm4, %v2644_v19  ;;  %v2621_v47 = vadd.f32 %v4372_v29, %v2610_v38  ;;  %v2358_v4 = vadd.f32 %v2345_v23, %v2266_v53  ;;  %v2522_v7 = vadd.f32 %v2508_v16, %v2433_v5  ;;  %v4483_v5 = vld [vmem:[#allocation3_spill] sm:$0xff] }
 0x247   : > { %v2166_v19 = vadd.f32 %v4342_v8, %v2078_v14  ;;  %v1462_v8 = vadd.f32 %v4379_v18, %v1451_v30 }
 0x248   : > { %v2629_v33 = vmax.f32 %v2621_v47, 0.0  ;;  %v2434_v48 = vadd.f32 %v2421_v59, %v2358_v4 }
 0x249   : > { %v2583_v52 = vpop.f32.mrf.mxu2  ;;  %v2267_v47 = vadd.f32 %v4354_v9, %v2166_v19 }
 0x24a   : > { %v2637_v11 = vadd.f32 %v2629_v33, %v1459_v25  ;;  %v2600_v10 = vadd.f32 %v2583_v52, %v2520_v24  ;;  %v2348_v33 = vpop.f32.mrf.mxu3  ;;  %v2079_v24 = vadd.f32 %v4348_v22, %v1941_v43  ;;  %v2523_v46 = vadd.f32 %v2510_v58, %v2434_v48  ;;  %v2424_v52 = vpop.f32.mrf.mxu0 }
 0x24b   : > { %v2359_v37 = vadd.f32 %v2348_v33, %v2267_v47 }
 0x24c   : > { %v2645_v61 = vpack.c.bf16 %v2637_v11, %v2637_v11  ;;  %v2611_v34 = vmul.f32 %v4366_v51, %v2600_v10  ;;  %v2167_v9 = vadd.f32 %v4350_v63, %v2079_v24  ;;  %v1452_v10 = vmul.f32 %v4361_v62, %v4302_v31 }
 0x24e   : > { %2653 = vst.msk [vmem:[%s4393_s10 + $0x4] sm:$0xf] %vm1466_vm4, %v2645_v61  ;;  %v2622_v39 = vadd.f32 %v4372_v29, %v2611_v34  ;;  %v2268_v22 = vadd.f32 %v4356_v42, %v2167_v9  ;;  %v2435_v61 = vadd.f32 %v2424_v52, %v2359_v37  ;;  %v2513_v34 = vpop.f32.mrf.mxu1  ;;  %v1463_v63 = vadd.f32 %v4379_v18, %v1452_v10 }
 0x250   : > { %v2630_v13 = vmax.f32 %v2622_v39, 0.0 }
 0x251   : > { %v2585_v45 = vpop.f32.mrf.mxu2 }
 0x252   : > { %v2638_v12 = vadd.f32 %v2630_v13, %v1460_v26  ;;  %v2601_v6 = vadd.f32 %v2585_v45, %v2521_v56  ;;  %v2350_v15 = vpop.f32.mrf.mxu3  ;;  %v2524_v26 = vadd.f32 %v2513_v34, %v2435_v61  ;;  %v2426_v42 = vpop.f32.mrf.mxu0  ;;  %v1453_v56 = vmul.f32 %v4361_v62, %v4304_v2 }
 0x253   : > { %v2360_v41 = vadd.f32 %v2350_v15, %v2268_v22  ;;  %v1454_v2 = vmul.f32 %v4361_v62, %v4483_v5 }
 0x254   : > { %v2646_v60 = vpack.c.bf16 %v2638_v12, %v2638_v12  ;;  %v2612_v32 = vmul.f32 %v4366_v51, %v2601_v6  ;;  %v1464_v6 = vadd.f32 %v4379_v18, %v1453_v56 }
 0x255   : > { %v2436_v57 = vadd.f32 %v2426_v42, %v2360_v41 }
 0x256   : > { %2654 = vst.msk [vmem:[%s4393_s10 + $0x8] sm:$0xf] %vm1466_vm4, %v2646_v60  ;;  %v2623_v0 = vadd.f32 %v4372_v29, %v2612_v32  ;;  %v2515_v12 = vpop.f32.mrf.mxu1 }
 0x257   : > { %v2525_v23 = vadd.f32 %v2515_v12, %v2436_v57 }
 0x258   : > { %v2631_v20 = vmax.f32 %v2623_v0, 0.0 }
 0x259   : > { %v2588_v28 = vpop.f32.mrf.mxu2 }
 0x25a   : > { %v2639_v38 = vadd.f32 %v2631_v20, %v1461_v21  ;;  %v2602_v27 = vadd.f32 %v2588_v28, %v2522_v7  ;;  %v1465_v21 = vadd.f32 %v4379_v18, %v1454_v2 }
 0x25c   : > { %v2647_v1 = vpack.c.bf16 %v2639_v38, %v2639_v38  ;;  %v2613_v25 = vmul.f32 %v4366_v51, %v2602_v27 }
 0x25e   : > { %2655 = vst.msk [vmem:[%s4393_s10 + $0xc] sm:$0xf] %vm1466_vm4, %v2647_v1  ;;  %v2624_v17 = vadd.f32 %v4372_v29, %v2613_v25 }
 0x260   : > { %v2632_v40 = vmax.f32 %v2624_v17, 0.0 }
 0x261   : > { %v2590_v35 = vpop.f32.mrf.mxu2 }
 0x262   : > { %v2640_v49 = vadd.f32 %v2632_v40, %v1462_v8  ;;  %v2603_v11 = vadd.f32 %v2590_v35, %v2523_v46 }
 0x264   : > { %v2648_v55 = vpack.c.bf16 %v2640_v49, %v2640_v49  ;;  %v2614_v44 = vmul.f32 %v4366_v51, %v2603_v11 }
 0x266   : > { %2656 = vst.msk [vmem:[%s4393_s10 + $0x10] sm:$0xf] %vm1466_vm4, %v2648_v55  ;;  %v2625_v54 = vadd.f32 %v4372_v29, %v2614_v44 }
 0x268   : > { %v2633_v39 = vmax.f32 %v2625_v54, 0.0 }
 0x269   : > { %v2593_v3 = vpop.f32.mrf.mxu2 }
 0x26a   : > { %v2641_v31 = vadd.f32 %v2633_v39, %v1463_v63  ;;  %v2604_v13 = vadd.f32 %v2593_v3, %v2524_v26 }
 0x26c   : > { %v2649_v16 = vpack.c.bf16 %v2641_v31, %v2641_v31  ;;  %v2615_v45 = vmul.f32 %v4366_v51, %v2604_v13 }
 0x26e   : > { %2657 = vst.msk [vmem:[%s4393_s10 + $0x14] sm:$0xf] %vm1466_vm4, %v2649_v16  ;;  %v2626_v36 = vadd.f32 %v4372_v29, %v2615_v45 }
 0x270   : > { %v2634_v50 = vmax.f32 %v2626_v36, 0.0 }
 0x271   : > { %v2595_v53 = vpop.f32.mrf.mxu2 }
 0x272   : > { %v2642_v60 = vadd.f32 %v2634_v50, %v1464_v6  ;;  %v2605_v32 = vadd.f32 %v2595_v53, %v2525_v23 }
 0x274   : > { %v2650_v14 = vpack.c.bf16 %v2642_v60, %v2642_v60  ;;  %v2616_v0 = vmul.f32 %v4366_v51, %v2605_v32 }
 0x276   : > { %2658 = vst.msk [vmem:[%s4393_s10 + $0x18] sm:$0xf] %vm1466_vm4, %v2650_v14  ;;  %v2627_v59 = vadd.f32 %v4372_v29, %v2616_v0 }
 0x278   : > { %v2635_v4 = vmax.f32 %v2627_v59, 0.0 }
 0x27a   : > { %v2643_v20 = vadd.f32 %v2635_v4, %v1465_v21 }
 0x27c   : > { %v2651_v7 = vpack.c.bf16 %v2643_v20, %v2643_v20 }
 0x27e   : > { %2659 = vst.msk [vmem:[%s4393_s10 + $0x1c] sm:$0xf] %vm1466_vm4, %v2651_v7 }
 0x27f PF: > { %s18_s27 = sadd.s32 1, %s3300_s27  }
 0x280   : > { %p15_p4 = scmp.ge.s32.totalorder %s18_s27, 4  }
 0x282   :  { %17 = sbr.rel (!%p15_p4) target bundleno = 1 (0x1), region = 113 }

// kernel: cnn_classifier_forward.6
= control target key start
LH: loop header
LB: loop body
LE: loop exit
PB: predicated region body
PF: predicated region fallthrough
CT: control target
= control target key end

     0   :  { %s3243_s27 = smov 0   ;;  %s3945_s0 = inlined_call_operand.vmem [shape: bf16[2,5,5,64], index: 0, kind: input, shape index: {}]   ;;  %s3946_s1 = inlined_call_operand.vmem [shape: bf16[2,5,5,64], index: 1, kind: input, shape index: {}]   ;;  %s3947_s2 = inlined_call_operand.vmem [shape: bf16[2,5,5,64], index: 2, kind: input, shape index: {}]   ;;  %s3948_s3 = inlined_call_operand.vmem [shape: bf16[2,5,5,64], index: 3, kind: input, shape index: {}]   ;;  %s3949_s4 = inlined_call_operand.vmem [shape: bf16[9,64,128], index: 4, kind: input, shape index: {}]   ;;  %s3950_s5 = inlined_call_operand.vmem [shape: bf16[64,128], index: 5, kind: input, shape index: {}]   ;;  %s3951_s6 = inlined_call_operand.vmem [shape: bf16[9,128,128], index: 6, kind: input, shape index: {}]   ;;  %s3952_s7 = inlined_call_operand.vmem [shape: f32[6,1,128], index: 7, kind: input, shape index: {}]   ;;  %s3953_s8 = inlined_call_operand.vmem [shape: bf16[2,4,4,128], index: 8, kind: output, shape index: {}]  }
   0x1 LB: > { %s2386_s28 = sadd.s32 4294967295, %s3195_s27   ;;  %p2390_p0 = scmp.ge.s32.totalorder %s3195_s27, 1  ;;  %s3195_s27 = sphi %s3243_s27, %s18_s27  }
   0x2   : > { %p292_p1 = scmp.lt.s32.totalorder %s3195_s27, 3 }
   0x4   : > { %p293_p2 = pnand %p2390_p0, %p292_p1 }
   0x5   : > { %p341_p3 = scmp.lt.s32.totalorder (!%p293_p2), %s2386_s28, 1 }
   0x6   : > { %296 = sbr.rel (%p293_p2) target bundleno = 538 (0x21a), region = 52 }
   0xb   : > { %v3072_v0 = vld [vmem:[%s3949_s4 + $0x58] sm:$0xff]  ;;  %v3071_v3 = vld [vmem:[%s3949_s4 + $0x50] sm:$0xff]  ;;  %s3963_s28 = smov (!%p341_p3, %s2386_s28), 1  ;;  %v3070_v6 = vld [vmem:[%s3949_s4 + $0x48] sm:$0xff]  ;;  %vm526_vm0 = vcmask 1041408   ;;  %vm529_vm1 = vcmask 1043458  }
   0xc   : > { %v3068_v1 = vld [vmem:[%s3949_s4 + $0x38] sm:$0xff]  ;;  %658 = vmatpush.bf16.msra.mxu3 %v3072_v0  ;;  %v3067_v4 = vld [vmem:[%s3949_s4 + $0x30] sm:$0xff]  ;;  %s3275_s21 = smul.u32 20, %s3963_s28  ;;  %v3066_v7 = vld [vmem:[%s3949_s4 + $0x28] sm:$0xff]  ;;  %vm449_vm2 = vcmask 523264   ;;  %vm1266_vm10 = vcmask 1042432  }
   0xd   : > { %v3064_v2 = vld [vmem:[%s3949_s4 + $0x18] sm:$0xff]  ;;  %456 = vmatpush.bf16.msra.mxu0 %v3068_v1  ;;  %v3063_v5 = vld [vmem:[%s3949_s4 + $0x10] sm:$0xff]  ;;  %v3062_v8 = vld [vmem:[%s3949_s4 + $0x8] sm:$0xff]  ;;  %vm548_vm3 = vsmask.f32 1280  ;;  %vm1554_vm13 = vcmask 1040384  }
   0xe   : > { %508 = vmatpush.bf16.msra.mxu1 %v3064_v2  ;;  %s3287_s30 = scalar_lea.vmem %s3945_s0, %s3275_s21  ;;  %s3293_s11 = scalar_lea.vmem %s3946_s1, %s3275_s21  ;;  %v3069_v17 = vld [vmem:[%s3949_s4 + $0x40] sm:$0xff]  ;;  %v3076_v23 = vld [vmem:[%s3949_s4 + $0x78] sm:$0xff]  ;;  %vm549_vm4 = vsmask.f32 3336  ;;  %vm551_vm5 = vsmask.f32 5392 }
   0xf   : > { %v3296_v9 = vld [vmem:[%s3287_s30] sm:$0x7]  ;;  %v3299_v10 = vld [vmem:[%s3287_s30 + $0x4] sm:$0x7]  ;;  %v3302_v11 = vld [vmem:[%s3287_s30 + $0x8] sm:$0x7]  ;;  %s355_s16 = scalar_lea.vmem %s3947_s2, %s3275_s21  ;;  %s360_s26 = scalar_lea.vmem %s3948_s3, %s3275_s21 }
  0x10   : > { %659 = vmatpush.bf16.msra.mxu3 %v3071_v3  ;;  %v3305_v12 = vld [vmem:[%s3287_s30 + $0xc] sm:$0x7]  ;;  %v372_v13 = vld [vmem:[%s3293_s11] sm:$0x7]  ;;  %v3309_v14 = vld [vmem:[%s3293_s11 + $0x4] sm:$0x7] }
  0x11   : > { %457 = vmatpush.bf16.msra.mxu0 %v3067_v4  ;;  %v3312_v15 = vld [vmem:[%s3293_s11 + $0x8] sm:$0x7]  ;;  %v3315_v16 = vld [vmem:[%s3293_s11 + $0xc] sm:$0x7]  ;;  %414 = vst [vmem:[#allocation1] ss:$4 sm:$0xff] %v372_v13  ;;  %vm3372_vm6 = vmor %vm548_vm3, %vm549_vm4 }
  0x12   : > { %509 = vmatpush.bf16.msra.mxu1 %v3063_v5  ;;  %417 = vst [vmem:[#allocation1 + $0x1] ss:$4 sm:$0xff] %v3309_v14  ;;  %v522_v18 = vrot.slane %v3296_v9, 2  ;;  %v523_v19 = vrot.slane %v3299_v10, 2  ;;  %v524_v20 = vrot.slane %v3302_v11, 2  ;;  %v3065_v21 = vld [vmem:[%s3949_s4 + $0x20] sm:$0xff]  ;;  %vm552_vm7 = vmor %vm3372_vm6, %vm551_vm5 }
  0x13   : > { %420 = vst [vmem:[#allocation1 + $0x2] ss:$4 sm:$0xff] %v3312_v15  ;;  %v3061_v22 = vld [vmem:[%s3949_s4] sm:$0xff]  ;;  %v525_v24 = vrot.slane %v3305_v12, 2  ;;  %v3080_v28 = vld [vmem:[%s3949_s4 + $0x98] sm:$0xff]  ;;  %v3075_v38 = vld [vmem:[%s3949_s4 + $0x70] sm:$0xff] }
  0x14   : > { %660 = vmatpush.bf16.msra.mxu3 %v3070_v6  ;;  %423 = vst [vmem:[#allocation1 + $0x3] ss:$4 sm:$0xff] %v3315_v16  ;;  %v528_v25 = vsel %vm526_vm0, %v3296_v9, %v522_v18  ;;  %v530_v26 = vsel %vm529_vm1, %v3296_v9, %v522_v18  ;;  %v534_v27 = vsel %vm526_vm0, %v3299_v10, %v523_v19  ;;  %v3084_v30 = vld [vmem:[%s3949_s4 + $0xb8] sm:$0xff]  ;;  %v3083_v43 = vld [vmem:[%s3949_s4 + $0xb0] sm:$0xff]  ;;  %v3074_v53 = vld [vmem:[%s3949_s4 + $0x68] sm:$0xff]  ;;  %vm1555_vm14 = vcmask 1042434  }
  0x15   : > { %458 = vmatpush.bf16.msra.mxu0 %v3066_v7  ;;  %v539_v29 = vsel %vm526_vm0, %v3302_v11, %v524_v20  ;;  %v532_v31 = vrot.slane %v530_v26, 2  ;;  %v535_v32 = vsel %vm529_vm1, %v3299_v10, %v523_v19  ;;  %v555_v33 = vshrl.u32 %v528_v25, 16  ;;  %v3079_v48 = vld [vmem:[%s3949_s4 + $0x90] sm:$0xff]  ;;  %v3073_v5 = vld [vmem:[%s3949_s4 + $0x60] sm:$0xff]  ;;  %v3078_v19 = vld [vmem:[%s3949_s4 + $0x88] sm:$0xff]  ;;  %s3060_s23 = sshll.u32 %s3963_s28, 3 }
  0x16   : > { %510 = vmatpush.bf16.msra.mxu1 %v3062_v8  ;;  %v540_v34 = vsel %vm529_vm1, %v3302_v11, %v524_v20  ;;  %v545_v35 = vsel %vm529_vm1, %v3305_v12, %v525_v24  ;;  %v558_v36 = vshll.u32 %v528_v25, 16  ;;  %v568_v37 = vshrl.u32 %v534_v27, 16  ;;  %v3088_v20 = vld [vmem:[%s3949_s4 + $0xd8] sm:$0xff]  ;;  %v3077_v25 = vld [vmem:[%s3949_s4 + $0x80] sm:$0xff]  ;;  %v3087_v26 = vld [vmem:[%s3949_s4 + $0xd0] sm:$0xff] }
  0x17   : > { %v544_v39 = vsel %vm526_vm0, %v3305_v12, %v525_v24  ;;  %v557_v40 = vrot.slane %v555_v33, 6  ;;  %v571_v41 = vshll.u32 %v534_v27, 16  ;;  %v581_v42 = vshrl.u32 %v539_v29, 16  ;;  %987 = vmatpush.bf16.msra.mxu2 %v3088_v20  ;;  %v377_v33 = vld [vmem:[%s355_s16] sm:$0x7]  ;;  %vm1556_vm15 = vmor %vm1554_vm13, %vm1555_vm14 }
  0x18   : > { %661 = vmatpush.bf16.msra.mxu3 %v3069_v17  ;;  %v537_v44 = vrot.slane %v535_v32, 2  ;;  %v560_v45 = vrot.slane %v558_v36, 7  ;;  %v570_v46 = vrot.slane %v568_v37, 6  ;;  %v584_v47 = vshll.u32 %v539_v29, 16  ;;  %v3086_v32 = vld [vmem:[%s3949_s4 + $0xc8] sm:$0xff]  ;;  %v3092_v37 = vld [vmem:[%s3949_s4 + $0xf8] sm:$0xff] }
  0x19   : > { %459 = vmatpush.bf16.msra.mxu0 %v3065_v21  ;;  %v542_v49 = vrot.slane %v540_v34, 2  ;;  %v547_v50 = vrot.slane %v545_v35, 2  ;;  %v573_v51 = vrot.slane %v571_v41, 7  ;;  %v583_v52 = vrot.slane %v581_v42, 6  ;;  %v3082_v21 = vld [vmem:[%s3949_s4 + $0xa8] sm:$0xff] }
  0x1a   : > { %511 = vmatpush.bf16.msra.mxu1 %v3061_v22  ;;  %v586_v56 = vrot.slane %v584_v47, 7  ;;  %v594_v57 = vshrl.u32 %v544_v39, 16  ;;  %v597_v58 = vshll.u32 %v544_v39, 16  ;;  %v561_v59 = vor.u32 %v560_v45, %v557_v40  ;;  %v378_v34 = vld [vmem:[%s355_s16 + $0x4] sm:$0x7] }
  0x1b   : > { %v424_v54 = vld.sshfl [vmem:[#allocation1] sm:$0xff pattern:$0x73625140]  ;;  %v564_v60 = vshll.u32 %v532_v31, 16  ;;  %v574_v61 = vor.u32 %v573_v51, %v570_v46  ;;  %v577_v62 = vshll.u32 %v537_v44, 16  ;;  %v590_v2 = vshll.u32 %v542_v49, 16  ;;  %988 = vmatpush.bf16.msra.mxu2 %v3087_v26 }
  0x1c   : > { %721 = vmatpush.bf16.msrb.mxu3 %v3076_v23  ;;  %467 = vst [vmem:[#allocation1] ss:$4 sm:$0xff] %v3296_v9  ;;  %2426 = vmatmul.msk.bf16.vlgmr.msra.gmra.mxu0 %vm449_vm2, %v424_v54  ;;  %v596_v63 = vrot.slane %v594_v57, 6  ;;  %v599_v0 = vrot.slane %v597_v58, 7  ;;  %vm553_vm8 = vsmask.f32 7448  ;;  %v587_v1 = vor.u32 %v586_v56, %v583_v52 }
  0x1d   : > { %784 = vmatpush.bf16.msrb.mxu0 %v3080_v28  ;;  %470 = vst [vmem:[#allocation1 + $0x1] ss:$4 sm:$0xff] %v3299_v10  ;;  %v603_v4 = vshll.u32 %v547_v50, 16  ;;  %v562_v6 = vrot.slane %v561_v59, 2  ;;  %v566_v7 = vrot.slane %v564_v60, 7  ;;  %vm3387_vm9 = vmor %vm552_vm7, %vm553_vm8  ;;  %v575_v9 = vrot.slane %v574_v61, 2 }
  0x1e   : > { %927 = vmatpush.bf16.msrb.mxu1 %v3084_v30  ;;  %473 = vst [vmem:[#allocation1 + $0x2] ss:$4 sm:$0xff] %v3302_v11  ;;  %v600_v3 = vor.u32 %v599_v0, %v596_v63  ;;  %v579_v13 = vrot.slane %v577_v62, 7  ;;  %v588_v17 = vrot.slane %v587_v1, 2  ;;  %v592_v18 = vrot.slane %v590_v2, 7  ;;  %v3081_v28 = vld [vmem:[%s3949_s4 + $0xa0] sm:$0xff] }
  0x1f   : > { %476 = vst [vmem:[#allocation1 + $0x3] ss:$4 sm:$0xff] %v3305_v12  ;;  %v605_v23 = vrot.slane %v603_v4, 7  ;;  %v567_v24 = vsel %vm3387_vm9, %v562_v6, %v566_v7  ;;  %989 = vmatpush.bf16.msra.mxu2 %v3086_v32  ;;  %v800_v35 = vrot.slane %v377_v33, 2  ;;  %v379_v36 = vld [vmem:[%s355_s16 + $0x8] sm:$0x7] }
  0x20   : > { %722 = vmatpush.bf16.msrb.mxu3 %v3075_v38  ;;  %v601_v22 = vrot.slane %v600_v3, 2  ;;  %v3410_v27 = vsel %vm3387_vm9, %v575_v9, %v579_v13  ;;  %v3417_v30 = vsel %vm3387_vm9, %v588_v17, %v592_v18  ;;  %v801_v38 = vrot.slane %v378_v34, 2  ;;  %v380_v39 = vld [vmem:[%s355_s16 + $0xc] sm:$0x7]  ;;  %v3091_v49 = vld [vmem:[%s3949_s4 + $0xf0] sm:$0xff]  ;;  %v3085_v50 = vld [vmem:[%s3949_s4 + $0xc0] sm:$0xff] }
  0x21   : > { %785 = vmatpush.bf16.msrb.mxu0 %v3079_v48  ;;  %v802_v40 = vrot.slane %v379_v36, 2  ;;  %v803_v42 = vrot.slane %v380_v39, 2  ;;  %v806_v51 = vsel %vm529_vm1, %v377_v33, %v800_v35  ;;  %v3455_v60 = vld [vmem:[%s360_s26] sm:$0x7]  ;;  %v3458_v1 = vld [vmem:[%s360_s26 + $0x4] sm:$0x7] }
  0x22   : > { %928 = vmatpush.bf16.msrb.mxu1 %v3083_v43  ;;  %v3421_v31 = vsel %vm3387_vm9, %v601_v22, %v605_v23  ;;  %v805_v43 = vsel %vm526_vm0, %v377_v33, %v800_v35  ;;  %v810_v44 = vsel %vm526_vm0, %v378_v34, %v801_v38  ;;  %v811_v54 = vsel %vm529_vm1, %v378_v34, %v801_v38  ;;  %v3462_v20 = vld [vmem:[%s360_s26 + $0xc] sm:$0x7] }
  0x23   : > { %v815_v45 = vsel %vm526_vm0, %v379_v36, %v802_v40  ;;  %v820_v46 = vsel %vm526_vm0, %v380_v39, %v803_v42  ;;  %v824_v47 = vshrl.u32 %v805_v43, 16  ;;  %v827_v48 = vshll.u32 %v805_v43, 16  ;;  %990 = vmatpush.bf16.msra.mxu2 %v3085_v50  ;;  %v3093_v50 = vld [vmem:[%s3949_s4 + $0x100] sm:$0xff] }
  0x24   : > { %723 = vmatpush.bf16.msrb.mxu3 %v3074_v53  ;;  %v837_v52 = vshrl.u32 %v810_v44, 16  ;;  %v840_v53 = vshll.u32 %v810_v44, 16  ;;  %v850_v55 = vshrl.u32 %v815_v45, 16  ;;  %v853_v56 = vshll.u32 %v815_v45, 16 }
  0x25   : > { %786 = vmatpush.bf16.msrb.mxu0 %v3078_v19  ;;  %v816_v57 = vsel %vm529_vm1, %v379_v36, %v802_v40  ;;  %v863_v58 = vshrl.u32 %v820_v46, 16  ;;  %v866_v59 = vshll.u32 %v820_v46, 16  ;;  %v808_v61 = vrot.slane %v806_v51, 2  ;;  %v371_v51 = vld [vmem:[%s3287_s30 + $0x10] sm:$0x7] }
  0x26   : > { %929 = vmatpush.bf16.msrb.mxu1 %v3082_v21  ;;  %v477_v29 = vld.sshfl [vmem:[#allocation1] sm:$0xff pattern:$0x73625140]  ;;  %v821_v62 = vsel %vm529_vm1, %v380_v39, %v803_v42  ;;  %v826_v63 = vrot.slane %v824_v47, 6  ;;  %v829_v0 = vrot.slane %v827_v48, 7  ;;  %v813_v2 = vrot.slane %v811_v54, 2 }
  0x27   : > { %617 = vst [vmem:[#allocation1] ss:$4 sm:$0xff] %v567_v24  ;;  %2443 = vmatmul.msk.bf16.vlgmr.msra.gmra.mxu1 %vm449_vm2, %v477_v29  ;;  %v839_v3 = vrot.slane %v837_v52, 6  ;;  %v842_v4 = vrot.slane %v840_v53, 7  ;;  %v818_v6 = vrot.slane %v816_v57, 2  ;;  %v852_v7 = vrot.slane %v850_v55, 6 }
  0x28   : > { %724 = vmatpush.bf16.msrb.mxu3 %v3073_v5  ;;  %620 = vst [vmem:[#allocation1 + $0x1] ss:$4 sm:$0xff] %v3410_v27  ;;  %v3460_v5 = vld [vmem:[%s360_s26 + $0x8] sm:$0x7]  ;;  %v855_v9 = vrot.slane %v853_v56, 7  ;;  %v823_v17 = vrot.slane %v821_v62, 2  ;;  %v830_v21 = vor.u32 %v829_v0, %v826_v63  ;;  %s365_s26 = scalar_lea.vmem %s3953_s8, %s3060_s23 }
  0x29   : > { %787 = vmatpush.bf16.msrb.mxu0 %v3077_v25  ;;  %623 = vst [vmem:[#allocation1 + $0x2] ss:$4 sm:$0xff] %v3417_v30  ;;  %v865_v18 = vrot.slane %v863_v58, 6  ;;  %v868_v19 = vrot.slane %v866_v59, 7  ;;  %v833_v22 = vshll.u32 %v808_v61, 16  ;;  %v843_v23 = vor.u32 %v842_v4, %v839_v3  ;;  %v3096_v29 = vld [vmem:[%s3949_s4 + $0x118] sm:$0xff] }
  0x2a   : > { %930 = vmatpush.bf16.msrb.mxu1 %v3081_v28  ;;  %626 = vst [vmem:[#allocation1 + $0x3] ss:$4 sm:$0xff] %v3421_v31  ;;  %v846_v24 = vshll.u32 %v813_v2, 16  ;;  %v856_v25 = vor.u32 %v855_v9, %v852_v7  ;;  %v859_v26 = vshll.u32 %v818_v6, 16  ;;  %v3090_v28 = vld [vmem:[%s3949_s4 + $0xe8] sm:$0xff]  ;;  %v1060_v53 = vrot.slane %v371_v51, 2 }
  0x2b   : > { %v869_v32 = vor.u32 %v868_v19, %v865_v18  ;;  %v835_v35 = vrot.slane %v833_v22, 7  ;;  %v844_v38 = vrot.slane %v843_v23, 2  ;;  %vm1267_vm11 = vsmask.f32 2306 }
  0x2c   : > { %v857_v40 = vrot.slane %v856_v25, 2  ;;  %v1062_v54 = vsel %vm526_vm0, %v371_v51, %v1060_v53  ;;  %v1063_v57 = vsel %vm529_vm1, %v371_v51, %v1060_v53  ;;  %vm3566_vm12 = vmand %vm1266_vm10, %vm1267_vm11  ;;  %vm1559_vm4 = vcmask 1046534  }
  0x2d   : > { %1127 = vmatpush.bf16.msra.mxu0 %v3096_v29  ;;  %v870_v42 = vrot.slane %v869_v32, 2  ;;  %v1066_v55 = vshrl.u32 %v1062_v54, 16  ;;  %v1069_v56 = vshll.u32 %v1062_v54, 16  ;;  %v1065_v59 = vrot.slane %v1063_v57, 2  ;;  %v3115_v54 = vld [vmem:[%s3951_s6 + $0x70] sm:$0xff] }
  0x2f   : > { %v1068_v61 = vrot.slane %v1066_v55, 6  ;;  %v1071_v62 = vrot.slane %v1069_v56, 7 }
  0x31   : > { %v627_v41 = vld.sshfl [vmem:[#allocation1] sm:$0xff pattern:$0x73625140] }
  0x32   : > { %2468 = vmatmul.msk.bf16.vlgmr.msra.gmra.mxu3 %vm449_vm2, %v627_v41  ;;  %680 = vst [vmem:[#allocation1] ss:$4 sm:$0xff] %v377_v33  ;;  %v872_v33 = vshll.u32 %v823_v17, 16  ;;  %v861_v41 = vrot.slane %v859_v26, 7 }
  0x33   : > { %683 = vst [vmem:[#allocation1 + $0x1] ss:$4 sm:$0xff] %v378_v34  ;;  %1047 = vmatpush.bf16.msra.mxu3 %v3092_v37  ;;  %v831_v34 = vrot.slane %v830_v21, 2  ;;  %v3095_v37 = vld [vmem:[%s3949_s4 + $0x110] sm:$0xff] }
  0x34   : > { %686 = vst [vmem:[#allocation1 + $0x2] ss:$4 sm:$0xff] %v379_v36  ;;  %v3089_v36 = vld [vmem:[%s3949_s4 + $0xe0] sm:$0xff]  ;;  %v874_v43 = vrot.slane %v872_v33, 7  ;;  %1128 = vmatpush.bf16.msra.mxu0 %v3095_v37  ;;  %v862_v47 = vsel %vm3387_vm9, %v857_v40, %v861_v41  ;;  %v3116_v41 = vld [vmem:[%s3951_s6 + $0x78] sm:$0xff] }
  0x35   : > { %689 = vst [vmem:[#allocation1 + $0x3] ss:$4 sm:$0xff] %v380_v39  ;;  %v848_v39 = vrot.slane %v846_v24, 7  ;;  %v836_v44 = vsel %vm3387_vm9, %v831_v34, %v835_v35  ;;  %1465 = vmatpush.bf16.msrb.mxu2 %v3116_v41 }
  0x36   : > { %v875_v48 = vsel %vm3387_vm9, %v870_v42, %v874_v43 }
  0x37   : > { %1048 = vmatpush.bf16.msra.mxu3 %v3091_v49  ;;  %v849_v45 = vsel %vm3387_vm9, %v844_v38, %v848_v39  ;;  %v3094_v49 = vld [vmem:[%s3949_s4 + $0x108] sm:$0xff]  ;;  %v3183_v38 = vld [vmem:[%s3952_s7] ss:$0 sm:$0xff] }
  0x38   : > { %1129 = vmatpush.bf16.msra.mxu0 %v3094_v49 }
  0x39   : > { %1466 = vmatpush.bf16.msrb.mxu2 %v3115_v54 }
  0x3b   : > { %1049 = vmatpush.bf16.msra.mxu3 %v3090_v28 }
  0x3c   : > { %v690_v13 = vld.sshfl [vmem:[#allocation1] sm:$0xff pattern:$0x73625140]  ;;  %1130 = vmatpush.bf16.msra.mxu0 %v3093_v50 }
  0x3d   : > { %743 = vst [vmem:[#allocation1] ss:$4 sm:$0xff] %v3455_v60 }
  0x3e   : > { %746 = vst [vmem:[#allocation1 + $0x1] ss:$4 sm:$0xff] %v3458_v1 }
  0x3f   : > { %749 = vst [vmem:[#allocation1 + $0x2] ss:$4 sm:$0xff] %v3460_v5  ;;  %1050 = vmatpush.bf16.msra.mxu3 %v3089_v36 }
  0x40   : > { %752 = vst [vmem:[#allocation1 + $0x3] ss:$4 sm:$0xff] %v3462_v20 }
  0x42   : > { %2493 = vmatmul.msk.bf16.vlgmr.msrb.gmra.mxu3 %vm449_vm2, %v690_v13 }
  0x47   : > { %v753_v46 = vld.sshfl [vmem:[#allocation1] sm:$0xff pattern:$0x73625140] }
  0x48   : > { %2518 = vmatmul.msk.bf16.vlgmr.msrb.gmra.mxu0 %vm449_vm2, %v753_v46  ;;  %886 = vst [vmem:[#allocation1] ss:$4 sm:$0xff] %v836_v44  ;;  %v3184_v46 = vld [vmem:[%s3952_s7 + $0x1] ss:$0 sm:$0xff] }
  0x49   : > { %889 = vst [vmem:[#allocation1 + $0x1] ss:$4 sm:$0xff] %v849_v45 }
  0x4a   : > { %892 = vst [vmem:[#allocation1 + $0x2] ss:$4 sm:$0xff] %v862_v47 }
  0x4b   : > { %895 = vst [vmem:[#allocation1 + $0x3] ss:$4 sm:$0xff] %v875_v48 }
  0x52   : > { %v896_v52 = vld.sshfl [vmem:[#allocation1] sm:$0xff pattern:$0x73625140] }
  0x53   : > { %2543 = vmatmul.msk.bf16.vlgmr.msrb.gmra.mxu1 %vm449_vm2, %v896_v52  ;;  %948 = vst [vmem:[#allocation1] ss:$4 sm:$0xff] %v3299_v10  ;;  %v376_v10 = vld [vmem:[%s3293_s11 + $0x10] sm:$0x7] }
  0x54   : > { %950 = vst [vmem:[#allocation1 + $0x1] ss:$4 sm:$0xff] %v3302_v11  ;;  %v1072_v11 = vor.u32 %v1071_v62, %v1068_v61 }
  0x55   : > { %952 = vst [vmem:[#allocation1 + $0x2] ss:$4 sm:$0xff] %v3305_v12  ;;  %v1075_v12 = vshll.u32 %v1065_v59, 16 }
  0x56   : > { %955 = vst [vmem:[#allocation1 + $0x3] ss:$4 sm:$0xff] %v371_v51  ;;  %v1073_v63 = vrot.slane %v1072_v11, 2  ;;  %v3108_v11 = vld [vmem:[%s3951_s6 + $0x38] sm:$0xff] }
  0x57   : > { %v1077_v0 = vrot.slane %v1075_v12, 7  ;;  %1536 = vmatpush.bf16.msrb.mxu3 %v3108_v11 }
  0x59   : > { %v1078_v3 = vsel %vm3387_vm9, %v1073_v63, %v1077_v0 }
  0x5d   : > { %v956_v58 = vld.sshfl [vmem:[#allocation1] sm:$0xff pattern:$0x73625140] }
  0x5e   : > { %2568 = vmatmul.msk.bf16.vlgmr.msra.gmra.mxu2 %vm449_vm2, %v956_v58  ;;  %1008 = vst [vmem:[#allocation1] ss:$4 sm:$0xff] %v3309_v14 }
  0x5f   : > { %1010 = vst [vmem:[#allocation1 + $0x1] ss:$4 sm:$0xff] %v3312_v15 }
  0x60   : > { %1012 = vst [vmem:[#allocation1 + $0x2] ss:$4 sm:$0xff] %v3315_v16 }
  0x61   : > { %1015 = vst [vmem:[#allocation1 + $0x3] ss:$4 sm:$0xff] %v376_v10  ;;  %v3114_v10 = vld [vmem:[%s3951_s6 + $0x68] sm:$0xff] }
  0x62   : > { %1467 = vmatpush.bf16.msrb.mxu2 %v3114_v10 }
  0x68   : > { %v1016_v2 = vld.sshfl [vmem:[#allocation1] sm:$0xff pattern:$0x73625140] }
  0x69   : > { %2593 = vmatmul.msk.bf16.vlgmr.msra.gmra.mxu3 %vm449_vm2, %v1016_v2  ;;  %1088 = vst [vmem:[#allocation1] ss:$4 sm:$0xff] %v3410_v27 }
  0x6a   : > { %1090 = vst [vmem:[#allocation1 + $0x1] ss:$4 sm:$0xff] %v3417_v30  ;;  %v3197_v30 = vmov 0  }
  0x6b   : > { %1092 = vst [vmem:[#allocation1 + $0x2] ss:$4 sm:$0xff] %v3421_v31 }
  0x6c   : > { %1095 = vst [vmem:[#allocation1 + $0x3] ss:$4 sm:$0xff] %v1078_v3  ;;  %v3100_v3 = vld [vmem:[%s3950_s5 + $0x18] sm:$0xff] }
  0x6d   : > { %1217 = vst [vmem:[#allocation2] sm:$0x7] %v3197_v30  ;;  %1197 = vmatpush.bf16.msra.mxu1 %v3100_v3 }
  0x6e   : > { %1218 = vst [vmem:[#allocation2 + $0x4] sm:$0x7] %v3197_v30 }
  0x6f   : > { %1219 = vst [vmem:[#allocation2 + $0x8] sm:$0x7] %v3197_v30 }
  0x70   : > { %1222 = vst [vmem:[#allocation2 + $0x14] sm:$0x7] %v3197_v30 }
  0x71   : > { %1220 = vst [vmem:[#allocation2 + $0xc] sm:$0x7] %v3197_v30 }
  0x72   : > { %1221 = vst [vmem:[#allocation2 + $0x10] sm:$0x7] %v3197_v30 }
  0x73   : > { %v1096_v14 = vld.sshfl [vmem:[#allocation1] sm:$0xff pattern:$0x73625140] }
  0x74   : > { %2618 = vmatmul.msk.bf16.vlgmr.msra.gmra.mxu0 %vm449_vm2, %v1096_v14  ;;  %1159 = vst [vmem:[#allocation1] ss:$4 sm:$0xff] %v3455_v60  ;;  %v3519_v23 = vld [vmem:[#allocation2] sm:$0x7] }
  0x75   : > { %1161 = vst [vmem:[#allocation1 + $0x1] ss:$4 sm:$0xff] %v3458_v1  ;;  %v1307_v29 = vrot.slane %v3519_v23, 2 }
  0x76   : > { %1163 = vst [vmem:[#allocation1 + $0x2] ss:$4 sm:$0xff] %v3460_v5 }
  0x77   : > { %1165 = vst [vmem:[#allocation1 + $0x3] ss:$4 sm:$0xff] %v3462_v20  ;;  %v3524_v33 = vsel %vm526_vm0, %v3519_v23, %v1307_v29  ;;  %v3528_v34 = vsel %vm529_vm1, %v3519_v23, %v1307_v29  ;;  %v3098_v29 = vld [vmem:[%s3950_s5 + $0x8] sm:$0xff] }
  0x78   : > { %v1316_v36 = vrot.slane %v3528_v34, 2  ;;  %v1335_v39 = vshrl.u32 %v3524_v33, 16  ;;  %v1338_v40 = vshll.u32 %v3524_v33, 16  ;;  %v3163_v34 = vld [vmem:[%s3951_s6 + $0x1f0] sm:$0xff] }
  0x79   : > { %v1278_v54 = vld [vmem:[#allocation2 + $0x10] sm:$0x7] }
  0x7a   : > { %v1344_v43 = vshll.u32 %v1316_v36, 16  ;;  %v1337_v47 = vrot.slane %v1335_v39, 6  ;;  %v1340_v48 = vrot.slane %v1338_v40, 7 }
  0x7c   : > { %v1341_v51 = vor.u32 %v1340_v48, %v1337_v47  ;;  %v1346_v52 = vrot.slane %v1344_v43, 7  ;;  %v3104_v47 = vld [vmem:[%s3951_s6 + $0x18] sm:$0xff]  ;;  %v3122_v48 = vld [vmem:[%s3951_s6 + $0xa8] sm:$0xff] }
  0x7e   : > { %v1342_v57 = vrot.slane %v1341_v51, 2  ;;  %v3547_v61 = vld.sshfl [vmem:[#allocation1] sm:$0xff pattern:$0x73625140] }
  0x80   : > { %v1347_v62 = vsel %vm3387_vm9, %v1342_v57, %v1346_v52  ;;  %v3132_v52 = vld [vmem:[%s3951_s6 + $0xf8] sm:$0xff] }
  0x81   : > { %1405 = vst [vmem:[#allocation1] ss:$4 sm:$0xff] %v1347_v62  ;;  %v3103_v62 = vld [vmem:[%s3951_s6 + $0x10] sm:$0xff] }
  0x99   : > { %v461_v16 = vpop.f32.mrf.mxu0 }
  0xa1   : > { %v463_v6 = vpop.f32.mrf.mxu0 }
  0xa4   : > { %v513_v4 = vpop.f32.mrf.mxu1 }
  0xa5   : > { %v514_v7 = vadd.f32 %v513_v4, %v461_v16  ;;  %v3113_v16 = vld [vmem:[%s3951_s6 + $0x60] sm:$0xff] }
  0xa6   : > { %1468 = vmatpush.bf16.msrb.mxu2 %v3113_v16 }
  0xac   : > { %v515_v60 = vpop.f32.mrf.mxu1 }
  0xad   : > { %v516_v17 = vadd.f32 %v515_v60, %v463_v6  ;;  %v1269_v60 = vld [vmem:[#allocation2 + $0x4] sm:$0x7] }
  0xb5   : > { %v663_v15 = vpop.f32.mrf.mxu3 }
  0xb6   : > { %v668_v9 = vadd.f32 %v663_v15, %v514_v7  ;;  %v3120_v7 = vld [vmem:[%s3951_s6 + $0x98] sm:$0xff] }
  0xbd   : > { %v665_v27 = vpop.f32.mrf.mxu3 }
  0xbe   : > { %v669_v21 = vadd.f32 %v665_v27, %v516_v17  ;;  %v3107_v27 = vld [vmem:[%s3951_s6 + $0x30] sm:$0xff] }
  0xbf   : > { %1537 = vmatpush.bf16.msrb.mxu3 %v3107_v27 }
  0xc5   : > { %v726_v31 = vpop.f32.mrf.mxu3  ;;  %v789_v1 = vpop.f32.mrf.mxu0 }
  0xc6   : > { %v731_v5 = vadd.f32 %v726_v31, %v668_v9  ;;  %v3099_v9 = vld [vmem:[%s3950_s5 + $0x10] sm:$0xff] }
  0xc7   : > { %1198 = vmatpush.bf16.msra.mxu1 %v3099_v9  ;;  %v3130_v9 = vld [vmem:[%s3951_s6 + $0xe8] sm:$0xff] }
  0xc8   : > { %v794_v18 = vadd.f32 %v789_v1, %v731_v5 }
  0xcb   : > { %1199 = vmatpush.bf16.msra.mxu1 %v3098_v29 }
  0xcd   : > { %v728_v13 = vpop.f32.mrf.mxu3  ;;  %v791_v22 = vpop.f32.mrf.mxu0 }
  0xce   : > { %v732_v25 = vadd.f32 %v728_v13, %v669_v21  ;;  %v1272_v21 = vld [vmem:[#allocation2 + $0x8] sm:$0x7] }
  0xd0   : > { %v932_v19 = vpop.f32.mrf.mxu1  ;;  %v795_v35 = vadd.f32 %v791_v22, %v732_v25 }
  0xd1   : > { %v937_v24 = vadd.f32 %v932_v19, %v794_v18  ;;  %v3112_v18 = vld [vmem:[%s3951_s6 + $0x58] sm:$0xff]  ;;  %v3106_v19 = vld [vmem:[%s3951_s6 + $0x28] sm:$0xff] }
  0xd2   : > { %1469 = vmatpush.bf16.msrb.mxu2 %v3112_v18  ;;  %1538 = vmatpush.bf16.msrb.mxu3 %v3106_v19 }
  0xd8   : > { %v934_v37 = vpop.f32.mrf.mxu1 }
  0xd9   : > { %v938_v49 = vadd.f32 %v934_v37, %v795_v35  ;;  %v3111_v35 = vld [vmem:[%s3951_s6 + $0x50] sm:$0xff]  ;;  %v3105_v37 = vld [vmem:[%s3951_s6 + $0x20] sm:$0xff] }
  0xda   : > { %1470 = vmatpush.bf16.msrb.mxu2 %v3111_v35  ;;  %1539 = vmatpush.bf16.msrb.mxu3 %v3105_v37 }
  0xde   : > { %1540 = vmatpush.bf16.msrb.mxu3 %v3104_v47 }
  0xe1   : > { %v992_v20 = vpop.f32.mrf.mxu2 }
  0xe2   : > { %v997_v26 = vadd.f32 %v992_v20, %v937_v24  ;;  %v3124_v20 = vld [vmem:[%s3951_s6 + $0xb8] sm:$0xff]  ;;  %1541 = vmatpush.bf16.msrb.mxu3 %v3103_v62  ;;  %v3147_v62 = vld [vmem:[%s3951_s6 + $0x170] sm:$0xff] }
  0xe3   : > { %1655 = vmatpush.bf16.msrb.mxu0 %v3124_v20 }
  0xe9   : > { %v994_v44 = vpop.f32.mrf.mxu2 }
  0xea   : > { %v998_v55 = vadd.f32 %v994_v44, %v938_v49  ;;  %v1275_v44 = vld [vmem:[#allocation2 + $0xc] sm:$0x7] }
  0xec   : > { %v1052_v28 = vpop.f32.mrf.mxu3 }
  0xed   : > { %v1057_v32 = vadd.f32 %v1052_v28, %v997_v26 }
  0xf1   : > { %v1132_v42 = vpop.f32.mrf.mxu0 }
  0xf2   : > { %v1137_v45 = vadd.f32 %v1132_v42, %v1057_v32 }
  0xf4   : > { %v1142_v50 = vmul.f32 %v3183_v38, %v1137_v45  ;;  %v1054_v53 = vpop.f32.mrf.mxu3  ;;  %v3097_v45 = vld [vmem:[%s3950_s5] sm:$0xff] }
  0xf5   : > { %v1058_v58 = vadd.f32 %v1054_v53, %v998_v55  ;;  %1200 = vmatpush.bf16.msra.mxu1 %v3097_v45  ;;  %v3128_v45 = vld [vmem:[%s3951_s6 + $0xd8] sm:$0xff] }
  0xf6   : > { %v1147_v56 = vadd.f32 %v3184_v46, %v1142_v50 }
  0xf8   : > { %v1149_v59 = vmax.f32 %v1147_v56, 0.0  ;;  %2635 = vmatmul.msk.bf16.vlgmr.msra.gmra.mxu1 %vm449_vm2, %v3547_v61  ;;  %v3131_v61 = vld [vmem:[%s3951_s6 + $0xf0] sm:$0xff]  ;;  %vm1557_vm2 = vcmask 1044484  }
  0xf9   : > { %v1134_v12 = vpop.f32.mrf.mxu0  ;;  %1746 = vmatpush.bf16.msrb.mxu1 %v3132_v52  ;;  %vm1558_vm3 = vmor %vm1556_vm15, %vm1557_vm2 }
  0xfa   : > { %v1225_v63 = vrot.slane %v1149_v59, 4  ;;  %v1229_v0 = vpack.c.bf16 %v1149_v59, %v1149_v59  ;;  %v1138_v2 = vadd.f32 %v1134_v12, %v1058_v58  ;;  %v3109_v59 = vld [vmem:[%s3951_s6 + $0x40] sm:$0xff]  ;;  %vm3797_vm5 = vmor %vm1558_vm3, %vm1559_vm4 }
  0xfc   : > { %v1230_v14 = vpack.c.bf16 %v1225_v63, %v1225_v63  ;;  %v1234_v15 = vshrl.u32 %v1229_v0, 16  ;;  %v1143_v4 = vmul.f32 %v3183_v38, %v1138_v2  ;;  %v1237_v30 = vshll.u32 %v1229_v0, 16  ;;  %v3123_v38 = vld [vmem:[%s3951_s6 + $0xb0] sm:$0xff]  ;;  %v3121_v0 = vld [vmem:[%s3951_s6 + $0xa0] sm:$0xff] }
  0xfd   : > { %1656 = vmatpush.bf16.msrb.mxu0 %v3123_v38  ;;  %1747 = vmatpush.bf16.msrb.mxu1 %v3131_v61  ;;  %v3146_v61 = vld [vmem:[%s3951_s6 + $0x168] sm:$0xff] }
  0xfe   : > { %v1236_v6 = vrot.slane %v1234_v15, 7  ;;  %v1241_v31 = vshrl.u32 %v1230_v14, 16  ;;  %v1148_v1 = vadd.f32 %v3184_v46, %v1143_v4  ;;  %v1244_v17 = vshll.u32 %v1230_v14, 16  ;;  %v3110_v46 = vld [vmem:[%s3951_s6 + $0x48] sm:$0xff] }
  0xff   : > { %1471 = vmatpush.bf16.msrb.mxu2 %v3110_v46  ;;  %v3138_v46 = vld [vmem:[%s3951_s6 + $0x128] sm:$0xff] }
 0x100   : > { %v1239_v5 = vor.u32 %v1237_v30, %v1236_v6  ;;  %v1243_v13 = vrot.slane %v1241_v31, 7  ;;  %v1150_v22 = vmax.f32 %v1148_v1, 0.0  ;;  %v3102_v31 = vld [vmem:[%s3951_s6 + $0x8] sm:$0xff] }
 0x101   : > { %1657 = vmatpush.bf16.msrb.mxu0 %v3122_v48  ;;  %1542 = vmatpush.bf16.msrb.mxu3 %v3102_v31 }
 0x102   : > { %v1246_v24 = vor.u32 %v1244_v17, %v1243_v13  ;;  %v1270_v25 = vsel %vm3566_vm12, %v1239_v5, %v1269_v60  ;;  %v1226_v26 = vrot.slane %v1150_v22, 4  ;;  %v1231_v28 = vpack.c.bf16 %v1150_v22, %v1150_v22  ;;  %v3140_v5 = vld [vmem:[%s3951_s6 + $0x138] sm:$0xff]  ;;  %1748 = vmatpush.bf16.msrb.mxu1 %v3130_v9 }
 0x103   : > { %1271 = vst [vmem:[#allocation2 + $0x4] sm:$0x7] %v1270_v25  ;;  %1472 = vmatpush.bf16.msrb.mxu2 %v3109_v59  ;;  %v3101_v25 = vld [vmem:[%s3951_s6] sm:$0xff]  ;;  %v1563_v9 = vrot.slane %v1316_v36, 7 }
 0x104   : > { %v1273_v32 = vsel %vm3566_vm12, %v1246_v24, %v1272_v21  ;;  %v1232_v39 = vpack.c.bf16 %v1226_v26, %v1226_v26  ;;  %v1248_v40 = vshrl.u32 %v1231_v28, 16  ;;  %v1251_v42 = vshll.u32 %v1231_v28, 16  ;;  %v3119_v26 = vld [vmem:[%s3951_s6 + $0x90] sm:$0xff]  ;;  %v3129_v28 = vld [vmem:[%s3951_s6 + $0xe0] sm:$0xff] }
 0x105   : > { %1274 = vst [vmem:[#allocation2 + $0x8] sm:$0x7] %v1273_v32  ;;  %1658 = vmatpush.bf16.msrb.mxu0 %v3121_v0  ;;  %v3139_v32 = vld [vmem:[%s3951_s6 + $0x130] sm:$0xff]  ;;  %1543 = vmatpush.bf16.msrb.mxu3 %v3101_v25  ;;  %v3136_v0 = vld [vmem:[%s3951_s6 + $0x118] sm:$0xff] }
 0x106   : > { %v1250_v41 = vrot.slane %v1248_v40, 7  ;;  %v1255_v43 = vshrl.u32 %v1232_v39, 16  ;;  %v1258_v51 = vshll.u32 %v1232_v39, 16  ;;  %1749 = vmatpush.bf16.msrb.mxu1 %v3129_v28 }
 0x107   : > { %1857 = vmatpush.bf16.msra.mxu2 %v3140_v5  ;;  %v3164_v5 = vld [vmem:[%s3951_s6 + $0x1f8] sm:$0xff] }
 0x108   : > { %v1253_v49 = vor.u32 %v1251_v42, %v1250_v41  ;;  %v1257_v50 = vrot.slane %v1255_v43, 7 }
 0x109   : > { %1659 = vmatpush.bf16.msrb.mxu0 %v3120_v7  ;;  %v3134_v7 = vld [vmem:[%s3951_s6 + $0x108] sm:$0xff] }
 0x10a   : > { %v3613_v53 = vld [vmem:[#allocation2 + $0x4] sm:$0x7]  ;;  %v1260_v56 = vor.u32 %v1258_v51, %v1257_v50  ;;  %v1276_v57 = vsel %vm3566_vm12, %v1253_v49, %v1275_v44  ;;  %v3148_v51 = vld [vmem:[%s3951_s6 + $0x178] sm:$0xff]  ;;  %1750 = vmatpush.bf16.msrb.mxu1 %v3128_v45 }
 0x10b   : > { %v1308_v55 = vrot.slane %v3613_v53, 2  ;;  %1277 = vst [vmem:[#allocation2 + $0xc] sm:$0x7] %v1276_v57  ;;  %1858 = vmatpush.bf16.msra.mxu2 %v3139_v32  ;;  %v3118_v44 = vld [vmem:[%s3951_s6 + $0x88] sm:$0xff]  ;;  %1953 = vmatpush.bf16.msra.mxu3 %v3148_v51 }
 0x10c   : > { %v3618_v58 = vld [vmem:[#allocation2 + $0x8] sm:$0x7]  ;;  %v1279_v63 = vsel %vm3566_vm12, %v1260_v56, %v1278_v54  ;;  %v3117_v54 = vld [vmem:[%s3951_s6 + $0x80] sm:$0xff]  ;;  %v3162_v32 = vld [vmem:[%s3951_s6 + $0x1e8] sm:$0xff] }
 0x10d   : > { %v1309_v10 = vrot.slane %v3618_v58, 2  ;;  %v3631_v11 = vsel %vm526_vm0, %v3613_v53, %v1308_v55  ;;  %v3635_v12 = vsel %vm529_vm1, %v3613_v53, %v1308_v55  ;;  %1280 = vst [vmem:[#allocation2 + $0x10] sm:$0x7] %v1279_v63  ;;  %1660 = vmatpush.bf16.msrb.mxu0 %v3119_v26  ;;  %v3127_v55 = vld [vmem:[%s3951_s6 + $0xd0] sm:$0xff]  ;;  %v3137_v56 = vld [vmem:[%s3951_s6 + $0x120] sm:$0xff]  ;;  %v3126_v63 = vld [vmem:[%s3951_s6 + $0xc8] sm:$0xff] }
 0x10e   : > { %v1322_v2 = vrot.slane %v3635_v12, 2  ;;  %v1348_v3 = vshrl.u32 %v3631_v11, 16  ;;  %v1351_v14 = vshll.u32 %v3631_v11, 16  ;;  %1751 = vmatpush.bf16.msrb.mxu1 %v3127_v55  ;;  %v3150_v51 = vld [vmem:[%s3951_s6 + $0x188] sm:$0xff] }
 0x10f   : > { %v3650_v15 = vsel %vm526_vm0, %v3618_v58, %v1309_v10  ;;  %v3654_v16 = vsel %vm529_vm1, %v3618_v58, %v1309_v10  ;;  %1859 = vmatpush.bf16.msra.mxu2 %v3138_v46  ;;  %1954 = vmatpush.bf16.msra.mxu3 %v3147_v62 }
 0x110   : > { %v1328_v27 = vrot.slane %v3654_v16, 2  ;;  %v1350_v4 = vrot.slane %v1348_v3, 6  ;;  %v1353_v6 = vrot.slane %v1351_v14, 7  ;;  %v1357_v30 = vshll.u32 %v1322_v2, 16  ;;  %v3156_v3 = vld [vmem:[%s3951_s6 + $0x1b8] sm:$0xff]  ;;  %v3125_v14 = vld [vmem:[%s3951_s6 + $0xc0] sm:$0xff] }
 0x111   : > { %v1361_v60 = vshrl.u32 %v3650_v15, 16  ;;  %v1364_v1 = vshll.u32 %v3650_v15, 16  ;;  %1661 = vmatpush.bf16.msrb.mxu0 %v3118_v44  ;;  %v2718_v26 = vrot.slane %v3650_v15, 9 }
 0x112   : > { %v1354_v13 = vor.u32 %v1353_v6, %v1350_v4  ;;  %v1370_v17 = vshll.u32 %v1328_v27, 16  ;;  %v3675_v20 = vld [vmem:[#allocation2 + $0xc] sm:$0x7]  ;;  %v1359_v22 = vrot.slane %v1357_v30, 7  ;;  %1752 = vmatpush.bf16.msrb.mxu1 %v3126_v63  ;;  %v3145_v6 = vld [vmem:[%s3951_s6 + $0x160] sm:$0xff] }
 0x113   : > { %v1363_v18 = vrot.slane %v1361_v60, 6  ;;  %v1366_v19 = vrot.slane %v1364_v1, 7  ;;  %v1310_v24 = vrot.slane %v3675_v20, 2  ;;  %1860 = vmatpush.bf16.msra.mxu2 %v3137_v56  ;;  %v3155_v4 = vld [vmem:[%s3951_s6 + $0x1b0] sm:$0xff]  ;;  %1955 = vmatpush.bf16.msra.mxu3 %v3146_v61  ;;  %v3144_v60 = vld [vmem:[%s3951_s6 + $0x158] sm:$0xff]  ;;  %v2716_v1 = vrot.slane %v3524_v33, 9 }
 0x114   : > { %v1355_v21 = vrot.slane %v1354_v13, 2  ;;  %v1372_v37 = vrot.slane %v1370_v17, 7  ;;  %v3135_v30 = vld [vmem:[%s3951_s6 + $0x110] sm:$0xff]  ;;  %v3133_v13 = vld [vmem:[%s3951_s6 + $0x100] sm:$0xff] }
 0x115   : > { %v1367_v29 = vor.u32 %v1366_v19, %v1363_v18  ;;  %v3696_v38 = vsel %vm526_vm0, %v3675_v20, %v1310_v24  ;;  %v3700_v39 = vsel %vm529_vm1, %v3675_v20, %v1310_v24  ;;  %1662 = vmatpush.bf16.msrb.mxu0 %v3117_v54  ;;  %v3143_v17 = vld [vmem:[%s3951_s6 + $0x150] sm:$0xff]  ;;  %v3153_v33 = vld [vmem:[%s3951_s6 + $0x1a0] sm:$0xff]  ;;  %v1567_v18 = vrot.slane %v1322_v2, 7  ;;  %v3808_v24 = vld [vmem:[#allocation2 + $0x10] sm:$0x7] }
 0x116   : > { %v3692_v35 = vsel %vm3387_vm9, %v1355_v21, %v1359_v22  ;;  %v1334_v41 = vrot.slane %v3700_v39, 2  ;;  %v1374_v42 = vshrl.u32 %v3696_v38, 16  ;;  %v1377_v43 = vshll.u32 %v3696_v38, 16  ;;  %1753 = vmatpush.bf16.msrb.mxu1 %v3125_v14  ;;  %v3141_v39 = vld [vmem:[%s3951_s6 + $0x140] sm:$0xff]  ;;  %v3170_v54 = vld [vmem:[%s3951_s6 + $0x228] sm:$0xff]  ;;  %v3159_v56 = vld [vmem:[%s3951_s6 + $0x1d0] sm:$0xff] }
 0x117   : > { %v1368_v40 = vrot.slane %v1367_v29, 2  ;;  %1408 = vst [vmem:[#allocation1 + $0x1] ss:$4 sm:$0xff] %v3692_v35  ;;  %1861 = vmatpush.bf16.msra.mxu2 %v3136_v0  ;;  %1956 = vmatpush.bf16.msra.mxu3 %v3145_v6  ;;  %v1564_v19 = vsel %vm3797_vm5, %v2716_v1, %v1563_v9  ;;  %v1571_v21 = vrot.slane %v1328_v27, 7  ;;  %v2717_v22 = vrot.slane %v3631_v11, 9  ;;  %v3142_v27 = vld [vmem:[%s3951_s6 + $0x148] sm:$0xff] }
 0x118   : > { %v1376_v48 = vrot.slane %v1374_v42, 6  ;;  %v1379_v49 = vrot.slane %v1377_v43, 7  ;;  %v1383_v50 = vshll.u32 %v1334_v41, 16  ;;  %v1575_v25 = vrot.slane %v1334_v41, 7  ;;  %v3152_v29 = vld [vmem:[%s3951_s6 + $0x198] sm:$0xff]  ;;  %v3161_v41 = vld [vmem:[%s3951_s6 + $0x1e0] sm:$0xff] }
 0x119   : > { %v3717_v47 = vsel %vm3387_vm9, %v1368_v40, %v1372_v37  ;;  %2044 = vmatpush.bf16.msra.mxu0 %v3156_v3  ;;  %v3815_v12 = vsel %vm3797_vm5, %v2717_v22, %v1567_v18  ;;  %v2719_v2 = vrot.slane %v3696_v38, 9  ;;  %v3820_v11 = vsel %vm3797_vm5, %v2718_v26, %v1571_v21  ;;  %v3172_v37 = vld [vmem:[%s3951_s6 + $0x238] sm:$0xff]  ;;  %v3151_v40 = vld [vmem:[%s3951_s6 + $0x190] sm:$0xff]  ;;  %v3158_v3 = vld [vmem:[%s3951_s6 + $0x1c8] sm:$0xff] }
 0x11a   : > { %1411 = vst [vmem:[#allocation1 + $0x2] ss:$4 sm:$0xff] %v3717_v47  ;;  %v1380_v52 = vor.u32 %v1379_v49, %v1376_v48  ;;  %v1385_v59 = vrot.slane %v1383_v50, 7  ;;  %2155 = vmatpush.bf16.msra.mxu1 %v3164_v5  ;;  %v1763_v16 = vrot.slane %v3808_v24, 2  ;;  %v3171_v42 = vld [vmem:[%s3951_s6 + $0x230] sm:$0xff]  ;;  %v3168_v14 = vld [vmem:[%s3951_s6 + $0x218] sm:$0xff] }
 0x11b   : > { %1862 = vmatpush.bf16.msra.mxu2 %v3135_v30  ;;  %1957 = vmatpush.bf16.msra.mxu3 %v3144_v60  ;;  %v3826_v15 = vsel %vm3797_vm5, %v2719_v2, %v1575_v25  ;;  %v1286_v6 = vld [vmem:[#allocation2 + $0x14] sm:$0x7]  ;;  %v3166_v9 = vld [vmem:[%s3951_s6 + $0x208] sm:$0xff]  ;;  %v3165_v5 = vld [vmem:[%s3951_s6 + $0x200] sm:$0xff] }
 0x11c   : > { %v1381_v57 = vrot.slane %v1380_v52, 2  ;;  %v3844_v38 = vsel %vm526_vm0, %v3808_v24, %v1763_v16  ;;  %v1766_v46 = vsel %vm529_vm1, %v3808_v24, %v1763_v16  ;;  %v3160_v52 = vld [vmem:[%s3951_s6 + $0x1d8] sm:$0xff] }
 0x11d   : > { %2045 = vmatpush.bf16.msra.mxu0 %v3155_v4  ;;  %v1769_v43 = vshrl.u32 %v3844_v38, 16  ;;  %v1772_v44 = vshll.u32 %v3844_v38, 16  ;;  %v1768_v50 = vrot.slane %v1766_v46, 2  ;;  %v3167_v4 = vld [vmem:[%s3951_s6 + $0x210] sm:$0xff]  ;;  %v2864_v60 = vrot.slane %v3844_v38, 9 }
 0x11e   : > { %v3739_v10 = vsel %vm3387_vm9, %v1381_v57, %v1385_v59  ;;  %2156 = vmatpush.bf16.msra.mxu1 %v3163_v34  ;;  %v3169_v57 = vld [vmem:[%s3951_s6 + $0x220] sm:$0xff] }
 0x11f   : > { %1414 = vst [vmem:[#allocation1 + $0x3] ss:$4 sm:$0xff] %v3739_v10  ;;  %1863 = vmatpush.bf16.msra.mxu2 %v3134_v7  ;;  %1958 = vmatpush.bf16.msra.mxu3 %v3143_v17  ;;  %v1771_v48 = vrot.slane %v1769_v43, 6  ;;  %v1774_v49 = vrot.slane %v1772_v44, 7  ;;  %v1778_v59 = vshll.u32 %v1768_v50, 16  ;;  %v1876_v30 = vrot.slane %v1768_v50, 7 }
 0x121   : > { %v1775_v55 = vor.u32 %v1774_v49, %v1771_v48  ;;  %v1780_v0 = vrot.slane %v1778_v59, 7  ;;  %v3187_v59 = vld [vmem:[%s3952_s7 + $0x2] ss:$0 sm:$0xff] }
 0x122   : > { %2157 = vmatpush.bf16.msra.mxu1 %v3162_v32 }
 0x123   : > { %1864 = vmatpush.bf16.msra.mxu2 %v3133_v13  ;;  %1959 = vmatpush.bf16.msra.mxu3 %v3142_v27  ;;  %v1776_v62 = vrot.slane %v1775_v55, 2 }
 0x125   : > { %v1781_v61 = vsel %vm3387_vm9, %v1776_v62, %v1780_v0 }
 0x126   : > { %v1415_v31 = vld.sshfl [vmem:[#allocation1] sm:$0xff pattern:$0x73625140]  ;;  %2158 = vmatpush.bf16.msra.mxu1 %v3161_v41 }
 0x127   : > { %1479 = vst [vmem:[#allocation1] ss:$4 sm:$0xff] %v3519_v23  ;;  %1473 = vmatmul.bf16.vlgmr.msrb.gmra.mxu2 %v1415_v31  ;;  %v3154_v23 = vld [vmem:[%s3951_s6 + $0x1a8] sm:$0xff]  ;;  %1960 = vmatpush.bf16.msra.mxu3 %v3141_v39  ;;  %v2061_v31 = vrot.slane %v1286_v6, 2 }
 0x128   : > { %1481 = vst [vmem:[#allocation1 + $0x1] ss:$4 sm:$0xff] %v3613_v53  ;;  %2046 = vmatpush.bf16.msra.mxu0 %v3154_v23  ;;  %2251 = vmatpush.bf16.msrb.mxu2 %v3172_v37  ;;  %v1877_v23 = vsel %vm3797_vm5, %v2864_v60, %v1876_v30 }
 0x129   : > { %1483 = vst [vmem:[#allocation1 + $0x2] ss:$4 sm:$0xff] %v3618_v58  ;;  %v2063_v1 = vsel %vm526_vm0, %v1286_v6, %v2061_v31 }
 0x12a   : > { %1485 = vst [vmem:[#allocation1 + $0x3] ss:$4 sm:$0xff] %v3675_v20  ;;  %2159 = vmatpush.bf16.msra.mxu1 %v3160_v52  ;;  %v2067_v13 = vshrl.u32 %v2063_v1, 16  ;;  %v2070_v17 = vshll.u32 %v2063_v1, 16 }
 0x12c   : > { %2047 = vmatpush.bf16.msra.mxu0 %v3153_v33  ;;  %2252 = vmatpush.bf16.msrb.mxu2 %v3171_v42  ;;  %v2064_v33 = vsel %vm529_vm1, %v1286_v6, %v2061_v31  ;;  %v2069_v18 = vrot.slane %v2067_v13, 6 }
 0x12d   : > { %v2066_v34 = vrot.slane %v2064_v33, 2 }
 0x12e   : > { %2160 = vmatpush.bf16.msra.mxu1 %v3159_v56 }
 0x12f   : > { %v2076_v25 = vshll.u32 %v2066_v34, 16 }
 0x130   : > { %2048 = vmatpush.bf16.msra.mxu0 %v3152_v29  ;;  %2253 = vmatpush.bf16.msrb.mxu2 %v3170_v54 }
 0x131   : > { %v1486_v28 = vld.sshfl [vmem:[#allocation1] sm:$0xff pattern:$0x73625140] }
 0x132   : > { %1595 = vst [vmem:[#allocation1] ss:$4 sm:$0xff] %v1564_v19  ;;  %1544 = vmatmul.bf16.vlgmr.msrb.gmra.mxu3 %v1486_v28  ;;  %2161 = vmatpush.bf16.msra.mxu1 %v3158_v3  ;;  %v2072_v19 = vrot.slane %v2070_v17, 7  ;;  %v2078_v28 = vrot.slane %v2076_v25, 7 }
 0x133   : > { %1598 = vst [vmem:[#allocation1 + $0x1] ss:$4 sm:$0xff] %v3815_v12 }
 0x134   : > { %1601 = vst [vmem:[#allocation1 + $0x2] ss:$4 sm:$0xff] %v3820_v11  ;;  %2049 = vmatpush.bf16.msra.mxu0 %v3151_v40  ;;  %2254 = vmatpush.bf16.msrb.mxu2 %v3169_v57  ;;  %v2073_v22 = vor.u32 %v2072_v19, %v2069_v18 }
 0x135   : > { %1604 = vst [vmem:[#allocation1 + $0x3] ss:$4 sm:$0xff] %v3826_v15 }
 0x136   : > { %v2074_v26 = vrot.slane %v2073_v22, 2 }
 0x138   : > { %2050 = vmatpush.bf16.msra.mxu0 %v3150_v51  ;;  %2255 = vmatpush.bf16.msrb.mxu2 %v3168_v14  ;;  %v2079_v2 = vsel %vm3387_vm9, %v2074_v26, %v2078_v28 }
 0x13c   : > { %v1605_v45 = vld.sshfl [vmem:[#allocation1] sm:$0xff pattern:$0x73625140]  ;;  %2256 = vmatpush.bf16.msrb.mxu2 %v3167_v4 }
 0x13d   : > { %1692 = vst [vmem:[#allocation1 + $0x2] ss:$4 sm:$0xff] %v3675_v20  ;;  %1663 = vmatmul.bf16.vlgmr.msrb.gmra.mxu0 %v1605_v45 }
 0x13e   : > { %1695 = vst [vmem:[#allocation1 + $0x3] ss:$4 sm:$0xff] %v3808_v24 }
 0x13f   : > { %1688 = vst [vmem:[#allocation1] ss:$4 sm:$0xff] %v3613_v53  ;;  %v3149_v53 = vld [vmem:[%s3951_s6 + $0x180] sm:$0xff] }
 0x140   : > { %1690 = vst [vmem:[#allocation1 + $0x1] ss:$4 sm:$0xff] %v3618_v58  ;;  %2051 = vmatpush.bf16.msra.mxu0 %v3149_v53  ;;  %2257 = vmatpush.bf16.msrb.mxu2 %v3166_v9  ;;  %v3185_v53 = vld [vmem:[%s3952_s7 + $0x4] ss:$0 sm:$0xff] }
 0x144   : > { %2258 = vmatpush.bf16.msrb.mxu2 %v3165_v5 }
 0x147   : > { %v1696_v63 = vld.sshfl [vmem:[#allocation1] sm:$0xff pattern:$0x73625140] }
 0x148   : > { %1754 = vmatmul.bf16.vlgmr.msrb.gmra.mxu1 %v1696_v63  ;;  %1799 = vst [vmem:[#allocation1] ss:$4 sm:$0xff] %v3692_v35  ;;  %v3157_v35 = vld [vmem:[%s3951_s6 + $0x1c0] sm:$0xff] }
 0x149   : > { %1801 = vst [vmem:[#allocation1 + $0x1] ss:$4 sm:$0xff] %v3717_v47  ;;  %2162 = vmatpush.bf16.msra.mxu1 %v3157_v35  ;;  %v3186_v35 = vld [vmem:[%s3952_s7 + $0x5] ss:$0 sm:$0xff] }
 0x14a   : > { %1803 = vst [vmem:[#allocation1 + $0x2] ss:$4 sm:$0xff] %v3739_v10 }
 0x14b   : > { %1806 = vst [vmem:[#allocation1 + $0x3] ss:$4 sm:$0xff] %v1781_v61 }
 0x152   : > { %v1807_v7 = vld.sshfl [vmem:[#allocation1] sm:$0xff pattern:$0x73625140] }
 0x153   : > { %1865 = vmatmul.bf16.vlgmr.msra.gmra.mxu2 %v1807_v7  ;;  %1895 = vst [vmem:[#allocation1] ss:$4 sm:$0xff] %v3815_v12 }
 0x154   : > { %1897 = vst [vmem:[#allocation1 + $0x1] ss:$4 sm:$0xff] %v3820_v11 }
 0x155   : > { %1899 = vst [vmem:[#allocation1 + $0x2] ss:$4 sm:$0xff] %v3826_v15 }
 0x156   : > { %1902 = vst [vmem:[#allocation1 + $0x3] ss:$4 sm:$0xff] %v1877_v23 }
 0x15d   : > { %v1903_v21 = vld.sshfl [vmem:[#allocation1] sm:$0xff pattern:$0x73625140] }
 0x15e   : > { %1961 = vmatmul.bf16.vlgmr.msra.gmra.mxu3 %v1903_v21  ;;  %1986 = vst [vmem:[#allocation1] ss:$4 sm:$0xff] %v3618_v58  ;;  %v3009_v58 = vrot.slane %v2063_v1, 9 }
 0x15f   : > { %1988 = vst [vmem:[#allocation1 + $0x1] ss:$4 sm:$0xff] %v3675_v20  ;;  %v2174_v20 = vrot.slane %v2066_v34, 7 }
 0x160   : > { %1990 = vst [vmem:[#allocation1 + $0x2] ss:$4 sm:$0xff] %v3808_v24 }
 0x161   : > { %1993 = vst [vmem:[#allocation1 + $0x3] ss:$4 sm:$0xff] %v1286_v6  ;;  %v2175_v24 = vsel %vm3797_vm5, %v3009_v58, %v2174_v20 }
 0x168   : > { %v1994_v12 = vld.sshfl [vmem:[#allocation1] sm:$0xff pattern:$0x73625140] }
 0x169   : > { %2052 = vmatmul.bf16.vlgmr.msra.gmra.mxu0 %v1994_v12  ;;  %2097 = vst [vmem:[#allocation1] ss:$4 sm:$0xff] %v3717_v47 }
 0x16a   : > { %2099 = vst [vmem:[#allocation1 + $0x1] ss:$4 sm:$0xff] %v3739_v10 }
 0x16b   : > { %2101 = vst [vmem:[#allocation1 + $0x2] ss:$4 sm:$0xff] %v1781_v61  ;;  %v3188_v61 = vld [vmem:[%s3952_s7 + $0x3] ss:$0 sm:$0xff] }
 0x16c   : > { %2104 = vst [vmem:[#allocation1 + $0x3] ss:$4 sm:$0xff] %v2079_v2 }
 0x173   : > { %v2105_v16 = vld.sshfl [vmem:[#allocation1] sm:$0xff pattern:$0x73625140] }
 0x174   : > { %2163 = vmatmul.bf16.vlgmr.msra.gmra.mxu1 %v2105_v16  ;;  %2193 = vst [vmem:[#allocation1] ss:$4 sm:$0xff] %v3820_v11 }
 0x175   : > { %2195 = vst [vmem:[#allocation1 + $0x1] ss:$4 sm:$0xff] %v3826_v15  ;;  %v1202_v47 = vpop.f32.mrf.mxu1 }
 0x176   : > { %2197 = vst [vmem:[#allocation1 + $0x2] ss:$4 sm:$0xff] %v1877_v23  ;;  %v1210_v14 = vmul.f32 %v3185_v53, %v1202_v47 }
 0x177   : > { %2200 = vst [vmem:[#allocation1 + $0x3] ss:$4 sm:$0xff] %v2175_v24 }
 0x178   : > { %v1215_v7 = vadd.f32 %v3186_v35, %v1210_v14 }
 0x17d   : > { %v1204_v10 = vpop.f32.mrf.mxu1 }
 0x17e   : > { %v2201_v8 = vld.sshfl [vmem:[#allocation1] sm:$0xff pattern:$0x73625140]  ;;  %v1211_v13 = vmul.f32 %v3185_v53, %v1204_v10 }
 0x17f   : > { %2259 = vmatmul.bf16.vlgmr.msrb.gmra.mxu2 %v2201_v8 }
 0x180   : > { %v1216_v21 = vadd.f32 %v3186_v35, %v1211_v13 }
 0x1aa   : > { %v1474_v27 = vpop.f32.mrf.mxu2 }
 0x1b2   : > { %v1476_v32 = vpop.f32.mrf.mxu2 }
 0x1b5   : > { %v1545_v29 = vpop.f32.mrf.mxu3 }
 0x1b6   : > { %v1546_v36 = vadd.f32 %v1545_v29, %v1474_v27 }
 0x1ba   : > { %v1664_v37 = vpop.f32.mrf.mxu0 }
 0x1bb   : > { %v1669_v43 = vadd.f32 %v1664_v37, %v1546_v36 }
 0x1bd   : > { %v1547_v39 = vpop.f32.mrf.mxu3 }
 0x1be   : > { %v1548_v15 = vadd.f32 %v1547_v39, %v1476_v32 }
 0x1c2   : > { %v1666_v41 = vpop.f32.mrf.mxu0 }
 0x1c3   : > { %v1670_v51 = vadd.f32 %v1666_v41, %v1548_v15 }
 0x1c5   : > { %v1755_v38 = vpop.f32.mrf.mxu1 }
 0x1c6   : > { %v1760_v44 = vadd.f32 %v1755_v38, %v1669_v43 }
 0x1cd   : > { %v1757_v42 = vpop.f32.mrf.mxu1 }
 0x1ce   : > { %v1761_v52 = vadd.f32 %v1757_v42, %v1670_v51 }
 0x1d6   : > { %v1866_v40 = vpop.f32.mrf.mxu2 }
 0x1d7   : > { %v1871_v45 = vadd.f32 %v1866_v40, %v1760_v44 }
 0x1de   : > { %v1868_v46 = vpop.f32.mrf.mxu2 }
 0x1df   : > { %v1872_v56 = vadd.f32 %v1868_v46, %v1761_v52 }
 0x1e1   : > { %v1962_v11 = vpop.f32.mrf.mxu3 }
 0x1e2   : > { %v1967_v49 = vadd.f32 %v1962_v11, %v1871_v45 }
 0x1e6   : > { %v2053_v48 = vpop.f32.mrf.mxu0 }
 0x1e7   : > { %v2058_v54 = vadd.f32 %v2053_v48, %v1967_v49 }
 0x1e9   : > { %v1964_v55 = vpop.f32.mrf.mxu3 }
 0x1ea   : > { %v1968_v63 = vadd.f32 %v1964_v55, %v1872_v56 }
 0x1ee   : > { %v2055_v3 = vpop.f32.mrf.mxu0 }
 0x1ef   : > { %v2059_v30 = vadd.f32 %v2055_v3, %v1968_v63 }
 0x1f1   : > { %v2164_v50 = vpop.f32.mrf.mxu1 }
 0x1f2   : > { %v2169_v57 = vadd.f32 %v2164_v50, %v2058_v54 }
 0x1f9   : > { %v2166_v6 = vpop.f32.mrf.mxu1 }
 0x1fa   : > { %v2170_v60 = vadd.f32 %v2166_v6, %v2059_v30 }
 0x202   : > { %v2260_v62 = vpop.f32.mrf.mxu2 }
 0x203   : > { %v2265_v0 = vadd.f32 %v2260_v62, %v2169_v57 }
 0x205   : > { %v2270_v4 = vmul.f32 %v3187_v59, %v2265_v0 }
 0x207   : > { %v2275_v31 = vadd.f32 %v3188_v61, %v2270_v4 }
 0x209   : > { %v2277_v23 = vmax.f32 %v2275_v31, 0.0 }
 0x20a   : > { %v2262_v1 = vpop.f32.mrf.mxu2 }
 0x20b   : > { %v2279_v9 = vadd.f32 %v2277_v23, %v1215_v7  ;;  %v2266_v5 = vadd.f32 %v2262_v1, %v2170_v60 }
 0x20d   : > { %v2283_v17 = vrot.slane %v2279_v9, 4  ;;  %v2287_v33 = vpack.c.bf16 %v2279_v9, %v2279_v9  ;;  %v2271_v34 = vmul.f32 %v3187_v59, %v2266_v5 }
 0x20f   : > { %v2288_v18 = vpack.c.bf16 %v2283_v17, %v2283_v17  ;;  %2291 = vst [vmem:[%s365_s26] sm:$0x3] %v2287_v33  ;;  %v2276_v19 = vadd.f32 %v3188_v61, %v2271_v34 }
 0x211   : > { %2292 = vst [vmem:[%s365_s26 + $0x2] sm:$0x3] %v2288_v18  ;;  %v2278_v22 = vmax.f32 %v2276_v19, 0.0 }
 0x213   : > { %v2280_v25 = vadd.f32 %v2278_v22, %v1216_v21 }
 0x215   : > { %v2284_v26 = vrot.slane %v2280_v25, 4  ;;  %v2289_v28 = vpack.c.bf16 %v2280_v25, %v2280_v25 }
 0x217   : > { %v2290_v12 = vpack.c.bf16 %v2284_v26, %v2284_v26  ;;  %2293 = vst [vmem:[%s365_s26 + $0x4] sm:$0x3] %v2289_v28 }
 0x219   : > { %2294 = vst [vmem:[%s365_s26 + $0x6] sm:$0x3] %v2290_v12 }
 0x21a PF: > { %s18_s27 = sadd.s32 1, %s3195_s27  }
 0x21b   : > { %p15_p4 = scmp.ge.s32.totalorder %s18_s27, 4  }
 0x21d   :  { %17 = sbr.rel (!%p15_p4) target bundleno = 1 (0x1), region = 170 }

// kernel: cnn_classifier_forward.7
= control target key start
LH: loop header
LB: loop body
LE: loop exit
PB: predicated region body
PF: predicated region fallthrough
CT: control target
= control target key end

     0   :  { %s10722_s0 = inlined_call_operand.vmem [shape: bf16[2,3,3,128], index: 0, kind: input, shape index: {}]   ;;  %s10723_s1 = inlined_call_operand.vmem [shape: bf16[2,3,3,128], index: 1, kind: input, shape index: {}]   ;;  %s10724_s2 = inlined_call_operand.vmem [shape: bf16[2,3,3,128], index: 2, kind: input, shape index: {}]   ;;  %s10725_s3 = inlined_call_operand.vmem [shape: bf16[2,3,3,128], index: 3, kind: input, shape index: {}]   ;;  %s10726_s4 = inlined_call_operand.vmem [shape: bf16[9,128,256], index: 4, kind: input, shape index: {}]   ;;  %s10727_s5 = inlined_call_operand.vmem [shape: bf16[128,256], index: 5, kind: input, shape index: {}]   ;;  %s10728_s6 = inlined_call_operand.vmem [shape: bf16[9,256,256], index: 6, kind: input, shape index: {}]   ;;  %s10729_s7 = inlined_call_operand.vmem [shape: f32[6,1,256], index: 7, kind: input, shape index: {}]   ;;  %s10730_s8 = inlined_call_operand.vmem [shape: f32[256,6], index: 8, kind: input, shape index: {}]   ;;  %s10731_s9 = inlined_call_operand.vmem [shape: f32[1,6], index: 9, kind: input, shape index: {}]   ;;  %s10732_s10 = inlined_call_operand.hbm [shape: f32[2,1,6], index: 10, kind: output, shape index: {}]  }
   0x1   :  { %10734 = sst [smem:[#allocation8_spill]] %s10722_s0 }
   0x2   :  { %10735 = sst [smem:[#allocation9_spill]] %s10723_s1 }
   0x3   :  { %10736 = sst [smem:[#allocation10_spill]] %s10724_s2 }
   0x4   :  { %15 = vsyncpa [#allocation4], 0 }
   0x5   :  { %17 = vsyncpa [#allocation4 + $0x1], 0  ;;  %s7400_s13 = smov 0   ;;  %s7402_s14 = smov 0  }
   0x6   :  { %s7404_s15 = smov 0   ;;  %s7406_s16 = smov 0  }
   0x7 LB: > { %10737 = sst [smem:[#allocation6_spill]] %s7338_s15  ;;  %s7421_s17 = sadd.s32 4294967295, %s7342_s16   ;;  %s7342_s16 = sphi %s7406_s16, %s10754_s16   ;;  %s7338_s15 = sphi %s7404_s15, %s10751_s15   ;;  %s7334_s14 = sphi %s7402_s14, %s10753_s14   ;;  %s7330_s13 = sphi %s7400_s13, %s10752_s13  }
   0x8   : > { %s4591_s18 = sadd.s32 4294967294, %s7342_s16   ;;  %s7425_s19 = sadd.s32 1, %s7342_s16  }
   0x9   : > { %s260_s20 = sadd.s32 1, %s7338_s15  ;;  %s257_s21 = ssub.s32 %s7342_s16, %s7425_s19 }
   0xa   : > { %p270_p0 = scmp.ne.s32.totalorder %s7338_s15, %s7334_s14  ;;  %p258_p1 = scmp.eq.s32.totalorder %s257_s21, 0 }
   0xb   : > { %p271_p2 = scmp.eq.s32.totalorder %s7421_s17, 1  ;;  %p276_p3 = scmp.ne.s32.totalorder %s7334_s14, %s7330_s13 }
   0xc   : > { %p277_p4 = scmp.eq.s32.totalorder %s4591_s18, 1  ;;  %p4594_p7 = scmp.ge.s32.totalorder %s7342_s16, 1 }
   0xd   : > { %s7436_s22 = scalar_select %p258_p1, %s7338_s15, %s260_s20  }
   0xe   : > { %p7438_p5 = por %p271_p2, %p270_p0  ;;  %p7442_p6 = por %p277_p4, %p276_p3 }
   0xf   : > { %10738 = sst [smem:[#allocation7_spill]] %s7436_s22  ;;  %p345_p8 = scmp.lt.s32.totalorder %s7342_s16, 3 }
  0x11   : > { %p346_p9 = pnand %p4594_p7, %p345_p8 }
  0x12   : > { %p397_p10 = scmp.lt.s32.totalorder (!%p346_p9), %s7421_s17, 1  ;;  %s10741_s1 = sld [smem:[#allocation9_spill]] (!%p346_p9) }
  0x13   : > { %349 = sbr.rel (%p346_p9) target bundleno = 885 (0x375), region = 60  ;;  %s10742_s0 = sld [smem:[#allocation8_spill]] (!%p346_p9) }
  0x14   : > { %s10745_s2 = sld [smem:[#allocation10_spill]] (!%p346_p9)  ;;  %s7300_s12 = scalar_lea.hbm (!%p346_p9), %s10732_s10, 2 }
  0x18   : > { %v4678_v0 = vld [vmem:[%s10726_s4 + $0xf0] sm:$0xf]  ;;  %v6822_v1 = vld [vmem:[%s10726_s4 + $0xf4] sm:$0xf0]  ;;  %v6821_v2 = vld [vmem:[%s10726_s4 + $0xf4] sm:$0xf] }
  0x19   : > { %v4679_v3 = vor.u32 %v6822_v1, %v4678_v0  ;;  %v4680_v4 = vld [vmem:[%s10726_s4 + $0xf8] sm:$0xf0]  ;;  %v4742_v5 = vld [vmem:[%s10726_s4 + $0x70] sm:$0xf]  ;;  %v6806_v6 = vld [vmem:[%s10726_s4 + $0x74] sm:$0xf0] }
  0x1a   : > { %v4683_v7 = vor.u32 %v6821_v2, %v4680_v4  ;;  %v4743_v8 = vor.u32 %v6806_v6, %v4742_v5  ;;  %v6805_v9 = vld [vmem:[%s10726_s4 + $0x74] sm:$0xf]  ;;  %v4744_v10 = vld [vmem:[%s10726_s4 + $0x78] sm:$0xf0]  ;;  %v4670_v11 = vld [vmem:[%s10726_s4 + $0xe0] sm:$0xf] }
  0x1b   : > { %559 = vmatpush.bf16.msra.mxu0 %v4679_v3  ;;  %v4747_v12 = vor.u32 %v6805_v9, %v4744_v10  ;;  %v6820_v13 = vld [vmem:[%s10726_s4 + $0xe4] sm:$0xf0]  ;;  %v6819_v14 = vld [vmem:[%s10726_s4 + $0xe4] sm:$0xf]  ;;  %v4672_v15 = vld [vmem:[%s10726_s4 + $0xe8] sm:$0xf0] }
  0x1c   : > { %572 = vmatpush.bf16.msra.mxu1 %v4683_v7  ;;  %672 = vmatpush.bf16.msra.mxu2 %v4743_v8  ;;  %v4671_v16 = vor.u32 %v6820_v13, %v4670_v11  ;;  %v4675_v17 = vor.u32 %v6819_v14, %v4672_v15  ;;  %v4734_v18 = vld [vmem:[%s10726_s4 + $0x60] sm:$0xf]  ;;  %v6804_v19 = vld [vmem:[%s10726_s4 + $0x64] sm:$0xf0]  ;;  %v6803_v20 = vld [vmem:[%s10726_s4 + $0x64] sm:$0xf] }
  0x1d   : > { %685 = vmatpush.bf16.msra.mxu3 %v4747_v12  ;;  %v4735_v21 = vor.u32 %v6804_v19, %v4734_v18  ;;  %v4736_v22 = vld [vmem:[%s10726_s4 + $0x68] sm:$0xf0]  ;;  %v4662_v23 = vld [vmem:[%s10726_s4 + $0xd0] sm:$0xf]  ;;  %v6818_v24 = vld [vmem:[%s10726_s4 + $0xd4] sm:$0xf0] }
  0x1e   : > { %v4739_v25 = vor.u32 %v6803_v20, %v4736_v22  ;;  %v6817_v26 = vld [vmem:[%s10726_s4 + $0xd4] sm:$0xf]  ;;  %v4664_v27 = vld [vmem:[%s10726_s4 + $0xd8] sm:$0xf0]  ;;  %v4726_v28 = vld [vmem:[%s10726_s4 + $0x50] sm:$0xf]  ;;  %v4663_v29 = vor.u32 %v6818_v24, %v4662_v23 }
  0x1f   : > { %560 = vmatpush.bf16.msra.mxu0 %v4671_v16  ;;  %v6802_v30 = vld [vmem:[%s10726_s4 + $0x54] sm:$0xf0]  ;;  %v6801_v31 = vld [vmem:[%s10726_s4 + $0x54] sm:$0xf]  ;;  %v4728_v32 = vld [vmem:[%s10726_s4 + $0x58] sm:$0xf0]  ;;  %v4667_v33 = vor.u32 %v6817_v26, %v4664_v27 }
  0x20   : > { %573 = vmatpush.bf16.msra.mxu1 %v4675_v17  ;;  %673 = vmatpush.bf16.msra.mxu2 %v4735_v21  ;;  %v4727_v34 = vor.u32 %v6802_v30, %v4726_v28  ;;  %v4654_v35 = vld [vmem:[%s10726_s4 + $0xc0] sm:$0xf]  ;;  %v6816_v36 = vld [vmem:[%s10726_s4 + $0xc4] sm:$0xf0]  ;;  %v6815_v37 = vld [vmem:[%s10726_s4 + $0xc4] sm:$0xf]  ;;  %v4731_v38 = vor.u32 %v6801_v31, %v4728_v32 }
  0x21   : > { %686 = vmatpush.bf16.msra.mxu3 %v4739_v25  ;;  %v4656_v39 = vld [vmem:[%s10726_s4 + $0xc8] sm:$0xf0]  ;;  %v4718_v40 = vld [vmem:[%s10726_s4 + $0x40] sm:$0xf]  ;;  %v6800_v41 = vld [vmem:[%s10726_s4 + $0x44] sm:$0xf0]  ;;  %v4655_v44 = vor.u32 %v6816_v36, %v4654_v35 }
  0x22   : > { %v6799_v42 = vld [vmem:[%s10726_s4 + $0x44] sm:$0xf]  ;;  %v4720_v43 = vld [vmem:[%s10726_s4 + $0x48] sm:$0xf0]  ;;  %v4659_v45 = vor.u32 %v6815_v37, %v4656_v39  ;;  %v4719_v46 = vor.u32 %v6800_v41, %v4718_v40  ;;  %v4646_v47 = vld [vmem:[%s10726_s4 + $0xb0] sm:$0xf] }
  0x23   : > { %561 = vmatpush.bf16.msra.mxu0 %v4663_v29  ;;  %v6814_v48 = vld [vmem:[%s10726_s4 + $0xb4] sm:$0xf0]  ;;  %v6813_v49 = vld [vmem:[%s10726_s4 + $0xb4] sm:$0xf]  ;;  %v4723_v50 = vor.u32 %v6799_v42, %v4720_v43  ;;  %v4648_v51 = vld [vmem:[%s10726_s4 + $0xb8] sm:$0xf0] }
  0x24   : > { %574 = vmatpush.bf16.msra.mxu1 %v4667_v33  ;;  %674 = vmatpush.bf16.msra.mxu2 %v4727_v34  ;;  %v4710_v52 = vld [vmem:[%s10726_s4 + $0x30] sm:$0xf]  ;;  %v6798_v53 = vld [vmem:[%s10726_s4 + $0x34] sm:$0xf0]  ;;  %v6797_v54 = vld [vmem:[%s10726_s4 + $0x34] sm:$0xf]  ;;  %v4647_v56 = vor.u32 %v6814_v48, %v4646_v47  ;;  %v4651_v57 = vor.u32 %v6813_v49, %v4648_v51 }
  0x25   : > { %687 = vmatpush.bf16.msra.mxu3 %v4731_v38  ;;  %v4712_v55 = vld [vmem:[%s10726_s4 + $0x38] sm:$0xf0]  ;;  %v4711_v58 = vor.u32 %v6798_v53, %v4710_v52  ;;  %v4638_v59 = vld [vmem:[%s10726_s4 + $0xa0] sm:$0xf]  ;;  %v6812_v60 = vld [vmem:[%s10726_s4 + $0xa4] sm:$0xf0] }
  0x26   : > { %v6811_v61 = vld [vmem:[%s10726_s4 + $0xa4] sm:$0xf]  ;;  %v4715_v62 = vor.u32 %v6797_v54, %v4712_v55  ;;  %v4640_v63 = vld [vmem:[%s10726_s4 + $0xa8] sm:$0xf0]  ;;  %v4702_v0 = vld [vmem:[%s10726_s4 + $0x20] sm:$0xf]  ;;  %v4639_v4 = vor.u32 %v6812_v60, %v4638_v59 }
  0x27   : > { %562 = vmatpush.bf16.msra.mxu0 %v4655_v44  ;;  %v6796_v1 = vld [vmem:[%s10726_s4 + $0x24] sm:$0xf0]  ;;  %v6795_v2 = vld [vmem:[%s10726_s4 + $0x24] sm:$0xf]  ;;  %v4704_v3 = vld [vmem:[%s10726_s4 + $0x28] sm:$0xf0]  ;;  %v4643_v5 = vor.u32 %v6811_v61, %v4640_v63 }
  0x28   : > { %575 = vmatpush.bf16.msra.mxu1 %v4659_v45  ;;  %675 = vmatpush.bf16.msra.mxu2 %v4719_v46  ;;  %v4703_v6 = vor.u32 %v6796_v1, %v4702_v0  ;;  %v4630_v7 = vld [vmem:[%s10726_s4 + $0x90] sm:$0xf]  ;;  %v6810_v8 = vld [vmem:[%s10726_s4 + $0x94] sm:$0xf0]  ;;  %v6809_v9 = vld [vmem:[%s10726_s4 + $0x94] sm:$0xf]  ;;  %v4707_v10 = vor.u32 %v6795_v2, %v4704_v3 }
  0x29   : > { %688 = vmatpush.bf16.msra.mxu3 %v4723_v50  ;;  %v4632_v11 = vld [vmem:[%s10726_s4 + $0x98] sm:$0xf0]  ;;  %v4694_v12 = vld [vmem:[%s10726_s4 + $0x10] sm:$0xf]  ;;  %v6794_v13 = vld [vmem:[%s10726_s4 + $0x14] sm:$0xf0]  ;;  %v4631_v16 = vor.u32 %v6810_v8, %v4630_v7 }
  0x2a   : > { %v6793_v14 = vld [vmem:[%s10726_s4 + $0x14] sm:$0xf]  ;;  %v4696_v15 = vld [vmem:[%s10726_s4 + $0x18] sm:$0xf0]  ;;  %v4622_v17 = vld [vmem:[%s10726_s4 + $0x80] sm:$0xf]  ;;  %v4635_v19 = vor.u32 %v6809_v9, %v4632_v11  ;;  %v4695_v20 = vor.u32 %v6794_v13, %v4694_v12 }
  0x2b   : > { %563 = vmatpush.bf16.msra.mxu0 %v4647_v56  ;;  %v6808_v18 = vld [vmem:[%s10726_s4 + $0x84] sm:$0xf0]  ;;  %v6807_v21 = vld [vmem:[%s10726_s4 + $0x84] sm:$0xf]  ;;  %v4624_v22 = vld [vmem:[%s10726_s4 + $0x88] sm:$0xf0]  ;;  %v4699_v24 = vor.u32 %v6793_v14, %v4696_v15 }
  0x2c   : > { %576 = vmatpush.bf16.msra.mxu1 %v4651_v57  ;;  %676 = vmatpush.bf16.msra.mxu2 %v4711_v58  ;;  %v4686_v23 = vld [vmem:[%s10726_s4] sm:$0xf]  ;;  %v6792_v25 = vld [vmem:[%s10726_s4 + $0x4] sm:$0xf0]  ;;  %v6791_v26 = vld [vmem:[%s10726_s4 + $0x4] sm:$0xf]  ;;  %v4623_v31 = vor.u32 %v6808_v18, %v4622_v17  ;;  %v4627_v35 = vor.u32 %v6807_v21, %v4624_v22 }
  0x2d   : > { %689 = vmatpush.bf16.msra.mxu3 %v4715_v62  ;;  %v4688_v27 = vld [vmem:[%s10726_s4 + $0x8] sm:$0xf0]  ;;  %v4824_v28 = vld [vmem:[%s10726_s4 + $0x170] sm:$0xf]  ;;  %v6838_v29 = vld [vmem:[%s10726_s4 + $0x174] sm:$0xf0]  ;;  %v4687_v36 = vor.u32 %v6792_v25, %v4686_v23 }
  0x2e   : > { %v6837_v30 = vld [vmem:[%s10726_s4 + $0x174] sm:$0xf]  ;;  %v4826_v32 = vld [vmem:[%s10726_s4 + $0x178] sm:$0xf0]  ;;  %v4904_v33 = vld [vmem:[%s10726_s4 + $0x1f0] sm:$0xf]  ;;  %v4691_v39 = vor.u32 %v6791_v26, %v4688_v27  ;;  %v4825_v40 = vor.u32 %v6838_v29, %v4824_v28 }
  0x2f   : > { %564 = vmatpush.bf16.msra.mxu0 %v4639_v4  ;;  %v6854_v34 = vld [vmem:[%s10726_s4 + $0x1f4] sm:$0xf0]  ;;  %v6853_v37 = vld [vmem:[%s10726_s4 + $0x1f4] sm:$0xf]  ;;  %v4906_v38 = vld [vmem:[%s10726_s4 + $0x1f8] sm:$0xf0]  ;;  %v4829_v41 = vor.u32 %v6837_v30, %v4826_v32 }
  0x30   : > { %577 = vmatpush.bf16.msra.mxu1 %v4643_v5  ;;  %677 = vmatpush.bf16.msra.mxu2 %v4703_v6  ;;  %v4905_v42 = vor.u32 %v6854_v34, %v4904_v33  ;;  %v4816_v43 = vld [vmem:[%s10726_s4 + $0x160] sm:$0xf]  ;;  %v6836_v44 = vld [vmem:[%s10726_s4 + $0x164] sm:$0xf0]  ;;  %v6835_v45 = vld [vmem:[%s10726_s4 + $0x164] sm:$0xf]  ;;  %v4909_v46 = vor.u32 %v6853_v37, %v4906_v38 }
  0x31   : > { %690 = vmatpush.bf16.msra.mxu3 %v4707_v10  ;;  %v4818_v47 = vld [vmem:[%s10726_s4 + $0x168] sm:$0xf0]  ;;  %v4896_v48 = vld [vmem:[%s10726_s4 + $0x1e0] sm:$0xf]  ;;  %v6852_v49 = vld [vmem:[%s10726_s4 + $0x1e4] sm:$0xf0]  ;;  %v4817_v52 = vor.u32 %v6836_v44, %v4816_v43 }
  0x32   : > { %v6851_v50 = vld [vmem:[%s10726_s4 + $0x1e4] sm:$0xf]  ;;  %v4898_v51 = vld [vmem:[%s10726_s4 + $0x1e8] sm:$0xf0]  ;;  %v4808_v53 = vld [vmem:[%s10726_s4 + $0x150] sm:$0xf]  ;;  %v4821_v55 = vor.u32 %v6835_v45, %v4818_v47  ;;  %v4897_v56 = vor.u32 %v6852_v49, %v4896_v48 }
  0x33   : > { %565 = vmatpush.bf16.msra.mxu0 %v4631_v16  ;;  %v6834_v54 = vld [vmem:[%s10726_s4 + $0x154] sm:$0xf0]  ;;  %v6833_v57 = vld [vmem:[%s10726_s4 + $0x154] sm:$0xf]  ;;  %v4810_v58 = vld [vmem:[%s10726_s4 + $0x158] sm:$0xf0]  ;;  %v4901_v59 = vor.u32 %v6851_v50, %v4898_v51 }
  0x34   : > { %578 = vmatpush.bf16.msra.mxu1 %v4635_v19  ;;  %678 = vmatpush.bf16.msra.mxu2 %v4695_v20  ;;  %s398_s21 = scalar_select %p397_p10, %s7421_s17, 1  ;;  %v4888_v60 = vld [vmem:[%s10726_s4 + $0x1d0] sm:$0xf]  ;;  %v6850_v61 = vld [vmem:[%s10726_s4 + $0x1d4] sm:$0xf0]  ;;  %v4809_v1 = vor.u32 %v6834_v54, %v4808_v53  ;;  %v4813_v5 = vor.u32 %v6833_v57, %v4810_v58  ;;  %vm706_vm0 = vcmask 1040384  }
  0x35   : > { %691 = vmatpush.bf16.msra.mxu3 %v4699_v24  ;;  %v6849_v62 = vld [vmem:[%s10726_s4 + $0x1d4] sm:$0xf]  ;;  %v4890_v63 = vld [vmem:[%s10726_s4 + $0x1d8] sm:$0xf0]  ;;  %v4800_v0 = vld [vmem:[%s10726_s4 + $0x140] sm:$0xf]  ;;  %v4889_v6 = vor.u32 %v6850_v61, %v4888_v60 }
  0x36   : > { %s7717_s20 = smul.u32 6, %s398_s21  ;;  %v6832_v2 = vld [vmem:[%s10726_s4 + $0x144] sm:$0xf0]  ;;  %v6831_v3 = vld [vmem:[%s10726_s4 + $0x144] sm:$0xf]  ;;  %v4893_v10 = vor.u32 %v6849_v62, %v4890_v63  ;;  %vm709_vm1 = vcmask 1042434  }
  0x37   : > { %566 = vmatpush.bf16.msra.mxu0 %v4623_v31  ;;  %v4802_v4 = vld [vmem:[%s10726_s4 + $0x148] sm:$0xf0]  ;;  %v4880_v7 = vld [vmem:[%s10726_s4 + $0x1c0] sm:$0xf]  ;;  %v6848_v8 = vld [vmem:[%s10726_s4 + $0x1c4] sm:$0xf0]  ;;  %v4801_v16 = vor.u32 %v6832_v2, %v4800_v0 }
  0x38   : > { %579 = vmatpush.bf16.msra.mxu1 %v4627_v35  ;;  %679 = vmatpush.bf16.msra.mxu2 %v4687_v36  ;;  %v6847_v9 = vld [vmem:[%s10726_s4 + $0x1c4] sm:$0xf]  ;;  %s7741_s28 = scalar_lea.vmem %s10741_s1, %s7717_s20  ;;  %v4882_v11 = vld [vmem:[%s10726_s4 + $0x1c8] sm:$0xf0]  ;;  %v4792_v14 = vld [vmem:[%s10726_s4 + $0x130] sm:$0xf]  ;;  %v4805_v21 = vor.u32 %v6831_v3, %v4802_v4  ;;  %v4881_v22 = vor.u32 %v6848_v8, %v4880_v7  ;;  %s7773_s18 = scalar_lea.vmem %s10742_s0, %s7717_s20 }
  0x39   : > { %692 = vmatpush.bf16.msra.mxu3 %v4691_v39  ;;  %v421_v12 = vld [vmem:[%s7741_s28] sm:$0x3]  ;;  %v7748_v13 = vld [vmem:[%s7741_s28 + $0x2] sm:$0x3]  ;;  %v6830_v15 = vld [vmem:[%s10726_s4 + $0x134] sm:$0xf0]  ;;  %v4885_v25 = vor.u32 %v6847_v9, %v4882_v11  ;;  %s411_s0 = scalar_lea.vmem %s10745_s2, %s7717_s20  ;;  %s416_s21 = scalar_lea.vmem %s10725_s3, %s7717_s20 }
  0x3a   : > { %473 = vst [vmem:[#allocation1] ss:$9 sm:$0xff] %v421_v12  ;;  %v6829_v17 = vld [vmem:[%s10726_s4 + $0x134] sm:$0xf]  ;;  %v4794_v18 = vld [vmem:[%s10726_s4 + $0x138] sm:$0xf0]  ;;  %v4793_v33 = vor.u32 %v6830_v15, %v4792_v14 }
  0x3b   : > { %869 = vmatpush.bf16.msrb.mxu0 %v4825_v40  ;;  %476 = vst [vmem:[#allocation1 + $0x1] ss:$9 sm:$0xff] %v7748_v13  ;;  %v4872_v19 = vld [vmem:[%s10726_s4 + $0x1b0] sm:$0xf]  ;;  %v6846_v20 = vld [vmem:[%s10726_s4 + $0x1b4] sm:$0xf0]  ;;  %v4797_v37 = vor.u32 %v6829_v17, %v4794_v18 }
  0x3c   : > { %882 = vmatpush.bf16.msrb.mxu1 %v4829_v41  ;;  %1001 = vmatpush.bf16.msrb.mxu2 %v4905_v42  ;;  %v6845_v23 = vld [vmem:[%s10726_s4 + $0x1b4] sm:$0xf]  ;;  %v4874_v24 = vld [vmem:[%s10726_s4 + $0x1b8] sm:$0xf0]  ;;  %v7784_v26 = vld [vmem:[%s10726_s4 + $0x120] sm:$0xf]  ;;  %v4873_v38 = vor.u32 %v6846_v20, %v4872_v19 }
  0x3d   : > { %1014 = vmatpush.bf16.msrb.mxu3 %v4909_v46  ;;  %v6828_v27 = vld [vmem:[%s10726_s4 + $0x124] sm:$0xf0]  ;;  %v7792_v28 = vld [vmem:[%s10726_s4 + $0x124] sm:$0xf]  ;;  %v7797_v29 = vld [vmem:[%s10726_s4 + $0x128] sm:$0xf0]  ;;  %v4877_v39 = vor.u32 %v6845_v23, %v4874_v24 }
  0x3e   : > { %v7802_v30 = vld [vmem:[%s10726_s4 + $0x1a0] sm:$0xf]  ;;  %v7807_v31 = vld [vmem:[%s10726_s4 + $0x1a4] sm:$0xf0]  ;;  %v7813_v34 = vld [vmem:[%s10726_s4 + $0x1a4] sm:$0xf]  ;;  %v4785_v42 = vor.u32 %v6828_v27, %v7784_v26  ;;  %v4789_v43 = vor.u32 %v7792_v28, %v7797_v29 }
  0x3f   : > { %870 = vmatpush.bf16.msrb.mxu0 %v4817_v52  ;;  %v418_v32 = vld [vmem:[%s7773_s18] sm:$0x3]  ;;  %v7818_v35 = vld [vmem:[%s10726_s4 + $0x1a8] sm:$0xf0]  ;;  %v7821_v36 = vld [vmem:[%s7773_s18 + $0x2] sm:$0x3]  ;;  %v4865_v44 = vor.u32 %v7807_v31, %v7802_v30 }
  0x40   : > { %883 = vmatpush.bf16.msrb.mxu1 %v4821_v55  ;;  %1002 = vmatpush.bf16.msrb.mxu2 %v4897_v56  ;;  %v7826_v40 = vld [vmem:[%s10726_s4 + $0x110] sm:$0xf]  ;;  %v7831_v41 = vld [vmem:[%s10726_s4 + $0x114] sm:$0xf0]  ;;  %v7841_v45 = vld [vmem:[%s10726_s4 + $0x114] sm:$0xf]  ;;  %v4869_v47 = vor.u32 %v7813_v34, %v7818_v35 }
  0x41   : > { %1015 = vmatpush.bf16.msrb.mxu3 %v4901_v59  ;;  %vm713_vm2 = vcmask 1041408   ;;  %v7848_v48 = vld [vmem:[%s10726_s4 + $0x118] sm:$0xf0]  ;;  %v700_v49 = vrot.slane %v418_v32, 1  ;;  %v701_v50 = vrot.slane %v418_v32, 2  ;;  %v702_v51 = vrot.slane %v418_v32, 3 }
  0x42   : > { %v477_v46 = vld [vmem:[#allocation1] sm:$0xff]  ;;  %v4777_v52 = vor.u32 %v7831_v41, %v7826_v40  ;;  %v703_v53 = vrot.slane %v7821_v36, 1  ;;  %v704_v54 = vrot.slane %v7821_v36, 2  ;;  %v705_v55 = vrot.slane %v7821_v36, 3  ;;  %v7859_v56 = vld [vmem:[%s10726_s4 + $0x190] sm:$0xf] }
  0x43   : > { %871 = vmatpush.bf16.msrb.mxu0 %v4809_v1  ;;  %580 = vmatmul.bf16.vlgmr.msra.gmra.mxu1 %v477_v46  ;;  %586 = vst [vmem:[#allocation1] ss:$9 sm:$0xff] %v418_v32  ;;  %v7864_v57 = vld [vmem:[%s10726_s4 + $0x194] sm:$0xf0]  ;;  %v708_v58 = vsel %vm706_vm0, %v418_v32, %v700_v49  ;;  %v712_v59 = vsel %vm709_vm1, %v701_v50, %v702_v51  ;;  %vm715_vm3 = vcmask 1041409   ;;  %vm717_vm4 = vcmask 1043459  }
  0x44   : > { %884 = vmatpush.bf16.msrb.mxu1 %v4813_v5  ;;  %1003 = vmatpush.bf16.msrb.mxu2 %v4889_v6  ;;  %589 = vst [vmem:[#allocation1 + $0x1] ss:$9 sm:$0xff] %v7821_v36  ;;  %v4781_v60 = vor.u32 %v7841_v45, %v7848_v48  ;;  %v7873_v61 = vld [vmem:[%s10726_s4 + $0x194] sm:$0xf]  ;;  %v7878_v62 = vld [vmem:[%s10726_s4 + $0x198] sm:$0xf0]  ;;  %v716_v63 = vsel %vm715_vm3, %v418_v32, %v700_v49 }
  0x45   : > { %1016 = vmatpush.bf16.msrb.mxu3 %v4893_v10  ;;  %567 = vmatmul.bf16.vlgmr.msra.gmra.mxu0 %v477_v46  ;;  %v718_v0 = vsel %vm717_vm4, %v701_v50, %v702_v51  ;;  %vm719_vm5 = vcmask 1042433   ;;  %v7885_v1 = vld [vmem:[%s10726_s4 + $0x100] sm:$0xf]  ;;  %v7890_v2 = vld [vmem:[%s10726_s4 + $0x104] sm:$0xf0]  ;;  %v724_v5 = vsel %vm706_vm0, %v7821_v36, %v703_v53  ;;  %v727_v6 = vsel %vm709_vm1, %v704_v54, %v705_v55 }
  0x46   : > { %v7895_v3 = vld [vmem:[%s10726_s4 + $0x270] sm:$0xf]  ;;  %v720_v4 = vsel %vm719_vm5, %v716_v63, %v718_v0  ;;  %v729_v7 = vsel %vm715_vm3, %v7821_v36, %v703_v53  ;;  %v7906_v8 = vld [vmem:[%s10726_s4 + $0x274] sm:$0xf0]  ;;  %v7909_v9 = vsel %vm713_vm2, %v708_v58, %v712_v59  ;;  %v730_v11 = vsel %vm717_vm4, %v704_v54, %v705_v55  ;;  %v7915_v12 = vld [vmem:[%s10726_s4 + $0x104] sm:$0xf] }
  0x47   : > { %872 = vmatpush.bf16.msrb.mxu0 %v4801_v16  ;;  %v722_v10 = vrot.slane %v720_v4, 1  ;;  %vm734_vm6 = vsmask.f32 256  ;;  %v7920_v14 = vld [vmem:[%s10726_s4 + $0x108] sm:$0xf0]  ;;  %v731_v17 = vsel %vm719_vm5, %v729_v7, %v730_v11  ;;  %v4857_v18 = vor.u32 %v7864_v57, %v7859_v56 }
  0x48   : > { %885 = vmatpush.bf16.msrb.mxu1 %v4805_v21  ;;  %1004 = vmatpush.bf16.msrb.mxu2 %v4881_v22  ;;  %v7925_v15 = vld [vmem:[%s10726_s4 + $0x180] sm:$0xf]  ;;  %v6840_v16 = vld [vmem:[%s10726_s4 + $0x184] sm:$0xf0]  ;;  %vm735_vm7 = vsmask.f32 1284  ;;  %v728_v23 = vsel %vm713_vm2, %v724_v5, %v727_v6  ;;  %v4769_v30 = vor.u32 %v7890_v2, %v7885_v1  ;;  %v4985_v31 = vor.u32 %v7906_v8, %v7895_v3 }
  0x49   : > { %1017 = vmatpush.bf16.msrb.mxu3 %v4885_v25  ;;  %vm737_vm8 = vsmask.f32 2312  ;;  %vm739_vm9 = vsmask.f32 3340  ;;  %v6839_v19 = vld [vmem:[%s10726_s4 + $0x184] sm:$0xf]  ;;  %vm736_vm10 = vmor %vm734_vm6, %vm735_vm7  ;;  %v4861_v25 = vor.u32 %v7873_v61, %v7878_v62 }
  0x4a   : > { %v4850_v20 = vld [vmem:[%s10726_s4 + $0x188] sm:$0xf0]  ;;  %v6869_v21 = vld [vmem:[%s10726_s4 + $0x274] sm:$0xf]  ;;  %v4986_v22 = vld [vmem:[%s10726_s4 + $0x278] sm:$0xf0] }
  0x4b   : > { %873 = vmatpush.bf16.msrb.mxu0 %v4793_v33  ;;  %v733_v24 = vrot.slane %v731_v17, 1  ;;  %vm741_vm11 = vsmask.f32 4368  ;;  %v5066_v26 = vld [vmem:[%s10726_s4 + $0x2f0] sm:$0xf]  ;;  %vm738_vm12 = vmor %vm736_vm10, %vm737_vm8  ;;  %v590_v29 = vld [vmem:[#allocation1] sm:$0xff] }
  0x4c   : > { %886 = vmatpush.bf16.msrb.mxu1 %v4797_v37  ;;  %1005 = vmatpush.bf16.msrb.mxu2 %v4873_v38  ;;  %v6886_v27 = vld [vmem:[%s10726_s4 + $0x2f4] sm:$0xf0]  ;;  %v6885_v28 = vld [vmem:[%s10726_s4 + $0x2f4] sm:$0xf]  ;;  %vm743_vm13 = vsmask.f32 5396  ;;  %vm740_vm14 = vmor %vm738_vm12, %vm739_vm9  ;;  %v4773_v38 = vor.u32 %v7915_v12, %v7920_v14 }
  0x4d   : > { %1018 = vmatpush.bf16.msrb.mxu3 %v4877_v39  ;;  %v5068_v32 = vld [vmem:[%s10726_s4 + $0x2f8] sm:$0xf0]  ;;  %vm745_vm15 = vsmask.f32 6424  ;;  %v749_v33 = vshrl.u32 %v7909_v9, 16  ;;  %680 = vmatmul.bf16.vlgmr.msra.gmra.mxu2 %v590_v29  ;;  %vm742_vm6 = vmor %vm740_vm14, %vm741_vm11  ;;  %v754_v34 = vshll.u32 %v722_v10, 16  ;;  %v4849_v39 = vor.u32 %v6840_v16, %v7925_v15 }
  0x4e   : > { %693 = vmatmul.bf16.vlgmr.msra.gmra.mxu3 %v590_v29  ;;  %vm747_vm7 = vsmask.f32 7452  ;;  %v757_v35 = vshrl.u32 %v728_v23, 16  ;;  %v762_v37 = vshll.u32 %v733_v24, 16  ;;  %vm744_vm8 = vmor %vm742_vm6, %vm743_vm13  ;;  %v4976_v40 = vld [vmem:[%s10726_s4 + $0x260] sm:$0xf]  ;;  %v5067_v45 = vor.u32 %v6886_v27, %v5066_v26 }
  0x4f   : > { %874 = vmatpush.bf16.msrb.mxu0 %v4785_v42  ;;  %v6868_v41 = vld [vmem:[%s10726_s4 + $0x264] sm:$0xf0]  ;;  %v4853_v42 = vor.u32 %v6839_v19, %v4850_v20  ;;  %vm746_vm9 = vmor %vm744_vm8, %vm745_vm15  ;;  %v5071_v46 = vor.u32 %v6885_v28, %v5068_v32  ;;  %v4978_v48 = vld [vmem:[%s10726_s4 + $0x268] sm:$0xf0]  ;;  %vm1920_vm11 = vcmask 1043458  }
  0x50   : > { %887 = vmatpush.bf16.msrb.mxu1 %v4789_v43  ;;  %1006 = vmatpush.bf16.msrb.mxu2 %v4865_v44  ;;  %v4989_v43 = vor.u32 %v6869_v21, %v4986_v22  ;;  %v6867_v44 = vld [vmem:[%s10726_s4 + $0x264] sm:$0xf]  ;;  %vm7984_vm10 = vmor %vm746_vm9, %vm747_vm7  ;;  %v5058_v49 = vld [vmem:[%s10726_s4 + $0x2e0] sm:$0xf]  ;;  %vm1962_vm12 = vsmask.f32 1282 }
  0x51   : > { %1019 = vmatpush.bf16.msrb.mxu3 %v4869_v47  ;;  %v756_v50 = vsel %vm7984_vm10, %v749_v33, %v754_v34  ;;  %v7998_v51 = vsel %vm7984_vm10, %v757_v35, %v762_v37  ;;  %v6884_v53 = vld [vmem:[%s10726_s4 + $0x2e4] sm:$0xf0]  ;;  %v6883_v54 = vld [vmem:[%s10726_s4 + $0x2e4] sm:$0xf]  ;;  %v5060_v55 = vld [vmem:[%s10726_s4 + $0x2e8] sm:$0xf0]  ;;  %v4981_v58 = vor.u32 %v6867_v44, %v4978_v48 }
  0x52   : > { %783 = vst [vmem:[#allocation1] ss:$9 sm:$0xff] %v756_v50  ;;  %v4968_v56 = vld [vmem:[%s10726_s4 + $0x250] sm:$0xf]  ;;  %v6866_v57 = vld [vmem:[%s10726_s4 + $0x254] sm:$0xf0]  ;;  %v5059_v59 = vor.u32 %v6884_v53, %v5058_v49  ;;  %vm8946_vm14 = vmand %vm713_vm2, %vm1962_vm12 }
  0x53   : > { %875 = vmatpush.bf16.msrb.mxu0 %v4777_v52  ;;  %v4977_v52 = vor.u32 %v6868_v41, %v4976_v40  ;;  %786 = vst [vmem:[#allocation1 + $0x1] ss:$9 sm:$0xff] %v7998_v51  ;;  %v6865_v61 = vld [vmem:[%s10726_s4 + $0x254] sm:$0xf]  ;;  %v4970_v62 = vld [vmem:[%s10726_s4 + $0x258] sm:$0xf0]  ;;  %v4969_v63 = vor.u32 %v6866_v57, %v4968_v56 }
  0x54   : > { %888 = vmatpush.bf16.msrb.mxu1 %v4781_v60  ;;  %1007 = vmatpush.bf16.msrb.mxu2 %v4857_v18  ;;  %v5063_v60 = vor.u32 %v6883_v54, %v5060_v55  ;;  %v5050_v0 = vld [vmem:[%s10726_s4 + $0x2d0] sm:$0xf]  ;;  %v6882_v1 = vld [vmem:[%s10726_s4 + $0x2d4] sm:$0xf0]  ;;  %v6881_v2 = vld [vmem:[%s10726_s4 + $0x2d4] sm:$0xf]  ;;  %v4973_v8 = vor.u32 %v6865_v61, %v4970_v62 }
  0x55   : > { %1020 = vmatpush.bf16.msrb.mxu3 %v4861_v25  ;;  %v5052_v3 = vld [vmem:[%s10726_s4 + $0x2d8] sm:$0xf0]  ;;  %v4960_v4 = vld [vmem:[%s10726_s4 + $0x240] sm:$0xf]  ;;  %v6864_v5 = vld [vmem:[%s10726_s4 + $0x244] sm:$0xf0]  ;;  %v5051_v9 = vor.u32 %v6882_v1, %v5050_v0 }
  0x56   : > { %v424_v6 = vld [vmem:[%s411_s0] sm:$0x3]  ;;  %v8044_v7 = vld [vmem:[%s411_s0 + $0x2] sm:$0x3]  ;;  %v6863_v10 = vld [vmem:[%s10726_s4 + $0x244] sm:$0xf]  ;;  %v5055_v14 = vor.u32 %v6881_v2, %v5052_v3  ;;  %v4961_v15 = vor.u32 %v6864_v5, %v4960_v4  ;;  %s4496_s0 = scalar_lea.hbm %s10732_s10, %s7421_s17 }
  0x57   : > { %876 = vmatpush.bf16.msrb.mxu0 %v4769_v30  ;;  %v4962_v11 = vld [vmem:[%s10726_s4 + $0x248] sm:$0xf0]  ;;  %v5042_v12 = vld [vmem:[%s10726_s4 + $0x2c0] sm:$0xf]  ;;  %v6880_v16 = vld [vmem:[%s10726_s4 + $0x2c4] sm:$0xf0] }
  0x58   : > { %889 = vmatpush.bf16.msrb.mxu1 %v4773_v38  ;;  %1008 = vmatpush.bf16.msrb.mxu2 %v4849_v39  ;;  %v6879_v17 = vld [vmem:[%s10726_s4 + $0x2c4] sm:$0xf]  ;;  %v5044_v18 = vld [vmem:[%s10726_s4 + $0x2c8] sm:$0xf0]  ;;  %v4952_v20 = vld [vmem:[%s10726_s4 + $0x230] sm:$0xf]  ;;  %v4965_v25 = vor.u32 %v6863_v10, %v4962_v11  ;;  %v5043_v26 = vor.u32 %v6880_v16, %v5042_v12 }
  0x59   : > { %1021 = vmatpush.bf16.msrb.mxu3 %v4853_v42  ;;  %v6862_v21 = vld [vmem:[%s10726_s4 + $0x234] sm:$0xf0]  ;;  %v1163_v22 = vrot.slane %v424_v6, 1  ;;  %v1164_v23 = vrot.slane %v424_v6, 2  ;;  %v1165_v24 = vrot.slane %v424_v6, 3  ;;  %v5047_v27 = vor.u32 %v6879_v17, %v5044_v18  ;;  %s4500_s29 = sshll.u32 %s4496_s0, 4  ;;  %s4501_s29 = int_to_ptr.hbm [resolvable:$true] %s4500_s29 }
  0x5a   : > { %v787_v19 = vld [vmem:[#allocation1] sm:$0xff]  ;;  %v4953_v28 = vor.u32 %v6862_v21, %v4952_v20  ;;  %v6861_v29 = vld [vmem:[%s10726_s4 + $0x234] sm:$0xf]  ;;  %v4954_v30 = vld [vmem:[%s10726_s4 + $0x238] sm:$0xf0]  ;;  %v1167_v4 = vrot.slane %v8044_v7, 2 }
  0x5b   : > { %1133 = vmatpush.bf16.msra.mxu0 %v4985_v31  ;;  %890 = vmatmul.bf16.vlgmr.msrb.gmra.mxu1 %v787_v19  ;;  %915 = vst [vmem:[#allocation1] ss:$9 sm:$0xff] %v424_v6  ;;  %v5034_v31 = vld [vmem:[%s10726_s4 + $0x2b0] sm:$0xf]  ;;  %v6878_v32 = vld [vmem:[%s10726_s4 + $0x2b4] sm:$0xf0]  ;;  %v1175_v38 = vsel %vm715_vm3, %v424_v6, %v1163_v22  ;;  %v1176_v39 = vsel %vm717_vm4, %v1164_v23, %v1165_v24 }
  0x5c   : > { %1146 = vmatpush.bf16.msra.mxu1 %v4989_v43  ;;  %1311 = vmatpush.bf16.msra.mxu2 %v5067_v45  ;;  %918 = vst [vmem:[#allocation1 + $0x1] ss:$9 sm:$0xff] %v8044_v7  ;;  %v6877_v33 = vld [vmem:[%s10726_s4 + $0x2b4] sm:$0xf]  ;;  %v5036_v34 = vld [vmem:[%s10726_s4 + $0x2b8] sm:$0xf0]  ;;  %v1170_v43 = vsel %vm706_vm0, %v424_v6, %v1163_v22  ;;  %v1173_v44 = vsel %vm709_vm1, %v1164_v23, %v1165_v24 }
  0x5d   : > { %1324 = vmatpush.bf16.msra.mxu3 %v5071_v46  ;;  %877 = vmatmul.bf16.vlgmr.msrb.gmra.mxu0 %v787_v19  ;;  %v4944_v35 = vld [vmem:[%s10726_s4 + $0x220] sm:$0xf]  ;;  %v6860_v37 = vld [vmem:[%s10726_s4 + $0x224] sm:$0xf0]  ;;  %v6859_v40 = vld [vmem:[%s10726_s4 + $0x224] sm:$0xf]  ;;  %v4957_v45 = vor.u32 %v6861_v29, %v4954_v30  ;;  %v5035_v46 = vor.u32 %v6878_v32, %v5034_v31  ;;  %v1177_v55 = vsel %vm719_vm5, %v1175_v38, %v1176_v39 }
  0x5e   : > { %v4946_v41 = vld [vmem:[%s10726_s4 + $0x228] sm:$0xf0]  ;;  %v5026_v42 = vld [vmem:[%s10726_s4 + $0x2a0] sm:$0xf]  ;;  %v6876_v48 = vld [vmem:[%s10726_s4 + $0x2a4] sm:$0xf0]  ;;  %v4945_v53 = vor.u32 %v6860_v37, %v4944_v35  ;;  %v1174_v61 = vsel %vm713_vm2, %v1170_v43, %v1173_v44 }
  0x5f   : > { %1134 = vmatpush.bf16.msra.mxu0 %v4977_v52  ;;  %v6875_v49 = vld [vmem:[%s10726_s4 + $0x2a4] sm:$0xf]  ;;  %v5028_v50 = vld [vmem:[%s10726_s4 + $0x2a8] sm:$0xf0]  ;;  %v5039_v52 = vor.u32 %v6877_v33, %v5036_v34  ;;  %v4936_v54 = vld [vmem:[%s10726_s4 + $0x210] sm:$0xf]  ;;  %v4949_v57 = vor.u32 %v6859_v40, %v4946_v41  ;;  %v5027_v62 = vor.u32 %v6876_v48, %v5026_v42 }
  0x60   : > { %1147 = vmatpush.bf16.msra.mxu1 %v4981_v58  ;;  %1312 = vmatpush.bf16.msra.mxu2 %v5059_v59  ;;  %v6858_v58 = vld [vmem:[%s10726_s4 + $0x214] sm:$0xf0]  ;;  %v8128_v59 = vld [vmem:[%s416_s21] sm:$0x3]  ;;  %v6857_v0 = vld [vmem:[%s10726_s4 + $0x214] sm:$0xf] }
  0x61   : > { %1325 = vmatpush.bf16.msra.mxu3 %v5063_v60  ;;  %v1166_v60 = vrot.slane %v8044_v7, 1  ;;  %v4938_v1 = vld [vmem:[%s10726_s4 + $0x218] sm:$0xf0]  ;;  %v5018_v2 = vld [vmem:[%s10726_s4 + $0x290] sm:$0xf]  ;;  %v1168_v5 = vrot.slane %v8044_v7, 3  ;;  %v4937_v11 = vor.u32 %v6858_v58, %v4936_v54 }
  0x62   : > { %v8141_v3 = vld [vmem:[%s416_s21 + $0x2] sm:$0x3]  ;;  %v6874_v6 = vld [vmem:[%s10726_s4 + $0x294] sm:$0xf0]  ;;  %v6873_v12 = vld [vmem:[%s10726_s4 + $0x294] sm:$0xf] }
  0x63   : > { %1135 = vmatpush.bf16.msra.mxu0 %v4969_v63  ;;  %v919_v56 = vld [vmem:[#allocation1] sm:$0xff]  ;;  %v5031_v63 = vor.u32 %v6875_v49, %v5028_v50  ;;  %v1186_v10 = vsel %vm715_vm3, %v8044_v7, %v1166_v60  ;;  %v1187_v16 = vsel %vm717_vm4, %v1167_v4, %v1168_v5  ;;  %v1191_v17 = vshrl.u32 %v1174_v61, 16  ;;  %v6856_v18 = vld [vmem:[%s10726_s4 + $0x204] sm:$0xf0]  ;;  %v4930_v23 = vld [vmem:[%s10726_s4 + $0x208] sm:$0xf0] }
  0x64   : > { %1148 = vmatpush.bf16.msra.mxu1 %v4973_v8  ;;  %1313 = vmatpush.bf16.msra.mxu2 %v5051_v9  ;;  %1047 = vst [vmem:[#allocation1] ss:$9 sm:$0xff] %v8128_v59  ;;  %v1179_v8 = vrot.slane %v1177_v55, 1  ;;  %v1181_v9 = vsel %vm706_vm0, %v8044_v7, %v1166_v60  ;;  %v4928_v7 = vld [vmem:[%s10726_s4 + $0x200] sm:$0xf]  ;;  %v1188_v20 = vsel %vm719_vm5, %v1186_v10, %v1187_v16  ;;  %s395_s21 = sand.u32 1, %s7334_s14  }
  0x65   : > { %1326 = vmatpush.bf16.msra.mxu3 %v5055_v14  ;;  %1009 = vmatmul.bf16.vlgmr.msrb.gmra.mxu2 %v919_v56  ;;  %1050 = vst [vmem:[#allocation1 + $0x1] ss:$9 sm:$0xff] %v8141_v3  ;;  %v5020_v14 = vld [vmem:[%s10726_s4 + $0x298] sm:$0xf0]  ;;  %v6855_v22 = vld [vmem:[%s10726_s4 + $0x204] sm:$0xf]  ;;  %v5019_v29 = vor.u32 %v6874_v6, %v5018_v2  ;;  %v4929_v34 = vor.u32 %v6856_v18, %v4928_v7 }
  0x66   : > { %1022 = vmatmul.bf16.vlgmr.msrb.gmra.mxu3 %v919_v56  ;;  %v1196_v21 = vshll.u32 %v1179_v8, 16  ;;  %v5146_v24 = vld [vmem:[%s10726_s4 + $0x370] sm:$0xf]  ;;  %v5010_v30 = vld [vmem:[%s10726_s4 + $0x280] sm:$0xf]  ;;  %v5023_v33 = vor.u32 %v6873_v12, %v5020_v14  ;;  %v4933_v49 = vor.u32 %v6855_v22, %v4930_v23  ;;  %s4488_s30 = scalar_lea.sflag [#allocation4], %s395_s21 }
  0x67   : > { %1136 = vmatpush.bf16.msra.mxu0 %v4961_v15  ;;  %v1184_v15 = vsel %vm709_vm1, %v1167_v4, %v1168_v5  ;;  %v6872_v31 = vld [vmem:[%s10726_s4 + $0x284] sm:$0xf0]  ;;  %v6871_v32 = vld [vmem:[%s10726_s4 + $0x284] sm:$0xf]  ;;  %v5012_v35 = vld [vmem:[%s10726_s4 + $0x288] sm:$0xf0] }
  0x68   : > { %1149 = vmatpush.bf16.msra.mxu1 %v4965_v25  ;;  %1314 = vmatpush.bf16.msra.mxu2 %v5043_v26  ;;  %v1185_v19 = vsel %vm713_vm2, %v1181_v9, %v1184_v15  ;;  %v6902_v25 = vld [vmem:[%s10726_s4 + $0x374] sm:$0xf0]  ;;  %v1190_v26 = vrot.slane %v1188_v20, 1  ;;  %v6901_v37 = vld [vmem:[%s10726_s4 + $0x374] sm:$0xf]  ;;  %v1198_v38 = vsel %vm7984_vm10, %v1191_v17, %v1196_v21  ;;  %v5011_v50 = vor.u32 %v6872_v31, %v5010_v30  ;;  %s7294_s1 = sshra.s32 %s4501_s29, 4  ;;  %s7295_s1 = int_to_ptr.hbm [resolvable:$true] %s7294_s1 }
  0x69   : > { %1327 = vmatpush.bf16.msra.mxu3 %v5047_v27  ;;  %v1199_v27 = vshrl.u32 %v1185_v19, 16  ;;  %v5147_v40 = vor.u32 %v6902_v25, %v5146_v24  ;;  %v5148_v41 = vld [vmem:[%s10726_s4 + $0x378] sm:$0xf0]  ;;  %v5226_v42 = vld [vmem:[%s10726_s4 + $0x3f0] sm:$0xf]  ;;  %s7296_s17 = scalar_lea.hbm %s7295_s1, 1  ;;  %p7301_p0 = scmp.lt.s32.totalorder %s7295_s1, %s10732_s10 }
  0x6a   : > { %v1204_v39 = vshll.u32 %v1190_v26, 16  ;;  %v6918_v43 = vld [vmem:[%s10726_s4 + $0x3f4] sm:$0xf0]  ;;  %v6917_v44 = vld [vmem:[%s10726_s4 + $0x3f4] sm:$0xf]  ;;  %p7297_p11 = scmp.ne.s32.totalorder %s7295_s1, %s7296_s17  ;;  %p7302_p1 = scmp.lt.s32.totalorder %s7300_s12, %s7296_s17 }
  0x6b   : > { %1137 = vmatpush.bf16.msra.mxu0 %v4953_v28  ;;  %v4941_v28 = vor.u32 %v6857_v0, %v4938_v1  ;;  %v5138_v54 = vld [vmem:[%s10726_s4 + $0x360] sm:$0xf]  ;;  %v6900_v55 = vld [vmem:[%s10726_s4 + $0x364] sm:$0xf0]  ;;  %v5227_v56 = vor.u32 %v6918_v43, %v5226_v42  ;;  %v6899_v58 = vld [vmem:[%s10726_s4 + $0x364] sm:$0xf] }
  0x6c   : > { %1150 = vmatpush.bf16.msra.mxu1 %v4957_v45  ;;  %1315 = vmatpush.bf16.msra.mxu2 %v5035_v46  ;;  %v5228_v45 = vld [vmem:[%s10726_s4 + $0x3f8] sm:$0xf0]  ;;  %v1051_v46 = vld [vmem:[#allocation1] sm:$0xff]  ;;  %v1206_v48 = vsel %vm7984_vm10, %v1199_v27, %v1204_v39  ;;  %v5140_v60 = vld [vmem:[%s10726_s4 + $0x368] sm:$0xf0]  ;;  %p7298_p12 = pnand %p7297_p11, %p7438_p5  ;;  %p7303_p2 = por %p7302_p1, %p7301_p0 }
  0x6d   : > { %1328 = vmatpush.bf16.msra.mxu3 %v5039_v52  ;;  %1225 = vst [vmem:[#allocation1] ss:$9 sm:$0xff] %v1198_v38  ;;  %v5015_v52 = vor.u32 %v6871_v32, %v5012_v35  ;;  %v5218_v61 = vld [vmem:[%s10726_s4 + $0x3e0] sm:$0xf]  ;;  %v6915_v0 = vld [vmem:[%s10726_s4 + $0x3e4] sm:$0xf]  ;;  %v5143_v5 = vor.u32 %v6899_v58, %v5140_v60 }
  0x6e   : > { %1228 = vst [vmem:[#allocation1 + $0x1] ss:$9 sm:$0xff] %v1206_v48  ;;  %v5220_v1 = vld [vmem:[%s10726_s4 + $0x3e8] sm:$0xf0]  ;;  %v5130_v2 = vld [vmem:[%s10726_s4 + $0x350] sm:$0xf]  ;;  %p7299_p13 = pneg %p7298_p12 }
  0x6f   : > { %1138 = vmatpush.bf16.msra.mxu0 %v4945_v53  ;;  %v5151_v53 = vor.u32 %v6901_v37, %v5148_v41  ;;  %v6898_v4 = vld [vmem:[%s10726_s4 + $0x354] sm:$0xf0]  ;;  %v6897_v8 = vld [vmem:[%s10726_s4 + $0x354] sm:$0xf]  ;;  %v5223_v9 = vor.u32 %v6915_v0, %v5220_v1  ;;  %v5132_v10 = vld [vmem:[%s10726_s4 + $0x358] sm:$0xf0] }
  0x70   : > { %1151 = vmatpush.bf16.msra.mxu1 %v4949_v57  ;;  %1316 = vmatpush.bf16.msra.mxu2 %v5027_v62  ;;  %v5231_v57 = vor.u32 %v6917_v44, %v5228_v45  ;;  %v6916_v62 = vld [vmem:[%s10726_s4 + $0x3e4] sm:$0xf0]  ;;  %v6914_v12 = vld [vmem:[%s10726_s4 + $0x3d4] sm:$0xf0]  ;;  %v5131_v15 = vor.u32 %v6898_v4, %v5130_v2  ;;  %v6913_v16 = vld [vmem:[%s10726_s4 + $0x3d4] sm:$0xf]  ;;  %v5135_v19 = vor.u32 %v6897_v8, %v5132_v10  ;;  %p7304_p3 = pnand %p7303_p2, %p7299_p13 }
  0x71   : > { %1329 = vmatpush.bf16.msra.mxu3 %v5031_v63  ;;  %v5139_v63 = vor.u32 %v6900_v55, %v5138_v54  ;;  %v5219_v6 = vor.u32 %v6916_v62, %v5218_v61  ;;  %v5212_v17 = vld [vmem:[%s10726_s4 + $0x3d8] sm:$0xf0]  ;;  %v5122_v7 = vld [vmem:[%s10726_s4 + $0x340] sm:$0xf]  ;;  %v6896_v18 = vld [vmem:[%s10726_s4 + $0x344] sm:$0xf0] }
  0x72   : > { %v6895_v21 = vld [vmem:[%s10726_s4 + $0x344] sm:$0xf]  ;;  %v5215_v22 = vor.u32 %v6913_v16, %v5212_v17  ;;  %v5202_v23 = vld [vmem:[%s10726_s4 + $0x3c0] sm:$0xf]  ;;  %v6912_v24 = vld [vmem:[%s10726_s4 + $0x3c4] sm:$0xf0]  ;;  %v5123_v25 = vor.u32 %v6896_v18, %v5122_v7 }
  0x73   : > { %1139 = vmatpush.bf16.msra.mxu0 %v4937_v11  ;;  %v5210_v11 = vld [vmem:[%s10726_s4 + $0x3d0] sm:$0xf]  ;;  %v6911_v26 = vld [vmem:[%s10726_s4 + $0x3c4] sm:$0xf]  ;;  %v5204_v27 = vld [vmem:[%s10726_s4 + $0x3c8] sm:$0xf0]  ;;  %v5203_v31 = vor.u32 %v6912_v24, %v5202_v23 }
  0x74   : > { %1152 = vmatpush.bf16.msra.mxu1 %v4941_v28  ;;  %1317 = vmatpush.bf16.msra.mxu2 %v5019_v29  ;;  %v5211_v20 = vor.u32 %v6914_v12, %v5210_v11  ;;  %v5114_v28 = vld [vmem:[%s10726_s4 + $0x330] sm:$0xf]  ;;  %v6894_v29 = vld [vmem:[%s10726_s4 + $0x334] sm:$0xf0]  ;;  %v6893_v32 = vld [vmem:[%s10726_s4 + $0x334] sm:$0xf] }
  0x75   : > { %1330 = vmatpush.bf16.msra.mxu3 %v5023_v33  ;;  %v1229_v14 = vld [vmem:[#allocation1] sm:$0xff]  ;;  %v5116_v33 = vld [vmem:[%s10726_s4 + $0x338] sm:$0xf0]  ;;  %v5194_v35 = vld [vmem:[%s10726_s4 + $0x3b0] sm:$0xf]  ;;  %v5115_v39 = vor.u32 %v6894_v29, %v5114_v28 }
  0x76   : > { %1356 = vst [vmem:[#allocation1] ss:$9 sm:$0xff] %v7821_v36  ;;  %v5124_v36 = vld [vmem:[%s10726_s4 + $0x348] sm:$0xf0]  ;;  %v6910_v37 = vld [vmem:[%s10726_s4 + $0x3b4] sm:$0xf0]  ;;  %v5119_v44 = vor.u32 %v6893_v32, %v5116_v33 }
  0x77   : > { %1140 = vmatpush.bf16.msra.mxu0 %v4929_v34  ;;  %v5127_v30 = vor.u32 %v6895_v21, %v5124_v36  ;;  %v5207_v34 = vor.u32 %v6911_v26, %v5204_v27  ;;  %v8308_v38 = vld [vmem:[%s7773_s18 + $0x4] sm:$0x3]  ;;  %v5196_v41 = vld [vmem:[%s10726_s4 + $0x3b8] sm:$0xf0]  ;;  %v5106_v42 = vld [vmem:[%s10726_s4 + $0x320] sm:$0xf]  ;;  %v5195_v45 = vor.u32 %v6910_v37, %v5194_v35 }
  0x78   : > { %1153 = vmatpush.bf16.msra.mxu1 %v4933_v49  ;;  %1318 = vmatpush.bf16.msra.mxu2 %v5011_v50  ;;  %1359 = vst [vmem:[#allocation1 + $0x1] ss:$9 sm:$0xff] %v8308_v38  ;;  %v6892_v43 = vld [vmem:[%s10726_s4 + $0x324] sm:$0xf0]  ;;  %v5108_v49 = vld [vmem:[%s10726_s4 + $0x328] sm:$0xf0] }
  0x79   : > { %1331 = vmatpush.bf16.msra.mxu3 %v5015_v52  ;;  %v5186_v50 = vld [vmem:[%s10726_s4 + $0x3a0] sm:$0xf]  ;;  %v6908_v52 = vld [vmem:[%s10726_s4 + $0x3a4] sm:$0xf0]  ;;  %v6907_v54 = vld [vmem:[%s10726_s4 + $0x3a4] sm:$0xf] }
  0x7a   : > { %1141 = vmatmul.bf16.vlgmr.msra.gmra.mxu0 %v1051_v46  ;;  %v5188_v55 = vld [vmem:[%s10726_s4 + $0x3a8] sm:$0xf0]  ;;  %v6889_v58 = vld [vmem:[%s10726_s4 + $0x314] sm:$0xf]  ;;  %v5100_v60 = vld [vmem:[%s10726_s4 + $0x318] sm:$0xf0]  ;;  %v5187_v62 = vor.u32 %v6908_v52, %v5186_v50 }
  0x7b   : > { %1442 = vmatpush.bf16.msrb.mxu0 %v5147_v40  ;;  %1154 = vmatmul.bf16.vlgmr.msra.gmra.mxu1 %v1051_v46  ;;  %v6909_v40 = vld [vmem:[%s10726_s4 + $0x3b4] sm:$0xf]  ;;  %v6891_v46 = vld [vmem:[%s10726_s4 + $0x324] sm:$0xf]  ;;  %v6906_v0 = vld [vmem:[%s10726_s4 + $0x394] sm:$0xf0]  ;;  %v5191_v2 = vor.u32 %v6907_v54, %v5188_v55 }
  0x7c   : > { %1455 = vmatpush.bf16.msrb.mxu1 %v5151_v53  ;;  %1573 = vmatpush.bf16.msrb.mxu2 %v5227_v56  ;;  %v5199_v48 = vor.u32 %v6909_v40, %v5196_v41  ;;  %v5107_v53 = vor.u32 %v6892_v43, %v5106_v42  ;;  %v5098_v56 = vld [vmem:[%s10726_s4 + $0x310] sm:$0xf]  ;;  %v5111_v61 = vor.u32 %v6891_v46, %v5108_v49  ;;  %v423_v1 = vld [vmem:[%s7741_s28 + $0x4] sm:$0x3]  ;;  %v6905_v4 = vld [vmem:[%s10726_s4 + $0x394] sm:$0xf] }
  0x7d   : > { %1586 = vmatpush.bf16.msrb.mxu3 %v5231_v57  ;;  %1319 = vmatmul.bf16.vlgmr.msra.gmra.mxu2 %v1229_v14  ;;  %v6890_v57 = vld [vmem:[%s10726_s4 + $0x314] sm:$0xf0]  ;;  %v6888_v10 = vld [vmem:[%s10726_s4 + $0x304] sm:$0xf0]  ;;  %v6887_v11 = vld [vmem:[%s10726_s4 + $0x304] sm:$0xf] }
  0x7e   : > { %1332 = vmatmul.bf16.vlgmr.msra.gmra.mxu3 %v1229_v14  ;;  %v5099_v8 = vor.u32 %v6890_v57, %v5098_v56  ;;  %v5092_v12 = vld [vmem:[%s10726_s4 + $0x308] sm:$0xf0]  ;;  %v5103_v14 = vor.u32 %v6889_v58, %v5100_v60  ;;  %v5170_v16 = vld [vmem:[%s10726_s4 + $0x380] sm:$0xf]  ;;  %v6934_v17 = vld [vmem:[%s10726_s4 + $0x474] sm:$0xf0] }
  0x7f   : > { %1443 = vmatpush.bf16.msrb.mxu0 %v5139_v63  ;;  %v5178_v63 = vld [vmem:[%s10726_s4 + $0x390] sm:$0xf]  ;;  %v6904_v18 = vld [vmem:[%s10726_s4 + $0x384] sm:$0xf0]  ;;  %v5309_v36 = vld [vmem:[%s10726_s4 + $0x478] sm:$0xf0]  ;;  %v5095_v27 = vor.u32 %v6887_v11, %v5092_v12 }
  0x80   : > { %1456 = vmatpush.bf16.msrb.mxu1 %v5143_v5  ;;  %1574 = vmatpush.bf16.msrb.mxu2 %v5219_v6  ;;  %v5180_v5 = vld [vmem:[%s10726_s4 + $0x398] sm:$0xf0]  ;;  %v8366_v6 = vld [vmem:[#allocation1] sm:$0xff]  ;;  %v1602_v24 = vrot.slane %v8308_v38, 1  ;;  %v1604_v26 = vrot.slane %v8308_v38, 3  ;;  %v5171_v28 = vor.u32 %v6904_v18, %v5170_v16  ;;  %s396_s18 = scalar_lea.vmem [#allocation3], %s395_s21 }
  0x81   : > { %1587 = vmatpush.bf16.msrb.mxu3 %v5223_v9  ;;  %v5090_v9 = vld [vmem:[%s10726_s4 + $0x300] sm:$0xf]  ;;  %1487 = vst [vmem:[#allocation1] ss:$9 sm:$0xff] %v7748_v13  ;;  %v5307_v13 = vld [vmem:[%s10726_s4 + $0x470] sm:$0xf]  ;;  %v5183_v7 = vor.u32 %v6905_v4, %v5180_v5 }
  0x82   : > { %1490 = vst [vmem:[#allocation1 + $0x1] ss:$9 sm:$0xff] %v423_v1  ;;  %v5091_v21 = vor.u32 %v6888_v10, %v5090_v9  ;;  %v5308_v23 = vor.u32 %v6934_v17, %v5307_v13  ;;  %v6932_v32 = vld [vmem:[%s10726_s4 + $0x464] sm:$0xf0]  ;;  %v1606_v33 = vsel %vm706_vm0, %v8308_v38, %v1602_v24  ;;  %v1611_v35 = vsel %vm715_vm3, %v8308_v38, %v1602_v24  ;;  %v5301_v40 = vld [vmem:[%s10726_s4 + $0x468] sm:$0xf0] }
  0x83   : > { %1444 = vmatpush.bf16.msrb.mxu0 %v5131_v15  ;;  %v5179_v15 = vor.u32 %v6906_v0, %v5178_v63  ;;  %v6930_v49 = vld [vmem:[%s10726_s4 + $0x454] sm:$0xf0]  ;;  %v5293_v50 = vld [vmem:[%s10726_s4 + $0x458] sm:$0xf0]  ;;  %v5283_v56 = vld [vmem:[%s10726_s4 + $0x440] sm:$0xf] }
  0x84   : > { %1457 = vmatpush.bf16.msrb.mxu1 %v5135_v19  ;;  %1575 = vmatpush.bf16.msrb.mxu2 %v5211_v20  ;;  %v6903_v19 = vld [vmem:[%s10726_s4 + $0x384] sm:$0xf]  ;;  %v5172_v20 = vld [vmem:[%s10726_s4 + $0x388] sm:$0xf0]  ;;  %v6928_v57 = vld [vmem:[%s10726_s4 + $0x444] sm:$0xf0] }
  0x85   : > { %1588 = vmatpush.bf16.msrb.mxu3 %v5215_v22  ;;  %v6933_v22 = vld [vmem:[%s10726_s4 + $0x474] sm:$0xf]  ;;  %v5175_v29 = vor.u32 %v6903_v19, %v5172_v20  ;;  %v6927_v58 = vld [vmem:[%s10726_s4 + $0x444] sm:$0xf]  ;;  %v5285_v60 = vld [vmem:[%s10726_s4 + $0x448] sm:$0xf0] }
  0x86   : > { %v5275_v63 = vld [vmem:[%s10726_s4 + $0x430] sm:$0xf]  ;;  %v6926_v0 = vld [vmem:[%s10726_s4 + $0x434] sm:$0xf0]  ;;  %v6925_v1 = vld [vmem:[%s10726_s4 + $0x434] sm:$0xf] }
  0x87   : > { %1445 = vmatpush.bf16.msrb.mxu0 %v5123_v25  ;;  %v1603_v25 = vrot.slane %v8308_v38, 2  ;;  %v5276_v4 = vor.u32 %v6926_v0, %v5275_v63  ;;  %v6924_v9 = vld [vmem:[%s10726_s4 + $0x424] sm:$0xf0]  ;;  %v6923_v10 = vld [vmem:[%s10726_s4 + $0x424] sm:$0xf]  ;;  %s4498_s28 = sshll.u32 %s396_s18, 4  ;;  %s4499_s28 = int_to_ptr.vmem [resolvable:$true] %s4498_s28 }
  0x88   : > { %1458 = vmatpush.bf16.msrb.mxu1 %v5127_v30  ;;  %1576 = vmatpush.bf16.msrb.mxu2 %v5203_v31  ;;  %v5312_v30 = vor.u32 %v6933_v22, %v5309_v36  ;;  %v5299_v31 = vld [vmem:[%s10726_s4 + $0x460] sm:$0xf]  ;;  %v5269_v11 = vld [vmem:[%s10726_s4 + $0x428] sm:$0xf0]  ;;  %v6921_v16 = vld [vmem:[%s10726_s4 + $0x414] sm:$0xf] }
  0x89   : > { %1589 = vmatpush.bf16.msrb.mxu3 %v5207_v34  ;;  %v1609_v34 = vsel %vm709_vm1, %v1603_v25, %v1604_v26  ;;  %v1491_v37 = vld [vmem:[#allocation1] sm:$0xff]  ;;  %v1612_v42 = vsel %vm717_vm4, %v1603_v25, %v1604_v26  ;;  %v5300_v38 = vor.u32 %v6932_v32, %v5299_v31  ;;  %v6920_v18 = vld [vmem:[%s10726_s4 + $0x404] sm:$0xf0]  ;;  %v5253_v20 = vld [vmem:[%s10726_s4 + $0x408] sm:$0xf0] }
  0x8a   : > { %v1610_v41 = vsel %vm713_vm2, %v1606_v33, %v1609_v34  ;;  %1641 = vst [vmem:[#allocation1] ss:$9 sm:$0xff] %v7998_v51  ;;  %v1613_v43 = vsel %vm719_vm5, %v1611_v35, %v1612_v42  ;;  %v6929_v51 = vld [vmem:[%s10726_s4 + $0x454] sm:$0xf]  ;;  %v6919_v19 = vld [vmem:[%s10726_s4 + $0x404] sm:$0xf] }
  0x8b   : > { %1446 = vmatpush.bf16.msrb.mxu0 %v5115_v39  ;;  %v6931_v39 = vld [vmem:[%s10726_s4 + $0x464] sm:$0xf]  ;;  %v5296_v55 = vor.u32 %v6929_v51, %v5293_v50  ;;  %v5256_v22 = vor.u32 %v6919_v19, %v5253_v20  ;;  %v6949_v42 = vld [vmem:[%s10727_s5 + $0x74] sm:$0xf]  ;;  %v5363_v51 = vld [vmem:[%s10727_s5 + $0x60] sm:$0xf] }
  0x8c   : > { %1459 = vmatpush.bf16.msrb.mxu1 %v5119_v44  ;;  %1577 = vmatpush.bf16.msrb.mxu2 %v5195_v45  ;;  %v1615_v44 = vrot.slane %v1613_v43, 1  ;;  %v1616_v45 = vshrl.u32 %v1610_v41, 16  ;;  %v5304_v46 = vor.u32 %v6931_v39, %v5301_v40  ;;  %v5371_v40 = vld [vmem:[%s10727_s5 + $0x70] sm:$0xf]  ;;  %v6950_v41 = vld [vmem:[%s10727_s5 + $0x74] sm:$0xf0] }
  0x8d   : > { %1590 = vmatpush.bf16.msrb.mxu3 %v5199_v48  ;;  %v5291_v48 = vld [vmem:[%s10726_s4 + $0x450] sm:$0xf]  ;;  %v5372_v43 = vor.u32 %v6950_v41, %v5371_v40  ;;  %v6948_v50 = vld [vmem:[%s10727_s5 + $0x64] sm:$0xf0]  ;;  %v5357_v63 = vld [vmem:[%s10727_s5 + $0x58] sm:$0xf0] }
  0x8e   : > { %v1621_v52 = vshll.u32 %v1615_v44, 16  ;;  %v5347_v0 = vld [vmem:[%s10727_s5 + $0x40] sm:$0xf]  ;;  %v5469_v19 = vld [vmem:[%s10728_s6 + $0x170] sm:$0xf] }
  0x8f   : > { %1447 = vmatpush.bf16.msrb.mxu0 %v5107_v53  ;;  %v5292_v53 = vor.u32 %v6930_v49, %v5291_v48  ;;  %v6998_v20 = vld [vmem:[%s10728_s6 + $0x174] sm:$0xf0]  ;;  %v6936_v40 = vld [vmem:[%s10727_s5 + $0x4] sm:$0xf0]  ;;  %v6935_v41 = vld [vmem:[%s10727_s5 + $0x4] sm:$0xf] }
  0x90   : > { %1460 = vmatpush.bf16.msrb.mxu1 %v5111_v61  ;;  %1578 = vmatpush.bf16.msrb.mxu2 %v5187_v62  ;;  %v1623_v54 = vsel %vm7984_vm10, %v1616_v45, %v1621_v52  ;;  %v5284_v61 = vor.u32 %v6928_v57, %v5283_v56  ;;  %v5288_v62 = vor.u32 %v6927_v58, %v5285_v60  ;;  %v6947_v52 = vld [vmem:[%s10727_s5 + $0x64] sm:$0xf]  ;;  %v5355_v58 = vld [vmem:[%s10727_s5 + $0x50] sm:$0xf]  ;;  %v6946_v60 = vld [vmem:[%s10727_s5 + $0x54] sm:$0xf0] }
  0x91   : > { %1591 = vmatpush.bf16.msrb.mxu3 %v5191_v2  ;;  %1644 = vst [vmem:[#allocation1 + $0x1] ss:$9 sm:$0xff] %v1623_v54  ;;  %v5277_v2 = vld [vmem:[%s10726_s4 + $0x438] sm:$0xf0]  ;;  %v5365_v54 = vld [vmem:[%s10727_s5 + $0x68] sm:$0xf0] }
  0x92   : > { %v5368_v57 = vor.u32 %v6947_v52, %v5365_v54  ;;  %vm1965_vm13 = vsmask.f32 3338  ;;  %v7125_v47 = vld [vmem:[%s10728_s6 + $0x574] sm:$0xf] }
  0x93   : > { %1448 = vmatpush.bf16.msrb.mxu0 %v5099_v8  ;;  %v5267_v8 = vld [vmem:[%s10726_s4 + $0x420] sm:$0xf]  ;;  %vm8969_vm15 = vmand %vm1920_vm11, %vm1965_vm13 }
  0x94   : > { %1461 = vmatpush.bf16.msrb.mxu1 %v5103_v14  ;;  %1579 = vmatpush.bf16.msrb.mxu2 %v5179_v15  ;;  %v5268_v12 = vor.u32 %v6924_v9, %v5267_v8  ;;  %v5272_v14 = vor.u32 %v6923_v10, %v5269_v11  ;;  %v5259_v15 = vld [vmem:[%s10726_s4 + $0x410] sm:$0xf]  ;;  %v5349_v8 = vld [vmem:[%s10727_s5 + $0x48] sm:$0xf0]  ;;  %vm1967_vm6 = vmor %vm8969_vm15, %vm8946_vm14 }
  0x95   : > { %1592 = vmatpush.bf16.msrb.mxu3 %v5183_v7  ;;  %v5251_v7 = vld [vmem:[%s10726_s4 + $0x400] sm:$0xf] }
  0x97   : > { %1449 = vmatpush.bf16.msrb.mxu0 %v5091_v21  ;;  %v5252_v21 = vor.u32 %v6920_v18, %v5251_v7  ;;  %v6939_v18 = vld [vmem:[%s10727_s5 + $0x24] sm:$0xf] }
  0x98   : > { %1462 = vmatpush.bf16.msrb.mxu1 %v5095_v27  ;;  %1580 = vmatpush.bf16.msrb.mxu2 %v5171_v28  ;;  %v1645_v5 = vld [vmem:[#allocation1] sm:$0xff] }
  0x99   : > { %1593 = vmatpush.bf16.msrb.mxu3 %v5175_v29  ;;  %1789 = vst [vmem:[#allocation1 + $0x1] ss:$9 sm:$0xff] %v8141_v3  ;;  %v6922_v3 = vld [vmem:[%s10726_s4 + $0x414] sm:$0xf0] }
  0x9a   : > { %1450 = vmatmul.bf16.vlgmr.msrb.gmra.mxu0 %v8366_v6  ;;  %1787 = vst [vmem:[#allocation1] ss:$9 sm:$0xff] %v8128_v59  ;;  %v5261_v59 = vld [vmem:[%s10726_s4 + $0x418] sm:$0xf0]  ;;  %v5260_v13 = vor.u32 %v6922_v3, %v5259_v15  ;;  %v6942_v15 = vld [vmem:[%s10727_s5 + $0x34] sm:$0xf0] }
  0x9b   : > { %1727 = vmatpush.bf16.msra.mxu0 %v5308_v23  ;;  %1463 = vmatmul.bf16.vlgmr.msrb.gmra.mxu1 %v8366_v6  ;;  %v5280_v6 = vor.u32 %v6925_v1, %v5277_v2  ;;  %v5264_v17 = vor.u32 %v6921_v16, %v5261_v59  ;;  %v6944_v1 = vld [vmem:[%s10727_s5 + $0x44] sm:$0xf0]  ;;  %v6941_v3 = vld [vmem:[%s10727_s5 + $0x34] sm:$0xf]  ;;  %v5341_v16 = vld [vmem:[%s10727_s5 + $0x38] sm:$0xf0] }
  0x9c   : > { %1740 = vmatpush.bf16.msra.mxu1 %v5312_v30  ;;  %1581 = vmatmul.bf16.vlgmr.msrb.gmra.mxu2 %v1491_v37  ;;  %v5348_v11 = vor.u32 %v6944_v1, %v5347_v0  ;;  %v5344_v7 = vor.u32 %v6941_v3, %v5341_v16  ;;  %v6996_v0 = vld [vmem:[%s10728_s6 + $0x164] sm:$0xf0]  ;;  %v5525_v1 = vld [vmem:[%s10728_s6 + $0x1e0] sm:$0xf]  ;;  %v5453_v3 = vld [vmem:[%s10728_s6 + $0x150] sm:$0xf] }
  0x9d   : > { %1594 = vmatmul.bf16.vlgmr.msrb.gmra.mxu3 %v1491_v37  ;;  %1872 = vmatpush.bf16.msra.mxu2 %v5372_v43  ;;  %v6997_v43 = vld [vmem:[%s10728_s6 + $0x174] sm:$0xf]  ;;  %v6994_v16 = vld [vmem:[%s10728_s6 + $0x154] sm:$0xf0] }
  0x9f   : > { %1728 = vmatpush.bf16.msra.mxu0 %v5300_v38  ;;  %v5373_v38 = vld [vmem:[%s10727_s5 + $0x78] sm:$0xf0] }
  0xa0   : > { %1741 = vmatpush.bf16.msra.mxu1 %v5304_v46  ;;  %v5376_v44 = vor.u32 %v6949_v42, %v5373_v38  ;;  %v5317_v42 = vld [vmem:[%s10727_s5 + $0x8] sm:$0xf0]  ;;  %v5471_v38 = vld [vmem:[%s10728_s6 + $0x178] sm:$0xf0] }
  0xa2   : > { %1885 = vmatpush.bf16.msra.mxu3 %v5376_v44  ;;  %v7013_v44 = vld [vmem:[%s10728_s6 + $0x1f4] sm:$0xf] }
  0xa3   : > { %1729 = vmatpush.bf16.msra.mxu0 %v5292_v53  ;;  %v5364_v53 = vor.u32 %v6948_v50, %v5363_v51  ;;  %v5320_v51 = vor.u32 %v6935_v41, %v5317_v42  ;;  %v5474_v50 = vor.u32 %v6997_v43, %v5471_v38  ;;  %v1790_v43 = vld [vmem:[#allocation1] sm:$0xff] }
  0xa4   : > { %1742 = vmatpush.bf16.msra.mxu1 %v5296_v55 }
  0xa5   : > { %1873 = vmatpush.bf16.msra.mxu2 %v5364_v53 }
  0xa6   : > { %1886 = vmatpush.bf16.msra.mxu3 %v5368_v57  ;;  %v7344_v57 = vmov 0  }
  0xa7   : > { %1730 = vmatpush.bf16.msra.mxu0 %v5284_v61  ;;  %v6945_v61 = vld [vmem:[%s10727_s5 + $0x54] sm:$0xf]  ;;  %1912 = vst [vmem:[#allocation2] sm:$0xf] %v7344_v57 }
  0xa8   : > { %1743 = vmatpush.bf16.msra.mxu1 %v5288_v62  ;;  %v5356_v62 = vor.u32 %v6946_v60, %v5355_v58  ;;  %1913 = vst [vmem:[#allocation2 + $0x4] sm:$0xf] %v7344_v57 }
  0xa9   : > { %1914 = vst [vmem:[#allocation2 + $0x8] sm:$0xf] %v7344_v57 }
  0xaa   : > { %1874 = vmatpush.bf16.msra.mxu2 %v5356_v62  ;;  %1915 = vst [vmem:[#allocation2 + $0xc] sm:$0xf] %v7344_v57  ;;  %v5503_v57 = vld [vmem:[%s10728_s6 + $0x1b8] sm:$0xf0] }
  0xab   : > { %1731 = vmatpush.bf16.msra.mxu0 %v5276_v4 }
  0xac   : > { %1744 = vmatpush.bf16.msra.mxu1 %v5280_v6  ;;  %v6943_v6 = vld [vmem:[%s10727_s5 + $0x44] sm:$0xf] }
  0xae   : > { %1875 = vmatpush.bf16.msra.mxu2 %v5348_v11 }
  0xaf   : > { %1732 = vmatpush.bf16.msra.mxu0 %v5268_v12  ;;  %v5352_v12 = vor.u32 %v6943_v6, %v5349_v8  ;;  %v7012_v6 = vld [vmem:[%s10728_s6 + $0x1e4] sm:$0xf0]  ;;  %v6995_v8 = vld [vmem:[%s10728_s6 + $0x164] sm:$0xf] }
  0xb0   : > { %1745 = vmatpush.bf16.msra.mxu1 %v5272_v14  ;;  %v5339_v14 = vld [vmem:[%s10727_s5 + $0x30] sm:$0xf] }
  0xb1   : > { %v5340_v59 = vor.u32 %v6942_v15, %v5339_v14  ;;  %v5527_v14 = vld [vmem:[%s10728_s6 + $0x1e8] sm:$0xf0] }
  0xb3   : > { %1733 = vmatpush.bf16.msra.mxu0 %v5260_v13  ;;  %v5331_v13 = vld [vmem:[%s10727_s5 + $0x20] sm:$0xf]  ;;  %1876 = vmatpush.bf16.msra.mxu2 %v5340_v59  ;;  %v5517_v59 = vld [vmem:[%s10728_s6 + $0x1d0] sm:$0xf] }
  0xb4   : > { %1746 = vmatpush.bf16.msra.mxu1 %v5264_v17  ;;  %v6940_v17 = vld [vmem:[%s10727_s5 + $0x24] sm:$0xf0] }
  0xb7   : > { %1734 = vmatpush.bf16.msra.mxu0 %v5252_v21  ;;  %v5333_v21 = vld [vmem:[%s10727_s5 + $0x28] sm:$0xf0] }
  0xb8   : > { %1747 = vmatpush.bf16.msra.mxu1 %v5256_v22  ;;  %v5470_v22 = vor.u32 %v6998_v20, %v5469_v19  ;;  %v5455_v19 = vld [vmem:[%s10728_s6 + $0x158] sm:$0xf0] }
  0xba   : > { %1735 = vmatmul.bf16.vlgmr.msra.gmra.mxu0 %v1645_v5 }
  0xbb   : > { %1748 = vmatmul.bf16.vlgmr.msra.gmra.mxu1 %v1645_v5  ;;  %v5360_v5 = vor.u32 %v6945_v61, %v5357_v63  ;;  %2260 = vmatpush.bf16.msrb.mxu0 %v5470_v22  ;;  %v5461_v63 = vld [vmem:[%s10728_s6 + $0x160] sm:$0xf] }
  0xbd   : > { %1887 = vmatpush.bf16.msra.mxu3 %v5360_v5  ;;  %v5462_v5 = vor.u32 %v6996_v0, %v5461_v63 }
  0xbf   : > { %2261 = vmatpush.bf16.msrb.mxu0 %v5462_v5  ;;  %v5493_v5 = vld [vmem:[%s10728_s6 + $0x1a0] sm:$0xf] }
  0xc0   : > { %v581_v36 = vpop.f32.mrf.mxu1 }
  0xc1   : > { %1888 = vmatpush.bf16.msra.mxu3 %v5352_v12  ;;  %v7011_v12 = vld [vmem:[%s10728_s6 + $0x1e4] sm:$0xf] }
  0xc2   : > { %v568_v23 = vpop.f32.mrf.mxu0  ;;  %v5530_v15 = vor.u32 %v7011_v12, %v5527_v14 }
  0xc5   : > { %1889 = vmatpush.bf16.msra.mxu3 %v5344_v7  ;;  %v7010_v7 = vld [vmem:[%s10728_s6 + $0x1d4] sm:$0xf0] }
  0xc8   : > { %v583_v24 = vpop.f32.mrf.mxu1 }
  0xca   : > { %v570_v25 = vpop.f32.mrf.mxu0 }
  0xd0   : > { %v681_v26 = vpop.f32.mrf.mxu2 }
  0xd1   : > { %v694_v27 = vpop.f32.mrf.mxu3  ;;  %v682_v28 = vadd.f32 %v681_v26, %v568_v23  ;;  %v7014_v23 = vld [vmem:[%s10728_s6 + $0x1f4] sm:$0xf0] }
  0xd2   : > { %v695_v29 = vadd.f32 %v694_v27, %v581_v36  ;;  %v5533_v36 = vld [vmem:[%s10728_s6 + $0x1f0] sm:$0xf]  ;;  %v5332_v27 = vor.u32 %v6940_v17, %v5331_v13  ;;  %v5454_v17 = vor.u32 %v6994_v16, %v5453_v3  ;;  %v5495_v3 = vld [vmem:[%s10728_s6 + $0x1a8] sm:$0xf0] }
  0xd3   : > { %v5534_v26 = vor.u32 %v7014_v23, %v5533_v36  ;;  %v7009_v36 = vld [vmem:[%s10728_s6 + $0x1d4] sm:$0xf]  ;;  %v5519_v23 = vld [vmem:[%s10728_s6 + $0x1d8] sm:$0xf0] }
  0xd4   : > { %1877 = vmatpush.bf16.msra.mxu2 %v5332_v27  ;;  %2262 = vmatpush.bf16.msrb.mxu0 %v5454_v17  ;;  %v5509_v27 = vld [vmem:[%s10728_s6 + $0x1c0] sm:$0xf] }
  0xd5   : > { %2273 = vmatpush.bf16.msrb.mxu1 %v5534_v26  ;;  %v6992_v26 = vld [vmem:[%s10728_s6 + $0x144] sm:$0xf0] }
  0xd8   : > { %v683_v30 = vpop.f32.mrf.mxu2  ;;  %v891_v32 = vpop.f32.mrf.mxu1 }
  0xd9   : > { %v696_v31 = vpop.f32.mrf.mxu3  ;;  %v8507_v34 = vadd.f32 %v891_v32, %v695_v29  ;;  %v5323_v29 = vld [vmem:[%s10727_s5 + $0x10] sm:$0xf]  ;;  %v6938_v30 = vld [vmem:[%s10727_s5 + $0x14] sm:$0xf0]  ;;  %v5325_v32 = vld [vmem:[%s10727_s5 + $0x18] sm:$0xf0] }
  0xda   : > { %v878_v33 = vpop.f32.mrf.mxu0  ;;  %v6937_v31 = vld [vmem:[%s10727_s5 + $0x14] sm:$0xf] }
  0xdb   : > { %v8509_v35 = vadd.f32 %v878_v33, %v682_v28  ;;  %v5336_v28 = vor.u32 %v6939_v18, %v5333_v21  ;;  %v5324_v33 = vor.u32 %v6938_v30, %v5323_v29  ;;  %v6993_v18 = vld [vmem:[%s10728_s6 + $0x154] sm:$0xf]  ;;  %v5518_v21 = vor.u32 %v7010_v7, %v5517_v59  ;;  %v7008_v29 = vld [vmem:[%s10728_s6 + $0x1c4] sm:$0xf0]  ;;  %v6991_v30 = vld [vmem:[%s10728_s6 + $0x144] sm:$0xf] }
  0xdc   : > { %v5458_v22 = vor.u32 %v6993_v18, %v5455_v19  ;;  %v5421_v19 = vld [vmem:[%s10728_s6 + $0x110] sm:$0xf] }
  0xdd   : > { %1890 = vmatpush.bf16.msra.mxu3 %v5336_v28  ;;  %1878 = vmatpush.bf16.msra.mxu2 %v5324_v33  ;;  %v5510_v33 = vor.u32 %v7008_v29, %v5509_v27  ;;  %v6985_v27 = vld [vmem:[%s10728_s6 + $0x114] sm:$0xf] }
  0xde   : > { %v7001_v29 = vld [vmem:[%s10728_s6 + $0x194] sm:$0xf] }
  0xe0   : > { %v893_v39 = vpop.f32.mrf.mxu1 }
  0xe1   : > { %v5315_v39 = vld [vmem:[%s10727_s5] sm:$0xf] }
  0xe2   : > { %v880_v37 = vpop.f32.mrf.mxu0 }
  0xe3   : > { %v5328_v37 = vor.u32 %v6937_v31, %v5325_v32  ;;  %v5447_v31 = vld [vmem:[%s10728_s6 + $0x148] sm:$0xf0] }
  0xe5   : > { %1891 = vmatpush.bf16.msra.mxu3 %v5328_v37  ;;  %v5450_v37 = vor.u32 %v6991_v30, %v5447_v31 }
  0xe8   : > { %v8523_v45 = vpop.f32.mrf.mxu2 }
  0xe9   : > { %v8525_v46 = vpop.f32.mrf.mxu3  ;;  %1892 = vmatpush.bf16.msra.mxu3 %v5320_v51  ;;  %v1027_v32 = vadd.f32 %v8523_v45, %v8509_v35  ;;  %v5437_v35 = vld [vmem:[%s10728_s6 + $0x130] sm:$0xf]  ;;  %v6990_v45 = vld [vmem:[%s10728_s6 + $0x134] sm:$0xf0] }
  0xea   : > { %v1028_v41 = vadd.f32 %v8525_v46, %v8507_v34  ;;  %v5438_v46 = vor.u32 %v6990_v45, %v5437_v35  ;;  %v8828_v35 = vld [vmem:[#allocation2] sm:$0xf] }
  0xec   : > { %1893 = vmatmul.bf16.vlgmr.msra.gmra.mxu3 %v1790_v43 }
  0xf0   : > { %v1012_v48 = vpop.f32.mrf.mxu2 }
  0xf1   : > { %v1025_v49 = vpop.f32.mrf.mxu3  ;;  %v5535_v48 = vld [vmem:[%s10728_s6 + $0x1f8] sm:$0xf0] }
  0xf2   : > { %v5316_v49 = vor.u32 %v6936_v40, %v5315_v39  ;;  %v5538_v52 = vor.u32 %v7013_v44, %v5535_v48  ;;  %v7007_v39 = vld [vmem:[%s10728_s6 + $0x1c4] sm:$0xf]  ;;  %v5511_v40 = vld [vmem:[%s10728_s6 + $0x1c8] sm:$0xf0]  ;;  %v5501_v44 = vld [vmem:[%s10728_s6 + $0x1b0] sm:$0xf] }
  0xf3   : > { %v5514_v42 = vor.u32 %v7007_v39, %v5511_v40  ;;  %v6989_v48 = vld [vmem:[%s10728_s6 + $0x134] sm:$0xf] }
  0xf4   : > { %1879 = vmatpush.bf16.msra.mxu2 %v5316_v49  ;;  %2299 = vmatpush.bf16.msrb.mxu3 %v5538_v52  ;;  %v5439_v49 = vld [vmem:[%s10728_s6 + $0x138] sm:$0xf0] }
  0xf5   : > { %v5442_v52 = vor.u32 %v6989_v48, %v5439_v49 }
  0xf7   : > { %v8539_v55 = vpop.f32.mrf.mxu0  ;;  %1880 = vmatmul.bf16.vlgmr.msra.gmra.mxu2 %v1790_v43  ;;  %v7000_v43 = vld [vmem:[%s10728_s6 + $0x184] sm:$0xf0] }
  0xf8   : > { %v8541_v56 = vpop.f32.mrf.mxu1  ;;  %2286 = vmatpush.bf16.msrb.mxu2 %v5474_v50  ;;  %2300 = vmatpush.bf16.msrb.mxu3 %v5530_v15  ;;  %v1159_v38 = vadd.f32 %v8539_v55, %v1027_v32  ;;  %v7006_v55 = vld [vmem:[%s10728_s6 + $0x1b4] sm:$0xf0]  ;;  %v5487_v32 = vld [vmem:[%s10728_s6 + $0x198] sm:$0xf0] }
  0xf9   : > { %v1160_v34 = vadd.f32 %v8541_v56, %v1028_v41  ;;  %v5502_v50 = vor.u32 %v7006_v55, %v5501_v44  ;;  %v7005_v56 = vld [vmem:[%s10728_s6 + $0x1b4] sm:$0xf]  ;;  %v5490_v40 = vor.u32 %v7001_v29, %v5487_v32  ;;  %v5415_v44 = vld [vmem:[%s10728_s6 + $0x108] sm:$0xf0] }
  0xfa   : > { %v5506_v63 = vor.u32 %v7005_v56, %v5503_v57  ;;  %v6966_v57 = vld [vmem:[%s10728_s6 + $0x74] sm:$0xf0] }
  0xff   : > { %v1144_v9 = vpop.f32.mrf.mxu0 }
 0x100   : > { %v8561_v2 = vpop.f32.mrf.mxu2  ;;  %v1157_v10 = vpop.f32.mrf.mxu1  ;;  %v5463_v9 = vld [vmem:[%s10728_s6 + $0x168] sm:$0xf0] }
 0x101   : > { %v8563_v4 = vpop.f32.mrf.mxu3  ;;  %v5526_v10 = vor.u32 %v7012_v6, %v5525_v1  ;;  %v5466_v11 = vor.u32 %v6995_v8, %v5463_v9  ;;  %v1337_v51 = vadd.f32 %v8561_v2, %v1159_v38  ;;  %v4599_v2 = vld [vmem:[%s10729_s7 + $0x2] sm:$0x3]  ;;  %v6987_v9 = vld [vmem:[%s10728_s6 + $0x124] sm:$0xf] }
 0x102   : > { %v5429_v1 = vld [vmem:[%s10728_s6 + $0x120] sm:$0xf]  ;;  %v1763_v18 = vperm.slane %v4599_v2, 0  ;;  %v6983_v38 = vld [vmem:[%s10728_s6 + $0x104] sm:$0xf] }
 0x103   : > { %2274 = vmatpush.bf16.msrb.mxu1 %v5526_v10  ;;  %2287 = vmatpush.bf16.msrb.mxu2 %v5466_v11  ;;  %v5431_v10 = vld [vmem:[%s10728_s6 + $0x128] sm:$0xf0]  ;;  %v5418_v49 = vor.u32 %v6983_v38, %v5415_v44  ;;  %v5647_v44 = vld [vmem:[%s10728_s6 + $0xd8] sm:$0xf0] }
 0x104   : > { %v5434_v15 = vor.u32 %v6987_v9, %v5431_v10 }
 0x107   : > { %2275 = vmatpush.bf16.msrb.mxu1 %v5518_v21  ;;  %2288 = vmatpush.bf16.msrb.mxu2 %v5458_v22  ;;  %v1764_v21 = vperm.slane %v4599_v2, 1  ;;  %v5485_v22 = vld [vmem:[%s10728_s6 + $0x190] sm:$0xf] }
 0x108   : > { %v1322_v24 = vpop.f32.mrf.mxu2 }
 0x109   : > { %v1335_v25 = vpop.f32.mrf.mxu3  ;;  %v5522_v24 = vor.u32 %v7009_v36, %v5519_v23 }
 0x10a   : > { %v5445_v25 = vld [vmem:[%s10728_s6 + $0x140] sm:$0xf] }
 0x10b   : > { %2301 = vmatpush.bf16.msrb.mxu3 %v5522_v24  ;;  %v5446_v28 = vor.u32 %v6992_v26, %v5445_v25  ;;  %2276 = vmatpush.bf16.msrb.mxu1 %v5510_v33  ;;  %v7002_v24 = vld [vmem:[%s10728_s6 + $0x194] sm:$0xf0]  ;;  %v5413_v33 = vld [vmem:[%s10728_s6 + $0x100] sm:$0xf] }
 0x10c   : > { %2289 = vmatpush.bf16.msrb.mxu2 %v5450_v37  ;;  %v5486_v26 = vor.u32 %v7002_v24, %v5485_v22  ;;  %v6984_v37 = vld [vmem:[%s10728_s6 + $0x104] sm:$0xf0] }
 0x10d   : > { %2263 = vmatpush.bf16.msrb.mxu0 %v5446_v28  ;;  %v5423_v28 = vld [vmem:[%s10728_s6 + $0x118] sm:$0xf0]  ;;  %v5414_v41 = vor.u32 %v6984_v37, %v5413_v33  ;;  %v6978_v33 = vld [vmem:[%s10728_s6 + $0xd4] sm:$0xf0]  ;;  %v6961_v37 = vld [vmem:[%s10728_s6 + $0x54] sm:$0xf] }
 0x10e   : > { %v5426_v31 = vor.u32 %v6985_v27, %v5423_v28  ;;  %v5581_v27 = vld [vmem:[%s10728_s6 + $0x50] sm:$0xf] }
 0x10f   : > { %2302 = vmatpush.bf16.msrb.mxu3 %v5514_v42  ;;  %2277 = vmatpush.bf16.msrb.mxu1 %v5502_v50  ;;  %v5477_v42 = vld [vmem:[%s10728_s6 + $0x180] sm:$0xf]  ;;  %v5597_v50 = vld [vmem:[%s10728_s6 + $0x70] sm:$0xf] }
 0x110   : > { %2290 = vmatpush.bf16.msrb.mxu2 %v5442_v52  ;;  %v5478_v45 = vor.u32 %v7000_v43, %v5477_v42 }
 0x111   : > { %2264 = vmatpush.bf16.msrb.mxu0 %v5438_v46 }
 0x113   : > { %2303 = vmatpush.bf16.msrb.mxu3 %v5506_v63  ;;  %v1980_v63 = vrot.slane %v8828_v35, 1 }
 0x114   : > { %2291 = vmatpush.bf16.msrb.mxu2 %v5434_v15  ;;  %v5589_v15 = vld [vmem:[%s10728_s6 + $0x60] sm:$0xf] }
 0x117   : > { %v8643_v53 = vpop.f32.mrf.mxu0 }
 0x118   : > { %v8645_v54 = vpop.f32.mrf.mxu1  ;;  %v1468_v0 = vadd.f32 %v8643_v53, %v1337_v51  ;;  %v7004_v53 = vld [vmem:[%s10728_s6 + $0x1a4] sm:$0xf0]  ;;  %2292 = vmatpush.bf16.msrb.mxu2 %v5426_v31  ;;  %v5479_v51 = vld [vmem:[%s10728_s6 + $0x188] sm:$0xf0]  ;;  %v5645_v31 = vld [vmem:[%s10728_s6 + $0xd0] sm:$0xf] }
 0x119   : > { %v5494_v14 = vor.u32 %v7004_v53, %v5493_v5  ;;  %v6981_v53 = vld [vmem:[%s10728_s6 + $0xf4] sm:$0xf]  ;;  %v5646_v38 = vor.u32 %v6978_v33, %v5645_v31  ;;  %v6955_v31 = vld [vmem:[%s10728_s6 + $0x24] sm:$0xf] }
 0x11b   : > { %2278 = vmatpush.bf16.msrb.mxu1 %v5494_v14  ;;  %v5663_v14 = vld [vmem:[%s10728_s6 + $0xf8] sm:$0xf0] }
 0x11c   : > { %2293 = vmatpush.bf16.msrb.mxu2 %v5418_v49 }
 0x11f   : > { %v8647_v58 = vpop.f32.mrf.mxu2  ;;  %v1453_v61 = vpop.f32.mrf.mxu0  ;;  %2279 = vmatpush.bf16.msrb.mxu1 %v5486_v26  ;;  %v5655_v26 = vld [vmem:[%s10728_s6 + $0xe8] sm:$0xf0] }
 0x120   : > { %v8649_v60 = vpop.f32.mrf.mxu3  ;;  %v1466_v62 = vpop.f32.mrf.mxu1  ;;  %v1338_v61 = vadd.f32 %v8563_v4, %v1160_v34  ;;  %v6988_v4 = vld [vmem:[%s10728_s6 + $0x124] sm:$0xf0]  ;;  %v1599_v11 = vadd.f32 %v8647_v58, %v1468_v0  ;;  %v6999_v34 = vld [vmem:[%s10728_s6 + $0x184] sm:$0xf]  ;;  %v1981_v0 = vrot.slane %v8828_v35, 2 }
 0x121   : > { %v428_v62 = vld [vmem:[%s10729_s7] sm:$0x3]  ;;  %v5430_v8 = vor.u32 %v6988_v4, %v5429_v1  ;;  %v5482_v56 = vor.u32 %v6999_v34, %v5479_v51  ;;  %v1982_v1 = vrot.slane %v8828_v35, 3  ;;  %v5598_v4 = vor.u32 %v6966_v57, %v5597_v50 }
 0x122   : > { %v1469_v6 = vadd.f32 %v8645_v54, %v1338_v61  ;;  %v1756_v12 = vperm.slane %v428_v62, 0  ;;  %v7003_v54 = vld [vmem:[%s10728_s6 + $0x1a4] sm:$0xf]  ;;  %v5661_v61 = vld [vmem:[%s10728_s6 + $0xf0] sm:$0xf] }
 0x123   : > { %2265 = vmatpush.bf16.msrb.mxu0 %v5430_v8  ;;  %v5498_v17 = vor.u32 %v7003_v54, %v5495_v3  ;;  %2280 = vmatpush.bf16.msrb.mxu1 %v5478_v45  ;;  %v5599_v8 = vld [vmem:[%s10728_s6 + $0x78] sm:$0xf0]  ;;  %v6964_v54 = vld [vmem:[%s10728_s6 + $0x64] sm:$0xf0]  ;;  %v5573_v34 = vld [vmem:[%s10728_s6 + $0x40] sm:$0xf] }
 0x124   : > { %v1600_v16 = vadd.f32 %v8649_v60, %v1469_v6  ;;  %v6986_v60 = vld [vmem:[%s10728_s6 + $0x114] sm:$0xf0]  ;;  %v6965_v6 = vld [vmem:[%s10728_s6 + $0x74] sm:$0xf]  ;;  %v5590_v22 = vor.u32 %v6964_v54, %v5589_v15 }
 0x125   : > { %2304 = vmatpush.bf16.msrb.mxu3 %v5498_v17  ;;  %v5422_v23 = vor.u32 %v6986_v60, %v5421_v19  ;;  %v5653_v17 = vld [vmem:[%s10728_s6 + $0xe0] sm:$0xf]  ;;  %v6980_v19 = vld [vmem:[%s10728_s6 + $0xe4] sm:$0xf0]  ;;  %v6974_v15 = vld [vmem:[%s10728_s6 + $0xb4] sm:$0xf0] }
 0x127   : > { %v1584_v13 = vpop.f32.mrf.mxu2  ;;  %2266 = vmatpush.bf16.msrb.mxu0 %v5422_v23  ;;  %v5591_v23 = vld [vmem:[%s10728_s6 + $0x68] sm:$0xf0] }
 0x128   : > { %v1597_v20 = vpop.f32.mrf.mxu3  ;;  %v1757_v13 = vperm.slane %v428_v62, 1  ;;  %v6982_v62 = vld [vmem:[%s10728_s6 + $0xf4] sm:$0xf0] }
 0x129   : > { %2305 = vmatpush.bf16.msrb.mxu3 %v5490_v40  ;;  %v5662_v5 = vor.u32 %v6982_v62, %v5661_v61  ;;  %v6977_v40 = vld [vmem:[%s10728_s6 + $0xd4] sm:$0xf]  ;;  %v6976_v61 = vld [vmem:[%s10728_s6 + $0xc4] sm:$0xf0]  ;;  %v6959_v62 = vld [vmem:[%s10728_s6 + $0x44] sm:$0xf] }
 0x12a   : > { %v5650_v51 = vor.u32 %v6977_v40, %v5647_v44  ;;  %v5623_v40 = vld [vmem:[%s10728_s6 + $0xa8] sm:$0xf0] }
 0x12b   : > { %2267 = vmatpush.bf16.msrb.mxu0 %v5414_v41  ;;  %2492 = vmatpush.bf16.msra.mxu1 %v5662_v5 }
 0x12d   : > { %2306 = vmatpush.bf16.msrb.mxu3 %v5482_v56  ;;  %v5637_v56 = vld [vmem:[%s10728_s6 + $0xc0] sm:$0xf] }
 0x12f   : > { %2479 = vmatpush.bf16.msra.mxu0 %v5598_v4  ;;  %v6975_v4 = vld [vmem:[%s10728_s6 + $0xc4] sm:$0xf] }
 0x133   : > { %2480 = vmatpush.bf16.msra.mxu0 %v5590_v22  ;;  %v5631_v22 = vld [vmem:[%s10728_s6 + $0xb8] sm:$0xf0] }
 0x137   : > { %v1736_v59 = vpop.f32.mrf.mxu0 }
 0x138   : > { %v1753_v7 = vadd.f32 %v1736_v59, %v1599_v11  ;;  %v1749_v58 = vpop.f32.mrf.mxu1  ;;  %v1988_v11 = vsel %vm706_vm0, %v8828_v35, %v1980_v63  ;;  %v2032_v59 = vsel %vm715_vm3, %v8828_v35, %v1980_v63  ;;  %v6951_v63 = vld [vmem:[%s10728_s6 + $0x4] sm:$0xf] }
 0x139   : > { %v1754_v20 = vadd.f32 %v1749_v58, %v1600_v16  ;;  %v5666_v58 = vor.u32 %v6981_v53, %v5663_v14  ;;  %v5565_v53 = vld [vmem:[%s10728_s6 + $0x30] sm:$0xf] }
 0x13a   : > { %v1760_v36 = vmul.f32 %v1756_v12, %v1753_v7  ;;  %v1991_v12 = vsel %vm709_vm1, %v1981_v0, %v1982_v1  ;;  %v5629_v14 = vld [vmem:[%s10728_s6 + $0xb0] sm:$0xf] }
 0x13b   : > { %v1761_v25 = vmul.f32 %v1757_v13, %v1754_v20  ;;  %v8878_v16 = vsel %vm713_vm2, %v1988_v11, %v1991_v12  ;;  %v2033_v13 = vsel %vm717_vm4, %v1981_v0, %v1982_v1  ;;  %v6963_v20 = vld [vmem:[%s10728_s6 + $0x64] sm:$0xf]  ;;  %2518 = vmatpush.bf16.msra.mxu3 %v5666_v58  ;;  %v5638_v0 = vor.u32 %v6976_v61, %v5637_v56  ;;  %v5575_v1 = vld [vmem:[%s10728_s6 + $0x48] sm:$0xf0]  ;;  %v5615_v56 = vld [vmem:[%s10728_s6 + $0x98] sm:$0xf0] }
 0x13c   : > { %v1767_v30 = vadd.f32 %v1763_v18, %v1760_v36  ;;  %v2034_v7 = vsel %vm719_vm5, %v2032_v59, %v2033_v13  ;;  %v5602_v18 = vor.u32 %v6965_v6, %v5599_v8  ;;  %v2042_v60 = vshrl.u32 %v8878_v16, 16  ;;  %v5639_v8 = vld [vmem:[%s10728_s6 + $0xc8] sm:$0xf0]  ;;  %v6952_v61 = vld [vmem:[%s10728_s6 + $0x4] sm:$0xf0] }
 0x13d   : > { %v1768_v39 = vadd.f32 %v1764_v21, %v1761_v25  ;;  %v2036_v21 = vrot.slane %v2034_v7, 1  ;;  %v5654_v36 = vor.u32 %v6980_v19, %v5653_v17  ;;  %v5594_v24 = vor.u32 %v6963_v20, %v5591_v23  ;;  %v6979_v25 = vld [vmem:[%s10728_s6 + $0xe4] sm:$0xf]  ;;  %v6957_v17 = vld [vmem:[%s10728_s6 + $0x34] sm:$0xf] }
 0x13e   : > { %v1769_v46 = vmax.f32 %v1767_v30, 0.0  ;;  %2505 = vmatpush.bf16.msra.mxu2 %v5602_v18  ;;  %v5658_v29 = vor.u32 %v6979_v25, %v5655_v26  ;;  %v6962_v30 = vld [vmem:[%s10728_s6 + $0x54] sm:$0xf0]  ;;  %v5578_v6 = vor.u32 %v6959_v62, %v5575_v1  ;;  %v5642_v59 = vor.u32 %v6975_v4, %v5639_v8  ;;  %v5567_v7 = vld [vmem:[%s10728_s6 + $0x38] sm:$0xf0] }
 0x13f   : > { %v1770_v55 = vmax.f32 %v1768_v39, 0.0  ;;  %v1738_v48 = vpop.f32.mrf.mxu0  ;;  %v2047_v28 = vshll.u32 %v2036_v21, 16  ;;  %2493 = vmatpush.bf16.msra.mxu1 %v5654_v36  ;;  %v5582_v32 = vor.u32 %v6962_v30, %v5581_v27  ;;  %v5583_v39 = vld [vmem:[%s10728_s6 + $0x58] sm:$0xf0]  ;;  %v1971_v18 = vld [vmem:[#allocation2 + $0x8] sm:$0xf]  ;;  %v5630_v20 = vor.u32 %v6974_v15, %v5629_v14 }
 0x140   : > { %v1751_v52 = vpop.f32.mrf.mxu1  ;;  %2519 = vmatpush.bf16.msra.mxu3 %v5658_v29  ;;  %v5586_v45 = vor.u32 %v6961_v37, %v5583_v39  ;;  %v5570_v21 = vor.u32 %v6957_v17, %v5567_v7  ;;  %v5557_v25 = vld [vmem:[%s10728_s6 + $0x20] sm:$0xf]  ;;  %v6956_v26 = vld [vmem:[%s10728_s6 + $0x24] sm:$0xf0]  ;;  %v5559_v37 = vld [vmem:[%s10728_s6 + $0x28] sm:$0xf0] }
 0x141   : > { %v1918_v2 = vrot.slane %v1770_v55, 6  ;;  %v2049_v41 = vsel %vm7984_vm10, %v2042_v60, %v2047_v28  ;;  %2481 = vmatpush.bf16.msra.mxu0 %v5582_v32  ;;  %v6973_v60 = vld [vmem:[%s10728_s6 + $0xb4] sm:$0xf]  ;;  %v5558_v28 = vor.u32 %v6956_v26, %v5557_v25  ;;  %v5621_v29 = vld [vmem:[%s10728_s6 + $0xa0] sm:$0xf] }
 0x142   : > { %2506 = vmatpush.bf16.msra.mxu2 %v5594_v24  ;;  %v5634_v24 = vor.u32 %v6973_v60, %v5631_v22  ;;  %v6972_v30 = vld [vmem:[%s10728_s6 + $0xa4] sm:$0xf0]  ;;  %v6971_v39 = vld [vmem:[%s10728_s6 + $0xa4] sm:$0xf]  ;;  %v5605_v62 = vld [vmem:[%s10728_s6 + $0x80] sm:$0xf] }
 0x143   : > { %v1919_v9 = vsel %vm713_vm2, %v1769_v46, %v1918_v2  ;;  %v1921_v10 = vsel %vm1920_vm11, %v1769_v46, %v1918_v2  ;;  %v6960_v46 = vld [vmem:[%s10728_s6 + $0x44] sm:$0xf0]  ;;  %2494 = vmatpush.bf16.msra.mxu1 %v5646_v38  ;;  %v5622_v33 = vor.u32 %v6972_v30, %v5621_v29  ;;  %v6954_v38 = vld [vmem:[%s10728_s6 + $0x14] sm:$0xf0]  ;;  %v5543_v4 = vld [vmem:[%s10728_s6 + $0x8] sm:$0xf0] }
 0x144   : > { %v1922_v3 = vrot.slane %v1921_v10, 2  ;;  %1923 = vst [vmem:[#allocation1] ss:$4 sm:$0xff] %v1919_v9  ;;  %v5574_v52 = vor.u32 %v6960_v46, %v5573_v34  ;;  %2520 = vmatpush.bf16.msra.mxu3 %v5650_v51  ;;  %v6958_v9 = vld [vmem:[%s10728_s6 + $0x34] sm:$0xf0]  ;;  %v5626_v34 = vor.u32 %v6971_v39, %v5623_v40 }
 0x145   : > { %v5566_v13 = vor.u32 %v6958_v9, %v5565_v53  ;;  %v5551_v51 = vld [vmem:[%s10728_s6 + $0x18] sm:$0xf0]  ;;  %v5607_v8 = vld [vmem:[%s10728_s6 + $0x88] sm:$0xf0]  ;;  %v5546_v53 = vor.u32 %v6951_v63, %v5543_v4  ;;  %v5821_v60 = vld [vmem:[%s10728_s6 + $0x2f0] sm:$0xf] }
 0x146   : > { %1927 = vst [vmem:[#allocation1 + $0x20] ss:$4 sm:$0xff] %v1922_v3  ;;  %2507 = vmatpush.bf16.msra.mxu2 %v5586_v45  ;;  %2482 = vmatpush.bf16.msra.mxu0 %v5574_v52  ;;  %v1968_v3 = vld [vmem:[#allocation2 + $0x4] sm:$0xf]  ;;  %v5613_v45 = vld [vmem:[%s10728_s6 + $0x90] sm:$0xf] }
 0x147   : > { %2495 = vmatpush.bf16.msra.mxu1 %v5638_v0  ;;  %v7046_v22 = vld [vmem:[%s10728_s6 + $0x2f4] sm:$0xf0]  ;;  %v5823_v25 = vld [vmem:[%s10728_s6 + $0x2f8] sm:$0xf0]  ;;  %v5749_v26 = vld [vmem:[%s10728_s6 + $0x260] sm:$0xf] }
 0x148   : > { %2521 = vmatpush.bf16.msra.mxu3 %v5642_v59  ;;  %v5822_v29 = vor.u32 %v7046_v22, %v5821_v60  ;;  %v5813_v30 = vld [vmem:[%s10728_s6 + $0x2e0] sm:$0xf]  ;;  %v7040_v63 = vld [vmem:[%s10728_s6 + $0x2c4] sm:$0xf0]  ;;  %v7023_v4 = vld [vmem:[%s10728_s6 + $0x244] sm:$0xf] }
 0x14a   : > { %2508 = vmatpush.bf16.msra.mxu2 %v5578_v6  ;;  %2483 = vmatpush.bf16.msra.mxu0 %v5566_v13  ;;  %v6967_v6 = vld [vmem:[%s10728_s6 + $0x84] sm:$0xf] }
 0x14b   : > { %v1924_v42 = vld.sshfl [vmem:[#allocation1] sm:$0xff pattern:$0x73625140]  ;;  %v1925_v43 = vld.sshfl [vmem:[#allocation1 + $0x8] sm:$0xff pattern:$0x73625140]  ;;  %2496 = vmatpush.bf16.msra.mxu1 %v5630_v20 }
 0x14c   : > { %v1934_v49 = vpack.c.bf16 %v1925_v43, %v1924_v42  ;;  %v5562_v42 = vor.u32 %v6955_v31, %v5559_v37  ;;  %v5549_v43 = vld [vmem:[%s10728_s6 + $0x10] sm:$0xf]  ;;  %2522 = vmatpush.bf16.msra.mxu3 %v5634_v24  ;;  %v7045_v24 = vld [vmem:[%s10728_s6 + $0x2f4] sm:$0xf]  ;;  %v7044_v31 = vld [vmem:[%s10728_s6 + $0x2e4] sm:$0xf0] }
 0x14d   : > { %v1928_v55 = vld.sshfl [vmem:[#allocation1 + $0x20] sm:$0xff pattern:$0x73625140]  ;;  %v1929_v48 = vld.sshfl [vmem:[#allocation1 + $0x28] sm:$0xff pattern:$0x73625140]  ;;  %v5550_v46 = vor.u32 %v6954_v38, %v5549_v43  ;;  %v5826_v40 = vor.u32 %v7045_v24, %v5823_v25 }
 0x14e   : > { %v1935_v50 = vpack.c.bf16 %v1929_v48, %v1928_v55  ;;  %2092 = vst [vmem:[#allocation1] ss:$9 sm:$0xff] %v2049_v41  ;;  %v1938_v57 = vrot.slane %v1934_v49, 2  ;;  %2509 = vmatpush.bf16.msra.mxu2 %v5570_v21  ;;  %2484 = vmatpush.bf16.msra.mxu0 %v5558_v28  ;;  %v6970_v55 = vld [vmem:[%s10728_s6 + $0x94] sm:$0xf0] }
 0x14f   : > { %v6953_v48 = vld [vmem:[%s10728_s6 + $0x14] sm:$0xf]  ;;  %2497 = vmatpush.bf16.msra.mxu1 %v5622_v33  ;;  %v5757_v20 = vld [vmem:[%s10728_s6 + $0x270] sm:$0xf]  ;;  %v7030_v21 = vld [vmem:[%s10728_s6 + $0x274] sm:$0xf0] }
 0x150   : > { %v1939_v2 = vrot.slane %v1935_v50, 2  ;;  %v1942_v5 = vsel %vm713_vm2, %v1934_v49, %v1938_v57  ;;  %v5614_v49 = vor.u32 %v6970_v55, %v5613_v45  ;;  %v5554_v52 = vor.u32 %v6953_v48, %v5551_v51  ;;  %v5541_v57 = vld [vmem:[%s10728_s6] sm:$0xf]  ;;  %2523 = vmatpush.bf16.msra.mxu3 %v5626_v34  ;;  %v5815_v43 = vld [vmem:[%s10728_s6 + $0x2e8] sm:$0xf0] }
 0x151   : > { %v1946_v12 = vshrl.u32 %v1942_v5, 16  ;;  %v1949_v19 = vshll.u32 %v1942_v5, 16  ;;  %v5542_v1 = vor.u32 %v6952_v61, %v5541_v57  ;;  %v5758_v28 = vor.u32 %v7030_v21, %v5757_v20  ;;  %v5805_v55 = vld [vmem:[%s10728_s6 + $0x2d0] sm:$0xf]  ;;  %v7042_v48 = vld [vmem:[%s10728_s6 + $0x2d4] sm:$0xf0] }
 0x152   : > { %v1945_v10 = vsel %vm713_vm2, %v1935_v50, %v1939_v2  ;;  %v6969_v50 = vld [vmem:[%s10728_s6 + $0x94] sm:$0xf]  ;;  %2510 = vmatpush.bf16.msra.mxu2 %v5562_v42  ;;  %v6968_v2 = vld [vmem:[%s10728_s6 + $0x84] sm:$0xf0]  ;;  %2485 = vmatpush.bf16.msra.mxu0 %v5550_v46  ;;  %v7043_v42 = vld [vmem:[%s10728_s6 + $0x2e4] sm:$0xf]  ;;  %v5814_v45 = vor.u32 %v7044_v31, %v5813_v30  ;;  %v5806_v61 = vor.u32 %v7042_v48, %v5805_v55 }
 0x153   : > { %v1952_v54 = vshrl.u32 %v1945_v10, 16  ;;  %v1948_v58 = vrot.slane %v1946_v12, 7  ;;  %v1955_v23 = vshll.u32 %v1945_v10, 16  ;;  %v5618_v0 = vor.u32 %v6969_v50, %v5615_v56  ;;  %2498 = vmatpush.bf16.msra.mxu1 %v5614_v49  ;;  %v7025_v49 = vld [vmem:[%s10728_s6 + $0x254] sm:$0xf] }
 0x154   : > { %v5606_v5 = vor.u32 %v6968_v2, %v5605_v62  ;;  %v5610_v10 = vor.u32 %v6967_v6, %v5607_v8  ;;  %v5818_v46 = vor.u32 %v7043_v42, %v5815_v43  ;;  %v5743_v51 = vld [vmem:[%s10728_s6 + $0x258] sm:$0xf0]  ;;  %v7041_v50 = vld [vmem:[%s10728_s6 + $0x2d4] sm:$0xf]  ;;  %v5733_v56 = vld [vmem:[%s10728_s6 + $0x240] sm:$0xf] }
 0x155   : > { %v1954_v36 = vrot.slane %v1952_v54, 7  ;;  %v1951_v27 = vor.u32 %v1949_v19, %v1948_v58  ;;  %2524 = vmatpush.bf16.msra.mxu3 %v5618_v0  ;;  %v7024_v62 = vld [vmem:[%s10728_s6 + $0x244] sm:$0xf0]  ;;  %v5797_v2 = vld [vmem:[%s10728_s6 + $0x2c0] sm:$0xf]  ;;  %v5746_v0 = vor.u32 %v7025_v49, %v5743_v51 }
 0x156   : > { %2511 = vmatpush.bf16.msra.mxu2 %v5554_v52  ;;  %2486 = vmatpush.bf16.msra.mxu0 %v5542_v1  ;;  %v5807_v52 = vld [vmem:[%s10728_s6 + $0x2d8] sm:$0xf0]  ;;  %v7039_v6 = vld [vmem:[%s10728_s6 + $0x2c4] sm:$0xf]  ;;  %v5799_v8 = vld [vmem:[%s10728_s6 + $0x2c8] sm:$0xf0] }
 0x157   : > { %v1957_v32 = vor.u32 %v1955_v23, %v1954_v36  ;;  %v1969_v41 = vsel %vm1967_vm6, %v1951_v27, %v1968_v3  ;;  %2499 = vmatpush.bf16.msra.mxu1 %v5606_v5  ;;  %v7029_v36 = vld [vmem:[%s10728_s6 + $0x274] sm:$0xf]  ;;  %v5759_v23 = vld [vmem:[%s10728_s6 + $0x278] sm:$0xf0]  ;;  %v7028_v27 = vld [vmem:[%s10728_s6 + $0x264] sm:$0xf0]  ;;  %v5810_v1 = vor.u32 %v7041_v50, %v5807_v52 }
 0x158   : > { %1970 = vst [vmem:[#allocation2 + $0x4] sm:$0xf] %v1969_v41  ;;  %v5762_v39 = vor.u32 %v7029_v36, %v5759_v23  ;;  %v5751_v41 = vld [vmem:[%s10728_s6 + $0x268] sm:$0xf0]  ;;  %v5750_v38 = vor.u32 %v7028_v27, %v5749_v26  ;;  %v5791_v20 = vld [vmem:[%s10728_s6 + $0x2b8] sm:$0xf0] }
 0x159   : > { %v1972_v44 = vsel %vm1967_vm6, %v1957_v32, %v1971_v18  ;;  %2525 = vmatpush.bf16.msra.mxu3 %v5610_v10  ;;  %v7027_v32 = vld [vmem:[%s10728_s6 + $0x264] sm:$0xf]  ;;  %v5735_v5 = vld [vmem:[%s10728_s6 + $0x248] sm:$0xf0]  ;;  %v5717_v36 = vld [vmem:[%s10728_s6 + $0x220] sm:$0xf] }
 0x15a   : > { %1973 = vst [vmem:[#allocation2 + $0x8] sm:$0xf] %v1972_v44  ;;  %2512 = vmatpush.bf16.msra.mxu2 %v5546_v53  ;;  %v7026_v44 = vld [vmem:[%s10728_s6 + $0x254] sm:$0xf0]  ;;  %v5754_v34 = vor.u32 %v7027_v32, %v5751_v41  ;;  %v7020_v23 = vld [vmem:[%s10728_s6 + $0x224] sm:$0xf0] }
 0x15b   : > { %v5781_v24 = vld [vmem:[%s10728_s6 + $0x2a0] sm:$0xf]  ;;  %v7036_v27 = vld [vmem:[%s10728_s6 + $0x2a4] sm:$0xf0]  ;;  %v7035_v31 = vld [vmem:[%s10728_s6 + $0x2a4] sm:$0xf]  ;;  %v5718_v41 = vor.u32 %v7020_v23, %v5717_v36 }
 0x15c   : > { %v5783_v32 = vld [vmem:[%s10728_s6 + $0x2a8] sm:$0xf0]  ;;  %v5782_v42 = vor.u32 %v7036_v27, %v5781_v24  ;;  %v7018_v43 = vld [vmem:[%s10728_s6 + $0x214] sm:$0xf0]  ;;  %v7033_v55 = vld [vmem:[%s10728_s6 + $0x294] sm:$0xf] }
 0x15d   : > { %v5775_v48 = vld [vmem:[%s10728_s6 + $0x298] sm:$0xf0]  ;;  %v5701_v50 = vld [vmem:[%s10728_s6 + $0x200] sm:$0xf]  ;;  %v7016_v52 = vld [vmem:[%s10728_s6 + $0x204] sm:$0xf0] }
 0x15e   : > { %v5909_v24 = vld [vmem:[%s10728_s6 + $0x360] sm:$0xf] }
 0x15f   : > { %v9077_v9 = vld [vmem:[#allocation2 + $0x4] sm:$0xf] }
 0x160   : > { %v1983_v11 = vrot.slane %v9077_v9, 1  ;;  %v1984_v12 = vrot.slane %v9077_v9, 2  ;;  %v1985_v14 = vrot.slane %v9077_v9, 3 }
 0x162   : > { %v1995_v15 = vsel %vm706_vm0, %v9077_v9, %v1983_v11  ;;  %v1998_v54 = vsel %vm709_vm1, %v1984_v12, %v1985_v14  ;;  %v2037_v3 = vsel %vm715_vm3, %v9077_v9, %v1983_v11  ;;  %v2038_v59 = vsel %vm717_vm4, %v1984_v12, %v1985_v14  ;;  %v9196_v11 = vld [vmem:[#allocation2 + $0x8] sm:$0xf] }
 0x163   : > { %v9089_v13 = vsel %vm713_vm2, %v1995_v15, %v1998_v54  ;;  %v2039_v17 = vsel %vm719_vm5, %v2037_v3, %v2038_v59  ;;  %v5734_v12 = vor.u32 %v7024_v62, %v5733_v56  ;;  %v5798_v14 = vor.u32 %v7040_v63, %v5797_v2  ;;  %v5725_v15 = vld [vmem:[%s10728_s6 + $0x230] sm:$0xf]  ;;  %v7022_v54 = vld [vmem:[%s10728_s6 + $0x234] sm:$0xf0]  ;;  %v5765_v56 = vld [vmem:[%s10728_s6 + $0x280] sm:$0xf] }
 0x164   : > { %v2041_v7 = vrot.slane %v2039_v17, 1  ;;  %v2050_v18 = vshrl.u32 %v9089_v13, 16  ;;  %v5738_v3 = vor.u32 %v7023_v4, %v5735_v5  ;;  %v5802_v59 = vor.u32 %v7039_v6, %v5799_v8  ;;  %v5789_v17 = vld [vmem:[%s10728_s6 + $0x2b0] sm:$0xf]  ;;  %v7032_v2 = vld [vmem:[%s10728_s6 + $0x284] sm:$0xf0] }
 0x165   : > { %v2792_v21 = vrot.slane %v9196_v11, 1  ;;  %v5726_v60 = vor.u32 %v7022_v54, %v5725_v15  ;;  %v7015_v63 = vld [vmem:[%s10728_s6 + $0x204] sm:$0xf]  ;;  %v5778_v5 = vor.u32 %v7033_v55, %v5775_v48  ;;  %v5767_v8 = vld [vmem:[%s10728_s6 + $0x288] sm:$0xf0] }
 0x166   : > { %v2055_v58 = vshll.u32 %v2041_v7, 16  ;;  %v7021_v7 = vld [vmem:[%s10728_s6 + $0x234] sm:$0xf]  ;;  %v7031_v6 = vld [vmem:[%s10728_s6 + $0x284] sm:$0xf] }
 0x167   : > { %v3056_v49 = vsel %vm715_vm3, %v9196_v11, %v2792_v21  ;;  %v7078_v15 = vld [vmem:[%s10728_s6 + $0x3f4] sm:$0xf0]  ;;  %v7061_v54 = vld [vmem:[%s10728_s6 + $0x374] sm:$0xf]  ;;  %v5967_v55 = vld [vmem:[%s10728_s6 + $0x3d8] sm:$0xf0] }
 0x168   : > { %v9095_v19 = vsel %vm7984_vm10, %v2050_v18, %v2055_v58  ;;  %v5727_v18 = vld [vmem:[%s10728_s6 + $0x238] sm:$0xf0]  ;;  %v7037_v58 = vld [vmem:[%s10728_s6 + $0x2b4] sm:$0xf]  ;;  %v5893_v48 = vld [vmem:[%s10728_s6 + $0x340] sm:$0xf] }
 0x169   : > { %2095 = vst [vmem:[#allocation1 + $0x1] ss:$9 sm:$0xff] %v9095_v19  ;;  %v5730_v25 = vor.u32 %v7021_v7, %v5727_v18  ;;  %v5794_v26 = vor.u32 %v7037_v58, %v5791_v20  ;;  %v5766_v7 = vor.u32 %v7032_v2, %v5765_v56  ;;  %v5983_v18 = vld [vmem:[%s10728_s6 + $0x3f8] sm:$0xf0] }
 0x170   : > { %v2096_v33 = vld [vmem:[#allocation1] sm:$0xff]  ;;  %v2097_v37 = vld [vmem:[#allocation1 + $0x9] sm:$0xff] }
 0x171   : > { %2268 = vmatmul.bf16.vlgmr.msrb.gmra.mxu0 %v2096_v33  ;;  %2312 = vst [vmem:[#allocation1] ss:$9 sm:$0xff] %v8878_v16  ;;  %2281 = vmatmul.bf16.vlgmr.msrb.gmra.mxu1 %v2097_v37  ;;  %v5741_v16 = vld [vmem:[%s10728_s6 + $0x250] sm:$0xf] }
 0x172   : > { %2314 = vst [vmem:[#allocation1 + $0x1] ss:$9 sm:$0xff] %v9089_v13  ;;  %2294 = vmatmul.bf16.vlgmr.msrb.gmra.mxu2 %v2096_v33  ;;  %2307 = vmatmul.bf16.vlgmr.msrb.gmra.mxu3 %v2097_v37  ;;  %v5742_v57 = vor.u32 %v7026_v44, %v5741_v16  ;;  %v2793_v33 = vrot.slane %v9196_v11, 2  ;;  %v2794_v37 = vrot.slane %v9196_v11, 3  ;;  %v5786_v16 = vor.u32 %v7035_v31, %v5783_v32  ;;  %v7034_v44 = vld [vmem:[%s10728_s6 + $0x294] sm:$0xf0] }
 0x173   : > { %2737 = vmatpush.bf16.msrb.mxu0 %v5758_v28  ;;  %2750 = vmatpush.bf16.msrb.mxu1 %v5822_v29  ;;  %v7019_v28 = vld [vmem:[%s10728_s6 + $0x224] sm:$0xf]  ;;  %v5719_v29 = vld [vmem:[%s10728_s6 + $0x228] sm:$0xf0] }
 0x174   : > { %2763 = vmatpush.bf16.msrb.mxu2 %v5762_v39  ;;  %2776 = vmatpush.bf16.msrb.mxu3 %v5826_v40  ;;  %v5709_v39 = vld [vmem:[%s10728_s6 + $0x210] sm:$0xf]  ;;  %v3057_v51 = vsel %vm717_vm4, %v2793_v33, %v2794_v37  ;;  %v7075_v31 = vld [vmem:[%s10728_s6 + $0x3e4] sm:$0xf]  ;;  %v5975_v32 = vld [vmem:[%s10728_s6 + $0x3e8] sm:$0xf0] }
 0x177   : > { %2738 = vmatpush.bf16.msrb.mxu0 %v5750_v38  ;;  %2751 = vmatpush.bf16.msrb.mxu1 %v5814_v45  ;;  %v5773_v38 = vld [vmem:[%s10728_s6 + $0x290] sm:$0xf]  ;;  %v5722_v45 = vor.u32 %v7019_v28, %v5719_v29  ;;  %v5973_v28 = vld [vmem:[%s10728_s6 + $0x3e0] sm:$0xf]  ;;  %v7059_v29 = vld [vmem:[%s10728_s6 + $0x364] sm:$0xf] }
 0x178   : > { %2764 = vmatpush.bf16.msrb.mxu2 %v5754_v34  ;;  %2777 = vmatpush.bf16.msrb.mxu3 %v5818_v46  ;;  %v7017_v34 = vld [vmem:[%s10728_s6 + $0x214] sm:$0xf]  ;;  %v5711_v46 = vld [vmem:[%s10728_s6 + $0x218] sm:$0xf0]  ;;  %v5774_v62 = vor.u32 %v7034_v44, %v5773_v38  ;;  %v5978_v38 = vor.u32 %v7075_v31, %v5975_v32 }
 0x179   : > { %v2315_v53 = vld [vmem:[#allocation1] sm:$0xff]  ;;  %v2316_v10 = vld [vmem:[#allocation1 + $0x9] sm:$0xff]  ;;  %v5714_v4 = vor.u32 %v7017_v34, %v5711_v46  ;;  %v7057_v44 = vld [vmem:[%s10728_s6 + $0x354] sm:$0xf] }
 0x17a   : > { %2534 = vst [vmem:[#allocation1 + $0x10] sm:$0xff] %v9077_v9  ;;  %v5903_v34 = vld [vmem:[%s10728_s6 + $0x358] sm:$0xf0]  ;;  %v7073_v46 = vld [vmem:[%s10728_s6 + $0x3d4] sm:$0xf] }
 0x17b   : > { %2739 = vmatpush.bf16.msrb.mxu0 %v5742_v57  ;;  %2752 = vmatpush.bf16.msrb.mxu1 %v5806_v61  ;;  %2531 = vst [vmem:[#allocation1] sm:$0xff] %v8828_v35  ;;  %v7038_v35 = vld [vmem:[%s10728_s6 + $0x2b4] sm:$0xf0]  ;;  %v2797_v57 = vsel %vm706_vm0, %v9196_v11, %v2792_v21  ;;  %v5710_v61 = vor.u32 %v7018_v43, %v5709_v39 }
 0x17c   : > { %2765 = vmatpush.bf16.msrb.mxu2 %v5746_v0  ;;  %2778 = vmatpush.bf16.msrb.mxu3 %v5810_v1  ;;  %v5790_v22 = vor.u32 %v7038_v35, %v5789_v17  ;;  %v5703_v0 = vld [vmem:[%s10728_s6 + $0x208] sm:$0xf0]  ;;  %v2800_v1 = vsel %vm709_vm1, %v2793_v33, %v2794_v37  ;;  %v5702_v35 = vor.u32 %v7016_v52, %v5701_v50 }
 0x17d   : > { %v9328_v17 = vsel %vm713_vm2, %v2797_v57, %v2800_v1  ;;  %v7056_v57 = vld [vmem:[%s10728_s6 + $0x344] sm:$0xf0]  ;;  %v5970_v2 = vor.u32 %v7073_v46, %v5967_v55  ;;  %v5895_v1 = vld [vmem:[%s10728_s6 + $0x348] sm:$0xf0]  ;;  %v7047_v46 = vld [vmem:[%s10728_s6 + $0x304] sm:$0xf] }
 0x17e   : > { %v3061_v33 = vshrl.u32 %v9328_v17, 16  ;;  %v5863_v55 = vld [vmem:[%s10728_s6 + $0x308] sm:$0xf0] }
 0x17f   : > { %2740 = vmatpush.bf16.msrb.mxu0 %v5734_v12  ;;  %2753 = vmatpush.bf16.msrb.mxu1 %v5798_v14  ;;  %v7062_v12 = vld [vmem:[%s10728_s6 + $0x374] sm:$0xf0]  ;;  %v5981_v14 = vld [vmem:[%s10728_s6 + $0x3f0] sm:$0xf] }
 0x180   : > { %2766 = vmatpush.bf16.msrb.mxu2 %v5738_v3  ;;  %2779 = vmatpush.bf16.msrb.mxu3 %v5802_v59  ;;  %v5919_v3 = vld [vmem:[%s10728_s6 + $0x378] sm:$0xf0]  ;;  %v7077_v59 = vld [vmem:[%s10728_s6 + $0x3f4] sm:$0xf]  ;;  %v5982_v23 = vor.u32 %v7078_v15, %v5981_v14  ;;  %v5949_v14 = vld [vmem:[%s10728_s6 + $0x3b0] sm:$0xf] }
 0x181   : > { %2487 = vmatmul.bf16.vlgmr.msra.gmra.mxu0 %v2315_v53  ;;  %v2536_v30 = vld [vmem:[#allocation1 + $0x11] ss:$2 sm:$0xff]  ;;  %2500 = vmatmul.bf16.vlgmr.msra.gmra.mxu1 %v2316_v10  ;;  %v5986_v27 = vor.u32 %v7077_v59, %v5983_v18 }
 0x182   : > { %2513 = vmatmul.bf16.vlgmr.msra.gmra.mxu2 %v2315_v53  ;;  %2526 = vmatmul.bf16.vlgmr.msra.gmra.mxu3 %v2316_v10  ;;  %v2533_v40 = vld [vmem:[#allocation1 + $0x1] ss:$2 sm:$0xff]  ;;  %v5917_v53 = vld [vmem:[%s10728_s6 + $0x370] sm:$0xf]  ;;  %v3058_v10 = vsel %vm719_vm5, %v3056_v49, %v3057_v51  ;;  %v7070_v15 = vld [vmem:[%s10728_s6 + $0x3b4] sm:$0xf0] }
 0x183   : > { %2741 = vmatpush.bf16.msrb.mxu0 %v5726_v60  ;;  %2754 = vmatpush.bf16.msrb.mxu1 %v5790_v22  ;;  %2570 = vst [vmem:[#allocation1] ss:$9 sm:$0xff] %v2533_v40  ;;  %v3060_v21 = vrot.slane %v3058_v10, 1  ;;  %v5706_v60 = vor.u32 %v7015_v63, %v5703_v0  ;;  %v5770_v22 = vor.u32 %v7031_v6, %v5767_v8  ;;  %v7072_v63 = vld [vmem:[%s10728_s6 + $0x3c4] sm:$0xf0] }
 0x184   : > { %2767 = vmatpush.bf16.msrb.mxu2 %v5730_v25  ;;  %2780 = vmatpush.bf16.msrb.mxu3 %v5794_v26  ;;  %2572 = vst [vmem:[#allocation1 + $0x1] ss:$9 sm:$0xff] %v2536_v30  ;;  %v5918_v36 = vor.u32 %v7062_v12, %v5917_v53  ;;  %v7060_v25 = vld [vmem:[%s10728_s6 + $0x364] sm:$0xf0]  ;;  %v5922_v26 = vor.u32 %v7061_v54, %v5919_v3  ;;  %v5911_v30 = vld [vmem:[%s10728_s6 + $0x368] sm:$0xf0] }
 0x185   : > { %v3066_v37 = vshll.u32 %v3060_v21, 16  ;;  %v5910_v39 = vor.u32 %v7060_v25, %v5909_v24  ;;  %v5914_v43 = vor.u32 %v7059_v29, %v5911_v30  ;;  %v7055_v0 = vld [vmem:[%s10728_s6 + $0x344] sm:$0xf]  ;;  %v5885_v8 = vld [vmem:[%s10728_s6 + $0x330] sm:$0xf] }
 0x186   : > { %v7054_v53 = vld [vmem:[%s10728_s6 + $0x334] sm:$0xf0]  ;;  %v5898_v10 = vor.u32 %v7055_v0, %v5895_v1  ;;  %v7053_v54 = vld [vmem:[%s10728_s6 + $0x334] sm:$0xf]  ;;  %v5887_v3 = vld [vmem:[%s10728_s6 + $0x338] sm:$0xf0] }
 0x187   : > { %2742 = vmatpush.bf16.msrb.mxu0 %v5718_v41  ;;  %2755 = vmatpush.bf16.msrb.mxu1 %v5782_v42  ;;  %v5901_v41 = vld [vmem:[%s10728_s6 + $0x350] sm:$0xf]  ;;  %v7058_v42 = vld [vmem:[%s10728_s6 + $0x354] sm:$0xf0]  ;;  %v9393_v50 = vsel %vm7984_vm10, %v3061_v33, %v3066_v37  ;;  %v7069_v59 = vld [vmem:[%s10728_s6 + $0x3b4] sm:$0xf]  ;;  %v5886_v18 = vor.u32 %v7054_v53, %v5885_v8 }
 0x188   : > { %2768 = vmatpush.bf16.msrb.mxu2 %v5722_v45  ;;  %2781 = vmatpush.bf16.msrb.mxu3 %v5786_v16  ;;  %v5965_v45 = vld [vmem:[%s10728_s6 + $0x3d0] sm:$0xf]  ;;  %v7074_v16 = vld [vmem:[%s10728_s6 + $0x3d4] sm:$0xf0]  ;;  %v5902_v52 = vor.u32 %v7058_v42, %v5901_v41  ;;  %v5941_v21 = vld [vmem:[%s10728_s6 + $0x3a0] sm:$0xf] }
 0x189   : > { %v5966_v56 = vor.u32 %v7074_v16, %v5965_v45  ;;  %v7051_v24 = vld [vmem:[%s10728_s6 + $0x324] sm:$0xf]  ;;  %v7050_v30 = vld [vmem:[%s10728_s6 + $0x314] sm:$0xf0]  ;;  %v5933_v33 = vld [vmem:[%s10728_s6 + $0x390] sm:$0xf] }
 0x18a   : > { %v7066_v37 = vld [vmem:[%s10728_s6 + $0x394] sm:$0xf0]  ;;  %v7065_v41 = vld [vmem:[%s10728_s6 + $0x394] sm:$0xf]  ;;  %v5935_v42 = vld [vmem:[%s10728_s6 + $0x398] sm:$0xf0] }
 0x18b   : > { %2743 = vmatpush.bf16.msrb.mxu0 %v5710_v61  ;;  %2756 = vmatpush.bf16.msrb.mxu1 %v5774_v62  ;;  %v2573_v58 = vld [vmem:[#allocation1] sm:$0xff]  ;;  %v2574_v20 = vld [vmem:[#allocation1 + $0x9] sm:$0xff]  ;;  %v5906_v62 = vor.u32 %v7057_v44, %v5903_v34  ;;  %v5934_v44 = vor.u32 %v7066_v37, %v5933_v33  ;;  %v7110_v0 = vld [vmem:[%s10728_s6 + $0x4f4] sm:$0xf0] }
 0x18c   : > { %2769 = vmatpush.bf16.msrb.mxu2 %v5714_v4  ;;  %2782 = vmatpush.bf16.msrb.mxu3 %v5778_v5  ;;  %2835 = vst [vmem:[#allocation1] ss:$9 sm:$0xff] %v9089_v13  ;;  %v7076_v13 = vld [vmem:[%s10728_s6 + $0x3e4] sm:$0xf0]  ;;  %v5957_v61 = vld [vmem:[%s10728_s6 + $0x3c0] sm:$0xf]  ;;  %v5894_v5 = vor.u32 %v7056_v57, %v5893_v48 }
 0x18d   : > { %2837 = vst [vmem:[#allocation1 + $0x1] ss:$9 sm:$0xff] %v9328_v17  ;;  %v5974_v40 = vor.u32 %v7076_v13, %v5973_v28  ;;  %v5959_v4 = vld [vmem:[%s10728_s6 + $0x3c8] sm:$0xf0]  ;;  %v5958_v6 = vor.u32 %v7072_v63, %v5957_v61  ;;  %v5925_v45 = vld [vmem:[%s10728_s6 + $0x380] sm:$0xf] }
 0x18e   : > { %v5943_v28 = vld [vmem:[%s10728_s6 + $0x3a8] sm:$0xf0]  ;;  %v7064_v34 = vld [vmem:[%s10728_s6 + $0x384] sm:$0xf0]  ;;  %v6078_v61 = vld [vmem:[%s10728_s6 + $0x470] sm:$0xf] }
 0x18f   : > { %2744 = vmatpush.bf16.msrb.mxu0 %v5702_v35  ;;  %2757 = vmatpush.bf16.msrb.mxu1 %v5766_v7  ;;  %v5951_v35 = vld [vmem:[%s10728_s6 + $0x3b8] sm:$0xf0]  ;;  %v5877_v7 = vld [vmem:[%s10728_s6 + $0x320] sm:$0xf]  ;;  %v5927_v57 = vld [vmem:[%s10728_s6 + $0x388] sm:$0xf0] }
 0x190   : > { %2770 = vmatpush.bf16.msrb.mxu2 %v5706_v60  ;;  %2783 = vmatpush.bf16.msrb.mxu3 %v5770_v22  ;;  %v5890_v22 = vor.u32 %v7053_v54, %v5887_v3  ;;  %v7093_v1 = vld [vmem:[%s10728_s6 + $0x474] sm:$0xf]  ;;  %v6144_v8 = vld [vmem:[%s10728_s6 + $0x4f8] sm:$0xf0]  ;;  %v6070_v3 = vld [vmem:[%s10728_s6 + $0x460] sm:$0xf] }
 0x191   : > { %v7105_v33 = vld [vmem:[%s10728_s6 + $0x4d4] sm:$0xf]  ;;  %v6128_v37 = vld [vmem:[%s10728_s6 + $0x4d8] sm:$0xf0] }
 0x192   : > { %2745 = vmatmul.bf16.vlgmr.msrb.gmra.mxu0 %v2573_v58  ;;  %2758 = vmatmul.bf16.vlgmr.msrb.gmra.mxu1 %v2574_v20 }
 0x193   : > { %3002 = vmatpush.bf16.msra.mxu0 %v5918_v36  ;;  %3015 = vmatpush.bf16.msra.mxu1 %v5982_v23  ;;  %v5954_v36 = vor.u32 %v7069_v59, %v5951_v35  ;;  %v7068_v23 = vld [vmem:[%s10728_s6 + $0x3a4] sm:$0xf0] }
 0x194   : > { %3028 = vmatpush.bf16.msra.mxu2 %v5922_v26  ;;  %3041 = vmatpush.bf16.msra.mxu3 %v5986_v27  ;;  %v9387_v49 = vld [vmem:[#allocation1] sm:$0xff]  ;;  %v9389_v51 = vld [vmem:[#allocation1 + $0x9] sm:$0xff]  ;;  %v5942_v29 = vor.u32 %v7068_v23, %v5941_v21 }
 0x195   : > { %2771 = vmatmul.bf16.vlgmr.msrb.gmra.mxu2 %v2573_v58  ;;  %2784 = vmatmul.bf16.vlgmr.msrb.gmra.mxu3 %v2574_v20  ;;  %3102 = vst [vmem:[#allocation1] ss:$9 sm:$0xff] %v9095_v19  ;;  %v7071_v19 = vld [vmem:[%s10728_s6 + $0x3c4] sm:$0xf]  ;;  %v5950_v58 = vor.u32 %v7070_v15, %v5949_v14  ;;  %v7052_v20 = vld [vmem:[%s10728_s6 + $0x324] sm:$0xf0] }
 0x196   : > { %3105 = vst [vmem:[#allocation1 + $0x1] ss:$9 sm:$0xff] %v9393_v50  ;;  %v5962_v12 = vor.u32 %v7071_v19, %v5959_v4  ;;  %v5879_v26 = vld [vmem:[%s10728_s6 + $0x328] sm:$0xf0]  ;;  %v7067_v27 = vld [vmem:[%s10728_s6 + $0x3a4] sm:$0xf]  ;;  %v5878_v13 = vor.u32 %v7052_v20, %v5877_v7 }
 0x197   : > { %3003 = vmatpush.bf16.msra.mxu0 %v5910_v39  ;;  %3016 = vmatpush.bf16.msra.mxu1 %v5974_v40  ;;  %v5882_v31 = vor.u32 %v7051_v24, %v5879_v26  ;;  %v5946_v32 = vor.u32 %v7067_v27, %v5943_v28  ;;  %v7049_v39 = vld [vmem:[%s10728_s6 + $0x314] sm:$0xf]  ;;  %v5871_v40 = vld [vmem:[%s10728_s6 + $0x318] sm:$0xf0]  ;;  %v7092_v59 = vld [vmem:[%s10728_s6 + $0x464] sm:$0xf0] }
 0x198   : > { %3029 = vmatpush.bf16.msra.mxu2 %v5914_v43  ;;  %3042 = vmatpush.bf16.msra.mxu3 %v5978_v38  ;;  %v5861_v43 = vld [vmem:[%s10728_s6 + $0x300] sm:$0xf]  ;;  %v7048_v38 = vld [vmem:[%s10728_s6 + $0x304] sm:$0xf0]  ;;  %v5874_v48 = vor.u32 %v7049_v39, %v5871_v40  ;;  %v6080_v19 = vld [vmem:[%s10728_s6 + $0x478] sm:$0xf0]  ;;  %v6071_v24 = vor.u32 %v7092_v59, %v6070_v3 }
 0x199   : > { %v5862_v4 = vor.u32 %v7048_v38, %v5861_v43  ;;  %v9544_v14 = vld [vmem:[#allocation2 + $0xc] sm:$0xf]  ;;  %v6083_v35 = vor.u32 %v7093_v1, %v6080_v19  ;;  %v7091_v20 = vld [vmem:[%s10728_s6 + $0x464] sm:$0xf]  ;;  %v6072_v21 = vld [vmem:[%s10728_s6 + $0x468] sm:$0xf0] }
 0x19a   : > { %v3585_v23 = vrot.slane %v9544_v14, 1  ;;  %v6062_v27 = vld [vmem:[%s10728_s6 + $0x450] sm:$0xf]  ;;  %v7090_v28 = vld [vmem:[%s10728_s6 + $0x454] sm:$0xf0]  ;;  %v3586_v39 = vrot.slane %v9544_v14, 2 }
 0x19b   : > { %3004 = vmatpush.bf16.msra.mxu0 %v5902_v52  ;;  %3017 = vmatpush.bf16.msra.mxu1 %v5966_v56  ;;  %v5938_v52 = vor.u32 %v7065_v41, %v5935_v42  ;;  %v7063_v56 = vld [vmem:[%s10728_s6 + $0x384] sm:$0xf]  ;;  %v3587_v40 = vrot.slane %v9544_v14, 3  ;;  %v9601_v41 = vpop.f32.mrf.mxu2  ;;  %v6063_v43 = vor.u32 %v7090_v28, %v6062_v27  ;;  %v7086_v19 = vld [vmem:[%s10728_s6 + $0x434] sm:$0xf0] }
 0x19c   : > { %3030 = vmatpush.bf16.msra.mxu2 %v5906_v62  ;;  %3043 = vmatpush.bf16.msra.mxu3 %v5970_v2  ;;  %v7094_v62 = vld [vmem:[%s10728_s6 + $0x474] sm:$0xf0]  ;;  %v6142_v2 = vld [vmem:[%s10728_s6 + $0x4f0] sm:$0xf]  ;;  %v3849_v42 = vsel %vm715_vm3, %v9544_v14, %v3585_v23  ;;  %v7101_v3 = vld [vmem:[%s10728_s6 + $0x4b4] sm:$0xf] }
 0x19d   : > { %v9451_v60 = vld [vmem:[#allocation1] sm:$0xff]  ;;  %v9460_v25 = vld [vmem:[#allocation1 + $0x9] sm:$0xff]  ;;  %v6079_v15 = vor.u32 %v7094_v62, %v6078_v61  ;;  %v6143_v54 = vor.u32 %v7110_v0, %v6142_v2  ;;  %v3590_v61 = vsel %vm706_vm0, %v9544_v14, %v3585_v23  ;;  %v3593_v62 = vsel %vm709_vm1, %v3586_v39, %v3587_v40  ;;  %v6112_v59 = vld [vmem:[%s10728_s6 + $0x4b8] sm:$0xf0] }
 0x19e   : > { %3324 = vst [vmem:[#allocation1] sm:$0xff] %v9077_v9  ;;  %v5869_v9 = vld [vmem:[%s10728_s6 + $0x310] sm:$0xf]  ;;  %v7083_v27 = vld [vmem:[%s10728_s6 + $0x424] sm:$0xf]  ;;  %vm4395_vm0 = vcmask 1043456  }
 0x19f   : > { %3005 = vmatpush.bf16.msra.mxu0 %v5894_v5  ;;  %3018 = vmatpush.bf16.msra.mxu1 %v5958_v6  ;;  %3327 = vst [vmem:[#allocation1 + $0x10] sm:$0xff] %v9196_v11  ;;  %v5870_v16 = vor.u32 %v7050_v30, %v5869_v9  ;;  %v5926_v5 = vor.u32 %v7064_v34, %v5925_v45  ;;  %v7109_v6 = vld [vmem:[%s10728_s6 + $0x4f4] sm:$0xf]  ;;  %v6126_v9 = vld [vmem:[%s10728_s6 + $0x4d0] sm:$0xf]  ;;  %vm4485_vm1 = vcmask 40960  }
 0x1a0   : > { %3031 = vmatpush.bf16.msra.mxu2 %v5898_v10  ;;  %3044 = vmatpush.bf16.msra.mxu3 %v5962_v12  ;;  %v5866_v10 = vor.u32 %v7047_v46, %v5863_v55  ;;  %v5930_v12 = vor.u32 %v7063_v56, %v5927_v57  ;;  %v6147_v7 = vor.u32 %v7109_v6, %v6144_v8  ;;  %v7106_v30 = vld [vmem:[%s10728_s6 + $0x4d4] sm:$0xf0]  ;;  %v6054_v45 = vld [vmem:[%s10728_s6 + $0x440] sm:$0xf]  ;;  %v7104_v55 = vld [vmem:[%s10728_s6 + $0x4c4] sm:$0xf0] }
 0x1a1   : > { %v6127_v38 = vor.u32 %v7106_v30, %v6126_v9  ;;  %v6131_v34 = vor.u32 %v7105_v33, %v6128_v37  ;;  %v6118_v46 = vld [vmem:[%s10728_s6 + $0x4c0] sm:$0xf]  ;;  %v7103_v56 = vld [vmem:[%s10728_s6 + $0x4c4] sm:$0xf]  ;;  %v6120_v57 = vld [vmem:[%s10728_s6 + $0x4c8] sm:$0xf0] }
 0x1a2   : > { %v6046_v2 = vld [vmem:[%s10728_s6 + $0x430] sm:$0xf]  ;;  %v6119_v1 = vor.u32 %v7104_v55, %v6118_v46  ;;  %v6123_v8 = vor.u32 %v7103_v56, %v6120_v57  ;;  %v6040_v28 = vld [vmem:[%s10728_s6 + $0x428] sm:$0xf0]  ;;  %v7082_v33 = vld [vmem:[%s10728_s6 + $0x414] sm:$0xf0] }
 0x1a3   : > { %3006 = vmatpush.bf16.msra.mxu0 %v5886_v18  ;;  %3019 = vmatpush.bf16.msra.mxu1 %v5950_v58  ;;  %v6134_v18 = vld [vmem:[%s10728_s6 + $0x4e0] sm:$0xf]  ;;  %v7108_v58 = vld [vmem:[%s10728_s6 + $0x4e4] sm:$0xf0]  ;;  %v6043_v37 = vor.u32 %v7083_v27, %v6040_v28  ;;  %v6024_v56 = vld [vmem:[%s10728_s6 + $0x408] sm:$0xf0] }
 0x1a4   : > { %3032 = vmatpush.bf16.msra.mxu2 %v5890_v22  ;;  %3045 = vmatpush.bf16.msra.mxu3 %v5954_v36  ;;  %v7107_v22 = vld [vmem:[%s10728_s6 + $0x4e4] sm:$0xf]  ;;  %v6136_v36 = vld [vmem:[%s10728_s6 + $0x4e8] sm:$0xf0]  ;;  %v6135_v26 = vor.u32 %v7108_v58, %v6134_v18  ;;  %v1883_v18 = vpop.f32.mrf.mxu2  ;;  %v6047_v58 = vor.u32 %v7086_v19, %v6046_v2  ;;  %v7096_v46 = vld [vmem:[%s10728_s6 + $0x484] sm:$0xf0] }
 0x1a5   : > { %v3326_v63 = vld [vmem:[#allocation1 + $0x1] ss:$2 sm:$0xff]  ;;  %v6238_v19 = vld [vmem:[%s10728_s6 + $0x570] sm:$0xf] }
 0x1a6   : > { %v3329_v53 = vld [vmem:[#allocation1 + $0x11] ss:$2 sm:$0xff]  ;;  %v7095_v57 = vld [vmem:[%s10728_s6 + $0x484] sm:$0xf]  ;;  %v6088_v2 = vld [vmem:[%s10728_s6 + $0x488] sm:$0xf0] }
 0x1a7   : > { %3007 = vmatpush.bf16.msra.mxu0 %v5878_v13  ;;  %3020 = vmatpush.bf16.msra.mxu1 %v5942_v29  ;;  %3363 = vst [vmem:[#allocation1] ss:$9 sm:$0xff] %v3326_v63  ;;  %v6075_v13 = vor.u32 %v7091_v20, %v6072_v21  ;;  %v6139_v29 = vor.u32 %v7107_v22, %v6136_v36  ;;  %v7084_v21 = vld [vmem:[%s10728_s6 + $0x424] sm:$0xf0]  ;;  %v6102_v22 = vld [vmem:[%s10728_s6 + $0x4a0] sm:$0xf] }
 0x1a8   : > { %3033 = vmatpush.bf16.msra.mxu2 %v5882_v31  ;;  %3046 = vmatpush.bf16.msra.mxu3 %v5946_v32  ;;  %3365 = vst [vmem:[#allocation1 + $0x1] ss:$9 sm:$0xff] %v3329_v53  ;;  %v7089_v31 = vld [vmem:[%s10728_s6 + $0x454] sm:$0xf]  ;;  %v6064_v32 = vld [vmem:[%s10728_s6 + $0x458] sm:$0xf0] }
 0x1a9   : > { %v7085_v53 = vld [vmem:[%s10728_s6 + $0x434] sm:$0xf]  ;;  %v6296_v27 = vld [vmem:[%s10728_s6 + $0x5e8] sm:$0xf0] }
 0x1ab   : > { %3008 = vmatpush.bf16.msra.mxu0 %v5870_v16  ;;  %3021 = vmatpush.bf16.msra.mxu1 %v5934_v44  ;;  %v7088_v16 = vld [vmem:[%s10728_s6 + $0x444] sm:$0xf0]  ;;  %v6067_v44 = vor.u32 %v7089_v31, %v6064_v32  ;;  %v6030_v32 = vld [vmem:[%s10728_s6 + $0x410] sm:$0xf] }
 0x1ac   : > { %3034 = vmatpush.bf16.msra.mxu2 %v5874_v48  ;;  %3047 = vmatpush.bf16.msra.mxu3 %v5938_v52  ;;  %v7087_v48 = vld [vmem:[%s10728_s6 + $0x444] sm:$0xf]  ;;  %v6056_v52 = vld [vmem:[%s10728_s6 + $0x448] sm:$0xf0]  ;;  %v6055_v0 = vor.u32 %v7088_v16, %v6054_v45  ;;  %v7097_v45 = vld [vmem:[%s10728_s6 + $0x494] sm:$0xf]  ;;  %v6031_v55 = vor.u32 %v7082_v33, %v6030_v32 }
 0x1ad   : > { %v6059_v6 = vor.u32 %v7087_v48, %v6056_v52  ;;  %v6096_v16 = vld [vmem:[%s10728_s6 + $0x498] sm:$0xf0]  ;;  %v7079_v52 = vld [vmem:[%s10728_s6 + $0x404] sm:$0xf]  ;;  %v7138_v32 = vld [vmem:[%s10728_s6 + $0x5d4] sm:$0xf0] }
 0x1ae   : > { %v7121_v33 = vld [vmem:[%s10728_s6 + $0x554] sm:$0xf] }
 0x1af   : > { %3009 = vmatpush.bf16.msra.mxu0 %v5862_v4  ;;  %3022 = vmatpush.bf16.msra.mxu1 %v5926_v5  ;;  %v6110_v4 = vld [vmem:[%s10728_s6 + $0x4b0] sm:$0xf]  ;;  %v7102_v5 = vld [vmem:[%s10728_s6 + $0x4b4] sm:$0xf0] }
 0x1b0   : > { %3035 = vmatpush.bf16.msra.mxu2 %v5866_v10  ;;  %3048 = vmatpush.bf16.msra.mxu3 %v5930_v12  ;;  %v9651_v10 = vld [vmem:[#allocation1] sm:$0xff]  ;;  %v9653_v12 = vld [vmem:[#allocation1 + $0x9] sm:$0xff]  ;;  %v6111_v20 = vor.u32 %v7102_v5, %v6110_v4  ;;  %v7126_v4 = vld [vmem:[%s10728_s6 + $0x574] sm:$0xf0] }
 0x1b1   : > { %3628 = vst [vmem:[#allocation1] ss:$9 sm:$0xff] %v9328_v17  ;;  %v7099_v17 = vld [vmem:[%s10728_s6 + $0x4a4] sm:$0xf]  ;;  %v6302_v5 = vld [vmem:[%s10728_s6 + $0x5f0] sm:$0xf] }
 0x1b2   : > { %3010 = vmatmul.bf16.vlgmr.msra.gmra.mxu0 %v9387_v49  ;;  %3023 = vmatmul.bf16.vlgmr.msra.gmra.mxu1 %v9389_v51 }
 0x1b3   : > { %3270 = vmatpush.bf16.msrb.mxu0 %v6079_v15  ;;  %3283 = vmatpush.bf16.msrb.mxu1 %v6143_v54  ;;  %v9656_v15 = vsel %vm713_vm2, %v3590_v61, %v3593_v62  ;;  %v6048_v54 = vld [vmem:[%s10728_s6 + $0x438] sm:$0xf0]  ;;  %v6099_v62 = vor.u32 %v7097_v45, %v6096_v16  ;;  %v7120_v45 = vld [vmem:[%s10728_s6 + $0x544] sm:$0xf0]  ;;  %v6278_v16 = vld [vmem:[%s10728_s6 + $0x5c0] sm:$0xf] }
 0x1b4   : > { %3296 = vmatpush.bf16.msrb.mxu2 %v6083_v35  ;;  %3309 = vmatpush.bf16.msrb.mxu3 %v6147_v7  ;;  %v6038_v7 = vld [vmem:[%s10728_s6 + $0x420] sm:$0xf]  ;;  %v6051_v23 = vor.u32 %v7085_v53, %v6048_v54  ;;  %3630 = vst [vmem:[#allocation1 + $0x1] ss:$9 sm:$0xff] %v9656_v15  ;;  %v7141_v54 = vld [vmem:[%s10728_s6 + $0x5f4] sm:$0xf] }
 0x1b5   : > { %3036 = vmatmul.bf16.vlgmr.msra.gmra.mxu2 %v9387_v49  ;;  %3049 = vmatmul.bf16.vlgmr.msra.gmra.mxu3 %v9389_v51  ;;  %v9611_v49 = vpop.f32.mrf.mxu3  ;;  %v3850_v51 = vsel %vm717_vm4, %v3586_v39, %v3587_v40  ;;  %v6039_v30 = vor.u32 %v7084_v21, %v6038_v7  ;;  %v6094_v40 = vld [vmem:[%s10728_s6 + $0x490] sm:$0xf]  ;;  %v6239_v7 = vor.u32 %v7126_v4, %v6238_v19  ;;  %v7134_v19 = vld [vmem:[%s10728_s6 + $0x5b4] sm:$0xf0]  ;;  %v7117_v4 = vld [vmem:[%s10728_s6 + $0x534] sm:$0xf] }
 0x1b6   : > { %v3851_v63 = vsel %vm719_vm5, %v3849_v42, %v3850_v51  ;;  %v7098_v42 = vld [vmem:[%s10728_s6 + $0x494] sm:$0xf0]  ;;  %v6022_v51 = vld [vmem:[%s10728_s6 + $0x400] sm:$0xf] }
 0x1b7   : > { %3271 = vmatpush.bf16.msrb.mxu0 %v6071_v24  ;;  %3284 = vmatpush.bf16.msrb.mxu1 %v6135_v26  ;;  %v3853_v35 = vrot.slane %v3851_v63, 1  ;;  %v6115_v24 = vor.u32 %v7101_v3, %v6112_v59  ;;  %v7100_v26 = vld [vmem:[%s10728_s6 + $0x4a4] sm:$0xf0]  ;;  %v6095_v48 = vor.u32 %v7098_v42, %v6094_v40  ;;  %v6304_v3 = vld [vmem:[%s10728_s6 + $0x5f8] sm:$0xf0]  ;;  %v6027_v59 = vor.u32 %v7079_v52, %v6024_v56 }
 0x1b8   : > { %3297 = vmatpush.bf16.msrb.mxu2 %v6075_v13  ;;  %3310 = vmatpush.bf16.msrb.mxu3 %v6139_v29  ;;  %v6104_v13 = vld [vmem:[%s10728_s6 + $0x4a8] sm:$0xf0]  ;;  %v3854_v29 = vshrl.u32 %v9656_v15, 16  ;;  %v6103_v31 = vor.u32 %v7100_v26, %v6102_v22  ;;  %v6307_v22 = vor.u32 %v7141_v54, %v6304_v3  ;;  %v7139_v26 = vld [vmem:[%s10728_s6 + $0x5e4] sm:$0xf] }
 0x1b9   : > { %v3859_v9 = vshll.u32 %v3853_v35, 16  ;;  %v6107_v39 = vor.u32 %v7099_v17, %v6104_v13  ;;  %v6091_v35 = vor.u32 %v7095_v57, %v6088_v2  ;;  %v6222_v13 = vld [vmem:[%s10728_s6 + $0x550] sm:$0xf]  ;;  %v6288_v40 = vld [vmem:[%s10728_s6 + $0x5d8] sm:$0xf0] }
 0x1ba   : > { %v6214_v42 = vld [vmem:[%s10728_s6 + $0x540] sm:$0xf]  ;;  %v6280_v52 = vld [vmem:[%s10728_s6 + $0x5c8] sm:$0xf0] }
 0x1bb   : > { %3272 = vmatpush.bf16.msrb.mxu0 %v6063_v43  ;;  %3285 = vmatpush.bf16.msrb.mxu1 %v6127_v38  ;;  %v7081_v43 = vld [vmem:[%s10728_s6 + $0x414] sm:$0xf]  ;;  %v6032_v38 = vld [vmem:[%s10728_s6 + $0x418] sm:$0xf0]  ;;  %v9742_v63 = vld [vmem:[#allocation1] sm:$0xff]  ;;  %v6215_v56 = vor.u32 %v7120_v45, %v6214_v42 }
 0x1bc   : > { %3298 = vmatpush.bf16.msrb.mxu2 %v6067_v44  ;;  %3311 = vmatpush.bf16.msrb.mxu3 %v6131_v34  ;;  %v7080_v44 = vld [vmem:[%s10728_s6 + $0x404] sm:$0xf0]  ;;  %v6086_v34 = vld [vmem:[%s10728_s6 + $0x480] sm:$0xf]  ;;  %v6035_v61 = vor.u32 %v7081_v43, %v6032_v38  ;;  %v6184_v45 = vld [vmem:[%s10728_s6 + $0x508] sm:$0xf0] }
 0x1bd   : > { %v1896_v36 = vpop.f32.mrf.mxu3  ;;  %v6023_v53 = vor.u32 %v7080_v44, %v6022_v51  ;;  %v6087_v15 = vor.u32 %v7096_v46, %v6086_v34  ;;  %v7136_v44 = vld [vmem:[%s10728_s6 + $0x5c4] sm:$0xf0]  ;;  %v7119_v34 = vld [vmem:[%s10728_s6 + $0x544] sm:$0xf]  ;;  %v6262_v54 = vld [vmem:[%s10728_s6 + $0x5a0] sm:$0xf] }
 0x1be   : > { %v7140_v36 = vld [vmem:[%s10728_s6 + $0x5e4] sm:$0xf0]  ;;  %v6279_v57 = vor.u32 %v7136_v44, %v6278_v16  ;;  %v7127_v16 = vld [vmem:[%s10728_s6 + $0x584] sm:$0xf]  ;;  %v7158_v44 = vld [vmem:[%s10728_s6 + $0x674] sm:$0xf0] }
 0x1bf   : > { %3273 = vmatpush.bf16.msrb.mxu0 %v6055_v0  ;;  %3286 = vmatpush.bf16.msrb.mxu1 %v6119_v1  ;;  %v9744_v0 = vld [vmem:[#allocation1 + $0x9] sm:$0xff]  ;;  %v3861_v1 = vsel %vm7984_vm10, %v3854_v29, %v3859_v9  ;;  %v7122_v29 = vld [vmem:[%s10728_s6 + $0x554] sm:$0xf0] }
 0x1c0   : > { %3299 = vmatpush.bf16.msrb.mxu2 %v6059_v6  ;;  %3312 = vmatpush.bf16.msrb.mxu3 %v6123_v8  ;;  %v7142_v6 = vld [vmem:[%s10728_s6 + $0x5f4] sm:$0xf0]  ;;  %v6240_v8 = vld [vmem:[%s10728_s6 + $0x578] sm:$0xf0]  ;;  %3895 = vst [vmem:[#allocation1] ss:$9 sm:$0xff] %v9393_v50  ;;  %v6223_v43 = vor.u32 %v7122_v29, %v6222_v13 }
 0x1c1   : > { %3898 = vst [vmem:[#allocation1 + $0x1] ss:$9 sm:$0xff] %v3861_v1  ;;  %v6303_v18 = vor.u32 %v7142_v6, %v6302_v5  ;;  %v6243_v21 = vor.u32 %v7125_v47, %v6240_v8  ;;  %v6294_v50 = vld [vmem:[%s10728_s6 + $0x5e0] sm:$0xf]  ;;  %v6270_v1 = vld [vmem:[%s10728_s6 + $0x5b0] sm:$0xf] }
 0x1c2   : > { %v6295_v17 = vor.u32 %v7140_v36, %v6294_v50  ;;  %v7133_v5 = vld [vmem:[%s10728_s6 + $0x5b4] sm:$0xf]  ;;  %v6272_v6 = vld [vmem:[%s10728_s6 + $0x5b8] sm:$0xf0]  ;;  %v6271_v8 = vor.u32 %v7134_v19, %v6270_v1 }
 0x1c3   : > { %3274 = vmatpush.bf16.msrb.mxu0 %v6047_v58  ;;  %3287 = vmatpush.bf16.msrb.mxu1 %v6111_v20  ;;  %v6230_v58 = vld [vmem:[%s10728_s6 + $0x560] sm:$0xf]  ;;  %v7124_v20 = vld [vmem:[%s10728_s6 + $0x564] sm:$0xf0]  ;;  %v7113_v13 = vld [vmem:[%s10728_s6 + $0x514] sm:$0xf] }
 0x1c4   : > { %3300 = vmatpush.bf16.msrb.mxu2 %v6051_v23  ;;  %3313 = vmatpush.bf16.msrb.mxu3 %v6115_v24  ;;  %v7123_v23 = vld [vmem:[%s10728_s6 + $0x564] sm:$0xf]  ;;  %v6232_v24 = vld [vmem:[%s10728_s6 + $0x568] sm:$0xf0]  ;;  %v6231_v28 = vor.u32 %v7124_v20, %v6230_v58  ;;  %v6192_v29 = vld [vmem:[%s10728_s6 + $0x518] sm:$0xf0] }
 0x1c5   : > { %v6235_v9 = vor.u32 %v7123_v23, %v6232_v24  ;;  %v7131_v58 = vld [vmem:[%s10728_s6 + $0x5a4] sm:$0xf]  ;;  %v6264_v20 = vld [vmem:[%s10728_s6 + $0x5a8] sm:$0xf0]  ;;  %v7114_v23 = vld [vmem:[%s10728_s6 + $0x514] sm:$0xf0]  ;;  %v6195_v42 = vor.u32 %v7113_v13, %v6192_v29 }
 0x1c6   : > { %v6254_v24 = vld [vmem:[%s10728_s6 + $0x590] sm:$0xf]  ;;  %v6374_v29 = vld [vmem:[%s10728_s6 + $0x640] sm:$0xf] }
 0x1c7   : > { %3275 = vmatpush.bf16.msrb.mxu0 %v6039_v30  ;;  %3288 = vmatpush.bf16.msrb.mxu1 %v6103_v31  ;;  %v6299_v30 = vor.u32 %v7139_v26, %v6296_v27  ;;  %v6286_v31 = vld [vmem:[%s10728_s6 + $0x5d0] sm:$0xf] }
 0x1c8   : > { %3301 = vmatpush.bf16.msrb.mxu2 %v6043_v37  ;;  %3314 = vmatpush.bf16.msrb.mxu3 %v6107_v39  ;;  %v6224_v37 = vld [vmem:[%s10728_s6 + $0x558] sm:$0xf0]  ;;  %v7137_v39 = vld [vmem:[%s10728_s6 + $0x5d4] sm:$0xf]  ;;  %v6287_v38 = vor.u32 %v7138_v32, %v6286_v31  ;;  %v9834_v51 = vld [vmem:[#allocation1] sm:$0xff] }
 0x1c9   : > { %4117 = vst [vmem:[#allocation1] sm:$0xff] %v9196_v11  ;;  %v9843_v46 = vld [vmem:[#allocation1 + $0x9] sm:$0xff]  ;;  %v6182_v31 = vld [vmem:[%s10728_s6 + $0x500] sm:$0xf] }
 0x1ca   : > { %v6206_v11 = vld [vmem:[%s10728_s6 + $0x530] sm:$0xf]  ;;  %4120 = vst [vmem:[#allocation1 + $0x10] sm:$0xff] %v9544_v14  ;;  %v6208_v14 = vld [vmem:[%s10728_s6 + $0x538] sm:$0xf0] }
 0x1cb   : > { %3276 = vmatpush.bf16.msrb.mxu0 %v6031_v55  ;;  %3289 = vmatpush.bf16.msrb.mxu1 %v6095_v48  ;;  %v6216_v55 = vld [vmem:[%s10728_s6 + $0x548] sm:$0xf0]  ;;  %v7135_v48 = vld [vmem:[%s10728_s6 + $0x5c4] sm:$0xf]  ;;  %v6211_v3 = vor.u32 %v7117_v4, %v6208_v14  ;;  %v7112_v32 = vld [vmem:[%s10728_s6 + $0x504] sm:$0xf0] }
 0x1cc   : > { %3302 = vmatpush.bf16.msrb.mxu2 %v6035_v61  ;;  %3315 = vmatpush.bf16.msrb.mxu3 %v6099_v62  ;;  %v7118_v61 = vld [vmem:[%s10728_s6 + $0x534] sm:$0xf0]  ;;  %v6219_v62 = vor.u32 %v7119_v34, %v6216_v55  ;;  %v6283_v2 = vor.u32 %v7135_v48, %v6280_v52  ;;  %v6462_v34 = vld [vmem:[%s10728_s6 + $0x6f0] sm:$0xf]  ;;  %v7157_v48 = vld [vmem:[%s10728_s6 + $0x674] sm:$0xf]  ;;  %v6183_v52 = vor.u32 %v7112_v32, %v6182_v31 }
 0x1cd   : > { %v6207_v47 = vor.u32 %v7118_v61, %v6206_v11  ;;  %v7174_v55 = vld [vmem:[%s10728_s6 + $0x6f4] sm:$0xf0]  ;;  %v7173_v11 = vld [vmem:[%s10728_s6 + $0x6f4] sm:$0xf]  ;;  %v6464_v61 = vld [vmem:[%s10728_s6 + $0x6f8] sm:$0xf0] }
 0x1ce   : > { %v6463_v19 = vor.u32 %v7174_v55, %v6462_v34  ;;  %v6390_v4 = vld [vmem:[%s10728_s6 + $0x660] sm:$0xf]  ;;  %v7156_v14 = vld [vmem:[%s10728_s6 + $0x664] sm:$0xf0]  ;;  %v7151_v32 = vld [vmem:[%s10728_s6 + $0x644] sm:$0xf] }
 0x1cf   : > { %3277 = vmatpush.bf16.msrb.mxu0 %v6023_v53  ;;  %3290 = vmatpush.bf16.msrb.mxu1 %v6087_v15  ;;  %v6198_v53 = vld [vmem:[%s10728_s6 + $0x520] sm:$0xf]  ;;  %v7116_v15 = vld [vmem:[%s10728_s6 + $0x524] sm:$0xf0] }
 0x1d0   : > { %3303 = vmatpush.bf16.msrb.mxu2 %v6027_v59  ;;  %3316 = vmatpush.bf16.msrb.mxu3 %v6091_v35  ;;  %v6275_v59 = vor.u32 %v7133_v5, %v6272_v6  ;;  %v7132_v35 = vld [vmem:[%s10728_s6 + $0x5a4] sm:$0xf0]  ;;  %v6199_v50 = vor.u32 %v7116_v15, %v6198_v53  ;;  %v6467_v6 = vor.u32 %v7173_v11, %v6464_v61  ;;  %v7155_v53 = vld [vmem:[%s10728_s6 + $0x664] sm:$0xf]  ;;  %v6392_v15 = vld [vmem:[%s10728_s6 + $0x668] sm:$0xf0] }
 0x1d1   : > { %v6263_v36 = vor.u32 %v7132_v35, %v6262_v54  ;;  %v4122_v26 = vld [vmem:[#allocation1 + $0x11] ss:$2 sm:$0xff]  ;;  %v7171_v54 = vld [vmem:[%s10728_s6 + $0x6e4] sm:$0xf]  ;;  %v7168_v31 = vld [vmem:[%s10728_s6 + $0x6c4] sm:$0xf0] }
 0x1d2   : > { %3278 = vmatmul.bf16.vlgmr.msrb.gmra.mxu0 %v9451_v60  ;;  %3291 = vmatmul.bf16.vlgmr.msrb.gmra.mxu1 %v9460_v25 }
 0x1d3   : > { %3530 = vmatpush.bf16.msra.mxu0 %v6239_v7  ;;  %3543 = vmatpush.bf16.msra.mxu1 %v6303_v18  ;;  %v7115_v7 = vld [vmem:[%s10728_s6 + $0x524] sm:$0xf]  ;;  %v6200_v18 = vld [vmem:[%s10728_s6 + $0x528] sm:$0xf0] }
 0x1d4   : > { %3556 = vmatpush.bf16.msra.mxu2 %v6243_v21  ;;  %3569 = vmatpush.bf16.msra.mxu3 %v6307_v22  ;;  %v4119_v21 = vld [vmem:[#allocation1 + $0x1] ss:$2 sm:$0xff]  ;;  %v6190_v22 = vld [vmem:[%s10728_s6 + $0x510] sm:$0xf]  ;;  %v6203_v27 = vor.u32 %v7115_v7, %v6200_v18  ;;  %v7154_v18 = vld [vmem:[%s10728_s6 + $0x654] sm:$0xf0] }
 0x1d5   : > { %3304 = vmatmul.bf16.vlgmr.msrb.gmra.mxu2 %v9451_v60  ;;  %3317 = vmatmul.bf16.vlgmr.msrb.gmra.mxu3 %v9460_v25  ;;  %v6227_v60 = vor.u32 %v7121_v33, %v6224_v37  ;;  %v6291_v25 = vor.u32 %v7137_v39, %v6288_v40  ;;  %4156 = vst [vmem:[#allocation1] ss:$9 sm:$0xff] %v4119_v21  ;;  %v6246_v39 = vld [vmem:[%s10728_s6 + $0x580] sm:$0xf]  ;;  %v7128_v40 = vld [vmem:[%s10728_s6 + $0x584] sm:$0xf0] }
 0x1d6   : > { %v6191_v33 = vor.u32 %v7114_v23, %v6190_v22  ;;  %4158 = vst [vmem:[#allocation1 + $0x1] ss:$9 sm:$0xff] %v4122_v26  ;;  %v6382_v7 = vld [vmem:[%s10728_s6 + $0x650] sm:$0xf]  ;;  %v7170_v22 = vld [vmem:[%s10728_s6 + $0x6d4] sm:$0xf0] }
 0x1d7   : > { %3531 = vmatpush.bf16.msra.mxu0 %v6231_v28  ;;  %3544 = vmatpush.bf16.msra.mxu1 %v6295_v17  ;;  %v6267_v28 = vor.u32 %v7131_v58, %v6264_v20  ;;  %v7130_v17 = vld [vmem:[%s10728_s6 + $0x594] sm:$0xf0]  ;;  %v6395_v58 = vor.u32 %v7155_v53, %v6392_v15  ;;  %v6446_v21 = vld [vmem:[%s10728_s6 + $0x6d0] sm:$0xf]  ;;  %v7169_v23 = vld [vmem:[%s10728_s6 + $0x6d4] sm:$0xf] }
 0x1d8   : > { %3557 = vmatpush.bf16.msra.mxu2 %v6235_v9  ;;  %3570 = vmatpush.bf16.msra.mxu3 %v6299_v30  ;;  %v7129_v9 = vld [vmem:[%s10728_s6 + $0x594] sm:$0xf]  ;;  %v6256_v30 = vld [vmem:[%s10728_s6 + $0x598] sm:$0xf0]  ;;  %v6255_v37 = vor.u32 %v7130_v17, %v6254_v24  ;;  %v6447_v17 = vor.u32 %v7170_v22, %v6446_v21  ;;  %v7163_v53 = vld [vmem:[%s10728_s6 + $0x6a4] sm:$0xf] }
 0x1d9   : > { %v6448_v24 = vld [vmem:[%s10728_s6 + $0x6d8] sm:$0xf0]  ;;  %v6424_v15 = vld [vmem:[%s10728_s6 + $0x6a8] sm:$0xf0]  ;;  %v7145_v21 = vld [vmem:[%s10728_s6 + $0x614] sm:$0xf] }
 0x1db   : > { %3532 = vmatpush.bf16.msra.mxu0 %v6223_v43  ;;  %3545 = vmatpush.bf16.msra.mxu1 %v6287_v38  ;;  %v6259_v43 = vor.u32 %v7129_v9, %v6256_v30  ;;  %v7111_v38 = vld [vmem:[%s10728_s6 + $0x504] sm:$0xf]  ;;  %v7152_v9 = vld [vmem:[%s10728_s6 + $0x644] sm:$0xf0]  ;;  %v6438_v30 = vld [vmem:[%s10728_s6 + $0x6c0] sm:$0xf] }
 0x1dc   : > { %3558 = vmatpush.bf16.msra.mxu2 %v6227_v60  ;;  %3571 = vmatpush.bf16.msra.mxu3 %v6291_v25  ;;  %v6248_v60 = vld [vmem:[%s10728_s6 + $0x588] sm:$0xf0]  ;;  %v6398_v25 = vld [vmem:[%s10728_s6 + $0x670] sm:$0xf] }
 0x1dd   : > { %v6399_v1 = vor.u32 %v7158_v44, %v6398_v25  ;;  %v7166_v25 = vld [vmem:[%s10728_s6 + $0x6b4] sm:$0xf0]  ;;  %v7149_v44 = vld [vmem:[%s10728_s6 + $0x634] sm:$0xf] }
 0x1df   : > { %3533 = vmatpush.bf16.msra.mxu0 %v6215_v56  ;;  %3546 = vmatpush.bf16.msra.mxu1 %v6279_v57  ;;  %v6247_v56 = vor.u32 %v7128_v40, %v6246_v39  ;;  %v6400_v57 = vld [vmem:[%s10728_s6 + $0x678] sm:$0xf0]  ;;  %v6440_v39 = vld [vmem:[%s10728_s6 + $0x6c8] sm:$0xf0]  ;;  %v6375_v40 = vor.u32 %v7152_v9, %v6374_v29 }
 0x1e0   : > { %3559 = vmatpush.bf16.msra.mxu2 %v6219_v62  ;;  %3572 = vmatpush.bf16.msra.mxu3 %v6283_v2  ;;  %v6187_v62 = vor.u32 %v7111_v38, %v6184_v45  ;;  %v6251_v2 = vor.u32 %v7127_v16, %v6248_v60  ;;  %v6403_v5 = vor.u32 %v7157_v48, %v6400_v57  ;;  %v7150_v38 = vld [vmem:[%s10728_s6 + $0x634] sm:$0xf0]  ;;  %v6430_v60 = vld [vmem:[%s10728_s6 + $0x6b0] sm:$0xf]  ;;  %v6368_v48 = vld [vmem:[%s10728_s6 + $0x638] sm:$0xf0] }
 0x1e3   : > { %3534 = vmatpush.bf16.msra.mxu0 %v6207_v47  ;;  %3547 = vmatpush.bf16.msra.mxu1 %v6271_v8  ;;  %v6454_v47 = vld [vmem:[%s10728_s6 + $0x6e0] sm:$0xf]  ;;  %v7172_v8 = vld [vmem:[%s10728_s6 + $0x6e4] sm:$0xf0] }
 0x1e4   : > { %3560 = vmatpush.bf16.msra.mxu2 %v6211_v3  ;;  %3573 = vmatpush.bf16.msra.mxu3 %v6275_v59  ;;  %v6456_v3 = vld [vmem:[%s10728_s6 + $0x6e8] sm:$0xf0]  ;;  %v6391_v59 = vor.u32 %v7156_v14, %v6390_v4  ;;  %v6455_v35 = vor.u32 %v7172_v8, %v6454_v47  ;;  %v6371_v4 = vor.u32 %v7149_v44, %v6368_v48  ;;  %v7147_v47 = vld [vmem:[%s10728_s6 + $0x624] sm:$0xf]  ;;  %v6561_v44 = vld [vmem:[%s10728_s6 + $0x778] sm:$0xf0] }
 0x1e5   : > { %v6459_v20 = vor.u32 %v7171_v54, %v6456_v3  ;;  %v6360_v8 = vld [vmem:[%s10728_s6 + $0x628] sm:$0xf0] }
 0x1e7   : > { %3535 = vmatpush.bf16.msra.mxu0 %v6199_v50  ;;  %3548 = vmatpush.bf16.msra.mxu1 %v6263_v36  ;;  %v7153_v50 = vld [vmem:[%s10728_s6 + $0x654] sm:$0xf]  ;;  %v6384_v36 = vld [vmem:[%s10728_s6 + $0x658] sm:$0xf0] }
 0x1e8   : > { %3561 = vmatpush.bf16.msra.mxu2 %v6203_v27  ;;  %3574 = vmatpush.bf16.msra.mxu3 %v6267_v28  ;;  %v6383_v28 = vor.u32 %v7154_v18, %v6382_v7  ;;  %v6363_v7 = vor.u32 %v7147_v47, %v6360_v8  ;;  %v6427_v18 = vor.u32 %v7163_v53, %v6424_v15  ;;  %v6615_v47 = vld [vmem:[%s10728_s6 + $0x7e0] sm:$0xf]  ;;  %v7204_v8 = vld [vmem:[%s10728_s6 + $0x7e4] sm:$0xf0]  ;;  %v7187_v53 = vld [vmem:[%s10728_s6 + $0x764] sm:$0xf] }
 0x1e9   : > { %v7203_v15 = vld [vmem:[%s10728_s6 + $0x7e4] sm:$0xf] }
 0x1eb   : > { %3536 = vmatpush.bf16.msra.mxu0 %v6191_v33  ;;  %3549 = vmatpush.bf16.msra.mxu1 %v6255_v37  ;;  %v6376_v33 = vld [vmem:[%s10728_s6 + $0x648] sm:$0xf0]  ;;  %v7167_v37 = vld [vmem:[%s10728_s6 + $0x6c4] sm:$0xf] }
 0x1ec   : > { %3562 = vmatpush.bf16.msra.mxu2 %v6195_v42  ;;  %3575 = vmatpush.bf16.msra.mxu3 %v6259_v43  ;;  %v6439_v42 = vor.u32 %v7168_v31, %v6438_v30  ;;  %v6366_v43 = vld [vmem:[%s10728_s6 + $0x630] sm:$0xf]  ;;  %v6379_v45 = vor.u32 %v7151_v32, %v6376_v33  ;;  %v6443_v16 = vor.u32 %v7167_v37, %v6440_v39  ;;  %v7160_v30 = vld [vmem:[%s10728_s6 + $0x684] sm:$0xf0]  ;;  %v6344_v33 = vld [vmem:[%s10728_s6 + $0x608] sm:$0xf0] }
 0x1ed   : > { %v7159_v37 = vld [vmem:[%s10728_s6 + $0x684] sm:$0xf] }
 0x1ee   : > { %v2269_v26 = vpop.f32.mrf.mxu0  ;;  %v2282_v27 = vpop.f32.mrf.mxu1 }
 0x1ef   : > { %3537 = vmatpush.bf16.msra.mxu0 %v6183_v52  ;;  %3550 = vmatpush.bf16.msra.mxu1 %v6247_v56  ;;  %v10027_v13 = vadd.f32 %v2282_v27, %v2269_v26  ;;  %v7165_v52 = vld [vmem:[%s10728_s6 + $0x6b4] sm:$0xf]  ;;  %v6432_v56 = vld [vmem:[%s10728_s6 + $0x6b8] sm:$0xf0] }
 0x1f0   : > { %3563 = vmatpush.bf16.msra.mxu2 %v6187_v62  ;;  %3576 = vmatpush.bf16.msra.mxu3 %v6251_v2  ;;  %v6367_v62 = vor.u32 %v7150_v38, %v6366_v43  ;;  %v6431_v2 = vor.u32 %v7166_v25, %v6430_v60  ;;  %v6435_v14 = vor.u32 %v7165_v52, %v6432_v56  ;;  %v7190_v43 = vld [vmem:[%s10728_s6 + $0x774] sm:$0xf0]  ;;  %v6623_v38 = vld [vmem:[%s10728_s6 + $0x7f0] sm:$0xf] }
 0x1f2   : > { %3538 = vmatmul.bf16.vlgmr.msra.gmra.mxu0 %v9651_v10  ;;  %3551 = vmatmul.bf16.vlgmr.msra.gmra.mxu1 %v9653_v12 }
 0x1f3   : > { %3795 = vmatpush.bf16.msrb.mxu0 %v6399_v1  ;;  %3808 = vmatpush.bf16.msrb.mxu1 %v6463_v19  ;;  %v6358_v1 = vld [vmem:[%s10728_s6 + $0x620] sm:$0xf]  ;;  %v7148_v19 = vld [vmem:[%s10728_s6 + $0x624] sm:$0xf0] }
 0x1f4   : > { %3821 = vmatpush.bf16.msrb.mxu2 %v6403_v5  ;;  %3834 = vmatpush.bf16.msrb.mxu3 %v6467_v6  ;;  %v6422_v5 = vld [vmem:[%s10728_s6 + $0x6a0] sm:$0xf]  ;;  %v7164_v6 = vld [vmem:[%s10728_s6 + $0x6a4] sm:$0xf0]  ;;  %v6359_v54 = vor.u32 %v7148_v19, %v6358_v1 }
 0x1f5   : > { %3564 = vmatmul.bf16.vlgmr.msra.gmra.mxu2 %v9651_v10  ;;  %3577 = vmatmul.bf16.vlgmr.msra.gmra.mxu3 %v9653_v12  ;;  %v6387_v10 = vor.u32 %v7153_v50, %v6384_v36  ;;  %v6451_v12 = vor.u32 %v7169_v23, %v6448_v24  ;;  %v2295_v34 = vpop.f32.mrf.mxu2  ;;  %v2308_v55 = vpop.f32.mrf.mxu3  ;;  %v6423_v3 = vor.u32 %v7164_v6, %v6422_v5  ;;  %v6352_v36 = vld [vmem:[%s10728_s6 + $0x618] sm:$0xf0]  ;;  %v7161_v23 = vld [vmem:[%s10728_s6 + $0x694] sm:$0xf]  ;;  %v7188_v1 = vld [vmem:[%s10728_s6 + $0x764] sm:$0xf0] }
 0x1f6   : > { %v10077_v57 = vadd.f32 %v2308_v55, %v2295_v34  ;;  %v2271_v11 = vpop.f32.mrf.mxu0  ;;  %v2284_v61 = vpop.f32.mrf.mxu1  ;;  %v6416_v24 = vld [vmem:[%s10728_s6 + $0x698] sm:$0xf0]  ;;  %v6355_v31 = vor.u32 %v7145_v21, %v6352_v36  ;;  %v7205_v34 = vld [vmem:[%s10728_s6 + $0x7f4] sm:$0xf]  ;;  %v6607_v21 = vld [vmem:[%s10728_s6 + $0x7d0] sm:$0xf] }
 0x1f7   : > { %3796 = vmatpush.bf16.msrb.mxu0 %v6391_v59  ;;  %3809 = vmatpush.bf16.msrb.mxu1 %v6455_v35  ;;  %v6350_v59 = vld [vmem:[%s10728_s6 + $0x610] sm:$0xf]  ;;  %v7146_v35 = vld [vmem:[%s10728_s6 + $0x614] sm:$0xf0]  ;;  %v6419_v32 = vor.u32 %v7161_v23, %v6416_v24  ;;  %v6625_v55 = vld [vmem:[%s10728_s6 + $0x7f8] sm:$0xf0] }
 0x1f8   : > { %3822 = vmatpush.bf16.msrb.mxu2 %v6395_v58  ;;  %3835 = vmatpush.bf16.msrb.mxu3 %v6459_v20  ;;  %v6414_v58 = vld [vmem:[%s10728_s6 + $0x690] sm:$0xf]  ;;  %v7162_v20 = vld [vmem:[%s10728_s6 + $0x694] sm:$0xf0]  ;;  %v6545_v36 = vld [vmem:[%s10728_s6 + $0x758] sm:$0xf0] }
 0x1f9   : > { %v6415_v29 = vor.u32 %v7162_v20, %v6414_v58  ;;  %v7201_v23 = vld [vmem:[%s10728_s6 + $0x7d4] sm:$0xf]  ;;  %v6609_v24 = vld [vmem:[%s10728_s6 + $0x7d8] sm:$0xf0] }
 0x1fb   : > { %3797 = vmatpush.bf16.msrb.mxu0 %v6383_v28  ;;  %3810 = vmatpush.bf16.msrb.mxu1 %v6447_v17  ;;  %v6342_v28 = vld [vmem:[%s10728_s6 + $0x600] sm:$0xf]  ;;  %v6351_v17 = vor.u32 %v7146_v35, %v6350_v59  ;;  %v6616_v35 = vor.u32 %v7204_v8, %v6615_v47  ;;  %v6521_v47 = vld [vmem:[%s10728_s6 + $0x728] sm:$0xf0]  ;;  %v7195_v8 = vld [vmem:[%s10728_s6 + $0x7a4] sm:$0xf] }
 0x1fc   : > { %3823 = vmatpush.bf16.msrb.mxu2 %v6387_v10  ;;  %3836 = vmatpush.bf16.msrb.mxu3 %v6451_v12  ;;  %v7144_v10 = vld [vmem:[%s10728_s6 + $0x604] sm:$0xf0]  ;;  %v6406_v12 = vld [vmem:[%s10728_s6 + $0x680] sm:$0xf] }
 0x1fd   : > { %v2297_v22 = vpop.f32.mrf.mxu2  ;;  %v2310_v50 = vpop.f32.mrf.mxu3  ;;  %v6343_v60 = vor.u32 %v7144_v10, %v6342_v28  ;;  %v6407_v25 = vor.u32 %v7160_v30, %v6406_v12  ;;  %v7200_v12 = vld [vmem:[%s10728_s6 + $0x7c4] sm:$0xf0]  ;;  %v7183_v30 = vld [vmem:[%s10728_s6 + $0x744] sm:$0xf] }
 0x1fe   : > { %v2488_v26 = vpop.f32.mrf.mxu0  ;;  %v2501_v27 = vpop.f32.mrf.mxu1  ;;  %v7202_v22 = vld [vmem:[%s10728_s6 + $0x7d4] sm:$0xf0]  ;;  %v7185_v50 = vld [vmem:[%s10728_s6 + $0x754] sm:$0xf] }
 0x1ff   : > { %3798 = vmatpush.bf16.msrb.mxu0 %v6375_v40  ;;  %3811 = vmatpush.bf16.msrb.mxu1 %v6439_v42  ;;  %v2489_v9 = vadd.f32 %v2488_v26, %v10027_v13  ;;  %v7143_v13 = vld [vmem:[%s10728_s6 + $0x604] sm:$0xf]  ;;  %v6408_v40 = vld [vmem:[%s10728_s6 + $0x688] sm:$0xf0]  ;;  %v6559_v42 = vld [vmem:[%s10728_s6 + $0x770] sm:$0xf]  ;;  %v6548_v10 = vor.u32 %v7185_v50, %v6545_v36 }
 0x200   : > { %3824 = vmatpush.bf16.msrb.mxu2 %v6379_v45  ;;  %3837 = vmatpush.bf16.msrb.mxu3 %v6443_v16  ;;  %v7206_v45 = vld [vmem:[%s10728_s6 + $0x7f4] sm:$0xf0]  ;;  %v7189_v16 = vld [vmem:[%s10728_s6 + $0x774] sm:$0xf]  ;;  %v6347_v48 = vor.u32 %v7143_v13, %v6344_v33  ;;  %v6411_v52 = vor.u32 %v7159_v37, %v6408_v40  ;;  %v6560_v56 = vor.u32 %v7190_v43, %v6559_v42  ;;  %v6601_v13 = vld [vmem:[%s10728_s6 + $0x7c8] sm:$0xf0] }
 0x201   : > { %v10149_v39 = vadd.f32 %v2501_v27, %v2489_v9  ;;  %v6624_v11 = vor.u32 %v7206_v45, %v6623_v38  ;;  %v6564_v19 = vor.u32 %v7189_v16, %v6561_v44  ;;  %v6608_v27 = vor.u32 %v7202_v22, %v6607_v21  ;;  %v7184_v9 = vld [vmem:[%s10728_s6 + $0x744] sm:$0xf0]  ;;  %v6527_v38 = vld [vmem:[%s10728_s6 + $0x730] sm:$0xf]  ;;  %v7182_v45 = vld [vmem:[%s10728_s6 + $0x734] sm:$0xf0] }
 0x202   : > { %v7198_v44 = vld [vmem:[%s10728_s6 + $0x7b4] sm:$0xf0]  ;;  %v6575_v22 = vld [vmem:[%s10728_s6 + $0x790] sm:$0xf]  ;;  %v7177_v36 = vld [vmem:[%s10728_s6 + $0x714] sm:$0xf] }
 0x203   : > { %3799 = vmatpush.bf16.msrb.mxu0 %v6367_v62  ;;  %3812 = vmatpush.bf16.msrb.mxu1 %v6431_v2  ;;  %v6551_v2 = vld [vmem:[%s10728_s6 + $0x760] sm:$0xf]  ;;  %v7194_v50 = vld [vmem:[%s10728_s6 + $0x794] sm:$0xf0] }
 0x204   : > { %3825 = vmatpush.bf16.msrb.mxu2 %v6371_v4  ;;  %3838 = vmatpush.bf16.msrb.mxu3 %v6435_v14  ;;  %v6628_v4 = vor.u32 %v7205_v34, %v6625_v55  ;;  %v6552_v59 = vor.u32 %v7188_v1, %v6551_v2  ;;  %v7181_v34 = vld [vmem:[%s10728_s6 + $0x734] sm:$0xf] }
 0x205   : > { %v2514_v61 = vpop.f32.mrf.mxu2  ;;  %v2527_v62 = vpop.f32.mrf.mxu3 }
 0x206   : > { %v2515_v14 = vadd.f32 %v2514_v61, %v10077_v57  ;;  %v2490_v5 = vpop.f32.mrf.mxu0  ;;  %v2503_v6 = vpop.f32.mrf.mxu1  ;;  %v6553_v57 = vld [vmem:[%s10728_s6 + $0x768] sm:$0xf0] }
 0x207   : > { %3800 = vmatpush.bf16.msrb.mxu0 %v6359_v54  ;;  %3813 = vmatpush.bf16.msrb.mxu1 %v6423_v3  ;;  %v6617_v54 = vld [vmem:[%s10728_s6 + $0x7e8] sm:$0xf0]  ;;  %v6556_v58 = vor.u32 %v7187_v53, %v6553_v57 }
 0x208   : > { %3826 = vmatpush.bf16.msrb.mxu2 %v6363_v7  ;;  %3839 = vmatpush.bf16.msrb.mxu3 %v6427_v18  ;;  %v10203_v3 = vadd.f32 %v2527_v62, %v2515_v14  ;;  %v6543_v7 = vld [vmem:[%s10728_s6 + $0x750] sm:$0xf]  ;;  %v7186_v18 = vld [vmem:[%s10728_s6 + $0x754] sm:$0xf0]  ;;  %v6620_v20 = vor.u32 %v7203_v15, %v6617_v54  ;;  %v7180_v62 = vld [vmem:[%s10728_s6 + $0x724] sm:$0xf0] }
 0x209   : > { %v6544_v26 = vor.u32 %v7186_v18, %v6543_v7  ;;  %v7179_v14 = vld [vmem:[%s10728_s6 + $0x724] sm:$0xf]  ;;  %v6585_v53 = vld [vmem:[%s10728_s6 + $0x7a8] sm:$0xf0]  ;;  %v6511_v7 = vld [vmem:[%s10728_s6 + $0x710] sm:$0xf] }
 0x20a   : > { %v7178_v18 = vld [vmem:[%s10728_s6 + $0x714] sm:$0xf0]  ;;  %v6588_v21 = vor.u32 %v7195_v8, %v6585_v53 }
 0x20b   : > { %3801 = vmatpush.bf16.msrb.mxu0 %v6351_v17  ;;  %3814 = vmatpush.bf16.msrb.mxu1 %v6415_v29  ;;  %v6535_v29 = vld [vmem:[%s10728_s6 + $0x740] sm:$0xf]  ;;  %v7218_v8 = vld [vmem:[%s10728_s6 + $0x854] sm:$0xf0] }
 0x20c   : > { %3827 = vmatpush.bf16.msrb.mxu2 %v6355_v31  ;;  %3840 = vmatpush.bf16.msrb.mxu3 %v6419_v32  ;;  %v6537_v31 = vld [vmem:[%s10728_s6 + $0x748] sm:$0xf0]  ;;  %v7199_v32 = vld [vmem:[%s10728_s6 + $0x7c4] sm:$0xf]  ;;  %v6536_v42 = vor.u32 %v7184_v9, %v6535_v29  ;;  %v6567_v29 = vld [vmem:[%s10728_s6 + $0x780] sm:$0xf] }
 0x20d   : > { %v2516_v28 = vpop.f32.mrf.mxu2  ;;  %v2529_v17 = vpop.f32.mrf.mxu3  ;;  %v6540_v16 = vor.u32 %v7183_v30, %v6537_v31  ;;  %v7192_v9 = vld [vmem:[%s10728_s6 + $0x784] sm:$0xf0]  ;;  %v7191_v30 = vld [vmem:[%s10728_s6 + $0x784] sm:$0xf] }
 0x20e   : > { %v6576_v28 = vor.u32 %v7194_v50, %v6575_v22  ;;  %v7176_v17 = vld [vmem:[%s10728_s6 + $0x704] sm:$0xf0]  ;;  %v6695_v22 = vld [vmem:[%s10728_s6 + $0x840] sm:$0xf] }
 0x20f   : > { %3802 = vmatpush.bf16.msrb.mxu0 %v6343_v60  ;;  %3815 = vmatpush.bf16.msrb.mxu1 %v6407_v25  ;;  %v2746_v33 = vpop.f32.mrf.mxu0  ;;  %v2759_v37 = vpop.f32.mrf.mxu1  ;;  %v6604_v60 = vor.u32 %v7199_v32, %v6601_v13  ;;  %v6591_v25 = vld [vmem:[%s10728_s6 + $0x7b0] sm:$0xf]  ;;  %v6569_v13 = vld [vmem:[%s10728_s6 + $0x788] sm:$0xf0]  ;;  %v7216_v50 = vld [vmem:[%s10728_s6 + $0x844] sm:$0xf0] }
 0x210   : > { %3828 = vmatpush.bf16.msrb.mxu2 %v6347_v48  ;;  %3841 = vmatpush.bf16.msrb.mxu3 %v6411_v52  ;;  %v2760_v40 = vadd.f32 %v2759_v37, %v2746_v33  ;;  %v6529_v48 = vld [vmem:[%s10728_s6 + $0x738] sm:$0xf0]  ;;  %v7197_v52 = vld [vmem:[%s10728_s6 + $0x7b4] sm:$0xf]  ;;  %v6592_v61 = vor.u32 %v7198_v44, %v6591_v25  ;;  %v6719_v33 = vld [vmem:[%s10728_s6 + $0x870] sm:$0xf] }
 0x211   : > { %v6532_v2 = vor.u32 %v7181_v34, %v6529_v48  ;;  %v7222_v37 = vld [vmem:[%s10728_s6 + $0x874] sm:$0xf0]  ;;  %v6785_v25 = vld [vmem:[%s10728_s6 + $0x8f8] sm:$0xf0]  ;;  %v6572_v34 = vor.u32 %v7191_v30, %v6569_v13  ;;  %v7213_v13 = vld [vmem:[%s10728_s6 + $0x834] sm:$0xf] }
 0x212   : > { %3803 = vmatmul.bf16.vlgmr.msrb.gmra.mxu0 %v9742_v63  ;;  %3816 = vmatmul.bf16.vlgmr.msrb.gmra.mxu1 %v9744_v0  ;;  %v10273_v55 = vadd.f32 %v2760_v40, %v10149_v39  ;;  %v6519_v39 = vld [vmem:[%s10728_s6 + $0x720] sm:$0xf]  ;;  %v6783_v40 = vld [vmem:[%s10728_s6 + $0x8f0] sm:$0xf]  ;;  %v6720_v48 = vor.u32 %v7222_v37, %v6719_v33  ;;  %v6689_v37 = vld [vmem:[%s10728_s6 + $0x838] sm:$0xf0] }
 0x213   : > { %4063 = vmatpush.bf16.msra.mxu0 %v6560_v56  ;;  %4076 = vmatpush.bf16.msra.mxu1 %v6624_v11  ;;  %v6593_v56 = vld [vmem:[%s10728_s6 + $0x7b8] sm:$0xf0]  ;;  %v6528_v11 = vor.u32 %v7182_v45, %v6527_v38  ;;  %v6568_v45 = vor.u32 %v7192_v9, %v6567_v29  ;;  %v6696_v9 = vor.u32 %v7216_v50, %v6695_v22  ;;  %v6727_v22 = vld [vmem:[%s10728_s6 + $0x880] sm:$0xf]  ;;  %v7224_v50 = vld [vmem:[%s10728_s6 + $0x884] sm:$0xf0] }
 0x214   : > { %4089 = vmatpush.bf16.msra.mxu2 %v6564_v19  ;;  %4102 = vmatpush.bf16.msra.mxu3 %v6628_v4  ;;  %v6596_v1 = vor.u32 %v7197_v52, %v6593_v56  ;;  %v6583_v19 = vld [vmem:[%s10728_s6 + $0x7a0] sm:$0xf]  ;;  %v7196_v4 = vld [vmem:[%s10728_s6 + $0x7a4] sm:$0xf0] }
 0x215   : > { %3829 = vmatmul.bf16.vlgmr.msrb.gmra.mxu2 %v9742_v63  ;;  %3842 = vmatmul.bf16.vlgmr.msrb.gmra.mxu3 %v9744_v0  ;;  %v6612_v63 = vor.u32 %v7201_v23, %v6609_v24  ;;  %v6599_v0 = vld [vmem:[%s10728_s6 + $0x7c0] sm:$0xf]  ;;  %v6513_v23 = vld [vmem:[%s10728_s6 + $0x718] sm:$0xf0] }
 0x216   : > { %v6600_v43 = vor.u32 %v7200_v12, %v6599_v0  ;;  %v6577_v24 = vld [vmem:[%s10728_s6 + $0x798] sm:$0xf0]  ;;  %v7175_v0 = vld [vmem:[%s10728_s6 + $0x704] sm:$0xf]  ;;  %v6505_v12 = vld [vmem:[%s10728_s6 + $0x708] sm:$0xf0] }
 0x217   : > { %4064 = vmatpush.bf16.msra.mxu0 %v6552_v59  ;;  %4077 = vmatpush.bf16.msra.mxu1 %v6616_v35  ;;  %v2748_v15 = vpop.f32.mrf.mxu0  ;;  %v2761_v54 = vpop.f32.mrf.mxu1  ;;  %v6520_v59 = vor.u32 %v7180_v62, %v6519_v39  ;;  %v6584_v35 = vor.u32 %v7196_v4, %v6583_v19  ;;  %v6508_v44 = vor.u32 %v7175_v0, %v6505_v12  ;;  %v6711_v56 = vld [vmem:[%s10728_s6 + $0x860] sm:$0xf]  ;;  %v6713_v19 = vld [vmem:[%s10728_s6 + $0x868] sm:$0xf0]  ;;  %v7235_v4 = vld [vmem:[%s10728_s6 + $0x8e4] sm:$0xf] }
 0x218   : > { %4090 = vmatpush.bf16.msra.mxu2 %v6556_v58  ;;  %4103 = vmatpush.bf16.msra.mxu3 %v6620_v20  ;;  %v2772_v5 = vpop.f32.mrf.mxu2  ;;  %v2785_v6 = vpop.f32.mrf.mxu3  ;;  %v6524_v20 = vor.u32 %v7179_v14, %v6521_v47  ;;  %v6775_v62 = vld [vmem:[%s10728_s6 + $0x8e0] sm:$0xf]  ;;  %v6777_v14 = vld [vmem:[%s10728_s6 + $0x8e8] sm:$0xf0]  ;;  %v6703_v47 = vld [vmem:[%s10728_s6 + $0x850] sm:$0xf] }
 0x219   : > { %v2786_v57 = vadd.f32 %v2785_v6, %v2772_v5  ;;  %v6767_v15 = vld [vmem:[%s10728_s6 + $0x8d0] sm:$0xf]  ;;  %v7234_v54 = vld [vmem:[%s10728_s6 + $0x8d4] sm:$0xf0] }
 0x21a   : > { %v7214_v0 = vld [vmem:[%s10728_s6 + $0x834] sm:$0xf0] }
 0x21b   : > { %4065 = vmatpush.bf16.msra.mxu0 %v6544_v26  ;;  %4078 = vmatpush.bf16.msra.mxu1 %v6608_v27  ;;  %v10315_v58 = vadd.f32 %v2786_v57, %v10203_v3  ;;  %v7193_v3 = vld [vmem:[%s10728_s6 + $0x794] sm:$0xf]  ;;  %v6503_v26 = vld [vmem:[%s10728_s6 + $0x700] sm:$0xf]  ;;  %v6512_v27 = vor.u32 %v7178_v18, %v6511_v7  ;;  %v6780_v57 = vor.u32 %v7235_v4, %v6777_v14  ;;  %v6769_v18 = vld [vmem:[%s10728_s6 + $0x8d8] sm:$0xf0] }
 0x21c   : > { %4091 = vmatpush.bf16.msra.mxu2 %v6548_v10  ;;  %4104 = vmatpush.bf16.msra.mxu3 %v6612_v63  ;;  %v6516_v10 = vor.u32 %v7177_v36, %v6513_v23  ;;  %v6580_v63 = vor.u32 %v7193_v3, %v6577_v24  ;;  %v6504_v38 = vor.u32 %v7176_v17, %v6503_v26  ;;  %v7233_v7 = vld [vmem:[%s10728_s6 + $0x8d4] sm:$0xf]  ;;  %v7215_v3 = vld [vmem:[%s10728_s6 + $0x844] sm:$0xf]  ;;  %v6697_v24 = vld [vmem:[%s10728_s6 + $0x848] sm:$0xf0] }
 0x21d   : > { %v6772_v23 = vor.u32 %v7233_v7, %v6769_v18  ;;  %v7231_v26 = vld [vmem:[%s10728_s6 + $0x8c4] sm:$0xf]  ;;  %v6700_v12 = vor.u32 %v7215_v3, %v6697_v24  ;;  %v6671_v4 = vld [vmem:[%s10728_s6 + $0x810] sm:$0xf]  ;;  %v7210_v14 = vld [vmem:[%s10728_s6 + $0x814] sm:$0xf0] }
 0x21e   : > { %v6663_v7 = vld [vmem:[%s10728_s6 + $0x800] sm:$0xf]  ;;  %v7208_v18 = vld [vmem:[%s10728_s6 + $0x804] sm:$0xf0]  ;;  %v7223_v3 = vld [vmem:[%s10728_s6 + $0x884] sm:$0xf] }
 0x21f   : > { %4066 = vmatpush.bf16.msra.mxu0 %v6536_v42  ;;  %4079 = vmatpush.bf16.msra.mxu1 %v6600_v43  ;;  %v7238_v42 = vld [vmem:[%s10728_s6 + $0x8f4] sm:$0xf0]  ;;  %v7221_v43 = vld [vmem:[%s10728_s6 + $0x874] sm:$0xf]  ;;  %v6729_v24 = vld [vmem:[%s10728_s6 + $0x888] sm:$0xf0] }
 0x220   : > { %4092 = vmatpush.bf16.msra.mxu2 %v6540_v16  ;;  %4105 = vmatpush.bf16.msra.mxu3 %v6604_v60  ;;  %v2774_v31 = vpop.f32.mrf.mxu2  ;;  %v2787_v32 = vpop.f32.mrf.mxu3  ;;  %v6721_v16 = vld [vmem:[%s10728_s6 + $0x878] sm:$0xf0]  ;;  %v7237_v60 = vld [vmem:[%s10728_s6 + $0x8f4] sm:$0xf]  ;;  %v6784_v52 = vor.u32 %v7238_v42, %v6783_v40 }
 0x221   : > { %v6788_v39 = vor.u32 %v7237_v60, %v6785_v25  ;;  %v6751_v31 = vld [vmem:[%s10728_s6 + $0x8b0] sm:$0xf]  ;;  %v7230_v32 = vld [vmem:[%s10728_s6 + $0x8b4] sm:$0xf0]  ;;  %v7229_v40 = vld [vmem:[%s10728_s6 + $0x8b4] sm:$0xf] }
 0x222   : > { %v6753_v42 = vld [vmem:[%s10728_s6 + $0x8b8] sm:$0xf0]  ;;  %v6743_v25 = vld [vmem:[%s10728_s6 + $0x8a0] sm:$0xf] }
 0x223   : > { %4067 = vmatpush.bf16.msra.mxu0 %v6528_v11  ;;  %4080 = vmatpush.bf16.msra.mxu1 %v6592_v61  ;;  %v7220_v11 = vld [vmem:[%s10728_s6 + $0x864] sm:$0xf0]  ;;  %v6724_v61 = vor.u32 %v7221_v43, %v6721_v16  ;;  %v6692_v16 = vor.u32 %v7213_v13, %v6689_v37  ;;  %v6756_v60 = vor.u32 %v7229_v40, %v6753_v42 }
 0x224   : > { %4093 = vmatpush.bf16.msra.mxu2 %v6532_v2  ;;  %4106 = vmatpush.bf16.msra.mxu3 %v6596_v1  ;;  %v7236_v2 = vld [vmem:[%s10728_s6 + $0x8e4] sm:$0xf0]  ;;  %v7219_v1 = vld [vmem:[%s10728_s6 + $0x864] sm:$0xf]  ;;  %v6712_v5 = vor.u32 %v7220_v11, %v6711_v56  ;;  %v6681_v56 = vld [vmem:[%s10728_s6 + $0x828] sm:$0xf0] }
 0x225   : > { %v6776_v6 = vor.u32 %v7236_v2, %v6775_v62  ;;  %v6716_v53 = vor.u32 %v7219_v1, %v6713_v19  ;;  %v7227_v11 = vld [vmem:[%s10728_s6 + $0x8a4] sm:$0xf] }
 0x227   : > { %4068 = vmatpush.bf16.msra.mxu0 %v6520_v59  ;;  %4081 = vmatpush.bf16.msra.mxu1 %v6584_v35  ;;  %v7217_v59 = vld [vmem:[%s10728_s6 + $0x854] sm:$0xf]  ;;  %v6705_v35 = vld [vmem:[%s10728_s6 + $0x858] sm:$0xf0] }
 0x228   : > { %4094 = vmatpush.bf16.msra.mxu2 %v6524_v20  ;;  %4107 = vmatpush.bf16.msra.mxu3 %v6588_v21  ;;  %v6704_v20 = vor.u32 %v7218_v8, %v6703_v47  ;;  %v6768_v21 = vor.u32 %v7234_v54, %v6767_v15  ;;  %v6708_v36 = vor.u32 %v7217_v59, %v6705_v35  ;;  %v6735_v8 = vld [vmem:[%s10728_s6 + $0x890] sm:$0xf]  ;;  %v6673_v15 = vld [vmem:[%s10728_s6 + $0x818] sm:$0xf0] }
 0x229   : > { %v6737_v54 = vld [vmem:[%s10728_s6 + $0x898] sm:$0xf0]  ;;  %v6672_v59 = vor.u32 %v7210_v14, %v6671_v4  ;;  %v4426_v4 = vld [vmem:[%s10730_s8 + $0x70] sm:$0xff] }
 0x22b   : > { %4069 = vmatpush.bf16.msra.mxu0 %v6512_v27  ;;  %4082 = vmatpush.bf16.msra.mxu1 %v6576_v28  ;;  %v6761_v27 = vld [vmem:[%s10728_s6 + $0x8c8] sm:$0xf0] }
 0x22c   : > { %4095 = vmatpush.bf16.msra.mxu2 %v6516_v10  ;;  %4108 = vmatpush.bf16.msra.mxu3 %v6580_v63  ;;  %v6687_v63 = vld [vmem:[%s10728_s6 + $0x830] sm:$0xf]  ;;  %v6764_v30 = vor.u32 %v7231_v26, %v6761_v27  ;;  %v6664_v26 = vor.u32 %v7208_v18, %v6663_v7  ;;  %v6728_v27 = vor.u32 %v7224_v50, %v6727_v22  ;;  %v4443_v7 = vld [vmem:[%s10730_s8 + $0xf8] sm:$0xff]  ;;  %v4441_v50 = vld [vmem:[%s10730_s8 + $0xe8] sm:$0xff] }
 0x22d   : > { %v6688_v43 = vor.u32 %v7214_v0, %v6687_v63  ;;  %v4442_v18 = vld [vmem:[%s10730_s8 + $0xf0] sm:$0xff] }
 0x22e   : > { %v4422_v22 = vld [vmem:[%s10730_s8 + $0x50] sm:$0xff] }
 0x22f   : > { %4070 = vmatpush.bf16.msra.mxu0 %v6504_v38  ;;  %4083 = vmatpush.bf16.msra.mxu1 %v6568_v45  ;;  %v3011_v28 = vpop.f32.mrf.mxu0  ;;  %v3024_v17 = vpop.f32.mrf.mxu1  ;;  %v6752_v38 = vor.u32 %v7230_v32, %v6751_v31  ;;  %v7212_v45 = vld [vmem:[%s10728_s6 + $0x824] sm:$0xf0] }
 0x230   : > { %4096 = vmatpush.bf16.msra.mxu2 %v6508_v44  ;;  %4109 = vmatpush.bf16.msra.mxu3 %v6572_v34  ;;  %v3025_v29 = vadd.f32 %v3024_v17, %v3011_v28  ;;  %v7228_v44 = vld [vmem:[%s10728_s6 + $0x8a4] sm:$0xf0]  ;;  %v7211_v34 = vld [vmem:[%s10728_s6 + $0x824] sm:$0xf]  ;;  %v6732_v17 = vor.u32 %v7223_v3, %v6729_v24  ;;  %v4439_v3 = vld [vmem:[%s10730_s8 + $0xd8] sm:$0xff] }
 0x231   : > { %v6744_v19 = vor.u32 %v7228_v44, %v6743_v25  ;;  %v10604_v24 = vld [vmem:[%s10729_s7 + $0x8] sm:$0x3] }
 0x232   : > { %4071 = vmatmul.bf16.vlgmr.msra.gmra.mxu0 %v9834_v51  ;;  %4084 = vmatmul.bf16.vlgmr.msra.gmra.mxu1 %v9843_v46  ;;  %v10475_v33 = vadd.f32 %v3025_v29, %v10273_v55  ;;  %v6679_v55 = vld [vmem:[%s10728_s6 + $0x820] sm:$0xf] }
 0x233   : > { %4323 = vmatpush.bf16.msrb.mxu0 %v6720_v48  ;;  %4336 = vmatpush.bf16.msrb.mxu1 %v6784_v52  ;;  %v6680_v1 = vor.u32 %v7212_v45, %v6679_v55  ;;  %v4159_v29 = vld [vmem:[#allocation1] sm:$0xff] }
 0x234   : > { %4349 = vmatpush.bf16.msrb.mxu2 %v6724_v61  ;;  %4362 = vmatpush.bf16.msrb.mxu3 %v6788_v39  ;;  %v6745_v61 = vld [vmem:[%s10728_s6 + $0x8a8] sm:$0xf0] }
 0x235   : > { %4097 = vmatmul.bf16.vlgmr.msra.gmra.mxu2 %v9834_v51  ;;  %4110 = vmatmul.bf16.vlgmr.msra.gmra.mxu3 %v9843_v46  ;;  %v6759_v51 = vld [vmem:[%s10728_s6 + $0x8c0] sm:$0xf]  ;;  %v7232_v46 = vld [vmem:[%s10728_s6 + $0x8c4] sm:$0xf0]  ;;  %v6748_v47 = vor.u32 %v7227_v11, %v6745_v61 }
 0x236   : > { %v6760_v10 = vor.u32 %v7232_v46, %v6759_v51  ;;  %v6665_v46 = vld [vmem:[%s10728_s6 + $0x808] sm:$0xf0] }
 0x237   : > { %4324 = vmatpush.bf16.msrb.mxu0 %v6712_v5  ;;  %4337 = vmatpush.bf16.msrb.mxu1 %v6776_v6  ;;  %v3013_v62 = vpop.f32.mrf.mxu0  ;;  %v3026_v2 = vpop.f32.mrf.mxu1  ;;  %v6684_v6 = vor.u32 %v7211_v34, %v6681_v56 }
 0x238   : > { %4350 = vmatpush.bf16.msrb.mxu2 %v6716_v53  ;;  %4363 = vmatpush.bf16.msrb.mxu3 %v6780_v57  ;;  %v3037_v48 = vpop.f32.mrf.mxu2  ;;  %v3050_v52 = vpop.f32.mrf.mxu3  ;;  %v7226_v53 = vld [vmem:[%s10728_s6 + $0x894] sm:$0xf0]  ;;  %v7209_v57 = vld [vmem:[%s10728_s6 + $0x814] sm:$0xf] }
 0x239   : > { %v3051_v39 = vadd.f32 %v3050_v52, %v3037_v48  ;;  %v6736_v35 = vor.u32 %v7226_v53, %v6735_v8 }
 0x23b   : > { %4325 = vmatpush.bf16.msrb.mxu0 %v6704_v20  ;;  %4338 = vmatpush.bf16.msrb.mxu1 %v6768_v21  ;;  %v3055_v5 = vadd.f32 %v3051_v39, %v10315_v58  ;;  %v7225_v58 = vld [vmem:[%s10728_s6 + $0x894] sm:$0xf]  ;;  %v6676_v20 = vor.u32 %v7209_v57, %v6673_v15 }
 0x23c   : > { %4351 = vmatpush.bf16.msrb.mxu2 %v6708_v36  ;;  %4364 = vmatpush.bf16.msrb.mxu3 %v6772_v23  ;;  %v6740_v21 = vor.u32 %v7225_v58, %v6737_v54  ;;  %v7207_v36 = vld [vmem:[%s10728_s6 + $0x804] sm:$0xf] }
 0x23d   : > { %v6668_v28 = vor.u32 %v7207_v36, %v6665_v46  ;;  %v4421_v36 = vld [vmem:[%s10730_s8 + $0x48] sm:$0xff]  ;;  %v4420_v46 = vld [vmem:[%s10730_s8 + $0x40] sm:$0xff] }
 0x23f   : > { %4326 = vmatpush.bf16.msrb.mxu0 %v6696_v9  ;;  %4339 = vmatpush.bf16.msrb.mxu1 %v6760_v10  ;;  %v4160_v9 = vld [vmem:[#allocation1 + $0x9] sm:$0xff] }
 0x240   : > { %4352 = vmatpush.bf16.msrb.mxu2 %v6700_v12  ;;  %4365 = vmatpush.bf16.msrb.mxu3 %v6764_v30  ;;  %v3039_v23 = vpop.f32.mrf.mxu2  ;;  %v3052_v51 = vpop.f32.mrf.mxu3 }
 0x241   : > { %v4440_v23 = vld [vmem:[%s10730_s8 + $0xe0] sm:$0xff] }
 0x243   : > { %4327 = vmatpush.bf16.msrb.mxu0 %v6688_v43  ;;  %4340 = vmatpush.bf16.msrb.mxu1 %v6752_v38 }
 0x244   : > { %4353 = vmatpush.bf16.msrb.mxu2 %v6692_v16  ;;  %4366 = vmatpush.bf16.msrb.mxu3 %v6756_v60 }
 0x247   : > { %4328 = vmatpush.bf16.msrb.mxu0 %v6680_v1  ;;  %4341 = vmatpush.bf16.msrb.mxu1 %v6744_v19  ;;  %v4427_v19 = vld [vmem:[%s10730_s8 + $0x78] sm:$0xff] }
 0x248   : > { %4354 = vmatpush.bf16.msrb.mxu2 %v6684_v6  ;;  %4367 = vmatpush.bf16.msrb.mxu3 %v6748_v47 }
 0x24b   : > { %4329 = vmatpush.bf16.msrb.mxu0 %v6672_v59  ;;  %4342 = vmatpush.bf16.msrb.mxu1 %v6736_v35  ;;  %v4425_v59 = vld [vmem:[%s10730_s8 + $0x68] sm:$0xff]  ;;  %v4424_v35 = vld [vmem:[%s10730_s8 + $0x60] sm:$0xff] }
 0x24c   : > { %4355 = vmatpush.bf16.msrb.mxu2 %v6676_v20  ;;  %4368 = vmatpush.bf16.msrb.mxu3 %v6740_v21  ;;  %v4423_v20 = vld [vmem:[%s10730_s8 + $0x58] sm:$0xff] }
 0x24f   : > { %4330 = vmatpush.bf16.msrb.mxu0 %v6664_v26  ;;  %4343 = vmatpush.bf16.msrb.mxu1 %v6728_v27  ;;  %v3279_v10 = vpop.f32.mrf.mxu0  ;;  %v3292_v63 = vpop.f32.mrf.mxu1  ;;  %v10609_v26 = vld [vmem:[%s10729_s7 + $0x4] sm:$0x3] }
 0x250   : > { %4356 = vmatpush.bf16.msrb.mxu2 %v6668_v28  ;;  %4369 = vmatpush.bf16.msrb.mxu3 %v6732_v17  ;;  %v3293_v0 = vadd.f32 %v3292_v63, %v3279_v10  ;;  %v4419_v28 = vld [vmem:[%s10730_s8 + $0x38] sm:$0xff]  ;;  %v4438_v17 = vld [vmem:[%s10730_s8 + $0xd0] sm:$0xff]  ;;  %v1899_v63 = vperm.slane %v10604_v24, 0 }
 0x252   : > { %4331 = vmatmul.bf16.vlgmr.msrb.gmra.mxu0 %v4159_v29  ;;  %4344 = vmatmul.bf16.vlgmr.msrb.gmra.mxu1 %v4160_v9  ;;  %v3322_v12 = vadd.f32 %v3293_v0, %v10475_v33 }
 0x253   : > { %4357 = vmatmul.bf16.vlgmr.msrb.gmra.mxu2 %v4159_v29  ;;  %4370 = vmatmul.bf16.vlgmr.msrb.gmra.mxu3 %v4160_v9  ;;  %v10620_v9 = vld [vmem:[%s10729_s7 + $0x6] sm:$0x3] }
 0x254   : > { %4445 = vmatpush.msra.mxu0 %v4427_v19  ;;  %4465 = vmatpush.msra.mxu1 %v4443_v7  ;;  %v4431_v7 = vld [vmem:[%s10730_s8 + $0x98] sm:$0xff] }
 0x256   : > { %4446 = vmatpush.msra.mxu0 %v4426_v4  ;;  %4466 = vmatpush.msra.mxu1 %v4442_v18 }
 0x257   : > { %v3281_v13 = vpop.f32.mrf.mxu0  ;;  %v3294_v37 = vpop.f32.mrf.mxu1 }
 0x258   : > { %v3305_v30 = vpop.f32.mrf.mxu2  ;;  %v3318_v31 = vpop.f32.mrf.mxu3  ;;  %4447 = vmatpush.msra.mxu0 %v4425_v59  ;;  %4467 = vmatpush.msra.mxu1 %v4441_v50  ;;  %v4603_v13 = vld [vmem:[%s10729_s7 + $0xa] sm:$0x3] }
 0x259   : > { %v3319_v32 = vadd.f32 %v3318_v31, %v3305_v30  ;;  %v4378_v30 = vperm.slane %v10609_v26, 0  ;;  %v4418_v31 = vld [vmem:[%s10730_s8 + $0x30] sm:$0xff] }
 0x25a   : > { %4448 = vmatpush.msra.mxu0 %v4424_v35  ;;  %4468 = vmatpush.msra.mxu1 %v4440_v23  ;;  %v4412_v35 = vld [vmem:[%s10730_s8] sm:$0xff] }
 0x25b   : > { %v3323_v40 = vadd.f32 %v3319_v32, %v3055_v5  ;;  %v4437_v32 = vld [vmem:[%s10730_s8 + $0xc8] sm:$0xff] }
 0x25c   : > { %4449 = vmatpush.msra.mxu0 %v4423_v20  ;;  %4469 = vmatpush.msra.mxu1 %v4439_v3 }
 0x25e   : > { %4450 = vmatpush.msra.mxu0 %v4422_v22  ;;  %4470 = vmatpush.msra.mxu1 %v4438_v17  ;;  %v4430_v22 = vld [vmem:[%s10730_s8 + $0x90] sm:$0xff] }
 0x260   : > { %v3307_v42 = vpop.f32.mrf.mxu2  ;;  %v3320_v43 = vpop.f32.mrf.mxu3  ;;  %4451 = vmatpush.msra.mxu0 %v4421_v36  ;;  %4471 = vmatpush.msra.mxu1 %v4437_v32  ;;  %v4444_v32 = vld [vmem:[%s10731_s9] sm:$0x1] }
 0x261   : > { %v4385_v42 = vperm.slane %v10620_v9, 0  ;;  %v4417_v43 = vld [vmem:[%s10730_s8 + $0x28] sm:$0xff] }
 0x262   : > { %4452 = vmatpush.msra.mxu0 %v4420_v46 }
 0x264   : > { %4453 = vmatpush.msra.mxu0 %v4419_v28 }
 0x266   : > { %4454 = vmatpush.msra.mxu0 %v4418_v31 }
 0x268   : > { %4455 = vmatpush.msra.mxu0 %v4417_v43 }
 0x26f   : > { %v3539_v38 = vpop.f32.mrf.mxu0  ;;  %v3552_v55 = vpop.f32.mrf.mxu1 }
 0x270   : > { %v3553_v45 = vadd.f32 %v3552_v55, %v3539_v38  ;;  %v4436_v38 = vld [vmem:[%s10730_s8 + $0xc0] sm:$0xff] }
 0x271   : > { %4472 = vmatpush.msra.mxu1 %v4436_v38 }
 0x272   : > { %v3582_v16 = vadd.f32 %v3553_v45, %v3322_v12  ;;  %v1903_v45 = vmul.f32 %v1899_v63, %v9601_v41  ;;  %v4415_v41 = vld [vmem:[%s10730_s8 + $0x18] sm:$0xff] }
 0x277   : > { %v3541_v34 = vpop.f32.mrf.mxu0  ;;  %v3554_v48 = vpop.f32.mrf.mxu1 }
 0x278   : > { %v3565_v60 = vpop.f32.mrf.mxu2  ;;  %v3578_v25 = vpop.f32.mrf.mxu3 }
 0x279   : > { %v3579_v44 = vadd.f32 %v3578_v25, %v3565_v60  ;;  %v4416_v25 = vld [vmem:[%s10730_s8 + $0x20] sm:$0xff] }
 0x27a   : > { %4456 = vmatpush.msra.mxu0 %v4416_v25 }
 0x27b   : > { %v10560_v52 = vadd.f32 %v3579_v44, %v3323_v40  ;;  %v4435_v44 = vld [vmem:[%s10730_s8 + $0xb8] sm:$0xff] }
 0x27c   : > { %4473 = vmatpush.msra.mxu1 %v4435_v44  ;;  %4457 = vmatpush.msra.mxu0 %v4415_v41 }
 0x280   : > { %v3567_v33 = vpop.f32.mrf.mxu2  ;;  %v3580_v56 = vpop.f32.mrf.mxu3 }
 0x28f   : > { %v3804_v11 = vpop.f32.mrf.mxu0  ;;  %v3817_v61 = vpop.f32.mrf.mxu1 }
 0x290   : > { %v3818_v21 = vadd.f32 %v3817_v61, %v3804_v11  ;;  %v4434_v11 = vld [vmem:[%s10730_s8 + $0xb0] sm:$0xff]  ;;  %v1900_v61 = vperm.slane %v10604_v24, 1  ;;  %v4428_v24 = vld [vmem:[%s10730_s8 + $0x80] sm:$0xff] }
 0x291   : > { %4474 = vmatpush.msra.mxu1 %v4434_v11 }
 0x292   : > { %v3847_v27 = vadd.f32 %v3818_v21, %v3582_v16  ;;  %v1906_v16 = vperm.slane %v4603_v13, 0 }
 0x294   : > { %v1910_v19 = vadd.f32 %v1906_v16, %v1903_v45 }
 0x297   : > { %v3806_v2 = vpop.f32.mrf.mxu0  ;;  %v3819_v1 = vpop.f32.mrf.mxu1 }
 0x298   : > { %v3830_v39 = vpop.f32.mrf.mxu2  ;;  %v3843_v62 = vpop.f32.mrf.mxu3  ;;  %v4379_v2 = vperm.slane %v10609_v26, 1 }
 0x299   : > { %v3844_v37 = vadd.f32 %v3843_v62, %v3830_v39 }
 0x29b   : > { %v3848_v34 = vadd.f32 %v3844_v37, %v10560_v52 }
 0x2a0   : > { %v3832_v14 = vpop.f32.mrf.mxu2  ;;  %v3845_v5 = vpop.f32.mrf.mxu3 }
 0x2a1   : > { %v4414_v14 = vld [vmem:[%s10730_s8 + $0x10] sm:$0xff]  ;;  %v4433_v5 = vld [vmem:[%s10730_s8 + $0xa8] sm:$0xff] }
 0x2a2   : > { %4458 = vmatpush.msra.mxu0 %v4414_v14  ;;  %4475 = vmatpush.msra.mxu1 %v4433_v5 }
 0x2af   : > { %v4072_v6 = vpop.f32.mrf.mxu0  ;;  %v4085_v47 = vpop.f32.mrf.mxu1 }
 0x2b0   : > { %v4086_v51 = vadd.f32 %v4085_v47, %v4072_v6  ;;  %v4386_v47 = vperm.slane %v10620_v9, 1 }
 0x2b2   : > { %v4115_v0 = vadd.f32 %v4086_v51, %v3847_v27  ;;  %v4429_v51 = vld [vmem:[%s10730_s8 + $0x88] sm:$0xff] }
 0x2b7   : > { %v4074_v57 = vpop.f32.mrf.mxu0  ;;  %v4087_v15 = vpop.f32.mrf.mxu1 }
 0x2b8   : > { %v4098_v8 = vpop.f32.mrf.mxu2  ;;  %v4111_v53 = vpop.f32.mrf.mxu3  ;;  %v4432_v57 = vld [vmem:[%s10730_s8 + $0xa0] sm:$0xff]  ;;  %v1904_v15 = vmul.f32 %v1900_v61, %v9611_v49 }
 0x2b9   : > { %v4112_v55 = vadd.f32 %v4111_v53, %v4098_v8  ;;  %v4413_v53 = vld [vmem:[%s10730_s8 + $0x8] sm:$0xff]  ;;  %4476 = vmatpush.msra.mxu1 %v4432_v57 }
 0x2ba   : > { %4459 = vmatpush.msra.mxu0 %v4413_v53 }
 0x2bb   : > { %v4116_v39 = vadd.f32 %v4112_v55, %v3848_v34  ;;  %4477 = vmatpush.msra.mxu1 %v4431_v7 }
 0x2bc   : > { %4460 = vmatpush.msra.mxu0 %v4412_v35 }
 0x2bd   : > { %4478 = vmatpush.msra.mxu1 %v4430_v22 }
 0x2bf   : > { %4479 = vmatpush.msra.mxu1 %v4429_v51 }
 0x2c0   : > { %v4100_v58 = vpop.f32.mrf.mxu2  ;;  %v4113_v54 = vpop.f32.mrf.mxu3 }
 0x2c1   : > { %v1907_v58 = vperm.slane %v4603_v13, 1  ;;  %4480 = vmatpush.msra.mxu1 %v4428_v24 }
 0x2c3   : > { %v1911_v50 = vadd.f32 %v1907_v58, %v1904_v15 }
 0x2cf   : > { %v4332_v29 = vpop.f32.mrf.mxu0  ;;  %v4345_v10 = vpop.f32.mrf.mxu1 }
 0x2d0   : > { %v4346_v12 = vadd.f32 %v4345_v10, %v4332_v29 }
 0x2d2   : > { %v4375_v40 = vadd.f32 %v4346_v12, %v4115_v0 }
 0x2d4   : > { %v4382_v60 = vmul.f32 %v4378_v30, %v4375_v40 }
 0x2d6   : > { %v4389_v48 = vadd.f32 %v4385_v42, %v4382_v60  ;;  %v4358_v33 = vpop.f32.mrf.mxu2  ;;  %v4371_v56 = vpop.f32.mrf.mxu3 }
 0x2d7   : > { %v4372_v62 = vadd.f32 %v4371_v56, %v4358_v33  ;;  %v4334_v52 = vpop.f32.mrf.mxu0  ;;  %v4347_v1 = vpop.f32.mrf.mxu1 }
 0x2d8   : > { %v4391_v4 = vmax.f32 %v4389_v48, 0.0 }
 0x2d9   : > { %v4376_v6 = vadd.f32 %v4372_v62, %v4116_v39 }
 0x2da   : > { %v4393_v8 = vadd.f32 %v4391_v4, %v1910_v19 }
 0x2db   : > { %v4383_v54 = vmul.f32 %v4379_v2, %v4376_v6 }
 0x2dc   : > { %v4396_v59 = vsel %vm4395_vm0, %v4393_v8, 0.0 }
 0x2dd   : > { %v4397_v18 = vrot.slane %v4396_v59, 4  ;;  %v4390_v20 = vadd.f32 %v4386_v47, %v4383_v54 }
 0x2de   : > { %v4360_v21 = vpop.f32.mrf.mxu2  ;;  %v4373_v49 = vpop.f32.mrf.mxu3 }
 0x2df   : > { %v4398_v36 = vadd.f32 %v4397_v18, %v4396_v59  ;;  %v4392_v23 = vmax.f32 %v4390_v20, 0.0 }
 0x2e1   : > { %v4399_v46 = vrot.slane %v4398_v36, 2  ;;  %v4394_v3 = vadd.f32 %v4392_v23, %v1911_v50 }
 0x2e3   : > { %v4400_v26 = vadd.f32 %v4399_v46, %v4398_v36  ;;  %v4403_v27 = vsel %vm4395_vm0, %v4394_v3, 0.0 }
 0x2e4   : > { %v4404_v28 = vrot.slane %v4403_v27, 4 }
 0x2e5   : > { %v4401_v17 = vrot.slane %v4400_v26, 1 }
 0x2e6   : > { %v4405_v29 = vadd.f32 %v4404_v28, %v4403_v27 }
 0x2e7   : > { %v4402_v9 = vadd.f32 %v4401_v17, %v4400_v26 }
 0x2e8   : > { %v4406_v10 = vrot.slane %v4405_v29, 2 }
 0x2e9   : > { %v4410_v63 = vmul.f32 0.25, %v4402_v9 }
 0x2ea   : > { %v4407_v0 = vadd.f32 %v4406_v10, %v4405_v29 }
 0x2eb   : > { %4461 = vmatmul.f32.vlgmr.msra.gmra.mxu0 %v4410_v63 }
 0x2ec   : > { %v4408_v12 = vrot.slane %v4407_v0, 1 }
 0x2ee   : > { %v4409_v30 = vadd.f32 %v4408_v12, %v4407_v0 }
 0x2f0   : > { %v4411_v31 = vmul.f32 0.25, %v4409_v30 }
 0x2f2   : > { %4481 = vmatmul.f32.vlgmr.msra.gmra.mxu1 %v4411_v31 }
 0x368   : > { %v4462_v13 = vpop.f32.mrf.mxu0 }
 0x369   : > { %v4463_v37 = vadd.f32 %v4462_v13, %v4444_v32 }
 0x36f   : > { %v4482_v40 = vpop.f32.mrf.mxu1 }
 0x370   : > { %v4483_v42 = vadd.f32 %v4482_v40, %v4463_v37 }
 0x372   : > { %4486 = vst.msk [vmem:[%s396_s18] sm:$0x1] %vm4485_vm1, %v4483_v42 }
 0x373   : > { %7307 = shalt.err (!%p7304_p3)
}
 0x374   : > { %7240 = dma.vmem_to_hbm [thread:$0]  (%p7438_p5), %s4499_s28, 16, %s4501_s29, %s4488_s30  }
 0x375 PF: > { %p7246_p4 = scmp.ge.s32.totalorder %s7342_s16, 2  ;;  %s4512_s21 = sand.u32 1, %s7330_s13  }
 0x376   : > { %s4513_s15 = scalar_lea.sflag [#allocation4], %s4512_s21 }
 0x377   : > { %p7243_p7 = pnand %p7246_p4, %p7442_p6 }
 0x379   : > { %p7244_p8 = pneg %p7243_p7 }
 0x37b   : > { %7325 = dma.done.wait (%p7244_p8), %s4513_s15, 16  }
 0x37c   : > { %7327 = vsyncadd (%p7244_p8), %s4513_s15, 4294967280  ;;  %s10750_s20 = sld [smem:[#allocation6_spill]]  ;;  %p20_p9 = scmp.ge.s32.totalorder %s7425_s19, 4  }
 0x37d   : > { %s10751_s15 = sld [smem:[#allocation7_spill]]  ;;  %s10752_s13 = smov %s7334_s14 }
 0x37e   : > { %s10754_s16 = smov %s7425_s19  ;;  %22 = sbr.rel (!%p20_p9) target bundleno = 7 (0x7), region = 152 }
 0x382   : > { %s10753_s14 = smov %s10750_s20 }
 0x383   :  { %4518 = vsyncpa [#allocation4], 1 }
 0x384   :  { %4520 = vsyncpa [#allocation4 + $0x1], 1 }

</bundles_post_ra>
